<compile_context>
chip_gen: v5e
topology: v5e:2x2
jax: 0.10.0
libtpu: 0.0.40
codegen_flags: <defaults>
</compile_context>

<pallas_src>
import functools

import jax
import jax.numpy as jnp
import numpy as np
from jax import lax
from jax.experimental import pallas as pl
from jax.experimental.pallas import tpu as pltpu

EPS = 1e-5
LANE = 128        # channel dims are padded to a multiple of the TPU lane width


def _round_up(x, m):
    return (x + m - 1) // m * m


# ----------------------------- fused Pallas kernel -------------------------- #

def _basic_block_kernel(*refs, H, W, W2p, out1_off, row_tile, shortcut):
    """relu(bn2(conv2(relu(bn1(conv1(x))))) + shortcut(x)) for one image.

    Spatial layout: the input is zero-padded to (H+3, W2p) with W2p =
    round_up(W+2, 8) and flattened, so a 3x3 tap at (kh, kw) is the contiguous
    slice starting at kh*W2p + kw — one slice feeding one MXU matmul, with
    slice starts ≡ kw (mod 8).  Within each W2p-wide output row only the first
    W columns are valid; the trailing "wide" columns are masked to zero so the
    conv1 intermediate doubles as conv2's zero-padded input, and are cropped
    in the wrapper for the final output.
    """
    if shortcut == "proj":
        xf, w1, s1, b1, w2, s2, b2, ws, ss, bs, o, h1 = refs
    else:
        xf, w1, s1, b1, w2, s2, b2, o, h1 = refs

    f32 = jnp.float32
    Lw = H * W2p
    cp = w1.shape[-1]
    L1 = h1.shape[0]

    # Zero ONLY the top/bottom halo rows of the conv1 intermediate.  Interior
    # rows (incl. the masked wide columns) are fully rewritten below every grid
    # step.  Done every step (cheap) so it stays correct if the "parallel"
    # batch axis is split across TensorCores (per-core scratch).
    h1[:out1_off, :] = jnp.zeros((out1_off, cp), h1.dtype)
    h1[out1_off + Lw:, :] = jnp.zeros((L1 - out1_off - Lw, cp), h1.dtype)

    # Hoisted (tiny) folded-BN scale/bias loads.
    s1v, b1v = s1[...], b1[...]
    s2v, b2v = s2[...], b2[...]

    # Static row tiles (Lw and row_tile are multiples of 8).
    tiles = []
    r0 = 0
    while r0 < Lw:
        tr = min(row_tile, Lw - r0)
        tiles.append((r0, tr))
        r0 += tr

    def conv9(load, w_ref):
        # Chain the 9 tap matmuls as one expression: partial sums stay in
        # registers / the MXU result buffer — no full-size accumulator RMW.
        acc = None
        for t in range(9):
            kh, kw = divmod(t, 3)
            d = jnp.dot(load(kh * W2p + kw), w_ref[t],
                        preferred_element_type=f32)
            acc = d if acc is None else acc + d
        return acc

    # ---- conv1 (3x3) + BN1 + ReLU -> VMEM-resident padded intermediate ----
    for r0, tr in tiles:
        acc1 = conv9(
            lambda off, r0=r0, tr=tr: xf[0, off + r0:off + r0 + tr, :], w1)
        y1 = jnp.maximum(acc1 * s1v + b1v, 0.0)        # folded BN + ReLU (f32)
        # Zero the row-wrap ("wide") columns so they double as conv2's width pad.
        ridx = lax.broadcasted_iota(jnp.int32, (tr, cp), 0) + r0
        y1 = jnp.where((ridx % W2p) < W, y1, 0.0)
        h1[out1_off + r0:out1_off + r0 + tr, :] = y1.astype(h1.dtype)

    # ---- conv2 (3x3) + BN2 + shortcut + ReLU (reads h1 from VMEM) ----
    base2 = out1_off - (W2p + 1)
    if shortcut == "proj":
        wsv, ssv, bsv = ws[...], ss[...], bs[...]
    for r0, tr in tiles:
        acc2 = conv9(
            lambda off, r0=r0, tr=tr:
                h1[base2 + off + r0:base2 + off + r0 + tr, :], w2)
        y2 = acc2 * s2v + b2v
        if shortcut == "proj":               # 1x1 conv + BN on the (padded) input
            xs = xf[0, W2p + 1 + r0:W2p + 1 + r0 + tr, :]
            y2 = y2 + (jnp.dot(xs, wsv, preferred_element_type=f32) * ssv + bsv)
        elif shortcut == "identity":
            # NOTE: residual uses x in the kernel input dtype (bf16 in the fast
            # mode); within the stated bf16 tolerance.
            y2 = y2 + xf[0, W2p + 1 + r0:W2p + 1 + r0 + tr, :].astype(f32)
        # shortcut == "none": residual add skipped entirely.
        o[0, r0:r0 + tr, :] = jnp.maximum(y2, 0.0).astype(o.dtype)


# ----------------------------- pallas_call wrapper -------------------------- #

def _fused_block_call(xf, w1, s1, b1, w2, s2, b2, proj_args, *,
                      H, W, W2p, shortcut):
    N, Lp, cpi = xf.shape
    cp = w1.shape[-1]
    Lw = H * W2p
    out1_off = _round_up(W2p + 1, 8)      # >= W2p+1 for any W; sublane-aligned
    L1 = out1_off + Lw + W2p + 8          # + bottom halo; multiple of 8
    # Per-tile f32 partial-sum footprint <= ~128 KiB (register/MRF friendly).
    row_tile = min(Lw, max(64, (32768 // cp) // 8 * 8))

    chan = lambda n: (0, 0)
    in_specs = [
        pl.BlockSpec((1, Lp, cpi), lambda n: (n, 0, 0)),    # padded, flattened image
        pl.BlockSpec((9, cpi, cp), lambda n: (0, 0, 0)),    # conv1 taps
        pl.BlockSpec((1, cp), chan), pl.BlockSpec((1, cp), chan),
        pl.BlockSpec((9, cp, cp), lambda n: (0, 0, 0)),     # conv2 taps
        pl.BlockSpec((1, cp), chan), pl.BlockSpec((1, cp), chan),
    ]
    args = [xf, w1, s1, b1, w2, s2, b2]
    if shortcut == "proj":
        ws, ss, bs = proj_args
        in_specs += [pl.BlockSpec((cpi, cp), chan),
                     pl.BlockSpec((1, cp), chan), pl.BlockSpec((1, cp), chan)]
        args += [ws, ss, bs]

    # Explicit VMEM budget: double-buffered IO + weights + the h1 scratch.
    ib = xf.dtype.itemsize
    wb = w1.dtype.itemsize
    est = (2 * Lp * cpi * ib + 2 * Lw * cp * 4
           + 2 * 9 * (cpi + cp) * cp * wb + 8 * cp * 4
           + L1 * cp * wb)
    if shortcut == "proj":
        est += 2 * (cpi * cp * wb + 2 * cp * 4)
    vmem_limit = int(min(128 * 1024 * 1024, max(32 * 1024 * 1024, 2 * est)))

    kern = functools.partial(_basic_block_kernel, H=H, W=W, W2p=W2p,
                             out1_off=out1_off, row_tile=row_tile,
                             shortcut=shortcut)
    return pl.pallas_call(
        kern,
        out_shape=jax.ShapeDtypeStruct((N, Lw, cp), jnp.float32),
        grid=(N,),
        in_specs=in_specs,
        out_specs=pl.BlockSpec((1, Lw, cp), lambda n: (n, 0, 0)),
        scratch_shapes=[pltpu.VMEM((L1, cp), w1.dtype)],   # conv1 result (padded)
        compiler_params=pltpu.CompilerParams(
            dimension_semantics=("parallel",),
            vmem_limit_bytes=vmem_limit),
    )(*args)


# ----------------------------- parameters ----------------------------------- #

def init_basic_block_params(key, in_planes, planes, stride=1):
    assert stride == 1, "kernels implement the stride=1 BasicBlock"
    keys = jax.random.split(key, 4)

    def bn_init(k, c):
        k1, k2, k3, k4 = jax.random.split(k, 4)
        gamma = jax.random.uniform(k1, (c,), jnp.float32, 0.5, 1.5)
        beta = 0.1 * jax.random.normal(k2, (c,), jnp.float32)
        mean = 0.1 * jax.random.normal(k3, (c,), jnp.float32)
        var = jax.random.uniform(k4, (c,), jnp.float32, 0.5, 1.5)
        return gamma, beta, mean, var

    p = {
        "w1": 0.2 * jax.random.normal(keys[0], (planes, in_planes, 3, 3), jnp.float32),
        "bn1": bn_init(keys[1], planes),
        "w2": 0.2 * jax.random.normal(keys[2], (planes, planes, 3, 3), jnp.float32),
        "bn2": bn_init(keys[3], planes),
    }
    if stride != 1 or in_planes != planes:   # projection shortcut: 1x1 conv + BN
        k5, k6 = jax.random.split(jax.random.fold_in(key, 99), 2)
        p["ws"] = 0.2 * jax.random.normal(k5, (planes, in_planes, 1, 1), jnp.float32)
        p["bns"] = bn_init(k6, planes)
    return p


def _fold_bn(bn, cp):
    gamma, beta, mean, var = bn
    scale = gamma / jnp.sqrt(var + EPS)
    bias = beta - mean * scale
    pad = cp - scale.shape[0]
    return (jnp.pad(scale, (0, pad))[None, :].astype(jnp.float32),
            jnp.pad(bias, (0, pad))[None, :].astype(jnp.float32))


def prepare_block_params(params, compute_dtype=jnp.bfloat16):
    """One-time conversion to kernel layout: tap-major, channel-padded to a
    lane multiple, folded eval-mode BatchNorm, matmul weights in compute_dtype
    (bf16 by default for the fast MXU path; accumulation stays f32)."""
    cout, cin = params["w1"].shape[:2]
    cpi, cp = _round_up(cin, LANE), _round_up(cout, LANE)

    def conv3x3(w, ci, ci_p):
        w = jnp.transpose(w, (2, 3, 1, 0)).reshape(9, ci, cout)
        return jnp.pad(w, ((0, 0), (0, ci_p - ci), (0, cp - cout))).astype(compute_dtype)

    prep = {
        "cin": cin, "cout": cout,
        "w1": conv3x3(params["w1"], cin, cpi),
        "w2": conv3x3(params["w2"], cout, cp),
        "s1b1": _fold_bn(params["bn1"], cp),
        "s2b2": _fold_bn(params["bn2"], cp),
    }
    if "ws" in params:
        ws = jnp.transpose(params["ws"][:, :, 0, 0], (1, 0))          # (Cin, Cout)
        prep["ws"] = jnp.pad(ws, ((0, cpi - cin), (0, cp - cout))).astype(compute_dtype)
        prep["ssbs"] = _fold_bn(params["bns"], cp)
    return prep


# ----------------------------- public forward ------------------------------- #

def basic_block_pallas(prep, x_nchw, shortcut_flag=True):
    """Pallas forward. Input/output NCHW, like the PyTorch module.
    (NCHW<->NHWC boundary transposes kept to match the module interface.)"""
    compute_dtype = prep["w1"].dtype
    x = jnp.transpose(x_nchw, (0, 2, 3, 1))                 # NCHW -> NHWC
    N, H, W, cin = x.shape
    cout = prep["cout"]
    cpi, cp = prep["w1"].shape[1], prep["w1"].shape[2]
    assert cin == prep["cin"]

    if not shortcut_flag:
        shortcut = "none"
    elif "ws" in prep:
        shortcut = "proj"
    else:
        assert cin == cout
        shortcut = "identity"

    # Single pad of the input (spatial halo + wide-row fill + lane-padded
    # channels), done in the matmul compute dtype (bf16 by default -> half the
    # input HBM DMA), then flatten (H+3, W2p) so every 3x3 tap in the kernel is
    # one contiguous, 8-phase-aligned slice + one MXU matmul.  The conv1
    # intermediate never touches HBM; its padding lives in a VMEM scratch.
    # TODO(synk): for small native cin, DMA at native width and pad in VMEM
    #             instead of shipping zero lanes from HBM.
    W2p = _round_up(W + 2, 8)
    xp = jnp.pad(x.astype(compute_dtype),
                 ((0, 0), (1, 2), (1, W2p - W - 1), (0, cpi - cin)))
    xf = xp.reshape(N, (H + 3) * W2p, cpi)

    s1, b1 = prep["s1b1"]
    s2, b2 = prep["s2b2"]
    proj_args = (prep["ws"],) + prep["ssbs"] if shortcut == "proj" else None

    out = _fused_block_call(xf, prep["w1"], s1, b1, prep["w2"], s2, b2,
                            proj_args, H=H, W=W, W2p=W2p, shortcut=shortcut)

    # Crop the wide / lane-padded output, return NCHW like the PyTorch module.
    out = out.reshape(N, H, W2p, cp)[:, :, :W, :cout]
    return jnp.transpose(out, (0, 3, 1, 2))


# ----------------------------- pure-JAX reference --------------------------- #

def basic_block_ref(params, x, shortcut_flag=True):
    dn = ("NCHW", "OIHW", "NCHW")

    def bn(y, bnp):
        g, b, m, v = bnp
        g, b, m, v = (t[None, :, None, None] for t in (g, b, m, v))
        return (y - m) / jnp.sqrt(v + EPS) * g + b

    out = lax.conv_general_dilated(x, params["w1"], (1, 1), ((1, 1), (1, 1)),
                                   dimension_numbers=dn)
    out = jax.nn.relu(bn(out, params["bn1"]))
    out = lax.conv_general_dilated(out, params["w2"], (1, 1), ((1, 1), (1, 1)),
                                   dimension_numbers=dn)
    out = bn(out, params["bn2"])
    if shortcut_flag:
        if "ws" in params:
            sc = lax.conv_general_dilated(x, params["ws"], (1, 1),
                                          ((0, 0), (0, 0)), dimension_numbers=dn)
            sc = bn(sc, params["bns"])
        else:
            sc = x
        out = out + sc
    return jax.nn.relu(out)


# ---------------------------------- main ------------------------------------ #

if __name__ == "__main__":
    key = jax.random.PRNGKey(0)
    kx1, kx2, kp1, kp2 = jax.random.split(key, 4)

    # Case 1: identity shortcut (in_planes == planes, stride=1).
    x1 = jax.random.normal(kx1, (2, 8, 16, 16), jnp.float32)           # NCHW
    p1 = init_basic_block_params(kp1, in_planes=8, planes=8)
    r1 = jax.block_until_ready(basic_block_ref(p1, x1))

    # f32 matmul mode: tight check of the fused indexing / padding math.
    prep1_f32 = prepare_block_params(p1, compute_dtype=jnp.float32)
    y1 = jax.block_until_ready(basic_block_pallas(prep1_f32, x1))
    np.testing.assert_allclose(np.asarray(y1), np.asarray(r1), rtol=2e-3, atol=2e-3)

    # bf16 matmul mode (f32 accumulate + f32 BN epilogue): fast MXU config.
    prep1_bf16 = prepare_block_params(p1)
    y1b = jax.block_until_ready(basic_block_pallas(prep1_bf16, x1))
    np.testing.assert_allclose(np.asarray(y1b), np.asarray(r1), rtol=5e-2, atol=5e-2)

    # shortcut_flag=False: residual add skipped entirely inside the kernel.
    y1n = jax.block_until_ready(basic_block_pallas(prep1_f32, x1, shortcut_flag=False))
    r1n = jax.block_until_ready(basic_block_ref(p1, x1, shortcut_flag=False))
    np.testing.assert_allclose(np.asarray(y1n), np.asarray(r1n), rtol=2e-3, atol=2e-3)

    # Case 2: projection shortcut (in_planes != planes, stride=1).
    x2 = jax.random.normal(kx2, (2, 4, 16, 16), jnp.float32)           # NCHW
    p2 = init_basic_block_params(kp2, in_planes=4, planes=8)
    r2 = jax.block_until_ready(basic_block_ref(p2, x2))

    prep2_f32 = prepare_block_params(p2, compute_dtype=jnp.float32)
    y2 = jax.block_until_ready(basic_block_pallas(prep2_f32, x2))
    np.testing.assert_allclose(np.asarray(y2), np.asarray(r2), rtol=2e-3, atol=2e-3)

    prep2_bf16 = prepare_block_params(p2)
    y2b = jax.block_until_ready(basic_block_pallas(prep2_bf16, x2))
    np.testing.assert_allclose(np.asarray(y2b), np.asarray(r2), rtol=5e-2, atol=5e-2)

    print("KERNEL_OK")
</pallas_src>

<mosaic_0001>
module attributes {stable_mosaic.version = 11 : i64} {
  func.func @_basic_block_kernel(%arg0: i32, %arg1: memref<1x456x128xf32, #tpu.memory_space<vmem>>, %arg2: memref<9x128x128xf32, #tpu.memory_space<vmem>>, %arg3: memref<1x128xf32, #tpu.memory_space<vmem>>, %arg4: memref<1x128xf32, #tpu.memory_space<vmem>>, %arg5: memref<9x128x128xf32, #tpu.memory_space<vmem>>, %arg6: memref<1x128xf32, #tpu.memory_space<vmem>>, %arg7: memref<1x128xf32, #tpu.memory_space<vmem>>, %arg8: memref<1x384x128xf32, #tpu.memory_space<vmem>>, %arg9: memref<448x128xf32, #tpu.memory_space<vmem>>) attributes {dimension_semantics = [#tpu.dimension_semantics<parallel>], iteration_bounds = array<i64: 2>, scalar_prefetch = 0 : i64, scratch_operands = 1 : i64, tpu.core_type = #tpu.core_type<tc>, window_params = [{transform_indices = @transform_0, window_bounds = array<i64: 1, 456, 128>}, {pipeline_mode = #tpu.pipeline_mode<synchronous>, transform_indices = @transform_1, window_bounds = array<i64: 9, 128, 128>}, {pipeline_mode = #tpu.pipeline_mode<synchronous>, transform_indices = @transform_2, window_bounds = array<i64: 1, 128>}, {pipeline_mode = #tpu.pipeline_mode<synchronous>, transform_indices = @transform_3, window_bounds = array<i64: 1, 128>}, {pipeline_mode = #tpu.pipeline_mode<synchronous>, transform_indices = @transform_4, window_bounds = array<i64: 9, 128, 128>}, {pipeline_mode = #tpu.pipeline_mode<synchronous>, transform_indices = @transform_5, window_bounds = array<i64: 1, 128>}, {pipeline_mode = #tpu.pipeline_mode<synchronous>, transform_indices = @transform_6, window_bounds = array<i64: 1, 128>}, {transform_indices = @transform_7, window_bounds = array<i64: 1, 384, 128>}]} {
    %cst = arith.constant 0.000000e+00 : f32
    %0 = vector.broadcast %cst : f32 to vector<32x128xf32>
    %c0 = arith.constant 0 : index
    %c0_0 = arith.constant 0 : index
    %1 = vector.load %arg9[%c0, %c0_0] : memref<448x128xf32, #tpu.memory_space<vmem>>, vector<32x128xf32>
    tpu.vector_store %arg9[%c0, %c0_0], %0 {strides = array<i32>} : memref<448x128xf32, #tpu.memory_space<vmem>>, vector<32x128xf32>,
    %cst_1 = arith.constant 0.000000e+00 : f32
    %2 = vector.broadcast %cst_1 : f32 to vector<32x128xf32>
    %c416 = arith.constant 416 : index
    %c0_2 = arith.constant 0 : index
    %3 = vector.load %arg9[%c416, %c0_2] : memref<448x128xf32, #tpu.memory_space<vmem>>, vector<32x128xf32>
    tpu.vector_store %arg9[%c416, %c0_2], %2 {strides = array<i32>} : memref<448x128xf32, #tpu.memory_space<vmem>>, vector<32x128xf32>,
    %c0_3 = arith.constant 0 : index
    %c0_4 = arith.constant 0 : index
    %4 = vector.load %arg3[%c0_3, %c0_4] : memref<1x128xf32, #tpu.memory_space<vmem>>, vector<1x128xf32>
    %c0_5 = arith.constant 0 : index
    %c0_6 = arith.constant 0 : index
    %5 = vector.load %arg4[%c0_5, %c0_6] : memref<1x128xf32, #tpu.memory_space<vmem>>, vector<1x128xf32>
    %c0_7 = arith.constant 0 : index
    %c0_8 = arith.constant 0 : index
    %6 = vector.load %arg6[%c0_7, %c0_8] : memref<1x128xf32, #tpu.memory_space<vmem>>, vector<1x128xf32>
    %c0_9 = arith.constant 0 : index
    %c0_10 = arith.constant 0 : index
    %7 = vector.load %arg7[%c0_9, %c0_10] : memref<1x128xf32, #tpu.memory_space<vmem>>, vector<1x128xf32>
    %c0_11 = arith.constant 0 : index
    %c0_12 = arith.constant 0 : index
    %c0_13 = arith.constant 0 : index
    %8 = vector.load %arg1[%c0_11, %c0_12, %c0_13] : memref<1x456x128xf32, #tpu.memory_space<vmem>>, vector<1x256x128xf32>
    %9 = vector.shape_cast %8 : vector<1x256x128xf32> to vector<256x128xf32>
    %c0_14 = arith.constant 0 : index
    %c0_15 = arith.constant 0 : index
    %c0_16 = arith.constant 0 : index
    %10 = vector.load %arg2[%c0_14, %c0_15, %c0_16] : memref<9x128x128xf32, #tpu.memory_space<vmem>>, vector<1x128x128xf32>
    %11 = vector.shape_cast %10 : vector<1x128x128xf32> to vector<128x128xf32>
    %cst_17 = arith.constant dense<0.000000e+00> : vector<256x128xf32>
    %12 = tpu.matmul %9, %11, %cst_17 {dimension_numbers = #tpu.dot_dimension_numbers<[1], [0], [0], [1], [0, 0, 1, 1], [], []>} : vector<256x128xf32>, vector<128x128xf32>, vector<256x128xf32> -> vector<256x128xf32>
    %c0_18 = arith.constant 0 : index
    %c1 = arith.constant 1 : index
    %c0_19 = arith.constant 0 : index
    %13 = vector.load %arg1[%c0_18, %c1, %c0_19] : memref<1x456x128xf32, #tpu.memory_space<vmem>>, vector<1x256x128xf32>
    %14 = vector.shape_cast %13 : vector<1x256x128xf32> to vector<256x128xf32>
    %c1_20 = arith.constant 1 : index
    %c0_21 = arith.constant 0 : index
    %c0_22 = arith.constant 0 : index
    %15 = vector.load %arg2[%c1_20, %c0_21, %c0_22] : memref<9x128x128xf32, #tpu.memory_space<vmem>>, vector<1x128x128xf32>
    %16 = vector.shape_cast %15 : vector<1x128x128xf32> to vector<128x128xf32>
    %cst_23 = arith.constant dense<0.000000e+00> : vector<256x128xf32>
    %17 = tpu.matmul %14, %16, %cst_23 {dimension_numbers = #tpu.dot_dimension_numbers<[1], [0], [0], [1], [0, 0, 1, 1], [], []>} : vector<256x128xf32>, vector<128x128xf32>, vector<256x128xf32> -> vector<256x128xf32>
    %18 = arith.addf %12, %17 : vector<256x128xf32>
    %c0_24 = arith.constant 0 : index
    %c2 = arith.constant 2 : index
    %c0_25 = arith.constant 0 : index
    %19 = vector.load %arg1[%c0_24, %c2, %c0_25] : memref<1x456x128xf32, #tpu.memory_space<vmem>>, vector<1x256x128xf32>
    %20 = vector.shape_cast %19 : vector<1x256x128xf32> to vector<256x128xf32>
    %c2_26 = arith.constant 2 : index
    %c0_27 = arith.constant 0 : index
    %c0_28 = arith.constant 0 : index
    %21 = vector.load %arg2[%c2_26, %c0_27, %c0_28] : memref<9x128x128xf32, #tpu.memory_space<vmem>>, vector<1x128x128xf32>
    %22 = vector.shape_cast %21 : vector<1x128x128xf32> to vector<128x128xf32>
    %cst_29 = arith.constant dense<0.000000e+00> : vector<256x128xf32>
    %23 = tpu.matmul %20, %22, %cst_29 {dimension_numbers = #tpu.dot_dimension_numbers<[1], [0], [0], [1], [0, 0, 1, 1], [], []>} : vector<256x128xf32>, vector<128x128xf32>, vector<256x128xf32> -> vector<256x128xf32>
    %24 = arith.addf %18, %23 : vector<256x128xf32>
    %c0_30 = arith.constant 0 : index
    %c24 = arith.constant 24 : index
    %c0_31 = arith.constant 0 : index
    %25 = vector.load %arg1[%c0_30, %c24, %c0_31] : memref<1x456x128xf32, #tpu.memory_space<vmem>>, vector<1x256x128xf32>
    %26 = vector.shape_cast %25 : vector<1x256x128xf32> to vector<256x128xf32>
    %c3 = arith.constant 3 : index
    %c0_32 = arith.constant 0 : index
    %c0_33 = arith.constant 0 : index
    %27 = vector.load %arg2[%c3, %c0_32, %c0_33] : memref<9x128x128xf32, #tpu.memory_space<vmem>>, vector<1x128x128xf32>
    %28 = vector.shape_cast %27 : vector<1x128x128xf32> to vector<128x128xf32>
    %cst_34 = arith.constant dense<0.000000e+00> : vector<256x128xf32>
    %29 = tpu.matmul %26, %28, %cst_34 {dimension_numbers = #tpu.dot_dimension_numbers<[1], [0], [0], [1], [0, 0, 1, 1], [], []>} : vector<256x128xf32>, vector<128x128xf32>, vector<256x128xf32> -> vector<256x128xf32>
    %30 = arith.addf %24, %29 : vector<256x128xf32>
    %c0_35 = arith.constant 0 : index
    %c25 = arith.constant 25 : index
    %c0_36 = arith.constant 0 : index
    %31 = vector.load %arg1[%c0_35, %c25, %c0_36] : memref<1x456x128xf32, #tpu.memory_space<vmem>>, vector<1x256x128xf32>
    %32 = vector.shape_cast %31 : vector<1x256x128xf32> to vector<256x128xf32>
    %c4 = arith.constant 4 : index
    %c0_37 = arith.constant 0 : index
    %c0_38 = arith.constant 0 : index
    %33 = vector.load %arg2[%c4, %c0_37, %c0_38] : memref<9x128x128xf32, #tpu.memory_space<vmem>>, vector<1x128x128xf32>
    %34 = vector.shape_cast %33 : vector<1x128x128xf32> to vector<128x128xf32>
    %cst_39 = arith.constant dense<0.000000e+00> : vector<256x128xf32>
    %35 = tpu.matmul %32, %34, %cst_39 {dimension_numbers = #tpu.dot_dimension_numbers<[1], [0], [0], [1], [0, 0, 1, 1], [], []>} : vector<256x128xf32>, vector<128x128xf32>, vector<256x128xf32> -> vector<256x128xf32>
    %36 = arith.addf %30, %35 : vector<256x128xf32>
    %c0_40 = arith.constant 0 : index
    %c26 = arith.constant 26 : index
    %c0_41 = arith.constant 0 : index
    %37 = vector.load %arg1[%c0_40, %c26, %c0_41] : memref<1x456x128xf32, #tpu.memory_space<vmem>>, vector<1x256x128xf32>
    %38 = vector.shape_cast %37 : vector<1x256x128xf32> to vector<256x128xf32>
    %c5 = arith.constant 5 : index
    %c0_42 = arith.constant 0 : index
    %c0_43 = arith.constant 0 : index
    %39 = vector.load %arg2[%c5, %c0_42, %c0_43] : memref<9x128x128xf32, #tpu.memory_space<vmem>>, vector<1x128x128xf32>
    %40 = vector.shape_cast %39 : vector<1x128x128xf32> to vector<128x128xf32>
    %cst_44 = arith.constant dense<0.000000e+00> : vector<256x128xf32>
    %41 = tpu.matmul %38, %40, %cst_44 {dimension_numbers = #tpu.dot_dimension_numbers<[1], [0], [0], [1], [0, 0, 1, 1], [], []>} : vector<256x128xf32>, vector<128x128xf32>, vector<256x128xf32> -> vector<256x128xf32>
    %42 = arith.addf %36, %41 : vector<256x128xf32>
    %c0_45 = arith.constant 0 : index
    %c48 = arith.constant 48 : index
    %c0_46 = arith.constant 0 : index
    %43 = vector.load %arg1[%c0_45, %c48, %c0_46] : memref<1x456x128xf32, #tpu.memory_space<vmem>>, vector<1x256x128xf32>
    %44 = vector.shape_cast %43 : vector<1x256x128xf32> to vector<256x128xf32>
    %c6 = arith.constant 6 : index
    %c0_47 = arith.constant 0 : index
    %c0_48 = arith.constant 0 : index
    %45 = vector.load %arg2[%c6, %c0_47, %c0_48] : memref<9x128x128xf32, #tpu.memory_space<vmem>>, vector<1x128x128xf32>
    %46 = vector.shape_cast %45 : vector<1x128x128xf32> to vector<128x128xf32>
    %cst_49 = arith.constant dense<0.000000e+00> : vector<256x128xf32>
    %47 = tpu.matmul %44, %46, %cst_49 {dimension_numbers = #tpu.dot_dimension_numbers<[1], [0], [0], [1], [0, 0, 1, 1], [], []>} : vector<256x128xf32>, vector<128x128xf32>, vector<256x128xf32> -> vector<256x128xf32>
    %48 = arith.addf %42, %47 : vector<256x128xf32>
    %c0_50 = arith.constant 0 : index
    %c49 = arith.constant 49 : index
    %c0_51 = arith.constant 0 : index
    %49 = vector.load %arg1[%c0_50, %c49, %c0_51] : memref<1x456x128xf32, #tpu.memory_space<vmem>>, vector<1x256x128xf32>
    %50 = vector.shape_cast %49 : vector<1x256x128xf32> to vector<256x128xf32>
    %c7 = arith.constant 7 : index
    %c0_52 = arith.constant 0 : index
    %c0_53 = arith.constant 0 : index
    %51 = vector.load %arg2[%c7, %c0_52, %c0_53] : memref<9x128x128xf32, #tpu.memory_space<vmem>>, vector<1x128x128xf32>
    %52 = vector.shape_cast %51 : vector<1x128x128xf32> to vector<128x128xf32>
    %cst_54 = arith.constant dense<0.000000e+00> : vector<256x128xf32>
    %53 = tpu.matmul %50, %52, %cst_54 {dimension_numbers = #tpu.dot_dimension_numbers<[1], [0], [0], [1], [0, 0, 1, 1], [], []>} : vector<256x128xf32>, vector<128x128xf32>, vector<256x128xf32> -> vector<256x128xf32>
    %54 = arith.addf %48, %53 : vector<256x128xf32>
    %c0_55 = arith.constant 0 : index
    %c50 = arith.constant 50 : index
    %c0_56 = arith.constant 0 : index
    %55 = vector.load %arg1[%c0_55, %c50, %c0_56] : memref<1x456x128xf32, #tpu.memory_space<vmem>>, vector<1x256x128xf32>
    %56 = vector.shape_cast %55 : vector<1x256x128xf32> to vector<256x128xf32>
    %c8 = arith.constant 8 : index
    %c0_57 = arith.constant 0 : index
    %c0_58 = arith.constant 0 : index
    %57 = vector.load %arg2[%c8, %c0_57, %c0_58] : memref<9x128x128xf32, #tpu.memory_space<vmem>>, vector<1x128x128xf32>
    %58 = vector.shape_cast %57 : vector<1x128x128xf32> to vector<128x128xf32>
    %cst_59 = arith.constant dense<0.000000e+00> : vector<256x128xf32>
    %59 = tpu.matmul %56, %58, %cst_59 {dimension_numbers = #tpu.dot_dimension_numbers<[1], [0], [0], [1], [0, 0, 1, 1], [], []>} : vector<256x128xf32>, vector<128x128xf32>, vector<256x128xf32> -> vector<256x128xf32>
    %60 = arith.addf %54, %59 : vector<256x128xf32>
    %61 = vector.broadcast %4 : vector<1x128xf32> to vector<256x128xf32>
    %62 = arith.mulf %60, %61 : vector<256x128xf32>
    %63 = vector.broadcast %5 : vector<1x128xf32> to vector<256x128xf32>
    %64 = arith.addf %62, %63 : vector<256x128xf32>
    %cst_60 = arith.constant 0.000000e+00 : f32
    %65 = vector.broadcast %cst_60 : f32 to vector<256x128xf32>
    %66 = arith.maximumf %64, %65 : vector<256x128xf32>
    %67 = tpu.iota {dimensions = array<i32: 0>} : vector<256x128xi32>
    %c0_i32 = arith.constant 0 : i32
    %68 = vector.broadcast %c0_i32 : i32 to vector<256x128xi32>
    %69 = arith.addi %67, %68 : vector<256x128xi32>
    %c24_i32 = arith.constant 24 : i32
    %c0_i32_61 = arith.constant 0 : i32
    %70 = arith.cmpi eq, %c24_i32, %c0_i32_61 : i32
    %c1_i32 = arith.constant 1 : i32
    %71 = arith.select %70, %c1_i32, %c24_i32 : i32
    %72 = vector.broadcast %71 : i32 to vector<256x128xi32>
    %73 = arith.remsi %69, %72 : vector<256x128xi32>
    %c0_i32_62 = arith.constant 0 : i32
    %74 = vector.broadcast %c0_i32_62 : i32 to vector<256x128xi32>
    %75 = arith.cmpi ne, %73, %74 : vector<256x128xi32>
    %c0_i32_63 = arith.constant 0 : i32
    %76 = vector.broadcast %c0_i32_63 : i32 to vector<256x128xi32>
    %77 = arith.cmpi slt, %73, %76 : vector<256x128xi32>
    %c0_i32_64 = arith.constant 0 : i32
    %78 = arith.cmpi slt, %71, %c0_i32_64 : i32
    %79 = vector.broadcast %78 : i1 to vector<256x128xi1>
    %80 = vector.broadcast %79 : vector<256x128xi1> to vector<256x128xi1>
    %81 = arith.xori %77, %80 : vector<256x128xi1>
    %82 = arith.andi %81, %75 : vector<256x128xi1>
    %83 = vector.broadcast %71 : i32 to vector<256x128xi32>
    %84 = arith.addi %73, %83 : vector<256x128xi32>
    %85 = arith.select %82, %84, %73 : vector<256x128xi1>, vector<256x128xi32>
    %c16_i32 = arith.constant 16 : i32
    %86 = vector.broadcast %c16_i32 : i32 to vector<256x128xi32>
    %87 = arith.cmpi slt, %85, %86 : vector<256x128xi32>
    %cst_65 = arith.constant 0.000000e+00 : f32
    %88 = vector.broadcast %cst_65 : f32 to vector<256x128xf32>
    %89 = arith.select %87, %66, %88 : vector<256x128xi1>, vector<256x128xf32>
    %c32 = arith.constant 32 : index
    %c0_66 = arith.constant 0 : index
    %90 = vector.load %arg9[%c32, %c0_66] : memref<448x128xf32, #tpu.memory_space<vmem>>, vector<256x128xf32>
    tpu.vector_store %arg9[%c32, %c0_66], %89 {strides = array<i32>} : memref<448x128xf32, #tpu.memory_space<vmem>>, vector<256x128xf32>,
    %c0_67 = arith.constant 0 : index
    %c256 = arith.constant 256 : index
    %c0_68 = arith.constant 0 : index
    %91 = vector.load %arg1[%c0_67, %c256, %c0_68] : memref<1x456x128xf32, #tpu.memory_space<vmem>>, vector<1x128x128xf32>
    %92 = vector.shape_cast %91 : vector<1x128x128xf32> to vector<128x128xf32>
    %c0_69 = arith.constant 0 : index
    %c0_70 = arith.constant 0 : index
    %c0_71 = arith.constant 0 : index
    %93 = vector.load %arg2[%c0_69, %c0_70, %c0_71] : memref<9x128x128xf32, #tpu.memory_space<vmem>>, vector<1x128x128xf32>
    %94 = vector.shape_cast %93 : vector<1x128x128xf32> to vector<128x128xf32>
    %cst_72 = arith.constant dense<0.000000e+00> : vector<128x128xf32>
    %95 = tpu.matmul %92, %94, %cst_72 {dimension_numbers = #tpu.dot_dimension_numbers<[1], [0], [0], [1], [0, 0, 1, 1], [], []>} : vector<128x128xf32>, vector<128x128xf32>, vector<128x128xf32> -> vector<128x128xf32>
    %c0_73 = arith.constant 0 : index
    %c257 = arith.constant 257 : index
    %c0_74 = arith.constant 0 : index
    %96 = vector.load %arg1[%c0_73, %c257, %c0_74] : memref<1x456x128xf32, #tpu.memory_space<vmem>>, vector<1x128x128xf32>
    %97 = vector.shape_cast %96 : vector<1x128x128xf32> to vector<128x128xf32>
    %c1_75 = arith.constant 1 : index
    %c0_76 = arith.constant 0 : index
    %c0_77 = arith.constant 0 : index
    %98 = vector.load %arg2[%c1_75, %c0_76, %c0_77] : memref<9x128x128xf32, #tpu.memory_space<vmem>>, vector<1x128x128xf32>
    %99 = vector.shape_cast %98 : vector<1x128x128xf32> to vector<128x128xf32>
    %cst_78 = arith.constant dense<0.000000e+00> : vector<128x128xf32>
    %100 = tpu.matmul %97, %99, %cst_78 {dimension_numbers = #tpu.dot_dimension_numbers<[1], [0], [0], [1], [0, 0, 1, 1], [], []>} : vector<128x128xf32>, vector<128x128xf32>, vector<128x128xf32> -> vector<128x128xf32>
    %101 = arith.addf %95, %100 : vector<128x128xf32>
    %c0_79 = arith.constant 0 : index
    %c258 = arith.constant 258 : index
    %c0_80 = arith.constant 0 : index
    %102 = vector.load %arg1[%c0_79, %c258, %c0_80] : memref<1x456x128xf32, #tpu.memory_space<vmem>>, vector<1x128x128xf32>
    %103 = vector.shape_cast %102 : vector<1x128x128xf32> to vector<128x128xf32>
    %c2_81 = arith.constant 2 : index
    %c0_82 = arith.constant 0 : index
    %c0_83 = arith.constant 0 : index
    %104 = vector.load %arg2[%c2_81, %c0_82, %c0_83] : memref<9x128x128xf32, #tpu.memory_space<vmem>>, vector<1x128x128xf32>
    %105 = vector.shape_cast %104 : vector<1x128x128xf32> to vector<128x128xf32>
    %cst_84 = arith.constant dense<0.000000e+00> : vector<128x128xf32>
    %106 = tpu.matmul %103, %105, %cst_84 {dimension_numbers = #tpu.dot_dimension_numbers<[1], [0], [0], [1], [0, 0, 1, 1], [], []>} : vector<128x128xf32>, vector<128x128xf32>, vector<128x128xf32> -> vector<128x128xf32>
    %107 = arith.addf %101, %106 : vector<128x128xf32>
    %c0_85 = arith.constant 0 : index
    %c280 = arith.constant 280 : index
    %c0_86 = arith.constant 0 : index
    %108 = vector.load %arg1[%c0_85, %c280, %c0_86] : memref<1x456x128xf32, #tpu.memory_space<vmem>>, vector<1x128x128xf32>
    %109 = vector.shape_cast %108 : vector<1x128x128xf32> to vector<128x128xf32>
    %c3_87 = arith.constant 3 : index
    %c0_88 = arith.constant 0 : index
    %c0_89 = arith.constant 0 : index
    %110 = vector.load %arg2[%c3_87, %c0_88, %c0_89] : memref<9x128x128xf32, #tpu.memory_space<vmem>>, vector<1x128x128xf32>
    %111 = vector.shape_cast %110 : vector<1x128x128xf32> to vector<128x128xf32>
    %cst_90 = arith.constant dense<0.000000e+00> : vector<128x128xf32>
    %112 = tpu.matmul %109, %111, %cst_90 {dimension_numbers = #tpu.dot_dimension_numbers<[1], [0], [0], [1], [0, 0, 1, 1], [], []>} : vector<128x128xf32>, vector<128x128xf32>, vector<128x128xf32> -> vector<128x128xf32>
    %113 = arith.addf %107, %112 : vector<128x128xf32>
    %c0_91 = arith.constant 0 : index
    %c281 = arith.constant 281 : index
    %c0_92 = arith.constant 0 : index
    %114 = vector.load %arg1[%c0_91, %c281, %c0_92] : memref<1x456x128xf32, #tpu.memory_space<vmem>>, vector<1x128x128xf32>
    %115 = vector.shape_cast %114 : vector<1x128x128xf32> to vector<128x128xf32>
    %c4_93 = arith.constant 4 : index
    %c0_94 = arith.constant 0 : index
    %c0_95 = arith.constant 0 : index
    %116 = vector.load %arg2[%c4_93, %c0_94, %c0_95] : memref<9x128x128xf32, #tpu.memory_space<vmem>>, vector<1x128x128xf32>
    %117 = vector.shape_cast %116 : vector<1x128x128xf32> to vector<128x128xf32>
    %cst_96 = arith.constant dense<0.000000e+00> : vector<128x128xf32>
    %118 = tpu.matmul %115, %117, %cst_96 {dimension_numbers = #tpu.dot_dimension_numbers<[1], [0], [0], [1], [0, 0, 1, 1], [], []>} : vector<128x128xf32>, vector<128x128xf32>, vector<128x128xf32> -> vector<128x128xf32>
    %119 = arith.addf %113, %118 : vector<128x128xf32>
    %c0_97 = arith.constant 0 : index
    %c282 = arith.constant 282 : index
    %c0_98 = arith.constant 0 : index
    %120 = vector.load %arg1[%c0_97, %c282, %c0_98] : memref<1x456x128xf32, #tpu.memory_space<vmem>>, vector<1x128x128xf32>
    %121 = vector.shape_cast %120 : vector<1x128x128xf32> to vector<128x128xf32>
    %c5_99 = arith.constant 5 : index
    %c0_100 = arith.constant 0 : index
    %c0_101 = arith.constant 0 : index
    %122 = vector.load %arg2[%c5_99, %c0_100, %c0_101] : memref<9x128x128xf32, #tpu.memory_space<vmem>>, vector<1x128x128xf32>
    %123 = vector.shape_cast %122 : vector<1x128x128xf32> to vector<128x128xf32>
    %cst_102 = arith.constant dense<0.000000e+00> : vector<128x128xf32>
    %124 = tpu.matmul %121, %123, %cst_102 {dimension_numbers = #tpu.dot_dimension_numbers<[1], [0], [0], [1], [0, 0, 1, 1], [], []>} : vector<128x128xf32>, vector<128x128xf32>, vector<128x128xf32> -> vector<128x128xf32>
    %125 = arith.addf %119, %124 : vector<128x128xf32>
    %c0_103 = arith.constant 0 : index
    %c304 = arith.constant 304 : index
    %c0_104 = arith.constant 0 : index
    %126 = vector.load %arg1[%c0_103, %c304, %c0_104] : memref<1x456x128xf32, #tpu.memory_space<vmem>>, vector<1x128x128xf32>
    %127 = vector.shape_cast %126 : vector<1x128x128xf32> to vector<128x128xf32>
    %c6_105 = arith.constant 6 : index
    %c0_106 = arith.constant 0 : index
    %c0_107 = arith.constant 0 : index
    %128 = vector.load %arg2[%c6_105, %c0_106, %c0_107] : memref<9x128x128xf32, #tpu.memory_space<vmem>>, vector<1x128x128xf32>
    %129 = vector.shape_cast %128 : vector<1x128x128xf32> to vector<128x128xf32>
    %cst_108 = arith.constant dense<0.000000e+00> : vector<128x128xf32>
    %130 = tpu.matmul %127, %129, %cst_108 {dimension_numbers = #tpu.dot_dimension_numbers<[1], [0], [0], [1], [0, 0, 1, 1], [], []>} : vector<128x128xf32>, vector<128x128xf32>, vector<128x128xf32> -> vector<128x128xf32>
    %131 = arith.addf %125, %130 : vector<128x128xf32>
    %c0_109 = arith.constant 0 : index
    %c305 = arith.constant 305 : index
    %c0_110 = arith.constant 0 : index
    %132 = vector.load %arg1[%c0_109, %c305, %c0_110] : memref<1x456x128xf32, #tpu.memory_space<vmem>>, vector<1x128x128xf32>
    %133 = vector.shape_cast %132 : vector<1x128x128xf32> to vector<128x128xf32>
    %c7_111 = arith.constant 7 : index
    %c0_112 = arith.constant 0 : index
    %c0_113 = arith.constant 0 : index
    %134 = vector.load %arg2[%c7_111, %c0_112, %c0_113] : memref<9x128x128xf32, #tpu.memory_space<vmem>>, vector<1x128x128xf32>
    %135 = vector.shape_cast %134 : vector<1x128x128xf32> to vector<128x128xf32>
    %cst_114 = arith.constant dense<0.000000e+00> : vector<128x128xf32>
    %136 = tpu.matmul %133, %135, %cst_114 {dimension_numbers = #tpu.dot_dimension_numbers<[1], [0], [0], [1], [0, 0, 1, 1], [], []>} : vector<128x128xf32>, vector<128x128xf32>, vector<128x128xf32> -> vector<128x128xf32>
    %137 = arith.addf %131, %136 : vector<128x128xf32>
    %c0_115 = arith.constant 0 : index
    %c306 = arith.constant 306 : index
    %c0_116 = arith.constant 0 : index
    %138 = vector.load %arg1[%c0_115, %c306, %c0_116] : memref<1x456x128xf32, #tpu.memory_space<vmem>>, vector<1x128x128xf32>
    %139 = vector.shape_cast %138 : vector<1x128x128xf32> to vector<128x128xf32>
    %c8_117 = arith.constant 8 : index
    %c0_118 = arith.constant 0 : index
    %c0_119 = arith.constant 0 : index
    %140 = vector.load %arg2[%c8_117, %c0_118, %c0_119] : memref<9x128x128xf32, #tpu.memory_space<vmem>>, vector<1x128x128xf32>
    %141 = vector.shape_cast %140 : vector<1x128x128xf32> to vector<128x128xf32>
    %cst_120 = arith.constant dense<0.000000e+00> : vector<128x128xf32>
    %142 = tpu.matmul %139, %141, %cst_120 {dimension_numbers = #tpu.dot_dimension_numbers<[1], [0], [0], [1], [0, 0, 1, 1], [], []>} : vector<128x128xf32>, vector<128x128xf32>, vector<128x128xf32> -> vector<128x128xf32>
    %143 = arith.addf %137, %142 : vector<128x128xf32>
    %144 = vector.broadcast %4 : vector<1x128xf32> to vector<128x128xf32>
    %145 = arith.mulf %143, %144 : vector<128x128xf32>
    %146 = vector.broadcast %5 : vector<1x128xf32> to vector<128x128xf32>
    %147 = arith.addf %145, %146 : vector<128x128xf32>
    %cst_121 = arith.constant 0.000000e+00 : f32
    %148 = vector.broadcast %cst_121 : f32 to vector<128x128xf32>
    %149 = arith.maximumf %147, %148 : vector<128x128xf32>
    %150 = tpu.iota {dimensions = array<i32: 0>} : vector<128x128xi32>
    %c256_i32 = arith.constant 256 : i32
    %151 = vector.broadcast %c256_i32 : i32 to vector<128x128xi32>
    %152 = arith.addi %150, %151 : vector<128x128xi32>
    %c24_i32_122 = arith.constant 24 : i32
    %c0_i32_123 = arith.constant 0 : i32
    %153 = arith.cmpi eq, %c24_i32_122, %c0_i32_123 : i32
    %c1_i32_124 = arith.constant 1 : i32
    %154 = arith.select %153, %c1_i32_124, %c24_i32_122 : i32
    %155 = vector.broadcast %154 : i32 to vector<128x128xi32>
    %156 = arith.remsi %152, %155 : vector<128x128xi32>
    %c0_i32_125 = arith.constant 0 : i32
    %157 = vector.broadcast %c0_i32_125 : i32 to vector<128x128xi32>
    %158 = arith.cmpi ne, %156, %157 : vector<128x128xi32>
    %c0_i32_126 = arith.constant 0 : i32
    %159 = vector.broadcast %c0_i32_126 : i32 to vector<128x128xi32>
    %160 = arith.cmpi slt, %156, %159 : vector<128x128xi32>
    %c0_i32_127 = arith.constant 0 : i32
    %161 = arith.cmpi slt, %154, %c0_i32_127 : i32
    %162 = vector.broadcast %161 : i1 to vector<128x128xi1>
    %163 = vector.broadcast %162 : vector<128x128xi1> to vector<128x128xi1>
    %164 = arith.xori %160, %163 : vector<128x128xi1>
    %165 = arith.andi %164, %158 : vector<128x128xi1>
    %166 = vector.broadcast %154 : i32 to vector<128x128xi32>
    %167 = arith.addi %156, %166 : vector<128x128xi32>
    %168 = arith.select %165, %167, %156 : vector<128x128xi1>, vector<128x128xi32>
    %c16_i32_128 = arith.constant 16 : i32
    %169 = vector.broadcast %c16_i32_128 : i32 to vector<128x128xi32>
    %170 = arith.cmpi slt, %168, %169 : vector<128x128xi32>
    %cst_129 = arith.constant 0.000000e+00 : f32
    %171 = vector.broadcast %cst_129 : f32 to vector<128x128xf32>
    %172 = arith.select %170, %149, %171 : vector<128x128xi1>, vector<128x128xf32>
    %c288 = arith.constant 288 : index
    %c0_130 = arith.constant 0 : index
    %173 = vector.load %arg9[%c288, %c0_130] : memref<448x128xf32, #tpu.memory_space<vmem>>, vector<128x128xf32>
    tpu.vector_store %arg9[%c288, %c0_130], %172 {strides = array<i32>} : memref<448x128xf32, #tpu.memory_space<vmem>>, vector<128x128xf32>,
    %c7_131 = arith.constant 7 : index
    %c0_132 = arith.constant 0 : index
    %174 = vector.load %arg9[%c7_131, %c0_132] : memref<448x128xf32, #tpu.memory_space<vmem>>, vector<256x128xf32>
    %c0_133 = arith.constant 0 : index
    %c0_134 = arith.constant 0 : index
    %c0_135 = arith.constant 0 : index
    %175 = vector.load %arg5[%c0_133, %c0_134, %c0_135] : memref<9x128x128xf32, #tpu.memory_space<vmem>>, vector<1x128x128xf32>
    %176 = vector.shape_cast %175 : vector<1x128x128xf32> to vector<128x128xf32>
    %cst_136 = arith.constant dense<0.000000e+00> : vector<256x128xf32>
    %177 = tpu.matmul %174, %176, %cst_136 {dimension_numbers = #tpu.dot_dimension_numbers<[1], [0], [0], [1], [0, 0, 1, 1], [], []>} : vector<256x128xf32>, vector<128x128xf32>, vector<256x128xf32> -> vector<256x128xf32>
    %c8_137 = arith.constant 8 : index
    %c0_138 = arith.constant 0 : index
    %178 = vector.load %arg9[%c8_137, %c0_138] : memref<448x128xf32, #tpu.memory_space<vmem>>, vector<256x128xf32>
    %c1_139 = arith.constant 1 : index
    %c0_140 = arith.constant 0 : index
    %c0_141 = arith.constant 0 : index
    %179 = vector.load %arg5[%c1_139, %c0_140, %c0_141] : memref<9x128x128xf32, #tpu.memory_space<vmem>>, vector<1x128x128xf32>
    %180 = vector.shape_cast %179 : vector<1x128x128xf32> to vector<128x128xf32>
    %cst_142 = arith.constant dense<0.000000e+00> : vector<256x128xf32>
    %181 = tpu.matmul %178, %180, %cst_142 {dimension_numbers = #tpu.dot_dimension_numbers<[1], [0], [0], [1], [0, 0, 1, 1], [], []>} : vector<256x128xf32>, vector<128x128xf32>, vector<256x128xf32> -> vector<256x128xf32>
    %182 = arith.addf %177, %181 : vector<256x128xf32>
    %c9 = arith.constant 9 : index
    %c0_143 = arith.constant 0 : index
    %183 = vector.load %arg9[%c9, %c0_143] : memref<448x128xf32, #tpu.memory_space<vmem>>, vector<256x128xf32>
    %c2_144 = arith.constant 2 : index
    %c0_145 = arith.constant 0 : index
    %c0_146 = arith.constant 0 : index
    %184 = vector.load %arg5[%c2_144, %c0_145, %c0_146] : memref<9x128x128xf32, #tpu.memory_space<vmem>>, vector<1x128x128xf32>
    %185 = vector.shape_cast %184 : vector<1x128x128xf32> to vector<128x128xf32>
    %cst_147 = arith.constant dense<0.000000e+00> : vector<256x128xf32>
    %186 = tpu.matmul %183, %185, %cst_147 {dimension_numbers = #tpu.dot_dimension_numbers<[1], [0], [0], [1], [0, 0, 1, 1], [], []>} : vector<256x128xf32>, vector<128x128xf32>, vector<256x128xf32> -> vector<256x128xf32>
    %187 = arith.addf %182, %186 : vector<256x128xf32>
    %c31 = arith.constant 31 : index
    %c0_148 = arith.constant 0 : index
    %188 = vector.load %arg9[%c31, %c0_148] : memref<448x128xf32, #tpu.memory_space<vmem>>, vector<256x128xf32>
    %c3_149 = arith.constant 3 : index
    %c0_150 = arith.constant 0 : index
    %c0_151 = arith.constant 0 : index
    %189 = vector.load %arg5[%c3_149, %c0_150, %c0_151] : memref<9x128x128xf32, #tpu.memory_space<vmem>>, vector<1x128x128xf32>
    %190 = vector.shape_cast %189 : vector<1x128x128xf32> to vector<128x128xf32>
    %cst_152 = arith.constant dense<0.000000e+00> : vector<256x128xf32>
    %191 = tpu.matmul %188, %190, %cst_152 {dimension_numbers = #tpu.dot_dimension_numbers<[1], [0], [0], [1], [0, 0, 1, 1], [], []>} : vector<256x128xf32>, vector<128x128xf32>, vector<256x128xf32> -> vector<256x128xf32>
    %192 = arith.addf %187, %191 : vector<256x128xf32>
    %c32_153 = arith.constant 32 : index
    %c0_154 = arith.constant 0 : index
    %193 = vector.load %arg9[%c32_153, %c0_154] : memref<448x128xf32, #tpu.memory_space<vmem>>, vector<256x128xf32>
    %c4_155 = arith.constant 4 : index
    %c0_156 = arith.constant 0 : index
    %c0_157 = arith.constant 0 : index
    %194 = vector.load %arg5[%c4_155, %c0_156, %c0_157] : memref<9x128x128xf32, #tpu.memory_space<vmem>>, vector<1x128x128xf32>
    %195 = vector.shape_cast %194 : vector<1x128x128xf32> to vector<128x128xf32>
    %cst_158 = arith.constant dense<0.000000e+00> : vector<256x128xf32>
    %196 = tpu.matmul %193, %195, %cst_158 {dimension_numbers = #tpu.dot_dimension_numbers<[1], [0], [0], [1], [0, 0, 1, 1], [], []>} : vector<256x128xf32>, vector<128x128xf32>, vector<256x128xf32> -> vector<256x128xf32>
    %197 = arith.addf %192, %196 : vector<256x128xf32>
    %c33 = arith.constant 33 : index
    %c0_159 = arith.constant 0 : index
    %198 = vector.load %arg9[%c33, %c0_159] : memref<448x128xf32, #tpu.memory_space<vmem>>, vector<256x128xf32>
    %c5_160 = arith.constant 5 : index
    %c0_161 = arith.constant 0 : index
    %c0_162 = arith.constant 0 : index
    %199 = vector.load %arg5[%c5_160, %c0_161, %c0_162] : memref<9x128x128xf32, #tpu.memory_space<vmem>>, vector<1x128x128xf32>
    %200 = vector.shape_cast %199 : vector<1x128x128xf32> to vector<128x128xf32>
    %cst_163 = arith.constant dense<0.000000e+00> : vector<256x128xf32>
    %201 = tpu.matmul %198, %200, %cst_163 {dimension_numbers = #tpu.dot_dimension_numbers<[1], [0], [0], [1], [0, 0, 1, 1], [], []>} : vector<256x128xf32>, vector<128x128xf32>, vector<256x128xf32> -> vector<256x128xf32>
    %202 = arith.addf %197, %201 : vector<256x128xf32>
    %c55 = arith.constant 55 : index
    %c0_164 = arith.constant 0 : index
    %203 = vector.load %arg9[%c55, %c0_164] : memref<448x128xf32, #tpu.memory_space<vmem>>, vector<256x128xf32>
    %c6_165 = arith.constant 6 : index
    %c0_166 = arith.constant 0 : index
    %c0_167 = arith.constant 0 : index
    %204 = vector.load %arg5[%c6_165, %c0_166, %c0_167] : memref<9x128x128xf32, #tpu.memory_space<vmem>>, vector<1x128x128xf32>
    %205 = vector.shape_cast %204 : vector<1x128x128xf32> to vector<128x128xf32>
    %cst_168 = arith.constant dense<0.000000e+00> : vector<256x128xf32>
    %206 = tpu.matmul %203, %205, %cst_168 {dimension_numbers = #tpu.dot_dimension_numbers<[1], [0], [0], [1], [0, 0, 1, 1], [], []>} : vector<256x128xf32>, vector<128x128xf32>, vector<256x128xf32> -> vector<256x128xf32>
    %207 = arith.addf %202, %206 : vector<256x128xf32>
    %c56 = arith.constant 56 : index
    %c0_169 = arith.constant 0 : index
    %208 = vector.load %arg9[%c56, %c0_169] : memref<448x128xf32, #tpu.memory_space<vmem>>, vector<256x128xf32>
    %c7_170 = arith.constant 7 : index
    %c0_171 = arith.constant 0 : index
    %c0_172 = arith.constant 0 : index
    %209 = vector.load %arg5[%c7_170, %c0_171, %c0_172] : memref<9x128x128xf32, #tpu.memory_space<vmem>>, vector<1x128x128xf32>
    %210 = vector.shape_cast %209 : vector<1x128x128xf32> to vector<128x128xf32>
    %cst_173 = arith.constant dense<0.000000e+00> : vector<256x128xf32>
    %211 = tpu.matmul %208, %210, %cst_173 {dimension_numbers = #tpu.dot_dimension_numbers<[1], [0], [0], [1], [0, 0, 1, 1], [], []>} : vector<256x128xf32>, vector<128x128xf32>, vector<256x128xf32> -> vector<256x128xf32>
    %212 = arith.addf %207, %211 : vector<256x128xf32>
    %c57 = arith.constant 57 : index
    %c0_174 = arith.constant 0 : index
    %213 = vector.load %arg9[%c57, %c0_174] : memref<448x128xf32, #tpu.memory_space<vmem>>, vector<256x128xf32>
    %c8_175 = arith.constant 8 : index
    %c0_176 = arith.constant 0 : index
    %c0_177 = arith.constant 0 : index
    %214 = vector.load %arg5[%c8_175, %c0_176, %c0_177] : memref<9x128x128xf32, #tpu.memory_space<vmem>>, vector<1x128x128xf32>
    %215 = vector.shape_cast %214 : vector<1x128x128xf32> to vector<128x128xf32>
    %cst_178 = arith.constant dense<0.000000e+00> : vector<256x128xf32>
    %216 = tpu.matmul %213, %215, %cst_178 {dimension_numbers = #tpu.dot_dimension_numbers<[1], [0], [0], [1], [0, 0, 1, 1], [], []>} : vector<256x128xf32>, vector<128x128xf32>, vector<256x128xf32> -> vector<256x128xf32>
    %217 = arith.addf %212, %216 : vector<256x128xf32>
    %218 = vector.broadcast %6 : vector<1x128xf32> to vector<256x128xf32>
    %219 = arith.mulf %217, %218 : vector<256x128xf32>
    %220 = vector.broadcast %7 : vector<1x128xf32> to vector<256x128xf32>
    %221 = arith.addf %219, %220 : vector<256x128xf32>
    %c0_179 = arith.constant 0 : index
    %c25_180 = arith.constant 25 : index
    %c0_181 = arith.constant 0 : index
    %222 = vector.load %arg1[%c0_179, %c25_180, %c0_181] : memref<1x456x128xf32, #tpu.memory_space<vmem>>, vector<1x256x128xf32>
    %223 = vector.shape_cast %222 : vector<1x256x128xf32> to vector<256x128xf32>
    %224 = arith.addf %221, %223 : vector<256x128xf32>
    %cst_182 = arith.constant 0.000000e+00 : f32
    %225 = vector.broadcast %cst_182 : f32 to vector<256x128xf32>
    %226 = arith.maximumf %224, %225 : vector<256x128xf32>
    %c0_183 = arith.constant 0 : index
    %c0_184 = arith.constant 0 : index
    %c0_185 = arith.constant 0 : index
    %227 = vector.load %arg8[%c0_183, %c0_184, %c0_185] : memref<1x384x128xf32, #tpu.memory_space<vmem>>, vector<1x256x128xf32>
    %228 = vector.shape_cast %227 : vector<1x256x128xf32> to vector<256x128xf32>
    %229 = vector.shape_cast %226 : vector<256x128xf32> to vector<1x256x128xf32>
    tpu.vector_store %arg8[%c0_183, %c0_184, %c0_185], %229 {strides = array<i32>} : memref<1x384x128xf32, #tpu.memory_space<vmem>>, vector<1x256x128xf32>,
    %c263 = arith.constant 263 : index
    %c0_186 = arith.constant 0 : index
    %230 = vector.load %arg9[%c263, %c0_186] : memref<448x128xf32, #tpu.memory_space<vmem>>, vector<128x128xf32>
    %c0_187 = arith.constant 0 : index
    %c0_188 = arith.constant 0 : index
    %c0_189 = arith.constant 0 : index
    %231 = vector.load %arg5[%c0_187, %c0_188, %c0_189] : memref<9x128x128xf32, #tpu.memory_space<vmem>>, vector<1x128x128xf32>
    %232 = vector.shape_cast %231 : vector<1x128x128xf32> to vector<128x128xf32>
    %cst_190 = arith.constant dense<0.000000e+00> : vector<128x128xf32>
    %233 = tpu.matmul %230, %232, %cst_190 {dimension_numbers = #tpu.dot_dimension_numbers<[1], [0], [0], [1], [0, 0, 1, 1], [], []>} : vector<128x128xf32>, vector<128x128xf32>, vector<128x128xf32> -> vector<128x128xf32>
    %c264 = arith.constant 264 : index
    %c0_191 = arith.constant 0 : index
    %234 = vector.load %arg9[%c264, %c0_191] : memref<448x128xf32, #tpu.memory_space<vmem>>, vector<128x128xf32>
    %c1_192 = arith.constant 1 : index
    %c0_193 = arith.constant 0 : index
    %c0_194 = arith.constant 0 : index
    %235 = vector.load %arg5[%c1_192, %c0_193, %c0_194] : memref<9x128x128xf32, #tpu.memory_space<vmem>>, vector<1x128x128xf32>
    %236 = vector.shape_cast %235 : vector<1x128x128xf32> to vector<128x128xf32>
    %cst_195 = arith.constant dense<0.000000e+00> : vector<128x128xf32>
    %237 = tpu.matmul %234, %236, %cst_195 {dimension_numbers = #tpu.dot_dimension_numbers<[1], [0], [0], [1], [0, 0, 1, 1], [], []>} : vector<128x128xf32>, vector<128x128xf32>, vector<128x128xf32> -> vector<128x128xf32>
    %238 = arith.addf %233, %237 : vector<128x128xf32>
    %c265 = arith.constant 265 : index
    %c0_196 = arith.constant 0 : index
    %239 = vector.load %arg9[%c265, %c0_196] : memref<448x128xf32, #tpu.memory_space<vmem>>, vector<128x128xf32>
    %c2_197 = arith.constant 2 : index
    %c0_198 = arith.constant 0 : index
    %c0_199 = arith.constant 0 : index
    %240 = vector.load %arg5[%c2_197, %c0_198, %c0_199] : memref<9x128x128xf32, #tpu.memory_space<vmem>>, vector<1x128x128xf32>
    %241 = vector.shape_cast %240 : vector<1x128x128xf32> to vector<128x128xf32>
    %cst_200 = arith.constant dense<0.000000e+00> : vector<128x128xf32>
    %242 = tpu.matmul %239, %241, %cst_200 {dimension_numbers = #tpu.dot_dimension_numbers<[1], [0], [0], [1], [0, 0, 1, 1], [], []>} : vector<128x128xf32>, vector<128x128xf32>, vector<128x128xf32> -> vector<128x128xf32>
    %243 = arith.addf %238, %242 : vector<128x128xf32>
    %c287 = arith.constant 287 : index
    %c0_201 = arith.constant 0 : index
    %244 = vector.load %arg9[%c287, %c0_201] : memref<448x128xf32, #tpu.memory_space<vmem>>, vector<128x128xf32>
    %c3_202 = arith.constant 3 : index
    %c0_203 = arith.constant 0 : index
    %c0_204 = arith.constant 0 : index
    %245 = vector.load %arg5[%c3_202, %c0_203, %c0_204] : memref<9x128x128xf32, #tpu.memory_space<vmem>>, vector<1x128x128xf32>
    %246 = vector.shape_cast %245 : vector<1x128x128xf32> to vector<128x128xf32>
    %cst_205 = arith.constant dense<0.000000e+00> : vector<128x128xf32>
    %247 = tpu.matmul %244, %246, %cst_205 {dimension_numbers = #tpu.dot_dimension_numbers<[1], [0], [0], [1], [0, 0, 1, 1], [], []>} : vector<128x128xf32>, vector<128x128xf32>, vector<128x128xf32> -> vector<128x128xf32>
    %248 = arith.addf %243, %247 : vector<128x128xf32>
    %c288_206 = arith.constant 288 : index
    %c0_207 = arith.constant 0 : index
    %249 = vector.load %arg9[%c288_206, %c0_207] : memref<448x128xf32, #tpu.memory_space<vmem>>, vector<128x128xf32>
    %c4_208 = arith.constant 4 : index
    %c0_209 = arith.constant 0 : index
    %c0_210 = arith.constant 0 : index
    %250 = vector.load %arg5[%c4_208, %c0_209, %c0_210] : memref<9x128x128xf32, #tpu.memory_space<vmem>>, vector<1x128x128xf32>
    %251 = vector.shape_cast %250 : vector<1x128x128xf32> to vector<128x128xf32>
    %cst_211 = arith.constant dense<0.000000e+00> : vector<128x128xf32>
    %252 = tpu.matmul %249, %251, %cst_211 {dimension_numbers = #tpu.dot_dimension_numbers<[1], [0], [0], [1], [0, 0, 1, 1], [], []>} : vector<128x128xf32>, vector<128x128xf32>, vector<128x128xf32> -> vector<128x128xf32>
    %253 = arith.addf %248, %252 : vector<128x128xf32>
    %c289 = arith.constant 289 : index
    %c0_212 = arith.constant 0 : index
    %254 = vector.load %arg9[%c289, %c0_212] : memref<448x128xf32, #tpu.memory_space<vmem>>, vector<128x128xf32>
    %c5_213 = arith.constant 5 : index
    %c0_214 = arith.constant 0 : index
    %c0_215 = arith.constant 0 : index
    %255 = vector.load %arg5[%c5_213, %c0_214, %c0_215] : memref<9x128x128xf32, #tpu.memory_space<vmem>>, vector<1x128x128xf32>
    %256 = vector.shape_cast %255 : vector<1x128x128xf32> to vector<128x128xf32>
    %cst_216 = arith.constant dense<0.000000e+00> : vector<128x128xf32>
    %257 = tpu.matmul %254, %256, %cst_216 {dimension_numbers = #tpu.dot_dimension_numbers<[1], [0], [0], [1], [0, 0, 1, 1], [], []>} : vector<128x128xf32>, vector<128x128xf32>, vector<128x128xf32> -> vector<128x128xf32>
    %258 = arith.addf %253, %257 : vector<128x128xf32>
    %c311 = arith.constant 311 : index
    %c0_217 = arith.constant 0 : index
    %259 = vector.load %arg9[%c311, %c0_217] : memref<448x128xf32, #tpu.memory_space<vmem>>, vector<128x128xf32>
    %c6_218 = arith.constant 6 : index
    %c0_219 = arith.constant 0 : index
    %c0_220 = arith.constant 0 : index
    %260 = vector.load %arg5[%c6_218, %c0_219, %c0_220] : memref<9x128x128xf32, #tpu.memory_space<vmem>>, vector<1x128x128xf32>
    %261 = vector.shape_cast %260 : vector<1x128x128xf32> to vector<128x128xf32>
    %cst_221 = arith.constant dense<0.000000e+00> : vector<128x128xf32>
    %262 = tpu.matmul %259, %261, %cst_221 {dimension_numbers = #tpu.dot_dimension_numbers<[1], [0], [0], [1], [0, 0, 1, 1], [], []>} : vector<128x128xf32>, vector<128x128xf32>, vector<128x128xf32> -> vector<128x128xf32>
    %263 = arith.addf %258, %262 : vector<128x128xf32>
    %c312 = arith.constant 312 : index
    %c0_222 = arith.constant 0 : index
    %264 = vector.load %arg9[%c312, %c0_222] : memref<448x128xf32, #tpu.memory_space<vmem>>, vector<128x128xf32>
    %c7_223 = arith.constant 7 : index
    %c0_224 = arith.constant 0 : index
    %c0_225 = arith.constant 0 : index
    %265 = vector.load %arg5[%c7_223, %c0_224, %c0_225] : memref<9x128x128xf32, #tpu.memory_space<vmem>>, vector<1x128x128xf32>
    %266 = vector.shape_cast %265 : vector<1x128x128xf32> to vector<128x128xf32>
    %cst_226 = arith.constant dense<0.000000e+00> : vector<128x128xf32>
    %267 = tpu.matmul %264, %266, %cst_226 {dimension_numbers = #tpu.dot_dimension_numbers<[1], [0], [0], [1], [0, 0, 1, 1], [], []>} : vector<128x128xf32>, vector<128x128xf32>, vector<128x128xf32> -> vector<128x128xf32>
    %268 = arith.addf %263, %267 : vector<128x128xf32>
    %c313 = arith.constant 313 : index
    %c0_227 = arith.constant 0 : index
    %269 = vector.load %arg9[%c313, %c0_227] : memref<448x128xf32, #tpu.memory_space<vmem>>, vector<128x128xf32>
    %c8_228 = arith.constant 8 : index
    %c0_229 = arith.constant 0 : index
    %c0_230 = arith.constant 0 : index
    %270 = vector.load %arg5[%c8_228, %c0_229, %c0_230] : memref<9x128x128xf32, #tpu.memory_space<vmem>>, vector<1x128x128xf32>
    %271 = vector.shape_cast %270 : vector<1x128x128xf32> to vector<128x128xf32>
    %cst_231 = arith.constant dense<0.000000e+00> : vector<128x128xf32>
    %272 = tpu.matmul %269, %271, %cst_231 {dimension_numbers = #tpu.dot_dimension_numbers<[1], [0], [0], [1], [0, 0, 1, 1], [], []>} : vector<128x128xf32>, vector<128x128xf32>, vector<128x128xf32> -> vector<128x128xf32>
    %273 = arith.addf %268, %272 : vector<128x128xf32>
    %274 = vector.broadcast %6 : vector<1x128xf32> to vector<128x128xf32>
    %275 = arith.mulf %273, %274 : vector<128x128xf32>
    %276 = vector.broadcast %7 : vector<1x128xf32> to vector<128x128xf32>
    %277 = arith.addf %275, %276 : vector<128x128xf32>
    %c0_232 = arith.constant 0 : index
    %c281_233 = arith.constant 281 : index
    %c0_234 = arith.constant 0 : index
    %278 = vector.load %arg1[%c0_232, %c281_233, %c0_234] : memref<1x456x128xf32, #tpu.memory_space<vmem>>, vector<1x128x128xf32>
    %279 = vector.shape_cast %278 : vector<1x128x128xf32> to vector<128x128xf32>
    %280 = arith.addf %277, %279 : vector<128x128xf32>
    %cst_235 = arith.constant 0.000000e+00 : f32
    %281 = vector.broadcast %cst_235 : f32 to vector<128x128xf32>
    %282 = arith.maximumf %280, %281 : vector<128x128xf32>
    %c0_236 = arith.constant 0 : index
    %c256_237 = arith.constant 256 : index
    %c0_238 = arith.constant 0 : index
    %283 = vector.load %arg8[%c0_236, %c256_237, %c0_238] : memref<1x384x128xf32, #tpu.memory_space<vmem>>, vector<1x128x128xf32>
    %284 = vector.shape_cast %283 : vector<1x128x128xf32> to vector<128x128xf32>
    %285 = vector.shape_cast %282 : vector<128x128xf32> to vector<1x128x128xf32>
    tpu.vector_store %arg8[%c0_236, %c256_237, %c0_238], %285 {strides = array<i32>} : memref<1x384x128xf32, #tpu.memory_space<vmem>>, vector<1x128x128xf32>,
    return
  }
  func.func @transform_0(%arg0: i32) -> (i32, i32, i32) {
    %c0_i32 = arith.constant 0 : i32
    %c0_i32_0 = arith.constant 0 : i32
    %c0_i32_1 = arith.constant 0 : i32
    return %arg0, %c0_i32, %c0_i32_0 : i32, i32, i32
  }
  func.func @transform_1(%arg0: i32) -> (i32, i32, i32) {
    %c0_i32 = arith.constant 0 : i32
    %c0_i32_0 = arith.constant 0 : i32
    %c0_i32_1 = arith.constant 0 : i32
    %c0_i32_2 = arith.constant 0 : i32
    return %c0_i32, %c0_i32_0, %c0_i32_1 : i32, i32, i32
  }
  func.func @transform_2(%arg0: i32) -> (i32, i32) {
    %c0_i32 = arith.constant 0 : i32
    %c0_i32_0 = arith.constant 0 : i32
    %c0_i32_1 = arith.constant 0 : i32
    return %c0_i32, %c0_i32_0 : i32, i32
  }
  func.func @transform_3(%arg0: i32) -> (i32, i32) {
    %c0_i32 = arith.constant 0 : i32
    %c0_i32_0 = arith.constant 0 : i32
    %c0_i32_1 = arith.constant 0 : i32
    return %c0_i32, %c0_i32_0 : i32, i32
  }
  func.func @transform_4(%arg0: i32) -> (i32, i32, i32) {
    %c0_i32 = arith.constant 0 : i32
    %c0_i32_0 = arith.constant 0 : i32
    %c0_i32_1 = arith.constant 0 : i32
    %c0_i32_2 = arith.constant 0 : i32
    return %c0_i32, %c0_i32_0, %c0_i32_1 : i32, i32, i32
  }
  func.func @transform_5(%arg0: i32) -> (i32, i32) {
    %c0_i32 = arith.constant 0 : i32
    %c0_i32_0 = arith.constant 0 : i32
    %c0_i32_1 = arith.constant 0 : i32
    return %c0_i32, %c0_i32_0 : i32, i32
  }
  func.func @transform_6(%arg0: i32) -> (i32, i32) {
    %c0_i32 = arith.constant 0 : i32
    %c0_i32_0 = arith.constant 0 : i32
    %c0_i32_1 = arith.constant 0 : i32
    return %c0_i32, %c0_i32_0 : i32, i32
  }
  func.func @transform_7(%arg0: i32) -> (i32, i32, i32) {
    %c0_i32 = arith.constant 0 : i32
    %c0_i32_0 = arith.constant 0 : i32
    %c0_i32_1 = arith.constant 0 : i32
    return %arg0, %c0_i32, %c0_i32_0 : i32, i32, i32
  }
}

</mosaic_0001>

<bundles_post_ra>
// kernel: tpu_custom_call.1
= control target key start
LH: loop header
LB: loop body
LE: loop exit
PB: predicated region body
PF: predicated region fallthrough
CT: control target
= control target key end

     0   :  { %s13217_s0 = inlined_call_operand.hbm [shape: f32[2,456,128], index: 0, kind: input, shape index: {}]   ;;  %s13218_s1 = inlined_call_operand.hbm [shape: f32[9,128,128], index: 1, kind: input, shape index: {}]   ;;  %s13219_s2 = inlined_call_operand.vmem [shape: f32[1,128], index: 2, kind: input, shape index: {}]   ;;  %s13220_s3 = inlined_call_operand.vmem [shape: f32[1,128], index: 3, kind: input, shape index: {}]   ;;  %s13221_s4 = inlined_call_operand.hbm [shape: f32[9,128,128], index: 4, kind: input, shape index: {}]   ;;  %s13222_s5 = inlined_call_operand.vmem [shape: f32[1,128], index: 5, kind: input, shape index: {}]   ;;  %s13223_s6 = inlined_call_operand.vmem [shape: f32[1,128], index: 6, kind: input, shape index: {}]   ;;  %s13224_s7 = inlined_call_operand.hbm [shape: f32[2,384,128], index: 7, kind: output, shape index: {}]  }
   0x1   :  { %13278 = sst [smem:[#allocation54_spill]] %s13218_s1 }
   0x2   :  { %13279 = sst [smem:[#allocation55_spill]] %s13221_s4 }
   0x3   :  { %12 = vsyncpa [#allocation4], 0 }
   0x4   :  { %14 = vsyncpa [#allocation4 + $0x1], 0 }
   0x5   :  { %15 = vsyncpa [#allocation7], 0 }
   0x6   :  { %16 = vsyncpa [#allocation5], 0 }
   0x7   :  { %18 = vsyncpa [#allocation5 + $0x1], 0  ;;  %s8406_s24 = smov 0   ;;  %s8408_s25 = smov 0  }
   0x8   :  { %s8410_s26 = smov 0   ;;  %s8412_s27 = smov 0  }
   0x9 LB: > { %s8427_s28 = sadd.s32 4294967295, %s8356_s27   ;;  %s8053_s29 = sadd.s32 4294967294, %s8356_s27   ;;  %s8356_s27 = sphi %s8412_s27, %s13802_s27   ;;  %s8352_s26 = sphi %s8410_s26, %s13801_s26   ;;  %s8348_s25 = sphi %s8408_s25, %s13800_s25   ;;  %s8344_s24 = sphi %s8406_s24, %s13799_s24  }
   0xa   : > { %p44_p0 = scmp.ne.s32.totalorder %s8348_s25, %s8344_s24  ;;  %p45_p1 = scmp.eq.s32.totalorder %s8427_s28, 0 }
   0xb   : > { %p194_p2 = scmp.eq.s32.totalorder %s8427_s28, 1  ;;  %p200_p3 = scmp.eq.s32.totalorder %s8053_s29, 1 }
   0xc   : > { %p8436_p4 = por %p45_p1, %p44_p0  ;;  %p8054_p5 = scmp.ge.s32.totalorder %s8356_s27, 1 }
   0xd   : > { %p8441_p6 = por %p200_p3, %p44_p0  ;;  %p207_p7 = scmp.lt.s32.totalorder %s8356_s27, 3 }
   0xe   : > { %s13282_s1 = sld [smem:[#allocation54_spill]]  ;;  %s8358_s13 = smov [#allocation6]  }
   0xf   : > { %p8449_p8 = pnand %p8054_p5, %p207_p7  ;;  %s220_s14 = sshll.u32 %s8358_s13, 4  ;;  %s221_s14 = int_to_ptr.vmem [resolvable:$true] %s220_s14 }
  0x10   : > { %s13284_s4 = sld [smem:[#allocation55_spill]]  ;;  %s13225_s18 = smov 128  }
  0x11   : > { %p8114_p9 = pneg %p8449_p8  ;;  %s13226_s19 = smov 8  }
  0x12   : > { %s8361_s20 = smov [#allocation8]   ;;  %s8468_s22 = sadd.s32 1, %s8356_s27  }
  0x13   : > { %p8115_p10 = pnand %p8114_p9, %p45_p1  ;;  %s240_s21 = sshll.u32 %s8361_s20, 4  ;;  %s241_s21 = int_to_ptr.vmem [resolvable:$true] %s240_s21 }
  0x14   : > { %s218_s11 = sshll.u32 %s13282_s1, 4  ;;  %s31_s23 = sadd.s32 1, %s8352_s26  ;;  %s219_s11 = int_to_ptr.hbm [resolvable:$true] %s218_s11 }
  0x15   : > { %8117 = dma.hbm_to_vmem [thread:$0]  (!%p8115_p10), %s219_s11, 18432, %s221_s14, [#allocation7], %s13225_s18, %s13225_s18, %s13226_s19  }
  0x16   : > { %s238_s17 = sshll.u32 %s13284_s4, 4  ;;  %s28_s29 = ssub.s32 %s8356_s27, %s8468_s22  ;;  %s239_s17 = int_to_ptr.hbm [resolvable:$true] %s238_s17 }
  0x17   : > { %8120 = dma.hbm_to_vmem [thread:$0]  (!%p8115_p10), %s239_s17, 18432, %s241_s21, [#allocation7], %s13225_s18, %s13225_s18, %s13226_s19  }
  0x18   : > { %p38_p12 = scmp.ne.s32.totalorder %s8352_s26, %s8348_s25  ;;  %p29_p13 = scmp.eq.s32.totalorder %s28_s29, 0 }
  0x19   : > { %p39_p0 = scmp.eq.s32.totalorder %s8356_s27, 0  ;;  %p8131_p5 = scmp.lt.s32.totalorder %s8356_s27, 2 }
  0x1a   : > { %p8478_p3 = por %p194_p2, %p38_p12  ;;  %s260_s11 = sand.u32 1, %s8352_s26  }
  0x1b   : > { %s8484_s10 = scalar_select %p29_p13, %s8352_s26, %s31_s23  }
  0x1c   : > { %p40_p7 = por %p39_p0, %p38_p12  ;;  %s8097_s13 = smul.u32 456, %s260_s11 }
  0x1d   : > { %13286 = sst [smem:[#allocation13_spill]] %s8484_s10  ;;  %s8098_s14 = smul.u32 456, %s8356_s27 }
  0x1e   : > { %p8488_p9 = pnand %p8131_p5, %p40_p7  ;;  %s264_s21 = scalar_lea.vmem [#allocation3], %s8097_s13 }
  0x1f   : > { %s269_s20 = scalar_lea.hbm %s13217_s0, %s8098_s14  ;;  %s272_s29 = sshll.u32 %s264_s21, 4  ;;  %s273_s29 = int_to_ptr.vmem [resolvable:$true] %s272_s29 }
  0x20   : > { %s270_s18 = sshll.u32 %s269_s20, 4  ;;  %s261_s23 = scalar_lea.sflag [#allocation4], %s260_s11  ;;  %s271_s18 = int_to_ptr.hbm [resolvable:$true] %s270_s18 }
  0x21   : > { %s8256_s19 = sshra.s32 %s271_s18, 4  ;;  %p8260_p10 = pneg %p8488_p9  ;;  %s8257_s19 = int_to_ptr.hbm [resolvable:$true] %s8256_s19 }
  0x22   : > { %s8258_s1 = scalar_lea.hbm %s8257_s19, 456  ;;  %s8263_s16 = scalar_lea.hbm %s13217_s0, 912 }
  0x23   : > { %p8259_p2 = scmp.ne.s32.totalorder %s8257_s19, %s8258_s1  ;;  %p8264_p0 = scmp.lt.s32.totalorder %s8257_s19, %s13217_s0 }
  0x24   : > { %p8265_p5 = scmp.lt.s32.totalorder %s8263_s16, %s8258_s1 }
  0x25   : > { %p8261_p12 = pnand %p8260_p10, %p8259_p2 }
  0x26   : > { %p8266_p7 = por %p8265_p5, %p8264_p0 }
  0x27   : > { %p8262_p13 = pneg %p8261_p12 }
  0x29   : > { %p8267_p11 = pnand %p8266_p7, %p8262_p13 }
  0x2b   : > { %8270 = shalt.err (!%p8267_p11)
}
  0x2c   : > { %s13288_s11 = smov 8   ;;  %s13289_s13 = smov 128  }
  0x2d   : > { %8124 = dma.hbm_to_vmem [thread:$0]  (!%p8488_p9), %s271_s18, 7296, %s273_s29, %s261_s23, %s13289_s13, %s13289_s13, %s13288_s11  }
  0x2e   : > { %284 = sbr.rel (%p8449_p8) target bundleno = 1964 (0x7ac), region = 48 }
  0x33   : > { %s8511_s4 = sand.u32 1, %s8348_s25  }
  0x34   : > { %s8099_s19 = smul.u32 456, %s8511_s4  ;;  %s287_s1 = scalar_lea.sflag [#allocation4], %s8511_s4 }
  0x36   : > { %s8515_s10 = scalar_lea.vmem [#allocation3], %s8099_s19 }
  0x37   : > { %8331 = dma.done.wait (%p8436_p4), %s287_s1, 7296  }
  0x38   : > { %8333 = vsyncadd (%p8436_p4), %s287_s1, 4294960000 }
  0x39   : > { %8335 = dma.done.wait (%p45_p1), [#allocation7], 36864  }
  0x3a   : > { %8337 = vsyncadd (%p45_p1), [#allocation7], 4294930432  ;;  %v440_v0 = vld [vmem:[#allocation6 + $0xf8] sm:$0xff]  ;;  %v439_v2 = vld [vmem:[#allocation6 + $0xf0] sm:$0xff]  ;;  %s8100_s19 = smul.u32 384, %s8511_s4 }
  0x3b   : > { %v391_v1 = vld [vmem:[#allocation6 + $0x78] sm:$0xff]  ;;  %441 = vmatpush.msra.mxu0 %v440_v0  ;;  %8065 = vmatpush.msra.mxu2 %v440_v0  ;;  %v390_v3 = vld [vmem:[#allocation6 + $0x70] sm:$0xff]  ;;  %v438_v4 = vld [vmem:[#allocation6 + $0xe8] sm:$0xff]  ;;  %s8101_s20 = smul.u32 384, %s8427_s28  ;;  %s7946_s28 = scalar_lea.sflag [#allocation5], %s8511_s4 }
  0x3c   : > { %554 = vmatpush.msra.mxu1 %v391_v1  ;;  %8081 = vmatpush.msra.mxu3 %v391_v1  ;;  %v389_v5 = vld [vmem:[#allocation6 + $0x68] sm:$0xff]  ;;  %v437_v6 = vld [vmem:[#allocation6 + $0xe0] sm:$0xff]  ;;  %v436_v8 = vld [vmem:[#allocation6 + $0xd8] sm:$0xff]  ;;  %s12604_s1 = scalar_lea.vmem [#allocation9], %s8100_s19 }
  0x3d   : > { %442 = vmatpush.msra.mxu0 %v439_v2  ;;  %8066 = vmatpush.msra.mxu2 %v439_v2  ;;  %v388_v7 = vld [vmem:[#allocation6 + $0x60] sm:$0xff]  ;;  %v387_v9 = vld [vmem:[#allocation6 + $0x58] sm:$0xff]  ;;  %v435_v10 = vld [vmem:[#allocation6 + $0xd0] sm:$0xff]  ;;  %s7957_s23 = scalar_lea.hbm %s13224_s7, %s8101_s20  ;;  %s7958_s16 = sshll.u32 %s12604_s1, 4  ;;  %s7959_s16 = int_to_ptr.vmem [resolvable:$true] %s7958_s16 }
  0x3e   : > { %555 = vmatpush.msra.mxu1 %v390_v3  ;;  %8082 = vmatpush.msra.mxu3 %v390_v3  ;;  %v386_v11 = vld [vmem:[#allocation6 + $0x50] sm:$0xff]  ;;  %v434_v12 = vld [vmem:[#allocation6 + $0xc8] sm:$0xff]  ;;  %v433_v14 = vld [vmem:[#allocation6 + $0xc0] sm:$0xff]  ;;  %s7960_s17 = sshll.u32 %s7957_s23, 4  ;;  %s7961_s17 = int_to_ptr.hbm [resolvable:$true] %s7960_s17 }
  0x3f   : > { %443 = vmatpush.msra.mxu0 %v438_v4  ;;  %8067 = vmatpush.msra.mxu2 %v438_v4  ;;  %v385_v13 = vld [vmem:[#allocation6 + $0x48] sm:$0xff]  ;;  %v384_v15 = vld [vmem:[#allocation6 + $0x40] sm:$0xff]  ;;  %v432_v16 = vld [vmem:[#allocation6 + $0xb8] sm:$0xff]  ;;  %s8300_s14 = sshra.s32 %s7961_s17, 4  ;;  %s8301_s14 = int_to_ptr.hbm [resolvable:$true] %s8300_s14 }
  0x40   : > { %556 = vmatpush.msra.mxu1 %v389_v5  ;;  %8083 = vmatpush.msra.mxu3 %v389_v5  ;;  %v383_v17 = vld [vmem:[#allocation6 + $0x38] sm:$0xff]  ;;  %v431_v18 = vld [vmem:[#allocation6 + $0xb0] sm:$0xff]  ;;  %v430_v20 = vld [vmem:[#allocation6 + $0xa8] sm:$0xff]  ;;  %s8302_s11 = scalar_lea.hbm %s8301_s14, 384  ;;  %p8307_p11 = scmp.lt.s32.totalorder %s8301_s14, %s13224_s7 }
  0x41   : > { %444 = vmatpush.msra.mxu0 %v437_v6  ;;  %8068 = vmatpush.msra.mxu2 %v437_v6  ;;  %v382_v19 = vld [vmem:[#allocation6 + $0x30] sm:$0xff]  ;;  %v381_v21 = vld [vmem:[#allocation6 + $0x28] sm:$0xff]  ;;  %v429_v22 = vld [vmem:[#allocation6 + $0xa0] sm:$0xff]  ;;  %p8303_p1 = scmp.ne.s32.totalorder %s8301_s14, %s8302_s11 }
  0x42   : > { %557 = vmatpush.msra.mxu1 %v388_v7  ;;  %8084 = vmatpush.msra.mxu3 %v388_v7  ;;  %v380_v23 = vld [vmem:[#allocation6 + $0x20] sm:$0xff]  ;;  %v428_v24 = vld [vmem:[#allocation6 + $0x98] sm:$0xff]  ;;  %v427_v26 = vld [vmem:[#allocation6 + $0x90] sm:$0xff] }
  0x43   : > { %445 = vmatpush.msra.mxu0 %v436_v8  ;;  %8069 = vmatpush.msra.mxu2 %v436_v8  ;;  %v379_v25 = vld [vmem:[#allocation6 + $0x18] sm:$0xff]  ;;  %v378_v27 = vld [vmem:[#allocation6 + $0x10] sm:$0xff]  ;;  %v426_v28 = vld [vmem:[#allocation6 + $0x88] sm:$0xff]  ;;  %p8304_p4 = pnand %p8303_p1, %p8478_p3 }
  0x44   : > { %558 = vmatpush.msra.mxu1 %v387_v9  ;;  %8085 = vmatpush.msra.mxu3 %v387_v9  ;;  %v377_v29 = vld [vmem:[#allocation6 + $0x8] sm:$0xff]  ;;  %v425_v30 = vld [vmem:[#allocation6 + $0x80] sm:$0xff]  ;;  %v344_v34 = vld [vmem:[%s8515_s10] sm:$0xff] }
  0x45   : > { %446 = vmatpush.msra.mxu0 %v435_v10  ;;  %8070 = vmatpush.msra.mxu2 %v435_v10  ;;  %v376_v31 = vld [vmem:[#allocation6] sm:$0xff]  ;;  %v8529_v35 = vld [vmem:[%s8515_s10 + $0xc0] sm:$0xff]  ;;  %v713_v44 = vld [vmem:[#allocation6 + $0x168] sm:$0xff]  ;;  %p8305_p8 = pneg %p8304_p4 }
  0x46   : > { %559 = vmatpush.msra.mxu1 %v386_v11  ;;  %8086 = vmatpush.msra.mxu3 %v386_v11  ;;  %v392_v32 = vld [vmem:[%s8515_s10 + $0x1] sm:$0xff]  ;;  %v907_v45 = vld [vmem:[#allocation6 + $0x1e8] sm:$0xff] }
  0x47   : > { %447 = vmatpush.msra.mxu0 %v434_v12  ;;  %8071 = vmatpush.msra.mxu2 %v434_v12  ;;  %v416_v33 = vld [vmem:[%s8515_s10 + $0xc1] sm:$0xff]  ;;  %v1101_v46 = vld [vmem:[#allocation6 + $0x268] sm:$0xff] }
  0x48   : > { %560 = vmatpush.msra.mxu1 %v385_v13  ;;  %8087 = vmatpush.msra.mxu3 %v385_v13  ;;  %v715_v36 = vld [vmem:[#allocation6 + $0x178] sm:$0xff]  ;;  %v714_v40 = vld [vmem:[#allocation6 + $0x170] sm:$0xff]  ;;  %v1295_v47 = vld [vmem:[#allocation6 + $0x2e8] sm:$0xff] }
  0x49   : > { %448 = vmatpush.msra.mxu0 %v433_v14  ;;  %8072 = vmatpush.msra.mxu2 %v433_v14  ;;  %v909_v37 = vld [vmem:[#allocation6 + $0x1f8] sm:$0xff]  ;;  %v908_v41 = vld [vmem:[#allocation6 + $0x1f0] sm:$0xff]  ;;  %v712_v52 = vld [vmem:[#allocation6 + $0x160] sm:$0xff] }
  0x4a   : > { %561 = vmatpush.msra.mxu1 %v384_v15  ;;  %8088 = vmatpush.msra.mxu3 %v384_v15  ;;  %v1103_v38 = vld [vmem:[#allocation6 + $0x278] sm:$0xff]  ;;  %v1102_v42 = vld [vmem:[#allocation6 + $0x270] sm:$0xff]  ;;  %v906_v53 = vld [vmem:[#allocation6 + $0x1e0] sm:$0xff] }
  0x4b   : > { %449 = vmatpush.msra.mxu0 %v432_v16  ;;  %8073 = vmatpush.msra.mxu2 %v432_v16  ;;  %v1297_v39 = vld [vmem:[#allocation6 + $0x2f8] sm:$0xff]  ;;  %v1296_v43 = vld [vmem:[#allocation6 + $0x2f0] sm:$0xff]  ;;  %v1100_v56 = vld [vmem:[#allocation6 + $0x260] sm:$0xff] }
  0x4c   : > { %562 = vmatpush.msra.mxu1 %v383_v17  ;;  %8089 = vmatpush.msra.mxu3 %v383_v17  ;;  %v393_v48 = vld [vmem:[%s8515_s10 + $0x9] sm:$0xff]  ;;  %v710_v57 = vld [vmem:[#allocation6 + $0x150] sm:$0xff] }
  0x4d   : > { %450 = vmatpush.msra.mxu0 %v431_v18  ;;  %8074 = vmatpush.msra.mxu2 %v431_v18  ;;  %v417_v49 = vld [vmem:[%s8515_s10 + $0xc9] sm:$0xff]  ;;  %v904_v58 = vld [vmem:[#allocation6 + $0x1d0] sm:$0xff] }
  0x4e   : > { %563 = vmatpush.msra.mxu1 %v382_v19  ;;  %8090 = vmatpush.msra.mxu3 %v382_v19  ;;  %v345_v50 = vld [vmem:[%s8515_s10 + $0x8] sm:$0xff]  ;;  %v394_v59 = vld [vmem:[%s8515_s10 + $0x11] sm:$0xff]  ;;  %v8547_v6 = vld [vmem:[%s8515_s10 + $0x19] sm:$0xff] }
  0x4f   : > { %451 = vmatpush.msra.mxu0 %v430_v20  ;;  %8075 = vmatpush.msra.mxu2 %v430_v20  ;;  %v8536_v51 = vld [vmem:[%s8515_s10 + $0xc8] sm:$0xff]  ;;  %v418_v60 = vld [vmem:[%s8515_s10 + $0xd1] sm:$0xff]  ;;  %v419_v7 = vld [vmem:[%s8515_s10 + $0xd9] sm:$0xff] }
  0x50   : > { %564 = vmatpush.msra.mxu1 %v381_v21  ;;  %8091 = vmatpush.msra.mxu3 %v381_v21  ;;  %v711_v54 = vld [vmem:[#allocation6 + $0x158] sm:$0xff]  ;;  %v346_v61 = vld [vmem:[%s8515_s10 + $0x10] sm:$0xff]  ;;  %v8551_v8 = vld [vmem:[%s8515_s10 + $0x18] sm:$0xff] }
  0x51   : > { %452 = vmatpush.msra.mxu0 %v429_v22  ;;  %8076 = vmatpush.msra.mxu2 %v429_v22  ;;  %v905_v55 = vld [vmem:[#allocation6 + $0x1d8] sm:$0xff]  ;;  %v8543_v62 = vld [vmem:[%s8515_s10 + $0xd0] sm:$0xff]  ;;  %v8554_v9 = vld [vmem:[%s8515_s10 + $0xd8] sm:$0xff] }
  0x52   : > { %565 = vmatpush.msra.mxu1 %v380_v23  ;;  %8092 = vmatpush.msra.mxu3 %v380_v23  ;;  %v709_v63 = vld [vmem:[#allocation6 + $0x148] sm:$0xff]  ;;  %v708_v1 = vld [vmem:[#allocation6 + $0x140] sm:$0xff]  ;;  %v707_v4 = vld [vmem:[#allocation6 + $0x138] sm:$0xff] }
  0x53   : > { %453 = vmatpush.msra.mxu0 %v428_v24  ;;  %8077 = vmatpush.msra.mxu2 %v428_v24  ;;  %v903_v0 = vld [vmem:[#allocation6 + $0x1c8] sm:$0xff]  ;;  %v902_v2 = vld [vmem:[#allocation6 + $0x1c0] sm:$0xff]  ;;  %v901_v5 = vld [vmem:[#allocation6 + $0x1b8] sm:$0xff] }
  0x54   : > { %566 = vmatpush.msra.mxu1 %v379_v25  ;;  %8093 = vmatpush.msra.mxu3 %v379_v25  ;;  %v1294_v3 = vld [vmem:[#allocation6 + $0x2e0] sm:$0xff]  ;;  %v706_v10 = vld [vmem:[#allocation6 + $0x130] sm:$0xff]  ;;  %v705_v12 = vld [vmem:[#allocation6 + $0x128] sm:$0xff] }
  0x55   : > { %454 = vmatpush.msra.mxu0 %v427_v26  ;;  %8078 = vmatpush.msra.mxu2 %v427_v26  ;;  %v900_v11 = vld [vmem:[#allocation6 + $0x1b0] sm:$0xff]  ;;  %v899_v13 = vld [vmem:[#allocation6 + $0x1a8] sm:$0xff]  ;;  %v1099_v14 = vld [vmem:[#allocation6 + $0x258] sm:$0xff] }
  0x56   : > { %567 = vmatpush.msra.mxu1 %v378_v27  ;;  %8094 = vmatpush.msra.mxu3 %v378_v27  ;;  %v1293_v15 = vld [vmem:[#allocation6 + $0x2d8] sm:$0xff]  ;;  %v704_v16 = vld [vmem:[#allocation6 + $0x120] sm:$0xff]  ;;  %v702_v24 = vld [vmem:[#allocation6 + $0x110] sm:$0xff] }
  0x57   : > { %455 = vmatpush.msra.mxu0 %v426_v28  ;;  %8079 = vmatpush.msra.mxu2 %v426_v28  ;;  %v898_v17 = vld [vmem:[#allocation6 + $0x1a0] sm:$0xff]  ;;  %v8564_v20 = vld [vmem:[%s8515_s10 + $0x20] sm:$0xff]  ;;  %v701_v27 = vld [vmem:[#allocation6 + $0x108] sm:$0xff] }
  0x58   : > { %568 = vmatpush.msra.mxu1 %v377_v29  ;;  %8095 = vmatpush.msra.mxu3 %v377_v29  ;;  %v8560_v18 = vld [vmem:[%s8515_s10 + $0x21] sm:$0xff]  ;;  %v895_v28 = vld [vmem:[#allocation6 + $0x188] sm:$0xff] }
  0x59   : > { %456 = vmatpush.msra.mxu0 %v425_v30  ;;  %8080 = vmatpush.msra.mxu2 %v425_v30  ;;  %v420_v19 = vld [vmem:[%s8515_s10 + $0xe1] sm:$0xff]  ;;  %v8573_v29 = vld [vmem:[%s8515_s10 + $0x29] sm:$0xff] }
  0x5a   : > { %569 = vmatpush.msra.mxu1 %v376_v31  ;;  %8096 = vmatpush.msra.mxu3 %v376_v31  ;;  %v8567_v21 = vld [vmem:[%s8515_s10 + $0xe0] sm:$0xff]  ;;  %v421_v30 = vld [vmem:[%s8515_s10 + $0xe9] sm:$0xff] }
  0x5b   : > { %457 = vmatmul.f32.vlgmr.msra.gmra.mxu0 %v392_v32  ;;  %529 = vmatmul.f32.vlgmr.msra.gmra.mxu2 %v416_v33  ;;  %v703_v22 = vld [vmem:[#allocation6 + $0x118] sm:$0xff]  ;;  %v896_v25 = vld [vmem:[#allocation6 + $0x190] sm:$0xff]  ;;  %v700_v33 = vld [vmem:[#allocation6 + $0x100] sm:$0xff] }
  0x5c   : > { %570 = vmatmul.f32.vlgmr.msra.gmra.mxu1 %v344_v34  ;;  %642 = vmatmul.f32.vlgmr.msra.gmra.mxu3 %v8529_v35  ;;  %v897_v23 = vld [vmem:[#allocation6 + $0x198] sm:$0xff]  ;;  %v1098_v26 = vld [vmem:[#allocation6 + $0x250] sm:$0xff]  ;;  %v894_v34 = vld [vmem:[#allocation6 + $0x180] sm:$0xff] }
  0x5d   : > { %716 = vmatpush.msrb.mxu2 %v715_v36  ;;  %910 = vmatpush.msrb.mxu3 %v909_v37  ;;  %v8577_v31 = vld [vmem:[%s8515_s10 + $0x28] sm:$0xff] }
  0x5e   : > { %1104 = vmatpush.msrb.mxu0 %v1103_v38  ;;  %1298 = vmatpush.msrb.mxu1 %v1297_v39  ;;  %v8580_v32 = vld [vmem:[%s8515_s10 + $0xe8] sm:$0xff]  ;;  %v1292_v38 = vld [vmem:[#allocation6 + $0x2d0] sm:$0xff] }
  0x5f   : > { %717 = vmatpush.msrb.mxu2 %v714_v40  ;;  %911 = vmatpush.msrb.mxu3 %v908_v41  ;;  %v1491_v36 = vld [vmem:[#allocation6 + $0x378] sm:$0xff]  ;;  %v8586_v39 = vld [vmem:[%s8515_s10 + $0x31] sm:$0xff] }
  0x60   : > { %1105 = vmatpush.msrb.mxu0 %v1102_v42  ;;  %1299 = vmatpush.msrb.mxu1 %v1296_v43  ;;  %v1685_v37 = vld [vmem:[#allocation6 + $0x3f8] sm:$0xff]  ;;  %v422_v40 = vld [vmem:[%s8515_s10 + $0xf1] sm:$0xff] }
  0x61   : > { %718 = vmatpush.msrb.mxu2 %v713_v44  ;;  %912 = vmatpush.msrb.mxu3 %v907_v45  ;;  %v8590_v41 = vld [vmem:[%s8515_s10 + $0x30] sm:$0xff]  ;;  %v1490_v43 = vld [vmem:[#allocation6 + $0x370] sm:$0xff] }
  0x62   : > { %1106 = vmatpush.msrb.mxu0 %v1101_v46  ;;  %1300 = vmatpush.msrb.mxu1 %v1295_v47  ;;  %v8593_v42 = vld [vmem:[%s8515_s10 + $0xf0] sm:$0xff]  ;;  %v1684_v45 = vld [vmem:[#allocation6 + $0x3f0] sm:$0xff] }
  0x63   : > { %460 = vmatmul.f32.gmra.mxu0 %v393_v48  ;;  %532 = vmatmul.f32.gmra.mxu2 %v417_v49  ;;  %v1097_v44 = vld [vmem:[#allocation6 + $0x248] sm:$0xff] }
  0x64   : > { %573 = vmatmul.f32.gmra.mxu1 %v345_v50  ;;  %645 = vmatmul.f32.gmra.mxu3 %v8536_v51  ;;  %v1291_v46 = vld [vmem:[#allocation6 + $0x2c8] sm:$0xff] }
  0x65   : > { %719 = vmatpush.msrb.mxu2 %v712_v52  ;;  %913 = vmatpush.msrb.mxu3 %v906_v53  ;;  %v8599_v47 = vld [vmem:[%s8515_s10 + $0x39] sm:$0xff]  ;;  %v1096_v52 = vld [vmem:[#allocation6 + $0x240] sm:$0xff] }
  0x66   : > { %1107 = vmatpush.msrb.mxu0 %v1100_v56  ;;  %1301 = vmatpush.msrb.mxu1 %v1294_v3  ;;  %v423_v48 = vld [vmem:[%s8515_s10 + $0xf9] sm:$0xff]  ;;  %v8609_v53 = vld [vmem:[%s8515_s10 + $0x41] sm:$0xff]  ;;  %v354_v3 = vld [vmem:[%s8515_s10 + $0x50] sm:$0xff] }
  0x67   : > { %720 = vmatpush.msrb.mxu2 %v711_v54  ;;  %914 = vmatpush.msrb.mxu3 %v905_v55  ;;  %v351_v49 = vld [vmem:[%s8515_s10 + $0x38] sm:$0xff]  ;;  %v667_v54 = vld [vmem:[%s8515_s10 + $0x2] sm:$0xff] }
  0x68   : > { %1108 = vmatpush.msrb.mxu0 %v1099_v14  ;;  %1302 = vmatpush.msrb.mxu1 %v1293_v15  ;;  %v8604_v50 = vld [vmem:[%s8515_s10 + $0xf8] sm:$0xff]  ;;  %v8613_v55 = vld [vmem:[%s8515_s10 + $0x40] sm:$0xff]  ;;  %v1290_v56 = vld [vmem:[#allocation6 + $0x2c0] sm:$0xff] }
  0x69   : > { %721 = vmatpush.msrb.mxu2 %v710_v57  ;;  %915 = vmatpush.msrb.mxu3 %v904_v58  ;;  %v1489_v57 = vld [vmem:[#allocation6 + $0x368] sm:$0xff]  ;;  %v8646_v14 = vld [vmem:[%s8515_s10 + $0x22] sm:$0xff] }
  0x6a   : > { %1109 = vmatpush.msrb.mxu0 %v1098_v26  ;;  %1303 = vmatpush.msrb.mxu1 %v1292_v38  ;;  %v1683_v58 = vld [vmem:[#allocation6 + $0x3e8] sm:$0xff]  ;;  %v8649_v15 = vld [vmem:[%s8515_s10 + $0x60] sm:$0xff] }
  0x6b   : > { %463 = vmatmul.f32.gmra.mxu0 %v394_v59  ;;  %535 = vmatmul.f32.gmra.mxu2 %v418_v60  ;;  %v8619_v59 = vld [vmem:[%s8515_s10 + $0x49] sm:$0xff]  ;;  %v8671_v26 = vld [vmem:[%s8515_s10 + $0x32] sm:$0xff] }
  0x6c   : > { %576 = vmatmul.f32.gmra.mxu1 %v346_v61  ;;  %648 = vmatmul.f32.gmra.mxu3 %v8543_v62  ;;  %v668_v60 = vld [vmem:[%s8515_s10 + $0xa] sm:$0xff] }
  0x6d   : > { %722 = vmatpush.msrb.mxu2 %v709_v63  ;;  %916 = vmatpush.msrb.mxu3 %v903_v0  ;;  %v353_v61 = vld [vmem:[%s8515_s10 + $0x48] sm:$0xff] }
  0x6e   : > { %1110 = vmatpush.msrb.mxu0 %v1097_v44  ;;  %1304 = vmatpush.msrb.mxu1 %v1291_v46  ;;  %v1095_v63 = vld [vmem:[#allocation6 + $0x238] sm:$0xff] }
  0x6f   : > { %723 = vmatpush.msrb.mxu2 %v708_v1  ;;  %917 = vmatpush.msrb.mxu3 %v902_v2  ;;  %v1289_v0 = vld [vmem:[#allocation6 + $0x2b8] sm:$0xff]  ;;  %v8626_v1 = vld [vmem:[%s8515_s10 + $0x51] sm:$0xff] }
  0x70   : > { %1111 = vmatpush.msrb.mxu0 %v1096_v52  ;;  %1305 = vmatpush.msrb.mxu1 %v1290_v56  ;;  %v669_v2 = vld [vmem:[%s8515_s10 + $0x12] sm:$0xff]  ;;  %v1091_v38 = vld [vmem:[#allocation6 + $0x218] sm:$0xff] }
  0x71   : > { %724 = vmatpush.msrb.mxu2 %v707_v4  ;;  %918 = vmatpush.msrb.mxu3 %v901_v5  ;;  %v1488_v4 = vld [vmem:[#allocation6 + $0x360] sm:$0xff]  ;;  %v1285_v44 = vld [vmem:[#allocation6 + $0x298] sm:$0xff] }
  0x72   : > { %1112 = vmatpush.msrb.mxu0 %v1095_v63  ;;  %1306 = vmatpush.msrb.mxu1 %v1289_v0  ;;  %v1682_v5 = vld [vmem:[#allocation6 + $0x3e0] sm:$0xff]  ;;  %v8702_v46 = vld [vmem:[%s8515_s10 + $0x80] sm:$0xff] }
  0x73   : > { %466 = vmatmul.f32.gmra.mxu0 %v8547_v6  ;;  %538 = vmatmul.f32.gmra.mxu2 %v419_v7  ;;  %v1094_v7 = vld [vmem:[#allocation6 + $0x230] sm:$0xff] }
  0x74   : > { %579 = vmatmul.f32.gmra.mxu1 %v8551_v8  ;;  %651 = vmatmul.f32.gmra.mxu3 %v8554_v9  ;;  %v1090_v63 = vld [vmem:[#allocation6 + $0x210] sm:$0xff] }
  0x75   : > { %725 = vmatpush.msrb.mxu2 %v706_v10  ;;  %919 = vmatpush.msrb.mxu3 %v900_v11  ;;  %v8636_v10 = vld [vmem:[%s8515_s10 + $0x1a] sm:$0xff] }
  0x76   : > { %1113 = vmatpush.msrb.mxu0 %v1094_v7  ;;  %v355_v11 = vld [vmem:[%s8515_s10 + $0x58] sm:$0xff] }
  0x77   : > { %726 = vmatpush.msrb.mxu2 %v705_v12  ;;  %920 = vmatpush.msrb.mxu3 %v899_v13  ;;  %v1288_v12 = vld [vmem:[#allocation6 + $0x2b0] sm:$0xff] }
  0x78   : > { %1307 = vmatpush.msrb.mxu1 %v1288_v12  ;;  %v8643_v13 = vld [vmem:[%s8515_s10 + $0x61] sm:$0xff]  ;;  %v8731_v7 = vld [vmem:[%s8515_s10 + $0x91] sm:$0xff] }
  0x79   : > { %727 = vmatpush.msrb.mxu2 %v704_v16  ;;  %921 = vmatpush.msrb.mxu3 %v898_v17  ;;  %v1487_v16 = vld [vmem:[#allocation6 + $0x358] sm:$0xff]  ;;  %v1093_v17 = vld [vmem:[#allocation6 + $0x228] sm:$0xff]  ;;  %v1284_v0 = vld [vmem:[#allocation6 + $0x290] sm:$0xff]  ;;  %13294 = vst [vmem:[#allocation18_spill] sm:$0xff] %v8731_v7 }
  0x7a   : > { %1114 = vmatpush.msrb.mxu0 %v1093_v17  ;;  %v1089_v17 = vld [vmem:[#allocation6 + $0x208] sm:$0xff] }
  0x7b   : > { %469 = vmatmul.f32.gmra.mxu0 %v8560_v18  ;;  %541 = vmatmul.f32.gmra.mxu2 %v420_v19  ;;  %v1681_v19 = vld [vmem:[#allocation6 + $0x3d8] sm:$0xff] }
  0x7c   : > { %582 = vmatmul.f32.gmra.mxu1 %v8564_v20  ;;  %654 = vmatmul.f32.gmra.mxu3 %v8567_v21 }
  0x7d   : > { %728 = vmatpush.msrb.mxu2 %v703_v22  ;;  %922 = vmatpush.msrb.mxu3 %v897_v23  ;;  %v8658_v22 = vld [vmem:[%s8515_s10 + $0x2a] sm:$0xff] }
  0x7e   : > { %v1287_v23 = vld [vmem:[#allocation6 + $0x2a8] sm:$0xff] }
  0x7f   : > { %729 = vmatpush.msrb.mxu2 %v702_v24  ;;  %923 = vmatpush.msrb.mxu3 %v896_v25  ;;  %v8661_v24 = vld [vmem:[%s8515_s10 + $0x68] sm:$0xff]  ;;  %v8668_v25 = vld [vmem:[%s8515_s10 + $0x71] sm:$0xff] }
  0x80   : > { %1308 = vmatpush.msrb.mxu1 %v1287_v23 }
  0x81   : > { %730 = vmatpush.msrb.mxu2 %v701_v27  ;;  %924 = vmatpush.msrb.mxu3 %v895_v28  ;;  %v8674_v27 = vld [vmem:[%s8515_s10 + $0x70] sm:$0xff] }
  0x82   : > { %v1092_v28 = vld [vmem:[#allocation6 + $0x220] sm:$0xff] }
  0x83   : > { %472 = vmatmul.f32.gmra.mxu0 %v8573_v29  ;;  %544 = vmatmul.f32.gmra.mxu2 %v421_v30  ;;  %v1286_v30 = vld [vmem:[#allocation6 + $0x2a0] sm:$0xff] }
  0x84   : > { %585 = vmatmul.f32.gmra.mxu1 %v8577_v31  ;;  %657 = vmatmul.f32.gmra.mxu3 %v8580_v32 }
  0x85   : > { %731 = vmatpush.msrb.mxu2 %v700_v33  ;;  %925 = vmatpush.msrb.mxu3 %v894_v34  ;;  %v1680_v33 = vld [vmem:[#allocation6 + $0x3d0] sm:$0xff] }
  0x86   : > { %1115 = vmatpush.msrb.mxu0 %v1092_v28  ;;  %1309 = vmatpush.msrb.mxu1 %v1286_v30  ;;  %v8680_v34 = vld [vmem:[%s8515_s10 + $0x79] sm:$0xff] }
  0x87   : > { %1492 = vmatpush.msra.mxu2 %v1491_v36  ;;  %1686 = vmatpush.msra.mxu3 %v1685_v37  ;;  %v8683_v36 = vld [vmem:[%s8515_s10 + $0x3a] sm:$0xff] }
  0x88   : > { %v8686_v37 = vld [vmem:[%s8515_s10 + $0x78] sm:$0xff]  ;;  %1116 = vmatpush.msrb.mxu0 %v1091_v38  ;;  %1310 = vmatpush.msrb.mxu1 %v1285_v44 }
  0x89   : > { %1493 = vmatpush.msra.mxu2 %v1490_v43  ;;  %1687 = vmatpush.msra.mxu3 %v1684_v45  ;;  %v8697_v43 = vld [vmem:[%s8515_s10 + $0x42] sm:$0xff]  ;;  %v8753_v38 = vld [vmem:[%s8515_s10 + $0x5a] sm:$0xff] }
  0x8a   : > { %1117 = vmatpush.msrb.mxu0 %v1090_v63  ;;  %1311 = vmatpush.msrb.mxu1 %v1284_v0  ;;  %v8769_v0 = vld [vmem:[%s8515_s10 + $0xa1] sm:$0xff] }
  0x8b   : > { %475 = vmatmul.f32.gmra.mxu0 %v8586_v39  ;;  %547 = vmatmul.f32.gmra.mxu2 %v422_v40  ;;  %13298 = vst [vmem:[#allocation22_spill] sm:$0xff] %v8769_v0 }
  0x8c   : > { %588 = vmatmul.f32.gmra.mxu1 %v8590_v41  ;;  %660 = vmatmul.f32.gmra.mxu3 %v8593_v42 }
  0x8d   : > { %1494 = vmatpush.msra.mxu2 %v1489_v57  ;;  %1688 = vmatpush.msra.mxu3 %v1683_v58  ;;  %v8712_v57 = vld [vmem:[%s8515_s10 + $0x89] sm:$0xff] }
  0x8e   : > { %13292 = vst [vmem:[#allocation16_spill] sm:$0xff] %v8712_v57  ;;  %v8715_v58 = vld [vmem:[%s8515_s10 + $0x4a] sm:$0xff]  ;;  %1118 = vmatpush.msrb.mxu0 %v1089_v17 }
  0x8f   : > { %1495 = vmatpush.msra.mxu2 %v1488_v4  ;;  %1689 = vmatpush.msra.mxu3 %v1682_v5  ;;  %v1088_v17 = vld [vmem:[#allocation6 + $0x200] sm:$0xff] }
  0x90   : > { %1119 = vmatpush.msrb.mxu0 %v1088_v17  ;;  %v1879_v17 = vld [vmem:[#allocation6 + $0x478] sm:$0xff] }
  0x91   : > { %1496 = vmatpush.msra.mxu2 %v1487_v16  ;;  %1690 = vmatpush.msra.mxu3 %v1681_v19  ;;  %v8739_v16 = vld [vmem:[%s8515_s10 + $0x90] sm:$0xff] }
  0x92   : > { %v1678_v19 = vld [vmem:[#allocation6 + $0x3c0] sm:$0xff]  ;;  %1880 = vmatpush.msra.mxu0 %v1879_v17  ;;  %v1676_v17 = vld [vmem:[#allocation6 + $0x3b0] sm:$0xff] }
  0x93   : > { %478 = vmatmul.f32.gmra.mxu0 %v8599_v47  ;;  %550 = vmatmul.f32.gmra.mxu2 %v423_v48  ;;  %v1485_v48 = vld [vmem:[#allocation6 + $0x348] sm:$0xff] }
  0x94   : > { %591 = vmatmul.f32.gmra.mxu1 %v351_v49  ;;  %663 = vmatmul.f32.gmra.mxu3 %v8604_v50 }
  0x95   : > { %1691 = vmatpush.msra.mxu3 %v1680_v33  ;;  %v8750_v33 = vld [vmem:[%s8515_s10 + $0x99] sm:$0xff] }
  0x96   : > { %13296 = vst [vmem:[#allocation20_spill] sm:$0xff] %v8750_v33 }
  0x9b   : > { %481 = vmatmul.f32.gmra.mxu0 %v8609_v53  ;;  %732 = vmatmul.f32.vlgmr.msrb.gmra.mxu2 %v667_v54 }
  0x9c   : > { %594 = vmatmul.f32.gmra.mxu1 %v8613_v55  ;;  %926 = vmatmul.f32.vlgmr.msrb.gmra.mxu3 %v8551_v8  ;;  %v8633_v8 = vld [vmem:[%s8515_s10 + $0x59] sm:$0xff] }
  0xa3   : > { %484 = vmatmul.f32.gmra.mxu0 %v8619_v59  ;;  %735 = vmatmul.f32.gmra.mxu2 %v668_v60 }
  0xa4   : > { %597 = vmatmul.f32.gmra.mxu1 %v353_v61  ;;  %929 = vmatmul.f32.gmra.mxu3 %v8564_v20  ;;  %v8655_v20 = vld [vmem:[%s8515_s10 + $0x69] sm:$0xff] }
  0xab   : > { %487 = vmatmul.f32.gmra.mxu0 %v8626_v1  ;;  %738 = vmatmul.f32.gmra.mxu2 %v669_v2 }
  0xac   : > { %600 = vmatmul.f32.gmra.mxu1 %v354_v3  ;;  %932 = vmatmul.f32.gmra.mxu3 %v8577_v31  ;;  %v1486_v31 = vld [vmem:[#allocation6 + $0x350] sm:$0xff] }
  0xad   : > { %1497 = vmatpush.msra.mxu2 %v1486_v31 }
  0xaf   : > { %1498 = vmatpush.msra.mxu2 %v1485_v48  ;;  %v8758_v48 = vld [vmem:[%s8515_s10 + $0x98] sm:$0xff] }
  0xb3   : > { %490 = vmatmul.f32.gmra.mxu0 %v8633_v8  ;;  %741 = vmatmul.f32.gmra.mxu2 %v8636_v10 }
  0xb4   : > { %603 = vmatmul.f32.gmra.mxu1 %v355_v11  ;;  %935 = vmatmul.f32.gmra.mxu3 %v8590_v41  ;;  %v8694_v41 = vld [vmem:[%s8515_s10 + $0x81] sm:$0xff] }
  0xb5   : > { %13290 = vst [vmem:[#allocation14_spill] sm:$0xff] %v8694_v41 }
  0xbb   : > { %493 = vmatmul.f32.gmra.mxu0 %v8643_v13  ;;  %744 = vmatmul.f32.gmra.mxu2 %v8646_v14 }
  0xbc   : > { %606 = vmatmul.f32.gmra.mxu1 %v8649_v15  ;;  %938 = vmatmul.f32.gmra.mxu3 %v351_v49  ;;  %v1679_v49 = vld [vmem:[#allocation6 + $0x3c8] sm:$0xff] }
  0xbd   : > { %1692 = vmatpush.msra.mxu3 %v1679_v49 }
  0xbf   : > { %1693 = vmatpush.msra.mxu3 %v1678_v19  ;;  %v1282_v19 = vld [vmem:[#allocation6 + $0x280] sm:$0xff] }
  0xc3   : > { %496 = vmatmul.f32.gmra.mxu0 %v8655_v20  ;;  %747 = vmatmul.f32.gmra.mxu2 %v8658_v22 }
  0xc4   : > { %609 = vmatmul.f32.gmra.mxu1 %v8661_v24  ;;  %941 = vmatmul.f32.gmra.mxu3 %v8613_v55 }
  0xcb   : > { %499 = vmatmul.f32.gmra.mxu0 %v8668_v25  ;;  %750 = vmatmul.f32.gmra.mxu2 %v8671_v26 }
  0xcc   : > { %612 = vmatmul.f32.gmra.mxu1 %v8674_v27  ;;  %944 = vmatmul.f32.gmra.mxu3 %v353_v61  ;;  %v8720_v61 = vld [vmem:[%s8515_s10 + $0x88] sm:$0xff] }
  0xd3   : > { %502 = vmatmul.f32.gmra.mxu0 %v8680_v34  ;;  %753 = vmatmul.f32.gmra.mxu2 %v8683_v36 }
  0xd4   : > { %615 = vmatmul.f32.gmra.mxu1 %v8686_v37  ;;  %947 = vmatmul.f32.gmra.mxu3 %v354_v3 }
  0xd8   : > { %v8691_v40 = vpop.f32.mrf.mxu0 }
  0xd9   : > { %v8699_v45 = vpop.f32.mrf.mxu1 }
  0xdb   : > { %505 = vmatmul.f32.gmra.mxu0 %v8694_v41  ;;  %756 = vmatmul.f32.gmra.mxu2 %v8697_v43 }
  0xdc   : > { %618 = vmatmul.f32.gmra.mxu1 %v8702_v46  ;;  %950 = vmatmul.f32.gmra.mxu3 %v355_v11  ;;  %v8734_v11 = vld [vmem:[%s8515_s10 + $0x52] sm:$0xff] }
  0xde   : > { %v530_v52 = vpop.f32.mrf.mxu2 }
  0xdf   : > { %v643_v54 = vpop.f32.mrf.mxu3 }
  0xe0   : > { %v8707_v55 = vadd.f32 %v643_v54, %v530_v52  ;;  %v8709_v56 = vpop.f32.mrf.mxu0 }
  0xe1   : > { %v8717_v60 = vpop.f32.mrf.mxu1 }
  0xe2   : > { %13291 = vst [vmem:[#allocation15_spill] sm:$0xff] %v8707_v55 }
  0xe3   : > { %508 = vmatmul.f32.gmra.mxu0 %v8712_v57  ;;  %759 = vmatmul.f32.gmra.mxu2 %v8715_v58  ;;  %v8834_v57 = vld [vmem:[%s8515_s10 + $0xb8] sm:$0xff] }
  0xe4   : > { %621 = vmatmul.f32.gmra.mxu1 %v8720_v61  ;;  %953 = vmatmul.f32.gmra.mxu3 %v8649_v15  ;;  %v1484_v15 = vld [vmem:[#allocation6 + $0x340] sm:$0xff] }
  0xe5   : > { %1499 = vmatpush.msra.mxu2 %v1484_v15  ;;  %v8777_v15 = vld [vmem:[%s8515_s10 + $0xa0] sm:$0xff] }
  0xe6   : > { %v533_v2 = vpop.f32.mrf.mxu2 }
  0xe7   : > { %v646_v3 = vpop.f32.mrf.mxu3 }
  0xe8   : > { %v8726_v4 = vadd.f32 %v646_v3, %v533_v2  ;;  %v8728_v5 = vpop.f32.mrf.mxu0  ;;  %v8772_v2 = vld [vmem:[%s8515_s10 + $0x62] sm:$0xff] }
  0xe9   : > { %v8736_v12 = vpop.f32.mrf.mxu1 }
  0xea   : > { %13293 = vst [vmem:[#allocation17_spill] sm:$0xff] %v8726_v4  ;;  %v8796_v4 = vld [vmem:[%s8515_s10 + $0xa8] sm:$0xff] }
  0xeb   : > { %511 = vmatmul.f32.gmra.mxu0 %v8731_v7  ;;  %762 = vmatmul.f32.gmra.mxu2 %v8734_v11 }
  0xec   : > { %624 = vmatmul.f32.gmra.mxu1 %v8739_v16  ;;  %956 = vmatmul.f32.gmra.mxu3 %v8661_v24  ;;  %v1283_v24 = vld [vmem:[#allocation6 + $0x288] sm:$0xff] }
  0xed   : > { %1312 = vmatpush.msrb.mxu1 %v1283_v24 }
  0xee   : > { %v536_v23 = vpop.f32.mrf.mxu2 }
  0xef   : > { %v649_v28 = vpop.f32.mrf.mxu3  ;;  %1313 = vmatpush.msrb.mxu1 %v1282_v19 }
  0xf0   : > { %v8745_v30 = vadd.f32 %v649_v28, %v536_v23  ;;  %v8747_v31 = vpop.f32.mrf.mxu0  ;;  %v1677_v23 = vld [vmem:[#allocation6 + $0x3b8] sm:$0xff] }
  0xf1   : > { %v8755_v44 = vpop.f32.mrf.mxu1  ;;  %1694 = vmatpush.msra.mxu3 %v1677_v23 }
  0xf2   : > { %13295 = vst [vmem:[#allocation19_spill] sm:$0xff] %v8745_v30  ;;  %v8791_v30 = vld [vmem:[%s8515_s10 + $0x6a] sm:$0xff] }
  0xf3   : > { %514 = vmatmul.f32.gmra.mxu0 %v8750_v33  ;;  %765 = vmatmul.f32.gmra.mxu2 %v8753_v38 }
  0xf4   : > { %627 = vmatmul.f32.gmra.mxu1 %v8758_v48  ;;  %959 = vmatmul.f32.gmra.mxu3 %v8674_v27  ;;  %v1483_v27 = vld [vmem:[#allocation6 + $0x338] sm:$0xff] }
  0xf5   : > { %1500 = vmatpush.msra.mxu2 %v1483_v27  ;;  %1695 = vmatpush.msra.mxu3 %v1676_v17 }
  0xf6   : > { %v539_v49 = vpop.f32.mrf.mxu2 }
  0xf7   : > { %v652_v52 = vpop.f32.mrf.mxu3 }
  0xf8   : > { %v8764_v54 = vadd.f32 %v652_v52, %v539_v49  ;;  %v8766_v63 = vpop.f32.mrf.mxu0 }
  0xf9   : > { %v8774_v3 = vpop.f32.mrf.mxu1 }
  0xfa   : > { %13297 = vst [vmem:[#allocation21_spill] sm:$0xff] %v8764_v54  ;;  %v8788_v54 = vld [vmem:[%s8515_s10 + $0xa9] sm:$0xff] }
  0xfb   : > { %517 = vmatmul.f32.gmra.mxu0 %v8769_v0  ;;  %768 = vmatmul.f32.gmra.mxu2 %v8772_v2  ;;  %13300 = vst [vmem:[#allocation24_spill] sm:$0xff] %v8788_v54  ;;  %v3407_v0 = vld [vmem:[#allocation6 + $0xf8] sm:$0xff] }
  0xfc   : > { %630 = vmatmul.f32.gmra.mxu1 %v8777_v15  ;;  %962 = vmatmul.f32.gmra.mxu3 %v8686_v37 }
  0xfd   : > { %3408 = vmatpush.msra.mxu1 %v3407_v0  ;;  %v8826_v0 = vld [vmem:[%s8515_s10 + $0xb9] sm:$0xff] }
  0xfe   : > { %v542_v28 = vpop.f32.mrf.mxu2  ;;  %13304 = vst [vmem:[#allocation28_spill] sm:$0xff] %v8826_v0 }
  0xff   : > { %v655_v24 = vpop.f32.mrf.mxu3 }
 0x100   : > { %v8783_v49 = vadd.f32 %v655_v24, %v542_v28  ;;  %v8785_v52 = vpop.f32.mrf.mxu0  ;;  %v8807_v24 = vld [vmem:[%s8515_s10 + $0xb1] sm:$0xff] }
 0x101   : > { %v8793_v37 = vpop.f32.mrf.mxu1  ;;  %13302 = vst [vmem:[#allocation26_spill] sm:$0xff] %v8807_v24 }
 0x102   : > { %13299 = vst [vmem:[#allocation23_spill] sm:$0xff] %v8783_v49  ;;  %v8810_v49 = vld [vmem:[%s8515_s10 + $0x72] sm:$0xff] }
 0x103   : > { %520 = vmatmul.f32.gmra.mxu0 %v8788_v54  ;;  %771 = vmatmul.f32.gmra.mxu2 %v8791_v30  ;;  %v8815_v54 = vld [vmem:[%s8515_s10 + $0xb0] sm:$0xff] }
 0x104   : > { %633 = vmatmul.f32.gmra.mxu1 %v8796_v4  ;;  %965 = vmatmul.f32.gmra.mxu3 %v8702_v46  ;;  %v1482_v46 = vld [vmem:[#allocation6 + $0x330] sm:$0xff] }
 0x105   : > { %1501 = vmatpush.msra.mxu2 %v1482_v46 }
 0x106   : > { %v545_v19 = vpop.f32.mrf.mxu2 }
 0x107   : > { %v658_v27 = vpop.f32.mrf.mxu3 }
 0x108   : > { %v8802_v23 = vadd.f32 %v658_v27, %v545_v19  ;;  %v8804_v28 = vpop.f32.mrf.mxu0 }
 0x109   : > { %v8812_v55 = vpop.f32.mrf.mxu1 }
 0x10a   : > { %13301 = vst [vmem:[#allocation25_spill] sm:$0xff] %v8802_v23 }
 0x10b   : > { %523 = vmatmul.f32.gmra.mxu0 %v8807_v24  ;;  %774 = vmatmul.f32.gmra.mxu2 %v8810_v49  ;;  %v8829_v24 = vld [vmem:[%s8515_s10 + $0x7a] sm:$0xff] }
 0x10c   : > { %636 = vmatmul.f32.gmra.mxu1 %v8815_v54  ;;  %968 = vmatmul.f32.gmra.mxu3 %v8720_v61  ;;  %13305 = vst [vmem:[#allocation29_spill] sm:$0xff] %v8829_v24  ;;  %v1878_v61 = vld [vmem:[#allocation6 + $0x470] sm:$0xff] }
 0x10d   : > { %1881 = vmatpush.msra.mxu0 %v1878_v61  ;;  %v1675_v61 = vld [vmem:[#allocation6 + $0x3a8] sm:$0xff] }
 0x10e   : > { %v548_v19 = vpop.f32.mrf.mxu2  ;;  %1696 = vmatpush.msra.mxu3 %v1675_v61 }
 0x10f   : > { %v661_v27 = vpop.f32.mrf.mxu3 }
 0x110   : > { %v8821_v23 = vadd.f32 %v661_v27, %v548_v19  ;;  %v8823_v33 = vpop.f32.mrf.mxu0 }
 0x111   : > { %v8831_v7 = vpop.f32.mrf.mxu1 }
 0x112   : > { %13303 = vst [vmem:[#allocation27_spill] sm:$0xff] %v8821_v23  ;;  %v8845_v23 = vld [vmem:[%s8515_s10 + $0x82] sm:$0xff] }
 0x113   : > { %526 = vmatmul.f32.gmra.mxu0 %v8826_v0  ;;  %777 = vmatmul.f32.gmra.mxu2 %v8829_v24  ;;  %13307 = vst [vmem:[#allocation31_spill] sm:$0xff] %v8845_v23  ;;  %v3406_v0 = vld [vmem:[#allocation6 + $0xf0] sm:$0xff] }
 0x114   : > { %639 = vmatmul.f32.gmra.mxu1 %v8834_v57  ;;  %971 = vmatmul.f32.gmra.mxu3 %v8739_v16  ;;  %v1481_v16 = vld [vmem:[#allocation6 + $0x328] sm:$0xff] }
 0x115   : > { %3409 = vmatpush.msra.mxu1 %v3406_v0  ;;  %1502 = vmatpush.msra.mxu2 %v1481_v16 }
 0x116   : > { %v551_v46 = vpop.f32.mrf.mxu2 }
 0x117   : > { %v664_v17 = vpop.f32.mrf.mxu3 }
 0x118   : > { %v8840_v19 = vadd.f32 %v664_v17, %v551_v46  ;;  %v8842_v27 = vpop.f32.mrf.mxu0  ;;  %v572_v46 = vadd.f32 %v8699_v45, %v8691_v40  ;;  %v575_v40 = vadd.f32 %v8717_v60, %v8709_v56  ;;  %v1674_v56 = vld [vmem:[#allocation6 + $0x3a0] sm:$0xff]  ;;  %v578_v60 = vadd.f32 %v8736_v12, %v8728_v5 }
 0x119   : > { %v8847_v41 = vpop.f32.mrf.mxu1  ;;  %1697 = vmatpush.msra.mxu3 %v1674_v56  ;;  %v581_v5 = vadd.f32 %v8755_v44, %v8747_v31  ;;  %v8903_v56 = vld [vmem:[%s8515_s10 + $0xa2] sm:$0xff]  ;;  %v584_v44 = vadd.f32 %v8774_v3, %v8766_v63  ;;  %v587_v63 = vadd.f32 %v8793_v37, %v8785_v52  ;;  %v590_v52 = vadd.f32 %v8812_v55, %v8804_v28 }
 0x11a   : > { %13306 = vst [vmem:[#allocation30_spill] sm:$0xff] %v8840_v19  ;;  %v1673_v31 = vld [vmem:[#allocation6 + $0x398] sm:$0xff]  ;;  %v1874_v55 = vld [vmem:[#allocation6 + $0x450] sm:$0xff] }
 0x11b   : > { %780 = vmatmul.f32.gmra.mxu2 %v8845_v23  ;;  %1120 = vmatmul.f32.vlgmr.msrb.gmra.mxu0 %v8547_v6  ;;  %v8858_v23 = vld [vmem:[%s8515_s10 + $0x8a] sm:$0xff] }
 0x11c   : > { %974 = vmatmul.f32.gmra.mxu3 %v8758_v48  ;;  %1314 = vmatmul.f32.vlgmr.msrb.gmra.mxu1 %v8636_v10  ;;  %v1877_v10 = vld [vmem:[#allocation6 + $0x468] sm:$0xff] }
 0x11d   : > { %1882 = vmatpush.msra.mxu0 %v1877_v10  ;;  %1698 = vmatpush.msra.mxu3 %v1673_v31 }
 0x11e   : > { %v733_v17 = vpop.f32.mrf.mxu2 }
 0x11f   : > { %v829_v19 = vadd.f32 %v733_v17, %v572_v46  ;;  %v927_v24 = vpop.f32.mrf.mxu3 }
 0x120   : > { %v8855_v0 = vpop.f32.mrf.mxu0 }
 0x121   : > { %v8860_v6 = vadd.f32 %v927_v24, %v829_v19  ;;  %v8862_v48 = vpop.f32.mrf.mxu1  ;;  %v8873_v19 = vld [vmem:[%s8515_s10 + $0x92] sm:$0xff] }
 0x123   : > { %783 = vmatmul.f32.gmra.mxu2 %v8858_v23  ;;  %1123 = vmatmul.f32.gmra.mxu0 %v8560_v18  ;;  %v3405_v18 = vld [vmem:[#allocation6 + $0xe8] sm:$0xff] }
 0x124   : > { %977 = vmatmul.f32.gmra.mxu3 %v8777_v15  ;;  %1317 = vmatmul.f32.gmra.mxu1 %v8646_v14  ;;  %v1480_v14 = vld [vmem:[#allocation6 + $0x320] sm:$0xff] }
 0x125   : > { %3410 = vmatpush.msra.mxu1 %v3405_v18  ;;  %1503 = vmatpush.msra.mxu2 %v1480_v14 }
 0x126   : > { %v736_v45 = vpop.f32.mrf.mxu2 }
 0x127   : > { %v830_v16 = vadd.f32 %v736_v45, %v575_v40  ;;  %v930_v61 = vpop.f32.mrf.mxu3 }
 0x128   : > { %v8870_v24 = vpop.f32.mrf.mxu0 }
 0x129   : > { %v8875_v46 = vadd.f32 %v930_v61, %v830_v16  ;;  %v8877_v17 = vpop.f32.mrf.mxu1  ;;  %v8888_v16 = vld [vmem:[%s8515_s10 + $0x9a] sm:$0xff] }
 0x12b   : > { %786 = vmatmul.f32.gmra.mxu2 %v8873_v19  ;;  %1126 = vmatmul.f32.gmra.mxu0 %v8573_v29 }
 0x12c   : > { %980 = vmatmul.f32.gmra.mxu3 %v8796_v4  ;;  %1320 = vmatmul.f32.gmra.mxu1 %v8658_v22  ;;  %v1876_v22 = vld [vmem:[#allocation6 + $0x460] sm:$0xff] }
 0x12d   : > { %1883 = vmatpush.msra.mxu0 %v1876_v22 }
 0x12e   : > { %v739_v15 = vpop.f32.mrf.mxu2 }
 0x12f   : > { %v831_v10 = vadd.f32 %v739_v15, %v578_v60  ;;  %v933_v40 = vpop.f32.mrf.mxu3 }
 0x130   : > { %v8885_v45 = vpop.f32.mrf.mxu0 }
 0x131   : > { %v8890_v29 = vadd.f32 %v933_v40, %v831_v10  ;;  %v8892_v4 = vpop.f32.mrf.mxu1 }
 0x133   : > { %789 = vmatmul.f32.gmra.mxu2 %v8888_v16  ;;  %1129 = vmatmul.f32.gmra.mxu0 %v8586_v39  ;;  %v3404_v39 = vld [vmem:[#allocation6 + $0xe0] sm:$0xff] }
 0x134   : > { %983 = vmatmul.f32.gmra.mxu3 %v8815_v54  ;;  %1323 = vmatmul.f32.gmra.mxu1 %v8671_v26  ;;  %v1479_v26 = vld [vmem:[#allocation6 + $0x318] sm:$0xff] }
 0x135   : > { %3411 = vmatpush.msra.mxu1 %v3404_v39  ;;  %1504 = vmatpush.msra.mxu2 %v1479_v26  ;;  %v8933_v39 = vld [vmem:[%s8515_s10 + $0xb2] sm:$0xff] }
 0x136   : > { %v742_v12 = vpop.f32.mrf.mxu2 }
 0x137   : > { %v832_v61 = vadd.f32 %v742_v12, %v581_v5  ;;  %v936_v18 = vpop.f32.mrf.mxu3  ;;  %v8918_v5 = vld [vmem:[%s8515_s10 + $0xaa] sm:$0xff] }
 0x138   : > { %v8900_v14 = vpop.f32.mrf.mxu0 }
 0x139   : > { %v8905_v60 = vadd.f32 %v936_v18, %v832_v61  ;;  %v8907_v15 = vpop.f32.mrf.mxu1 }
 0x13b   : > { %792 = vmatmul.f32.gmra.mxu2 %v8903_v56  ;;  %1132 = vmatmul.f32.gmra.mxu0 %v8599_v47 }
 0x13c   : > { %986 = vmatmul.f32.gmra.mxu3 %v8834_v57  ;;  %1326 = vmatmul.f32.gmra.mxu1 %v8683_v36  ;;  %v1875_v36 = vld [vmem:[#allocation6 + $0x458] sm:$0xff] }
 0x13d   : > { %1884 = vmatpush.msra.mxu0 %v1875_v36 }
 0x13e   : > { %v745_v54 = vpop.f32.mrf.mxu2 }
 0x13f   : > { %v833_v10 = vadd.f32 %v745_v54, %v584_v44  ;;  %v939_v40 = vpop.f32.mrf.mxu3  ;;  %1885 = vmatpush.msra.mxu0 %v1874_v55 }
 0x140   : > { %v8915_v22 = vpop.f32.mrf.mxu0 }
 0x141   : > { %v8920_v47 = vadd.f32 %v939_v40, %v833_v10  ;;  %v8922_v57 = vpop.f32.mrf.mxu1  ;;  %v8948_v40 = vld [vmem:[%s8515_s10 + $0xba] sm:$0xff] }
 0x143   : > { %795 = vmatmul.f32.gmra.mxu2 %v8918_v5  ;;  %1135 = vmatmul.f32.gmra.mxu0 %v8609_v53  ;;  %v1478_v53 = vld [vmem:[#allocation6 + $0x310] sm:$0xff] }
 0x144   : > { %989 = vmatmul.f32.gmra.mxu3 %v8529_v35  ;;  %1329 = vmatmul.f32.gmra.mxu1 %v8697_v43  ;;  %v3403_v35 = vld [vmem:[#allocation6 + $0xd8] sm:$0xff]  ;;  %v1672_v43 = vld [vmem:[#allocation6 + $0x390] sm:$0xff] }
 0x145   : > { %3412 = vmatpush.msra.mxu1 %v3403_v35  ;;  %1505 = vmatpush.msra.mxu2 %v1478_v53 }
 0x146   : > { %v748_v3 = vpop.f32.mrf.mxu2  ;;  %1699 = vmatpush.msra.mxu3 %v1672_v43 }
 0x147   : > { %v834_v12 = vadd.f32 %v748_v3, %v587_v63  ;;  %v942_v61 = vpop.f32.mrf.mxu3 }
 0x148   : > { %v8930_v18 = vpop.f32.mrf.mxu0 }
 0x149   : > { %v8935_v26 = vadd.f32 %v942_v61, %v834_v12  ;;  %v8937_v31 = vpop.f32.mrf.mxu1  ;;  %v8963_v12 = vld [vmem:[%s8515_s10 + $0xc2] sm:$0xff] }
 0x14b   : > { %798 = vmatmul.f32.gmra.mxu2 %v8933_v39  ;;  %1138 = vmatmul.f32.gmra.mxu0 %v8619_v59 }
 0x14c   : > { %992 = vmatmul.f32.gmra.mxu3 %v8536_v51  ;;  %1332 = vmatmul.f32.gmra.mxu1 %v8715_v58  ;;  %v593_v58 = vadd.f32 %v8831_v7, %v8823_v33  ;;  %v1671_v7 = vld [vmem:[#allocation6 + $0x388] sm:$0xff] }
 0x14d   : > { %1700 = vmatpush.msra.mxu3 %v1671_v7  ;;  %v9008_v7 = vld [vmem:[%s8515_s10 + $0xda] sm:$0xff] }
 0x14e   : > { %v751_v37 = vpop.f32.mrf.mxu2 }
 0x14f   : > { %v835_v44 = vadd.f32 %v751_v37, %v590_v52  ;;  %v945_v54 = vpop.f32.mrf.mxu3  ;;  %v8978_v37 = vld [vmem:[%s8515_s10 + $0xca] sm:$0xff] }
 0x150   : > { %v8945_v10 = vpop.f32.mrf.mxu0 }
 0x151   : > { %v8950_v59 = vadd.f32 %v945_v54, %v835_v44  ;;  %v8952_v51 = vpop.f32.mrf.mxu1 }
 0x153   : > { %801 = vmatmul.f32.gmra.mxu2 %v8948_v40  ;;  %1141 = vmatmul.f32.gmra.mxu0 %v8626_v1  ;;  %v1477_v1 = vld [vmem:[#allocation6 + $0x308] sm:$0xff] }
 0x154   : > { %995 = vmatmul.f32.gmra.mxu3 %v8543_v62  ;;  %1335 = vmatmul.f32.gmra.mxu1 %v8734_v11  ;;  %v3402_v62 = vld [vmem:[#allocation6 + $0xd0] sm:$0xff]  ;;  %v596_v11 = vadd.f32 %v8847_v41, %v8842_v27  ;;  %v1873_v41 = vld [vmem:[#allocation6 + $0x448] sm:$0xff] }
 0x155   : > { %3413 = vmatpush.msra.mxu1 %v3402_v62  ;;  %1506 = vmatpush.msra.mxu2 %v1477_v1 }
 0x156   : > { %v754_v28 = vpop.f32.mrf.mxu2  ;;  %1886 = vmatpush.msra.mxu0 %v1873_v41 }
 0x157   : > { %v836_v36 = vadd.f32 %v754_v28, %v593_v58  ;;  %v948_v63 = vpop.f32.mrf.mxu3  ;;  %v8993_v58 = vld [vmem:[%s8515_s10 + $0xd2] sm:$0xff] }
 0x158   : > { %v8960_v3 = vpop.f32.mrf.mxu0 }
 0x159   : > { %v8965_v61 = vadd.f32 %v948_v63, %v836_v36  ;;  %v8967_v35 = vpop.f32.mrf.mxu1 }
 0x15b   : > { %804 = vmatmul.f32.gmra.mxu2 %v8963_v12  ;;  %1144 = vmatmul.f32.gmra.mxu0 %v8633_v8 }
 0x15c   : > { %998 = vmatmul.f32.gmra.mxu3 %v8554_v9  ;;  %1338 = vmatmul.f32.gmra.mxu1 %v8753_v38  ;;  %v599_v38 = vadd.f32 %v8862_v48, %v8855_v0  ;;  %v602_v0 = vadd.f32 %v8877_v17, %v8870_v24  ;;  %v605_v24 = vadd.f32 %v8892_v4, %v8885_v45  ;;  %v3569_v45 = vld [vmem:[#allocation6 + $0x178] sm:$0xff] }
 0x15d   : > { %v608_v4 = vadd.f32 %v8907_v15, %v8900_v14  ;;  %v13310_v14 = vld [vmem:[#allocation31_spill] sm:$0xff]  ;;  %v1871_v15 = vld [vmem:[#allocation6 + $0x438] sm:$0xff] }
 0x15e   : > { %v757_v33 = vpop.f32.mrf.mxu2 }
 0x15f   : > { %v837_v53 = vadd.f32 %v757_v33, %v596_v11  ;;  %v951_v43 = vpop.f32.mrf.mxu3 }
 0x160   : > { %v8975_v52 = vpop.f32.mrf.mxu0 }
 0x161   : > { %v8980_v8 = vadd.f32 %v951_v43, %v837_v53  ;;  %v8982_v9 = vpop.f32.mrf.mxu1  ;;  %v9023_v43 = vld [vmem:[%s8515_s10 + $0xe2] sm:$0xff] }
 0x163   : > { %807 = vmatmul.f32.gmra.mxu2 %v8978_v37  ;;  %1147 = vmatmul.f32.gmra.mxu0 %v8643_v13  ;;  %v1476_v13 = vld [vmem:[#allocation6 + $0x300] sm:$0xff] }
 0x164   : > { %1001 = vmatmul.f32.gmra.mxu3 %v8567_v21  ;;  %1341 = vmatmul.f32.gmra.mxu1 %v8772_v2  ;;  %v3401_v21 = vld [vmem:[#allocation6 + $0xc8] sm:$0xff]  ;;  %v1670_v2 = vld [vmem:[#allocation6 + $0x380] sm:$0xff] }
 0x165   : > { %3414 = vmatpush.msra.mxu1 %v3401_v21  ;;  %1507 = vmatpush.msra.mxu2 %v1476_v13  ;;  %v9038_v13 = vld [vmem:[%s8515_s10 + $0xea] sm:$0xff] }
 0x166   : > { %v760_v27 = vpop.f32.mrf.mxu2  ;;  %1701 = vmatpush.msra.mxu3 %v1670_v2  ;;  %v890_v2 = vld [vmem:[%s8515_s10 + $0x100] sm:$0xff] }
 0x167   : > { %v838_v44 = vadd.f32 %v760_v27, %v599_v38  ;;  %v954_v54 = vpop.f32.mrf.mxu3 }
 0x168   : > { %v8990_v55 = vpop.f32.mrf.mxu0  ;;  %3570 = vmatpush.msrb.mxu3 %v3569_v45  ;;  %v614_v45 = vadd.f32 %v8937_v31, %v8930_v18  ;;  %v1870_v18 = vld [vmem:[#allocation6 + $0x430] sm:$0xff]  ;;  %v617_v31 = vadd.f32 %v8952_v51, %v8945_v10  ;;  %v3373_v10 = vld [vmem:[#allocation6 + $0x68] sm:$0xff] }
 0x169   : > { %v8995_v28 = vadd.f32 %v954_v54, %v838_v44  ;;  %v8997_v36 = vpop.f32.mrf.mxu1  ;;  %v3567_v51 = vld [vmem:[#allocation6 + $0x168] sm:$0xff] }
 0x16b   : > { %810 = vmatmul.f32.gmra.mxu2 %v8993_v58  ;;  %1150 = vmatmul.f32.gmra.mxu0 %v8655_v20 }
 0x16c   : > { %1004 = vmatmul.f32.gmra.mxu3 %v8580_v32  ;;  %1344 = vmatmul.f32.gmra.mxu1 %v8791_v30  ;;  %v1872_v30 = vld [vmem:[#allocation6 + $0x440] sm:$0xff] }
 0x16d   : > { %1887 = vmatpush.msra.mxu0 %v1872_v30 }
 0x16e   : > { %v763_v48 = vpop.f32.mrf.mxu2 }
 0x16f   : > { %v839_v63 = vadd.f32 %v763_v48, %v602_v0  ;;  %v957_v62 = vpop.f32.mrf.mxu3  ;;  %v13309_v0 = vld [vmem:[#allocation14_spill] sm:$0xff]  ;;  %v611_v48 = vadd.f32 %v8922_v57, %v8915_v22  ;;  %1888 = vmatpush.msra.mxu0 %v1871_v15  ;;  %v3374_v22 = vld [vmem:[#allocation6 + $0x70] sm:$0xff] }
 0x170   : > { %v9005_v1 = vpop.f32.mrf.mxu0  ;;  %v3568_v57 = vld [vmem:[#allocation6 + $0x170] sm:$0xff]  ;;  %v13313_v15 = vld [vmem:[#allocation18_spill] sm:$0xff] }
 0x171   : > { %v9010_v20 = vadd.f32 %v957_v62, %v839_v63  ;;  %v9012_v32 = vpop.f32.mrf.mxu1  ;;  %3571 = vmatpush.msrb.mxu3 %v3568_v57  ;;  %1889 = vmatpush.msra.mxu0 %v1870_v18  ;;  %v3398_v57 = vld [vmem:[#allocation6 + $0xb0] sm:$0xff] }
 0x173   : > { %813 = vmatmul.f32.gmra.mxu2 %v9008_v7  ;;  %1153 = vmatmul.f32.gmra.mxu0 %v8668_v25  ;;  %v13308_v25 = vld [vmem:[#allocation29_spill] sm:$0xff] }
 0x174   : > { %1007 = vmatmul.f32.gmra.mxu3 %v8593_v42  ;;  %1347 = vmatmul.f32.gmra.mxu1 %v8810_v49  ;;  %v3400_v42 = vld [vmem:[#allocation6 + $0xc0] sm:$0xff]  ;;  %v3375_v49 = vld [vmem:[#allocation6 + $0x78] sm:$0xff] }
 0x175   : > { %3415 = vmatpush.msra.mxu1 %v3400_v42  ;;  %3473 = vmatpush.msrb.mxu2 %v3375_v49  ;;  %v891_v42 = vld [vmem:[%s8515_s10 + $0x108] sm:$0xff]  ;;  %v13311_v49 = vld [vmem:[#allocation16_spill] sm:$0xff] }
 0x176   : > { %v766_v17 = vpop.f32.mrf.mxu2  ;;  %3572 = vmatpush.msrb.mxu3 %v3567_v51  ;;  %v1639_v51 = vld [vmem:[%s8515_s10 + $0x41] sm:$0xff] }
 0x177   : > { %v840_v11 = vadd.f32 %v766_v17, %v605_v24  ;;  %v960_v33 = vpop.f32.mrf.mxu3  ;;  %v9053_v17 = vld [vmem:[%s8515_s10 + $0xf2] sm:$0xff]  ;;  %3474 = vmatpush.msrb.mxu2 %v3374_v22 }
 0x178   : > { %v9020_v53 = vpop.f32.mrf.mxu0  ;;  %v1637_v22 = vld [vmem:[%s8515_s10 + $0x31] sm:$0xff] }
 0x179   : > { %v9025_v41 = vadd.f32 %v960_v33, %v840_v11  ;;  %v9027_v38 = vpop.f32.mrf.mxu1  ;;  %3475 = vmatpush.msrb.mxu2 %v3373_v10 }
 0x17b   : > { %816 = vmatmul.f32.gmra.mxu2 %v9023_v43  ;;  %1156 = vmatmul.f32.gmra.mxu0 %v8680_v34 }
 0x17c   : > { %1010 = vmatmul.f32.gmra.mxu3 %v8604_v50  ;;  %1350 = vmatmul.f32.gmra.mxu1 %v13308_v25  ;;  %v3399_v25 = vld [vmem:[#allocation6 + $0xb8] sm:$0xff] }
 0x17d   : > { %3416 = vmatpush.msra.mxu1 %v3399_v25 }
 0x17e   : > { %v769_v27 = vpop.f32.mrf.mxu2 }
 0x17f   : > { %v841_v44 = vadd.f32 %v769_v27, %v608_v4  ;;  %v963_v54 = vpop.f32.mrf.mxu3  ;;  %3417 = vmatpush.msra.mxu1 %v3398_v57  ;;  %v1445_v57 = vld [vmem:[%s8515_s10 + $0x40] sm:$0xff] }
 0x180   : > { %v9035_v21 = vpop.f32.mrf.mxu0 }
 0x181   : > { %v9040_v34 = vadd.f32 %v963_v54, %v841_v44  ;;  %v9042_v50 = vpop.f32.mrf.mxu1 }
 0x183   : > { %819 = vmatmul.f32.gmra.mxu2 %v9038_v13  ;;  %1159 = vmatmul.f32.gmra.mxu0 %v13309_v0 }
 0x184   : > { %1013 = vmatmul.f32.gmra.mxu3 %v890_v2  ;;  %1353 = vmatmul.f32.gmra.mxu1 %v13310_v14  ;;  %v9068_v2 = vld [vmem:[%s8515_s10 + $0xfa] sm:$0xff] }
 0x186   : > { %v772_v63 = vpop.f32.mrf.mxu2 }
 0x187   : > { %v842_v62 = vadd.f32 %v772_v63, %v611_v48  ;;  %v966_v30 = vpop.f32.mrf.mxu3 }
 0x188   : > { %v9050_v24 = vpop.f32.mrf.mxu0 }
 0x189   : > { %v9055_v11 = vadd.f32 %v966_v30, %v842_v62  ;;  %v9057_v33 = vpop.f32.mrf.mxu1 }
 0x18b   : > { %822 = vmatmul.f32.gmra.mxu2 %v9053_v17  ;;  %1162 = vmatmul.f32.gmra.mxu0 %v13311_v49 }
 0x18c   : > { %1016 = vmatmul.f32.gmra.mxu3 %v891_v42  ;;  %1356 = vmatmul.f32.gmra.mxu1 %v8858_v23  ;;  %v892_v23 = vld [vmem:[%s8515_s10 + $0x110] sm:$0xff] }
 0x18d   : > { %v1443_v42 = vld [vmem:[%s8515_s10 + $0x30] sm:$0xff] }
 0x18e   : > { %v775_v4 = vpop.f32.mrf.mxu2 }
 0x18f   : > { %v843_v27 = vadd.f32 %v775_v4, %v614_v45  ;;  %v969_v44 = vpop.f32.mrf.mxu3  ;;  %v620_v45 = vadd.f32 %v8967_v35, %v8960_v3  ;;  %v1869_v3 = vld [vmem:[#allocation6 + $0x428] sm:$0xff]  ;;  %v623_v35 = vadd.f32 %v8982_v9, %v8975_v52  ;;  %v3372_v52 = vld [vmem:[#allocation6 + $0x60] sm:$0xff] }
 0x190   : > { %v9065_v54 = vpop.f32.mrf.mxu0  ;;  %1890 = vmatpush.msra.mxu0 %v1869_v3  ;;  %v3566_v9 = vld [vmem:[#allocation6 + $0x160] sm:$0xff]  ;;  %3476 = vmatpush.msrb.mxu2 %v3372_v52 }
 0x191   : > { %v9070_v0 = vadd.f32 %v969_v44, %v843_v27  ;;  %v9072_v14 = vpop.f32.mrf.mxu1  ;;  %3573 = vmatpush.msrb.mxu3 %v3566_v9  ;;  %v1641_v9 = vld [vmem:[%s8515_s10 + $0x51] sm:$0xff] }
 0x193   : > { %13312 = vst [vmem:[#allocation29_spill] sm:$0xff] %v9070_v0  ;;  %825 = vmatmul.f32.gmra.mxu2 %v9068_v2  ;;  %1165 = vmatmul.f32.gmra.mxu0 %v13313_v15  ;;  %v1444_v15 = vld [vmem:[%s8515_s10 + $0x38] sm:$0xff] }
 0x194   : > { %1019 = vmatmul.f32.gmra.mxu3 %v892_v23  ;;  %1359 = vmatmul.f32.gmra.mxu1 %v8873_v19  ;;  %v13315_v19 = vld [vmem:[#allocation20_spill] sm:$0xff] }
 0x196   : > { %v778_v48 = vpop.f32.mrf.mxu2 }
 0x197   : > { %v844_v63 = vadd.f32 %v778_v48, %v617_v31  ;;  %v972_v62 = vpop.f32.mrf.mxu3  ;;  %v13317_v48 = vld [vmem:[#allocation22_spill] sm:$0xff] }
 0x198   : > { %v9080_v30 = vpop.f32.mrf.mxu0 }
 0x199   : > { %v9083_v25 = vadd.f32 %v972_v62, %v844_v63  ;;  %v9085_v49 = vpop.f32.mrf.mxu1 }
 0x19b   : > { %13314 = vst [vmem:[#allocation14_spill] sm:$0xff] %v9083_v25  ;;  %1168 = vmatmul.f32.gmra.mxu0 %v13315_v19  ;;  %1508 = vmatmul.f32.vlgmr.msra.gmra.mxu2 %v1443_v42 }
 0x19c   : > { %1362 = vmatmul.f32.gmra.mxu1 %v8888_v16  ;;  %1702 = vmatmul.f32.vlgmr.msra.gmra.mxu3 %v1637_v22  ;;  %v1638_v16 = vld [vmem:[%s8515_s10 + $0x39] sm:$0xff] }
 0x19e   : > { %v781_v4 = vpop.f32.mrf.mxu2 }
 0x19f   : > { %v845_v27 = vadd.f32 %v781_v4, %v620_v45  ;;  %v975_v44 = vpop.f32.mrf.mxu3  ;;  %v3397_v45 = vld [vmem:[#allocation6 + $0xa8] sm:$0xff]  ;;  %v626_v4 = vadd.f32 %v8997_v36, %v8990_v55  ;;  %v1868_v55 = vld [vmem:[#allocation6 + $0x420] sm:$0xff]  ;;  %v629_v36 = vadd.f32 %v9012_v32, %v9005_v1  ;;  %v3371_v1 = vld [vmem:[#allocation6 + $0x58] sm:$0xff] }
 0x1a0   : > { %v9092_v23 = vpop.f32.mrf.mxu0  ;;  %3418 = vmatpush.msra.mxu1 %v3397_v45  ;;  %1891 = vmatpush.msra.mxu0 %v1868_v55  ;;  %v1447_v45 = vld [vmem:[%s8515_s10 + $0x50] sm:$0xff]  ;;  %v3565_v32 = vld [vmem:[#allocation6 + $0x158] sm:$0xff]  ;;  %v1448_v55 = vld [vmem:[%s8515_s10 + $0x58] sm:$0xff] }
 0x1a1   : > { %v9095_v18 = vadd.f32 %v975_v44, %v845_v27  ;;  %v9097_v31 = vpop.f32.mrf.mxu1  ;;  %3477 = vmatpush.msrb.mxu2 %v3371_v1  ;;  %3574 = vmatpush.msrb.mxu3 %v3565_v32 }
 0x1a3   : > { %13316 = vst [vmem:[#allocation31_spill] sm:$0xff] %v9095_v18  ;;  %1171 = vmatmul.f32.gmra.mxu0 %v13317_v48  ;;  %1511 = vmatmul.f32.gmra.mxu2 %v1444_v15  ;;  %v1446_v48 = vld [vmem:[%s8515_s10 + $0x48] sm:$0xff] }
 0x1a4   : > { %1365 = vmatmul.f32.gmra.mxu1 %v8903_v56  ;;  %1705 = vmatmul.f32.gmra.mxu3 %v1638_v16  ;;  %v13319_v56 = vld [vmem:[#allocation24_spill] sm:$0xff] }
 0x1a6   : > { %v784_v63 = vpop.f32.mrf.mxu2 }
 0x1a7   : > { %v846_v62 = vadd.f32 %v784_v63, %v623_v35  ;;  %v978_v42 = vpop.f32.mrf.mxu3  ;;  %v13321_v63 = vld [vmem:[#allocation26_spill] sm:$0xff] }
 0x1a8   : > { %v9104_v22 = vpop.f32.mrf.mxu0 }
 0x1a9   : > { %v9107_v19 = vadd.f32 %v978_v42, %v846_v62  ;;  %v9109_v10 = vpop.f32.mrf.mxu1 }
 0x1ab   : > { %13318 = vst [vmem:[#allocation16_spill] sm:$0xff] %v9107_v19  ;;  %1174 = vmatmul.f32.gmra.mxu0 %v13319_v56  ;;  %1514 = vmatmul.f32.gmra.mxu2 %v1445_v57 }
 0x1ac   : > { %1368 = vmatmul.f32.gmra.mxu1 %v8918_v5  ;;  %1708 = vmatmul.f32.gmra.mxu3 %v1639_v51  ;;  %v1640_v5 = vld [vmem:[%s8515_s10 + $0x49] sm:$0xff] }
 0x1ae   : > { %v787_v27 = vpop.f32.mrf.mxu2 }
 0x1af   : > { %v847_v44 = vadd.f32 %v787_v27, %v626_v4  ;;  %v981_v15 = vpop.f32.mrf.mxu3  ;;  %v3396_v4 = vld [vmem:[#allocation6 + $0xa0] sm:$0xff]  ;;  %v632_v27 = vadd.f32 %v9027_v38, %v9020_v53  ;;  %v1867_v53 = vld [vmem:[#allocation6 + $0x418] sm:$0xff]  ;;  %v635_v38 = vadd.f32 %v9042_v50, %v9035_v21  ;;  %v3370_v21 = vld [vmem:[#allocation6 + $0x50] sm:$0xff] }
 0x1b0   : > { %v9116_v16 = vpop.f32.mrf.mxu0  ;;  %3419 = vmatpush.msra.mxu1 %v3396_v4  ;;  %1892 = vmatpush.msra.mxu0 %v1867_v53  ;;  %v9158_v4 = vld [vmem:[%s8515_s10 + $0xc9] sm:$0xff]  ;;  %v3564_v50 = vld [vmem:[#allocation6 + $0x150] sm:$0xff] }
 0x1b1   : > { %v9119_v3 = vadd.f32 %v981_v15, %v847_v44  ;;  %v9121_v35 = vpop.f32.mrf.mxu1  ;;  %3478 = vmatpush.msrb.mxu2 %v3370_v21  ;;  %3575 = vmatpush.msrb.mxu3 %v3564_v50  ;;  %v9173_v53 = vld [vmem:[%s8515_s10 + $0xd1] sm:$0xff]  ;;  %v9188_v21 = vld [vmem:[%s8515_s10 + $0xd9] sm:$0xff] }
 0x1b2   : > { %v1451_v50 = vld [vmem:[%s8515_s10 + $0x70] sm:$0xff] }
 0x1b3   : > { %13320 = vst [vmem:[#allocation18_spill] sm:$0xff] %v9119_v3  ;;  %1177 = vmatmul.f32.gmra.mxu0 %v13321_v63  ;;  %1517 = vmatmul.f32.gmra.mxu2 %v1446_v48  ;;  %v9143_v63 = vld [vmem:[%s8515_s10 + $0xc1] sm:$0xff] }
 0x1b4   : > { %1371 = vmatmul.f32.gmra.mxu1 %v8933_v39  ;;  %1711 = vmatmul.f32.gmra.mxu3 %v1640_v5  ;;  %v13323_v39 = vld [vmem:[#allocation28_spill] sm:$0xff] }
 0x1b5   : > { %v9258_v3 = vld [vmem:[%s8515_s10 + $0x101] sm:$0xff] }
 0x1b6   : > { %v790_v62 = vpop.f32.mrf.mxu2 }
 0x1b7   : > { %v848_v42 = vadd.f32 %v790_v62, %v629_v36  ;;  %v984_v57 = vpop.f32.mrf.mxu3  ;;  %v1642_v62 = vld [vmem:[%s8515_s10 + $0x59] sm:$0xff] }
 0x1b8   : > { %v9128_v51 = vpop.f32.mrf.mxu0 }
 0x1b9   : > { %v9131_v56 = vadd.f32 %v984_v57, %v848_v42  ;;  %v9133_v52 = vpop.f32.mrf.mxu1 }
 0x1bb   : > { %13322 = vst [vmem:[#allocation20_spill] sm:$0xff] %v9131_v56  ;;  %1180 = vmatmul.f32.gmra.mxu0 %v13323_v39  ;;  %1520 = vmatmul.f32.gmra.mxu2 %v1447_v45  ;;  %v1449_v39 = vld [vmem:[%s8515_s10 + $0x60] sm:$0xff] }
 0x1bc   : > { %1374 = vmatmul.f32.gmra.mxu1 %v8948_v40  ;;  %1714 = vmatmul.f32.gmra.mxu3 %v1641_v9 }
 0x1be   : > { %v793_v44 = vpop.f32.mrf.mxu2 }
 0x1bf   : > { %v849_v15 = vadd.f32 %v793_v44, %v632_v27  ;;  %v987_v48 = vpop.f32.mrf.mxu3  ;;  %v1643_v27 = vld [vmem:[%s8515_s10 + $0x61] sm:$0xff]  ;;  %v638_v44 = vadd.f32 %v9057_v33, %v9050_v24  ;;  %v641_v33 = vadd.f32 %v9072_v14, %v9065_v54  ;;  %v3369_v54 = vld [vmem:[#allocation6 + $0x48] sm:$0xff] }
 0x1c0   : > { %v9140_v5 = vpop.f32.mrf.mxu0  ;;  %v1866_v24 = vld [vmem:[#allocation6 + $0x410] sm:$0xff]  ;;  %v3563_v14 = vld [vmem:[#allocation6 + $0x148] sm:$0xff]  ;;  %3479 = vmatpush.msrb.mxu2 %v3369_v54  ;;  %v13330_v54 = vld [vmem:[#allocation17_spill] sm:$0xff] }
 0x1c1   : > { %v9146_v36 = vadd.f32 %v987_v48, %v849_v15  ;;  %v9148_v40 = vpop.f32.mrf.mxu1  ;;  %1893 = vmatpush.msra.mxu0 %v1866_v24  ;;  %3576 = vmatpush.msrb.mxu3 %v3563_v14 }
 0x1c3   : > { %13324 = vst [vmem:[#allocation22_spill] sm:$0xff] %v9146_v36  ;;  %1183 = vmatmul.f32.gmra.mxu0 %v9143_v63  ;;  %1523 = vmatmul.f32.gmra.mxu2 %v1448_v55 }
 0x1c4   : > { %1377 = vmatmul.f32.gmra.mxu1 %v8963_v12  ;;  %1717 = vmatmul.f32.gmra.mxu3 %v1642_v62  ;;  %v3395_v12 = vld [vmem:[#allocation6 + $0x98] sm:$0xff] }
 0x1c5   : > { %3420 = vmatpush.msra.mxu1 %v3395_v12 }
 0x1c6   : > { %v796_v42 = vpop.f32.mrf.mxu2 }
 0x1c7   : > { %v850_v57 = vadd.f32 %v796_v42, %v635_v38  ;;  %v990_v45 = vpop.f32.mrf.mxu3  ;;  %v1450_v38 = vld [vmem:[%s8515_s10 + $0x68] sm:$0xff] }
 0x1c8   : > { %v9155_v9 = vpop.f32.mrf.mxu0 }
 0x1c9   : > { %v9161_v1 = vadd.f32 %v990_v45, %v850_v57  ;;  %v9163_v32 = vpop.f32.mrf.mxu1  ;;  %v1644_v57 = vld [vmem:[%s8515_s10 + $0x69] sm:$0xff] }
 0x1cb   : > { %13325 = vst [vmem:[#allocation24_spill] sm:$0xff] %v9161_v1  ;;  %1186 = vmatmul.f32.gmra.mxu0 %v9158_v4  ;;  %1526 = vmatmul.f32.gmra.mxu2 %v1449_v39 }
 0x1cc   : > { %1380 = vmatmul.f32.gmra.mxu1 %v8978_v37  ;;  %1720 = vmatmul.f32.gmra.mxu3 %v1643_v27 }
 0x1ce   : > { %v799_v15 = vpop.f32.mrf.mxu2 }
 0x1cf   : > { %v851_v48 = vadd.f32 %v799_v15, %v638_v44  ;;  %v993_v55 = vpop.f32.mrf.mxu3 }
 0x1d0   : > { %v9170_v62 = vpop.f32.mrf.mxu0 }
 0x1d1   : > { %v9176_v42 = vadd.f32 %v993_v55, %v851_v48  ;;  %v9178_v37 = vpop.f32.mrf.mxu1  ;;  %v3394_v48 = vld [vmem:[#allocation6 + $0x90] sm:$0xff] }
 0x1d2   : > { %3421 = vmatpush.msra.mxu1 %v3394_v48 }
 0x1d3   : > { %13326 = vst [vmem:[#allocation26_spill] sm:$0xff] %v9176_v42  ;;  %1189 = vmatmul.f32.gmra.mxu0 %v9173_v53  ;;  %1529 = vmatmul.f32.gmra.mxu2 %v1450_v38  ;;  %v13328_v38 = vld [vmem:[#allocation15_spill] sm:$0xff] }
 0x1d4   : > { %1383 = vmatmul.f32.gmra.mxu1 %v8993_v58  ;;  %1723 = vmatmul.f32.gmra.mxu3 %v1644_v57  ;;  %v1645_v58 = vld [vmem:[%s8515_s10 + $0x71] sm:$0xff] }
 0x1d5   : > { %v9230_v42 = vld [vmem:[%s8515_s10 + $0xf1] sm:$0xff] }
 0x1d6   : > { %v802_v45 = vpop.f32.mrf.mxu2 }
 0x1d7   : > { %v852_v39 = vadd.f32 %v802_v45, %v641_v33  ;;  %v996_v27 = vpop.f32.mrf.mxu3  ;;  %v9202_v45 = vld [vmem:[%s8515_s10 + $0xe1] sm:$0xff] }
 0x1d8   : > { %v9185_v12 = vpop.f32.mrf.mxu0 }
 0x1d9   : > { %v9191_v44 = vadd.f32 %v996_v27, %v852_v39  ;;  %v9193_v15 = vpop.f32.mrf.mxu1  ;;  %v1452_v39 = vld [vmem:[%s8515_s10 + $0x78] sm:$0xff] }
 0x1db   : > { %13327 = vst [vmem:[#allocation28_spill] sm:$0xff] %v9191_v44  ;;  %1192 = vmatmul.f32.gmra.mxu0 %v9188_v21  ;;  %1532 = vmatmul.f32.gmra.mxu2 %v1451_v50 }
 0x1dc   : > { %1386 = vmatmul.f32.gmra.mxu1 %v9008_v7  ;;  %1726 = vmatmul.f32.gmra.mxu3 %v1645_v58  ;;  %v1646_v7 = vld [vmem:[%s8515_s10 + $0x79] sm:$0xff] }
 0x1dd   : > { %v1865_v58 = vld [vmem:[#allocation6 + $0x408] sm:$0xff] }
 0x1de   : > { %v805_v55 = vpop.f32.mrf.mxu2  ;;  %1894 = vmatpush.msra.mxu0 %v1865_v58  ;;  %v3562_v58 = vld [vmem:[#allocation6 + $0x140] sm:$0xff] }
 0x1df   : > { %v853_v57 = vadd.f32 %v805_v55, %v13328_v38  ;;  %v999_v24 = vpop.f32.mrf.mxu3  ;;  %3577 = vmatpush.msrb.mxu3 %v3562_v58  ;;  %v13335_v58 = vld [vmem:[#allocation21_spill] sm:$0xff] }
 0x1e0   : > { %v9199_v33 = vpop.f32.mrf.mxu0 }
 0x1e1   : > { %v9205_v27 = vadd.f32 %v999_v24, %v853_v57  ;;  %v9207_v50 = vpop.f32.mrf.mxu1  ;;  %v9216_v57 = vld [vmem:[%s8515_s10 + $0xe9] sm:$0xff]  ;;  %v1453_v24 = vld [vmem:[%s8515_s10 + $0x80] sm:$0xff] }
 0x1e3   : > { %13329 = vst [vmem:[#allocation15_spill] sm:$0xff] %v9205_v27  ;;  %1195 = vmatmul.f32.gmra.mxu0 %v9202_v45  ;;  %1535 = vmatmul.f32.gmra.mxu2 %v1452_v39  ;;  %v1647_v39 = vld [vmem:[%s8515_s10 + $0x81] sm:$0xff] }
 0x1e4   : > { %1389 = vmatmul.f32.gmra.mxu1 %v9023_v43  ;;  %1729 = vmatmul.f32.gmra.mxu3 %v1646_v7  ;;  %v3393_v43 = vld [vmem:[#allocation6 + $0x88] sm:$0xff]  ;;  %v3368_v7 = vld [vmem:[#allocation6 + $0x40] sm:$0xff] }
 0x1e5   : > { %3422 = vmatpush.msra.mxu1 %v3393_v43  ;;  %3480 = vmatpush.msrb.mxu2 %v3368_v7  ;;  %v1454_v43 = vld [vmem:[%s8515_s10 + $0x88] sm:$0xff] }
 0x1e6   : > { %v808_v48 = vpop.f32.mrf.mxu2 }
 0x1e7   : > { %v854_v14 = vadd.f32 %v808_v48, %v13330_v54  ;;  %v1002_v55 = vpop.f32.mrf.mxu3  ;;  %v13332_v54 = vld [vmem:[#allocation19_spill] sm:$0xff] }
 0x1e8   : > { %v9213_v38 = vpop.f32.mrf.mxu0 }
 0x1e9   : > { %v9219_v27 = vadd.f32 %v1002_v55, %v854_v14  ;;  %v9221_v44 = vpop.f32.mrf.mxu1 }
 0x1eb   : > { %13331 = vst [vmem:[#allocation17_spill] sm:$0xff] %v9219_v27  ;;  %1198 = vmatmul.f32.gmra.mxu0 %v9216_v57  ;;  %1538 = vmatmul.f32.gmra.mxu2 %v1453_v24 }
 0x1ec   : > { %1392 = vmatmul.f32.gmra.mxu1 %v9038_v13  ;;  %1732 = vmatmul.f32.gmra.mxu3 %v1647_v39  ;;  %v1648_v13 = vld [vmem:[%s8515_s10 + $0x89] sm:$0xff] }
 0x1ed   : > { %v1864_v39 = vld [vmem:[#allocation6 + $0x400] sm:$0xff] }
 0x1ee   : > { %v811_v48 = vpop.f32.mrf.mxu2  ;;  %1895 = vmatpush.msra.mxu0 %v1864_v39  ;;  %v3561_v39 = vld [vmem:[#allocation6 + $0x138] sm:$0xff] }
 0x1ef   : > { %v855_v14 = vadd.f32 %v811_v48, %v13332_v54  ;;  %v1005_v55 = vpop.f32.mrf.mxu3  ;;  %3578 = vmatpush.msrb.mxu3 %v3561_v39 }
 0x1f0   : > { %v9227_v27 = vpop.f32.mrf.mxu0 }
 0x1f1   : > { %v9233_v1 = vadd.f32 %v1005_v55, %v855_v14  ;;  %v9235_v24 = vpop.f32.mrf.mxu1  ;;  %v9244_v14 = vld [vmem:[%s8515_s10 + $0xf9] sm:$0xff]  ;;  %v1455_v55 = vld [vmem:[%s8515_s10 + $0x90] sm:$0xff] }
 0x1f2   : > { %13334 = vst [vmem:[#allocation32_spill] sm:$0xff] %v9235_v24 }
 0x1f3   : > { %13333 = vst [vmem:[#allocation19_spill] sm:$0xff] %v9233_v1  ;;  %1201 = vmatmul.f32.gmra.mxu0 %v9230_v42  ;;  %1541 = vmatmul.f32.gmra.mxu2 %v1454_v43  ;;  %v1649_v43 = vld [vmem:[%s8515_s10 + $0x91] sm:$0xff] }
 0x1f4   : > { %1395 = vmatmul.f32.gmra.mxu1 %v9053_v17  ;;  %1735 = vmatmul.f32.gmra.mxu3 %v1648_v13  ;;  %v3392_v17 = vld [vmem:[#allocation6 + $0x80] sm:$0xff]  ;;  %v3367_v13 = vld [vmem:[#allocation6 + $0x38] sm:$0xff] }
 0x1f5   : > { %3423 = vmatpush.msra.mxu1 %v3392_v17  ;;  %3481 = vmatpush.msrb.mxu2 %v3367_v13  ;;  %v1456_v17 = vld [vmem:[%s8515_s10 + $0x98] sm:$0xff]  ;;  %v4021_v13 = vld [vmem:[#allocation6 + $0x378] sm:$0xff] }
 0x1f6   : > { %v814_v7 = vpop.f32.mrf.mxu2  ;;  %4022 = vmatpush.msrb.mxu0 %v4021_v13  ;;  %v3560_v13 = vld [vmem:[#allocation6 + $0x130] sm:$0xff] }
 0x1f7   : > { %v856_v48 = vadd.f32 %v814_v7, %v13335_v58  ;;  %v1008_v54 = vpop.f32.mrf.mxu3  ;;  %v13338_v58 = vld [vmem:[#allocation23_spill] sm:$0xff]  ;;  %3579 = vmatpush.msrb.mxu3 %v3560_v13 }
 0x1f8   : > { %v9241_v36 = vpop.f32.mrf.mxu0 }
 0x1f9   : > { %v9247_v1 = vadd.f32 %v1008_v54, %v856_v48  ;;  %v9249_v56 = vpop.f32.mrf.mxu1 }
 0x1fa   : > { %13337 = vst [vmem:[#allocation33_spill] sm:$0xff] %v9249_v56  ;;  %v1279_v56 = vld [vmem:[%s8515_s10 + $0x10a] sm:$0xff] }
 0x1fb   : > { %13336 = vst [vmem:[#allocation21_spill] sm:$0xff] %v9247_v1  ;;  %1204 = vmatmul.f32.gmra.mxu0 %v9244_v14  ;;  %1544 = vmatmul.f32.gmra.mxu2 %v1455_v55 }
 0x1fc   : > { %1398 = vmatmul.f32.gmra.mxu1 %v9068_v2  ;;  %1738 = vmatmul.f32.gmra.mxu3 %v1649_v43  ;;  %v1278_v2 = vld [vmem:[%s8515_s10 + $0x102] sm:$0xff]  ;;  %v1650_v43 = vld [vmem:[%s8515_s10 + $0x99] sm:$0xff] }
 0x1fe   : > { %v817_v7 = vpop.f32.mrf.mxu2 }
 0x1ff   : > { %v857_v48 = vadd.f32 %v817_v7, %v13338_v58  ;;  %v1011_v54 = vpop.f32.mrf.mxu3  ;;  %v13341_v7 = vld [vmem:[#allocation25_spill] sm:$0xff] }
 0x200   : > { %v9255_v1 = vpop.f32.mrf.mxu0 }
 0x201   : > { %v9261_v55 = vadd.f32 %v1011_v54, %v857_v48  ;;  %v9263_v19 = vpop.f32.mrf.mxu1  ;;  %v9272_v48 = vld [vmem:[%s8515_s10 + $0x109] sm:$0xff]  ;;  %v1457_v54 = vld [vmem:[%s8515_s10 + $0xa0] sm:$0xff] }
 0x202   : > { %13340 = vst [vmem:[#allocation34_spill] sm:$0xff] %v9263_v19 }
 0x203   : > { %13339 = vst [vmem:[#allocation23_spill] sm:$0xff] %v9261_v55  ;;  %1207 = vmatmul.f32.gmra.mxu0 %v9258_v3  ;;  %1547 = vmatmul.f32.gmra.mxu2 %v1456_v17  ;;  %v1651_v17 = vld [vmem:[%s8515_s10 + $0xa1] sm:$0xff] }
 0x204   : > { %1401 = vmatmul.f32.gmra.mxu1 %v1278_v2  ;;  %1741 = vmatmul.f32.gmra.mxu3 %v1650_v43  ;;  %v3682_v2 = vld [vmem:[#allocation6 + $0x1f8] sm:$0xff]  ;;  %v3366_v43 = vld [vmem:[#allocation6 + $0x30] sm:$0xff] }
 0x205   : > { %3683 = vmatpush.msrb.mxu1 %v3682_v2  ;;  %3482 = vmatpush.msrb.mxu2 %v3366_v43  ;;  %v1458_v2 = vld [vmem:[%s8515_s10 + $0xa8] sm:$0xff]  ;;  %v4020_v43 = vld [vmem:[#allocation6 + $0x370] sm:$0xff] }
 0x206   : > { %v820_v39 = vpop.f32.mrf.mxu2  ;;  %4023 = vmatpush.msrb.mxu0 %v4020_v43  ;;  %v3559_v43 = vld [vmem:[#allocation6 + $0x128] sm:$0xff] }
 0x207   : > { %v858_v58 = vadd.f32 %v820_v39, %v13341_v7  ;;  %v1014_v18 = vpop.f32.mrf.mxu3  ;;  %v13345_v39 = vld [vmem:[#allocation27_spill] sm:$0xff]  ;;  %3580 = vmatpush.msrb.mxu3 %v3559_v43 }
 0x208   : > { %v9269_v25 = vpop.f32.mrf.mxu0 }
 0x209   : > { %13342 = vst [vmem:[#allocation25_spill] sm:$0xff] %v9269_v25  ;;  %v9275_v55 = vadd.f32 %v1014_v18, %v858_v58  ;;  %v9277_v19 = vpop.f32.mrf.mxu1  ;;  %v3681_v25 = vld [vmem:[#allocation6 + $0x1f0] sm:$0xff] }
 0x20a   : > { %13344 = vst [vmem:[#allocation36_spill] sm:$0xff] %v9277_v19  ;;  %v9286_v19 = vld [vmem:[%s8515_s10 + $0x111] sm:$0xff]  ;;  %3684 = vmatpush.msrb.mxu1 %v3681_v25 }
 0x20b   : > { %13343 = vst [vmem:[#allocation35_spill] sm:$0xff] %v9275_v55  ;;  %1210 = vmatmul.f32.gmra.mxu0 %v9272_v48  ;;  %1550 = vmatmul.f32.gmra.mxu2 %v1457_v54 }
 0x20c   : > { %1404 = vmatmul.f32.gmra.mxu1 %v1279_v56  ;;  %1744 = vmatmul.f32.gmra.mxu3 %v1651_v17  ;;  %v1280_v56 = vld [vmem:[%s8515_s10 + $0x112] sm:$0xff]  ;;  %v1652_v17 = vld [vmem:[%s8515_s10 + $0xa9] sm:$0xff] }
 0x20e   : > { %v823_v18 = vpop.f32.mrf.mxu2 }
 0x20f   : > { %v859_v7 = vadd.f32 %v823_v18, %v13345_v39  ;;  %v1017_v58 = vpop.f32.mrf.mxu3  ;;  %v13349_v18 = vld [vmem:[#allocation30_spill] sm:$0xff] }
 0x210   : > { %v9283_v55 = vpop.f32.mrf.mxu0 }
 0x211   : > { %13346 = vst [vmem:[#allocation27_spill] sm:$0xff] %v9283_v55  ;;  %v9289_v24 = vadd.f32 %v1017_v58, %v859_v7  ;;  %v9291_v54 = vpop.f32.mrf.mxu1  ;;  %v1217_v55 = vadd.f32 %v9080_v30, %v8860_v6 }
 0x212   : > { %13348 = vst [vmem:[#allocation38_spill] sm:$0xff] %v9291_v54  ;;  %v1831_v54 = vld [vmem:[%s8515_s10 + $0x32] sm:$0xff] }
 0x213   : > { %13347 = vst [vmem:[#allocation37_spill] sm:$0xff] %v9289_v24  ;;  %1213 = vmatmul.f32.gmra.mxu0 %v9286_v19  ;;  %1553 = vmatmul.f32.gmra.mxu2 %v1458_v2  ;;  %v1459_v24 = vld [vmem:[%s8515_s10 + $0xb0] sm:$0xff] }
 0x214   : > { %1407 = vmatmul.f32.gmra.mxu1 %v1280_v56  ;;  %1747 = vmatmul.f32.gmra.mxu3 %v1652_v17  ;;  %v1653_v2 = vld [vmem:[%s8515_s10 + $0xb1] sm:$0xff] }
 0x215   : > { %v3680_v56 = vld [vmem:[#allocation6 + $0x1e8] sm:$0xff] }
 0x216   : > { %v826_v13 = vpop.f32.mrf.mxu2  ;;  %3685 = vmatpush.msrb.mxu1 %v3680_v56  ;;  %v3365_v17 = vld [vmem:[#allocation6 + $0x28] sm:$0xff] }
 0x217   : > { %v860_v39 = vadd.f32 %v826_v13, %v13349_v18  ;;  %v1020_v7 = vpop.f32.mrf.mxu3  ;;  %v1411_v13 = vadd.f32 %v9085_v49, %v1217_v55  ;;  %3483 = vmatpush.msrb.mxu2 %v3365_v17  ;;  %v1654_v56 = vld [vmem:[%s8515_s10 + $0xb9] sm:$0xff]  ;;  %v3679_v49 = vld [vmem:[#allocation6 + $0x1e0] sm:$0xff] }
 0x218   : > { %v9297_v58 = vpop.f32.mrf.mxu0  ;;  %3686 = vmatpush.msrb.mxu1 %v3679_v49  ;;  %v4019_v55 = vld [vmem:[#allocation6 + $0x368] sm:$0xff] }
 0x219   : > { %v9303_v25 = vadd.f32 %v1020_v7, %v860_v39  ;;  %v9305_v0 = vpop.f32.mrf.mxu1  ;;  %v1460_v7 = vld [vmem:[%s8515_s10 + $0xb8] sm:$0xff]  ;;  %4024 = vmatpush.msrb.mxu0 %v4019_v55 }
 0x21b   : > { %13350 = vst [vmem:[#allocation30_spill] sm:$0xff] %v9303_v25  ;;  %1556 = vmatmul.f32.gmra.mxu2 %v1459_v24  ;;  %1896 = vmatmul.f32.vlgmr.msra.gmra.mxu0 %v1831_v54  ;;  %v1832_v25 = vld [vmem:[%s8515_s10 + $0x3a] sm:$0xff]  ;;  %v1218_v24 = vadd.f32 %v9092_v23, %v8875_v46 }
 0x21c   : > { %1750 = vmatmul.f32.gmra.mxu3 %v1653_v2  ;;  %3424 = vmatmul.f32.vlgmr.msra.gmra.mxu1 %v9258_v3 }
 0x21d   : > { %v1412_v17 = vadd.f32 %v9097_v31, %v1218_v24  ;;  %v3364_v31 = vld [vmem:[#allocation6 + $0x20] sm:$0xff] }
 0x21e   : > { %v1509_v6 = vpop.f32.mrf.mxu2  ;;  %v3558_v24 = vld [vmem:[#allocation6 + $0x120] sm:$0xff]  ;;  %3484 = vmatpush.msrb.mxu2 %v3364_v31 }
 0x21f   : > { %v1605_v30 = vadd.f32 %v1509_v6, %v1411_v13  ;;  %v1703_v18 = vpop.f32.mrf.mxu3  ;;  %v1461_v6 = vld [vmem:[%s8515_s10 + $0xc0] sm:$0xff]  ;;  %3581 = vmatpush.msrb.mxu3 %v3558_v24 }
 0x220   : > { %v9310_v39 = vpop.f32.mrf.mxu0 }
 0x221   : > { %v9316_v54 = vadd.f32 %v1703_v18, %v1605_v30  ;;  %v9318_v2 = vpop.f32.mrf.mxu1  ;;  %v1833_v30 = vld [vmem:[%s8515_s10 + $0x42] sm:$0xff]  ;;  %v1219_v18 = vadd.f32 %v9104_v22, %v8890_v29 }
 0x223   : > { %13351 = vst [vmem:[#allocation39_spill] sm:$0xff] %v9316_v54  ;;  %1559 = vmatmul.f32.gmra.mxu2 %v1460_v7  ;;  %1899 = vmatmul.f32.gmra.mxu0 %v1832_v25  ;;  %v3678_v7 = vld [vmem:[#allocation6 + $0x1d8] sm:$0xff] }
 0x224   : > { %1753 = vmatmul.f32.gmra.mxu3 %v1654_v56  ;;  %3427 = vmatmul.f32.gmra.mxu1 %v9272_v48  ;;  %v1413_v56 = vadd.f32 %v9109_v10, %v1219_v18  ;;  %v3677_v10 = vld [vmem:[#allocation6 + $0x1d0] sm:$0xff]  ;;  %v4018_v18 = vld [vmem:[#allocation6 + $0x360] sm:$0xff] }
 0x225   : > { %3687 = vmatpush.msrb.mxu1 %v3678_v7  ;;  %4025 = vmatpush.msrb.mxu0 %v4018_v18 }
 0x226   : > { %v1512_v43 = vpop.f32.mrf.mxu2 }
 0x227   : > { %v1606_v46 = vadd.f32 %v1512_v43, %v1412_v17  ;;  %v1706_v23 = vpop.f32.mrf.mxu3  ;;  %v1462_v43 = vld [vmem:[%s8515_s10 + $0xc8] sm:$0xff]  ;;  %3688 = vmatpush.msrb.mxu1 %v3677_v10 }
 0x228   : > { %v9323_v13 = vpop.f32.mrf.mxu0 }
 0x229   : > { %v9329_v49 = vadd.f32 %v1706_v23, %v1606_v46  ;;  %v9331_v25 = vpop.f32.mrf.mxu1  ;;  %v1834_v46 = vld [vmem:[%s8515_s10 + $0x4a] sm:$0xff]  ;;  %v1220_v23 = vadd.f32 %v9116_v16, %v8905_v60 }
 0x22b   : > { %13352 = vst [vmem:[#allocation40_spill] sm:$0xff] %v9329_v49  ;;  %1562 = vmatmul.f32.gmra.mxu2 %v1461_v6  ;;  %1902 = vmatmul.f32.gmra.mxu0 %v1833_v30  ;;  %v9347_v30 = vld [vmem:[%s8515_s10 + $0x119] sm:$0xff]  ;;  %v1414_v60 = vadd.f32 %v9121_v35, %v1220_v23 }
 0x22c   : > { %1756 = vmatmul.f32.gmra.mxu3 %v9143_v63  ;;  %3430 = vmatmul.f32.gmra.mxu1 %v9286_v19  ;;  %v3363_v35 = vld [vmem:[#allocation6 + $0x18] sm:$0xff] }
 0x22d   : > { %v3557_v23 = vld [vmem:[#allocation6 + $0x118] sm:$0xff]  ;;  %3485 = vmatpush.msrb.mxu2 %v3363_v35 }
 0x22e   : > { %v1515_v29 = vpop.f32.mrf.mxu2  ;;  %3582 = vmatpush.msrb.mxu3 %v3557_v23 }
 0x22f   : > { %v1607_v22 = vadd.f32 %v1515_v29, %v1413_v56  ;;  %v1709_v55 = vpop.f32.mrf.mxu3  ;;  %v1463_v56 = vld [vmem:[%s8515_s10 + $0xd0] sm:$0xff] }
 0x230   : > { %v9336_v17 = vpop.f32.mrf.mxu0  ;;  %v1835_v29 = vld [vmem:[%s8515_s10 + $0x52] sm:$0xff] }
 0x231   : > { %v9342_v63 = vadd.f32 %v1709_v55, %v1607_v22  ;;  %v9344_v6 = vpop.f32.mrf.mxu1  ;;  %v1221_v22 = vadd.f32 %v9128_v51, %v8920_v47 }
 0x233   : > { %13353 = vst [vmem:[#allocation41_spill] sm:$0xff] %v9342_v63  ;;  %1565 = vmatmul.f32.gmra.mxu2 %v1462_v43  ;;  %1905 = vmatmul.f32.gmra.mxu0 %v1834_v46  ;;  %v3676_v46 = vld [vmem:[#allocation6 + $0x1c8] sm:$0xff]  ;;  %v1415_v47 = vadd.f32 %v9133_v52, %v1221_v22  ;;  %v3675_v52 = vld [vmem:[#allocation6 + $0x1c0] sm:$0xff]  ;;  %v4017_v22 = vld [vmem:[#allocation6 + $0x358] sm:$0xff] }
 0x234   : > { %1759 = vmatmul.f32.gmra.mxu3 %v9158_v4  ;;  %3433 = vmatmul.f32.gmra.mxu1 %v9347_v30  ;;  %v9363_v4 = vld [vmem:[%s8515_s10 + $0x121] sm:$0xff] }
 0x235   : > { %3689 = vmatpush.msrb.mxu1 %v3676_v46  ;;  %4026 = vmatpush.msrb.mxu0 %v4017_v22 }
 0x236   : > { %v1518_v16 = vpop.f32.mrf.mxu2 }
 0x237   : > { %v1608_v7 = vadd.f32 %v1518_v16, %v1414_v60  ;;  %v1712_v31 = vpop.f32.mrf.mxu3  ;;  %v1464_v16 = vld [vmem:[%s8515_s10 + $0xd8] sm:$0xff]  ;;  %3690 = vmatpush.msrb.mxu1 %v3675_v52 }
 0x238   : > { %v9352_v24 = vpop.f32.mrf.mxu0 }
 0x239   : > { %v9358_v55 = vadd.f32 %v1712_v31, %v1608_v7  ;;  %v9360_v43 = vpop.f32.mrf.mxu1  ;;  %v1836_v7 = vld [vmem:[%s8515_s10 + $0x5a] sm:$0xff]  ;;  %v1222_v31 = vadd.f32 %v9140_v5, %v8935_v26 }
 0x23b   : > { %13354 = vst [vmem:[#allocation42_spill] sm:$0xff] %v9358_v55  ;;  %1568 = vmatmul.f32.gmra.mxu2 %v1463_v56  ;;  %1908 = vmatmul.f32.gmra.mxu0 %v1835_v29  ;;  %v9379_v29 = vld [vmem:[%s8515_s10 + $0x129] sm:$0xff]  ;;  %v1416_v26 = vadd.f32 %v9148_v40, %v1222_v31  ;;  %v3362_v40 = vld [vmem:[#allocation6 + $0x10] sm:$0xff] }
 0x23c   : > { %1762 = vmatmul.f32.gmra.mxu3 %v9173_v53  ;;  %3436 = vmatmul.f32.gmra.mxu1 %v9363_v4  ;;  %v3556_v31 = vld [vmem:[#allocation6 + $0x110] sm:$0xff]  ;;  %v3668_v55 = vld [vmem:[#allocation6 + $0x188] sm:$0xff] }
 0x23d   : > { %3486 = vmatpush.msrb.mxu2 %v3362_v40  ;;  %3583 = vmatpush.msrb.mxu3 %v3556_v31  ;;  %v1467_v31 = vld [vmem:[%s8515_s10 + $0xf0] sm:$0xff] }
 0x23e   : > { %v1521_v51 = vpop.f32.mrf.mxu2 }
 0x23f   : > { %v1609_v10 = vadd.f32 %v1521_v51, %v1415_v47  ;;  %v1715_v18 = vpop.f32.mrf.mxu3  ;;  %v1465_v47 = vld [vmem:[%s8515_s10 + $0xe0] sm:$0xff] }
 0x240   : > { %v9368_v60 = vpop.f32.mrf.mxu0  ;;  %v1837_v51 = vld [vmem:[%s8515_s10 + $0x62] sm:$0xff] }
 0x241   : > { %v9374_v53 = vadd.f32 %v1715_v18, %v1609_v10  ;;  %v9376_v56 = vpop.f32.mrf.mxu1  ;;  %v1223_v10 = vadd.f32 %v9155_v9, %v8950_v59 }
 0x243   : > { %13355 = vst [vmem:[#allocation43_spill] sm:$0xff] %v9374_v53  ;;  %1571 = vmatmul.f32.gmra.mxu2 %v1464_v16  ;;  %1911 = vmatmul.f32.gmra.mxu0 %v1836_v7  ;;  %v3674_v7 = vld [vmem:[#allocation6 + $0x1b8] sm:$0xff]  ;;  %v1417_v52 = vadd.f32 %v9163_v32, %v1223_v10  ;;  %v3673_v32 = vld [vmem:[#allocation6 + $0x1b0] sm:$0xff] }
 0x244   : > { %1765 = vmatmul.f32.gmra.mxu3 %v9188_v21  ;;  %3439 = vmatmul.f32.gmra.mxu1 %v9379_v29  ;;  %v3382_v21 = vld [vmem:[%s8515_s10 + $0x131] sm:$0xff] }
 0x245   : > { %3691 = vmatpush.msrb.mxu1 %v3674_v7  ;;  %v4016_v10 = vld [vmem:[#allocation6 + $0x350] sm:$0xff] }
 0x246   : > { %v1524_v5 = vpop.f32.mrf.mxu2  ;;  %4027 = vmatpush.msrb.mxu0 %v4016_v10  ;;  %v1468_v10 = vld [vmem:[%s8515_s10 + $0xf8] sm:$0xff] }
 0x247   : > { %v1610_v46 = vadd.f32 %v1524_v5, %v1416_v26  ;;  %v1718_v35 = vpop.f32.mrf.mxu3  ;;  %v1466_v5 = vld [vmem:[%s8515_s10 + $0xe8] sm:$0xff]  ;;  %3692 = vmatpush.msrb.mxu1 %v3673_v32  ;;  %v1843_v53 = vld [vmem:[%s8515_s10 + $0x92] sm:$0xff] }
 0x248   : > { %v9384_v23 = vpop.f32.mrf.mxu0 }
 0x249   : > { %v9390_v18 = vadd.f32 %v1718_v35, %v1610_v46  ;;  %v9392_v16 = vpop.f32.mrf.mxu1  ;;  %v1838_v46 = vld [vmem:[%s8515_s10 + $0x6a] sm:$0xff]  ;;  %v1224_v35 = vadd.f32 %v9170_v62, %v8965_v61 }
 0x24b   : > { %13356 = vst [vmem:[#allocation44_spill] sm:$0xff] %v9390_v18  ;;  %1574 = vmatmul.f32.gmra.mxu2 %v1465_v47  ;;  %1914 = vmatmul.f32.gmra.mxu0 %v1837_v51  ;;  %v3383_v51 = vld [vmem:[%s8515_s10 + $0x139] sm:$0xff]  ;;  %v9516_v18 = vld [vmem:[%s8515_s10 + $0x110] sm:$0xff] }
 0x24c   : > { %1768 = vmatmul.f32.gmra.mxu3 %v9202_v45  ;;  %3442 = vmatmul.f32.gmra.mxu1 %v3382_v21  ;;  %v1418_v21 = vadd.f32 %v9178_v37, %v1224_v35  ;;  %v3361_v37 = vld [vmem:[#allocation6 + $0x8] sm:$0xff] }
 0x24d   : > { %3487 = vmatpush.msrb.mxu2 %v3361_v37 }
 0x24e   : > { %v1527_v59 = vpop.f32.mrf.mxu2 }
 0x24f   : > { %v1611_v9 = vadd.f32 %v1527_v59, %v1417_v52  ;;  %v1721_v22 = vpop.f32.mrf.mxu3  ;;  %v1839_v52 = vld [vmem:[%s8515_s10 + $0x72] sm:$0xff]  ;;  %v1225_v59 = vadd.f32 %v9185_v12, %v8980_v8 }
 0x250   : > { %v9397_v26 = vpop.f32.mrf.mxu0 }
 0x251   : > { %v9403_v47 = vadd.f32 %v1721_v22, %v1611_v9  ;;  %v9405_v45 = vpop.f32.mrf.mxu1  ;;  %v1419_v35 = vadd.f32 %v9193_v15, %v1225_v59  ;;  %v4015_v15 = vld [vmem:[#allocation6 + $0x348] sm:$0xff] }
 0x252   : > { %4028 = vmatpush.msrb.mxu0 %v4015_v15 }
 0x253   : > { %13357 = vst [vmem:[#allocation45_spill] sm:$0xff] %v9403_v47  ;;  %1577 = vmatmul.f32.gmra.mxu2 %v1466_v5  ;;  %1917 = vmatmul.f32.gmra.mxu0 %v1838_v46  ;;  %v3672_v5 = vld [vmem:[#allocation6 + $0x1a8] sm:$0xff] }
 0x254   : > { %1771 = vmatmul.f32.gmra.mxu3 %v9216_v57  ;;  %3445 = vmatmul.f32.gmra.mxu1 %v3383_v51  ;;  %v3384_v57 = vld [vmem:[%s8515_s10 + $0x141] sm:$0xff]  ;;  %v3555_v46 = vld [vmem:[#allocation6 + $0x108] sm:$0xff] }
 0x255   : > { %3693 = vmatpush.msrb.mxu1 %v3672_v5  ;;  %3584 = vmatpush.msrb.mxu3 %v3555_v46  ;;  %v9441_v46 = vld [vmem:[%s8515_s10 + $0x100] sm:$0xff] }
 0x256   : > { %v1530_v61 = vpop.f32.mrf.mxu2  ;;  %13361 = vst [vmem:[#allocation49_spill] sm:$0xff] %v9441_v46 }
 0x257   : > { %v1612_v62 = vadd.f32 %v1530_v61, %v1418_v21  ;;  %v1724_v7 = vpop.f32.mrf.mxu3  ;;  %v1840_v21 = vld [vmem:[%s8515_s10 + $0x7a] sm:$0xff]  ;;  %v1226_v61 = vadd.f32 %v9199_v33, %v8995_v28 }
 0x258   : > { %v9410_v40 = vpop.f32.mrf.mxu0 }
 0x259   : > { %v9416_v9 = vadd.f32 %v1724_v7, %v1612_v62  ;;  %v9418_v22 = vpop.f32.mrf.mxu1  ;;  %v3385_v7 = vld [vmem:[%s8515_s10 + $0x149] sm:$0xff]  ;;  %v1420_v59 = vadd.f32 %v9207_v50, %v1226_v61  ;;  %v3386_v50 = vld [vmem:[%s8515_s10 + $0x151] sm:$0xff] }
 0x25b   : > { %13358 = vst [vmem:[#allocation46_spill] sm:$0xff] %v9416_v9  ;;  %1580 = vmatmul.f32.gmra.mxu2 %v1467_v31  ;;  %1920 = vmatmul.f32.gmra.mxu0 %v1839_v52  ;;  %v3671_v31 = vld [vmem:[#allocation6 + $0x1a0] sm:$0xff]  ;;  %v2127_v52 = vlaneseq  ;;  %v13368_v9 = vmov 0  }
 0x25c   : > { %1774 = vmatmul.f32.gmra.mxu3 %v9230_v42  ;;  %3448 = vmatmul.f32.gmra.mxu1 %v3384_v57 }
 0x25d   : > { %3694 = vmatpush.msrb.mxu1 %v3671_v31  ;;  %v9436_v33 = vshrl.u32 %v2127_v52, 7  ;;  %v3554_v31 = vld [vmem:[#allocation6 + $0x100] sm:$0xff] }
 0x25e   : > { %v1533_v8 = vpop.f32.mrf.mxu2  ;;  %3585 = vmatpush.msrb.mxu3 %v3554_v31  ;;  %v1842_v31 = vld [vmem:[%s8515_s10 + $0x8a] sm:$0xff] }
 0x25f   : > { %v1613_v12 = vadd.f32 %v1533_v8, %v1419_v35  ;;  %v1727_v51 = vpop.f32.mrf.mxu3  ;;  %13360 = vst [vmem:[#allocation48_spill] sm:$0xff] %v9436_v33  ;;  %v1841_v35 = vld [vmem:[%s8515_s10 + $0x82] sm:$0xff]  ;;  %v2163_v8 = vand.u32 65535, %v9436_v33 }
 0x260   : > { %v9423_v32 = vpop.f32.mrf.mxu0 }
 0x261   : > { %v9429_v62 = vadd.f32 %v1727_v51, %v1613_v12  ;;  %v9431_v42 = vpop.f32.mrf.mxu1  ;;  %v2167_v61 = vmul.u32 43690, %v2163_v8  ;;  %v2166_v15 = vmul.u32 43691, %v2163_v8 }
 0x263   : > { %13359 = vst [vmem:[#allocation47_spill] sm:$0xff] %v9429_v62  ;;  %1583 = vmatmul.f32.gmra.mxu2 %v1468_v10  ;;  %1923 = vmatmul.f32.gmra.mxu0 %v1840_v21  ;;  %v3670_v10 = vld [vmem:[#allocation6 + $0x198] sm:$0xff]  ;;  %v2164_v21 = vshrl.u32 %v9436_v33, 16  ;;  %v2171_v62 = vshrl.u32 %v2167_v61, 16 }
 0x264   : > { %1777 = vmatmul.f32.gmra.mxu3 %v9244_v14  ;;  %3451 = vmatmul.f32.gmra.mxu1 %v3385_v7  ;;  %v1227_v14 = vadd.f32 %v9213_v38, %v9010_v20  ;;  %v3360_v7 = vld [vmem:[#allocation6] sm:$0xff]  ;;  %v2170_v38 = vshll.u32 %v2167_v61, 16 }
 0x265   : > { %3695 = vmatpush.msrb.mxu1 %v3670_v10  ;;  %v9455_v20 = vmul.u32 43691, %v2164_v21  ;;  %3488 = vmatpush.msrb.mxu2 %v3360_v7  ;;  %v9461_v10 = vadd.s32 8, %v9436_v33  ;;  %v9470_v7 = vld [vmem:[%s8515_s10 + $0x108] sm:$0xff] }
 0x266   : > { %v1536_v28 = vpop.f32.mrf.mxu2  ;;  %v1421_v52 = vadd.f32 %v9221_v44, %v1227_v14  ;;  %vm2174_vm0 = vc.u32 %v2166_v15, %v2170_v38  ;;  %v1228_v44 = vadd.f32 %v9227_v27, %v9025_v41  ;;  %v1229_v14 = vadd.f32 %v9241_v36, %v9040_v34  ;;  %13364 = vst [vmem:[#allocation52_spill] sm:$0xff] %v9470_v7  ;;  %v13366_v27 = vld [vmem:[#allocation29_spill] sm:$0xff] }
 0x267   : > { %v1614_v57 = vadd.f32 %v1536_v28, %v1420_v59  ;;  %v1730_v5 = vpop.f32.mrf.mxu3  ;;  %v2169_v28 = vmul.u32 43690, %v2164_v21  ;;  %13363 = vst [vmem:[#allocation51_spill] sm:$0xff] %v9461_v10  ;;  %v2192_v41 = vand.u32 65535, %v9461_v10  ;;  %v13367_v34 = vld [vmem:[#allocation25_spill] sm:$0xff] }
 0x268   : > { %v9438_v37 = vpop.f32.mrf.mxu0  ;;  %v1231_v36 = vadd.f32 %v13367_v34, %v13366_v27  ;;  %v13371_v27 = vld [vmem:[#allocation34_spill] sm:$0xff] }
 0x269   : > { %v9447_v12 = vadd.f32 %v1730_v5, %v1614_v57  ;;  %v9449_v51 = vpop.f32.mrf.mxu1  ;;  %v2172_v57 = vshll.u32 %v9455_v20, 16  ;;  %v2195_v61 = vmul.u32 43691, %v2192_v41 }
 0x26b   : > { %13362 = vst [vmem:[#allocation50_spill] sm:$0xff] %v9447_v12  ;;  %1586 = vmatmul.f32.gmra.mxu2 %v9441_v46  ;;  %1926 = vmatmul.f32.gmra.mxu0 %v1841_v35  ;;  %v13237_v35 = vmov 0   ;;  %v3669_v12 = vld [vmem:[#allocation6 + $0x190] sm:$0xff]  ;;  %v13379_v46 = vld [vmem:[#allocation38_spill] sm:$0xff] }
 0x26c   : > { %1780 = vmatmul.f32.gmra.mxu3 %v9258_v3  ;;  %3454 = vmatmul.f32.gmra.mxu1 %v3386_v50  ;;  %v2175_v8 = vsel %vm2174_vm0, 1, %v13237_v35  ;;  %v2176_v50 = vadd.s32 %v2170_v38, %v2166_v15  ;;  %v3387_v38 = vld [vmem:[%s8515_s10 + $0x159] sm:$0xff] }
 0x26d   : > { %3696 = vmatpush.msrb.mxu1 %v3669_v12  ;;  %v4014_v12 = vld [vmem:[#allocation6 + $0x340] sm:$0xff] }
 0x26e   : > { %v1539_v59 = vpop.f32.mrf.mxu2  ;;  %vm2178_vm1 = vc.u32 %v2176_v50, %v2172_v57  ;;  %v13370_v57 = vld [vmem:[#allocation33_spill] sm:$0xff]  ;;  %4029 = vmatpush.msrb.mxu0 %v4014_v12 }
 0x26f   : > { %v1615_v3 = vadd.f32 %v1539_v59, %v1421_v52  ;;  %v1733_v5 = vpop.f32.mrf.mxu3  ;;  %v2177_v52 = vadd.s32 %v2175_v8, %v2169_v28  ;;  %v1230_v59 = vadd.f32 %v9255_v1, %v9055_v11  ;;  %v2179_v47 = vsel %vm2178_vm1, 1, %v13368_v9  ;;  %3697 = vmatpush.msrb.mxu1 %v3668_v55 }
 0x270   : > { %v9467_v21 = vpop.f32.mrf.mxu0  ;;  %v2193_v28 = vshrl.u32 %v9461_v10, 16  ;;  %v9486_v1 = vmul.u32 43690, %v2192_v41  ;;  %v9490_v8 = vadd.f32 %v13370_v57, %v1229_v14  ;;  %v13372_v14 = vld [vmem:[#allocation36_spill] sm:$0xff]  ;;  %v13375_v57 = vld [vmem:[#allocation27_spill] sm:$0xff] }
 0x271   : > { %v9475_v35 = vadd.f32 %v1733_v5, %v1615_v3  ;;  %v9477_v15 = vpop.f32.mrf.mxu1  ;;  %v2181_v11 = vadd.s32 %v2179_v47, %v2177_v52  ;;  %v13369_v3 = vld [vmem:[#allocation32_spill] sm:$0xff]  ;;  %v9496_v34 = vadd.f32 %v13371_v27, %v1230_v59  ;;  %v2173_v47 = vshrl.u32 %v9455_v20, 16  ;;  %v13374_v59 = vld [vmem:[#allocation14_spill] sm:$0xff] }
 0x272   : > { %v1422_v5 = vadd.f32 %v13369_v3, %v1228_v44  ;;  %v9493_v50 = vmul.u32 43691, %v2193_v28  ;;  %v2199_v44 = vshll.u32 %v9486_v1, 16  ;;  %v9501_v52 = vadd.f32 %v13372_v14, %v1231_v36  ;;  %v13377_v36 = vld [vmem:[#allocation16_spill] sm:$0xff] }
 0x273   : > { %13365 = vst [vmem:[#allocation53_spill] sm:$0xff] %v9475_v35  ;;  %1589 = vmatmul.f32.gmra.mxu2 %v9470_v7  ;;  %1929 = vmatmul.f32.gmra.mxu0 %v1842_v31  ;;  %v2182_v31 = vadd.s32 %v2181_v11, %v2171_v62  ;;  %v9505_v3 = vadd.s32 16, %v9436_v33  ;;  %v1232_v12 = vadd.f32 %v13375_v57, %v13374_v59  ;;  %v13376_v11 = vld [vmem:[#allocation31_spill] sm:$0xff] }
 0x274   : > { %1783 = vmatmul.f32.gmra.mxu3 %v9272_v48  ;;  %3457 = vmatmul.f32.gmra.mxu1 %v3387_v38  ;;  %v2198_v38 = vmul.u32 43690, %v2193_v28  ;;  %v2201_v41 = vshll.u32 %v9493_v50, 16  ;;  %vm2203_vm2 = vc.u32 %v2195_v61, %v2199_v44  ;;  %v2205_v62 = vadd.s32 %v2199_v44, %v2195_v61 }
 0x275   : > { %13373 = vst [vmem:[#allocation29_spill] sm:$0xff] %v9505_v3  ;;  %v1233_v35 = vadd.f32 %v9297_v58, %v13376_v11  ;;  %v1234_v14 = vadd.f32 %v9310_v39, %v13377_v36  ;;  %v2204_v63 = vsel %vm2203_vm2, 1, %v13368_v9  ;;  %v2221_v59 = vand.u32 65535, %v9505_v3  ;;  %v3388_v58 = vld [vmem:[%s8515_s10 + $0x161] sm:$0xff] }
 0x276   : > { %v1542_v48 = vpop.f32.mrf.mxu2  ;;  %v2183_v39 = vadd.s32 %v2182_v31, %v2173_v47  ;;  %v2206_v57 = vadd.s32 %v2204_v63, %v2198_v38  ;;  %v3667_v11 = vld [vmem:[#allocation6 + $0x180] sm:$0xff]  ;;  %v2200_v36 = vshrl.u32 %v9486_v1, 16  ;;  %vm2207_vm3 = vc.u32 %v2205_v62, %v2201_v41 }
 0x277   : > { %v1616_v20 = vadd.f32 %v1542_v48, %v1422_v5  ;;  %v1736_v27 = vpop.f32.mrf.mxu3  ;;  %v13378_v5 = vld [vmem:[#allocation18_spill] sm:$0xff]  ;;  %v2222_v7 = vshrl.u32 %v9505_v3, 16  ;;  %v9530_v49 = vmul.u32 43690, %v2221_v59  ;;  %v9533_v54 = vadd.f32 %v13379_v46, %v1232_v12  ;;  %3698 = vmatpush.msrb.mxu1 %v3667_v11 }
 0x278   : > { %v9513_v28 = vpop.f32.mrf.mxu0  ;;  %v1235_v48 = vadd.f32 %v9323_v13, %v13378_v5  ;;  %v13380_v13 = vld [vmem:[#allocation20_spill] sm:$0xff]  ;;  %v2208_v63 = vsel %vm2207_vm3, 1, %v13368_v9  ;;  %v2202_v55 = vshrl.u32 %v9493_v50, 16  ;;  %v2224_v47 = vmul.u32 43691, %v2221_v59 }
 0x279   : > { %v9523_v61 = vadd.f32 %v1736_v27, %v1616_v20  ;;  %v9525_v44 = vpop.f32.mrf.mxu1  ;;  %v1236_v20 = vadd.f32 %v9336_v17, %v13380_v13  ;;  %v13381_v27 = vld [vmem:[#allocation22_spill] sm:$0xff]  ;;  %v2210_v1 = vadd.s32 %v2208_v63, %v2206_v57  ;;  %v9543_v46 = vmul.u32 43691, %v2222_v7  ;;  %v9569_v59 = vld [vmem:[%s8515_s10 + $0x118] sm:$0xff] }
 0x27a   : > { %v1237_v5 = vadd.f32 %v9352_v24, %v13381_v27  ;;  %v9546_v31 = vadd.f32 %v9305_v0, %v1233_v35  ;;  %v9549_v17 = vadd.f32 %v9318_v2, %v1234_v14  ;;  %v9552_v24 = vadd.f32 %v9331_v25, %v1235_v48  ;;  %v3389_v13 = vld [vmem:[%s8515_s10 + $0x169] sm:$0xff]  ;;  %v13385_v27 = vld [vmem:[#allocation28_spill] sm:$0xff] }
 0x27b   : > { %1592 = vmatmul.f32.gmra.mxu2 %v9516_v18  ;;  %1932 = vmatmul.f32.gmra.mxu0 %v1843_v53  ;;  %v2184_v50 = vshrl.u32 %v2183_v39, 4  ;;  %v2211_v38 = vadd.s32 %v2210_v1, %v2200_v36  ;;  %v2227_v41 = vmul.u32 43690, %v2222_v7  ;;  %v9556_v12 = vadd.s32 24, %v9436_v33  ;;  %v1844_v7 = vld [vmem:[%s8515_s10 + $0x9a] sm:$0xff] }
 0x27c   : > { %1786 = vmatmul.f32.gmra.mxu3 %v9286_v19  ;;  %3460 = vmatmul.f32.gmra.mxu1 %v3388_v58  ;;  %v2228_v19 = vshll.u32 %v9530_v49, 16  ;;  %v9559_v0 = vadd.f32 %v9344_v6, %v1236_v20  ;;  %v9562_v2 = vadd.f32 %v9360_v43, %v1237_v5  ;;  %v2230_v62 = vshll.u32 %v9543_v46, 16  ;;  %v13383_v39 = vld [vmem:[#allocation24_spill] sm:$0xff]  ;;  %v13384_v43 = vld [vmem:[#allocation26_spill] sm:$0xff]  ;;  %v13386_v63 = vld [vmem:[#allocation15_spill] sm:$0xff] }
 0x27d   : > { %13382 = vst [vmem:[#allocation25_spill] sm:$0xff] %v9556_v12  ;;  %v2212_v48 = vadd.s32 %v2211_v38, %v2202_v55  ;;  %v2250_v6 = vand.u32 65535, %v9556_v12  ;;  %v1238_v57 = vadd.f32 %v9368_v60, %v13383_v39  ;;  %v1239_v11 = vadd.f32 %v9384_v23, %v13384_v43 }
 0x27e   : > { %v1545_v53 = vpop.f32.mrf.mxu2  ;;  %vm2232_vm4 = vc.u32 %v2224_v47, %v2228_v19  ;;  %v2234_v58 = vadd.s32 %v2228_v19, %v2224_v47  ;;  %v1240_v5 = vadd.f32 %v9397_v26, %v13385_v27  ;;  %v1241_v55 = vadd.f32 %v9410_v40, %v13386_v63  ;;  %v3795_v47 = vld [vmem:[#allocation6 + $0x278] sm:$0xff] }
 0x27f   : > { %v1617_v25 = vadd.f32 %v1545_v53, %v9490_v8  ;;  %v1739_v35 = vpop.f32.mrf.mxu3  ;;  %v2233_v20 = vsel %vm2232_vm4, 1, %v13368_v9  ;;  %v2185_v1 = vmul.u32 24, %v2184_v50  ;;  %v3908_v19 = vld [vmem:[#allocation6 + $0x2f8] sm:$0xff]  ;;  %v2229_v23 = vshrl.u32 %v9530_v49, 16  ;;  %3796 = vmatpush.msra.mxu2 %v3795_v47 }
 0x280   : > { %v9566_v14 = vpop.f32.mrf.mxu0  ;;  %v2235_v60 = vadd.s32 %v2233_v20, %v2227_v41  ;;  %vm2236_vm5 = vc.u32 %v2234_v58, %v2230_v62  ;;  %v2251_v53 = vshrl.u32 %v9556_v12, 16  ;;  %v9590_v38 = vmul.u32 43690, %v2250_v6  ;;  %3909 = vmatpush.msra.mxu3 %v3908_v19  ;;  %v1845_v20 = vld [vmem:[%s8515_s10 + $0xa2] sm:$0xff] }
 0x281   : > { %v9577_v8 = vadd.f32 %v1739_v35, %v1617_v25  ;;  %v9579_v36 = vpop.f32.mrf.mxu1  ;;  %v2213_v26 = vshrl.u32 %v2212_v48, 4  ;;  %v2231_v40 = vshrl.u32 %v9543_v46, 16  ;;  %v2237_v50 = vsel %vm2236_vm5, 1, %v13368_v9 }
 0x282   : > { %v2253_v25 = vmul.u32 43691, %v2250_v6  ;;  %v2239_v41 = vadd.s32 %v2237_v50, %v2235_v60  ;;  %v9595_v35 = vmul.u32 43691, %v2251_v53  ;;  %v2257_v49 = vshll.u32 %v9590_v38, 16  ;;  %v3907_v50 = vld [vmem:[#allocation6 + $0x2f0] sm:$0xff] }
 0x283   : > { %1595 = vmatmul.f32.gmra.mxu2 %v9569_v59  ;;  %1935 = vmatmul.f32.gmra.mxu0 %v1844_v7  ;;  %v9599_v62 = vadd.f32 %v9376_v56, %v1238_v57  ;;  %v2256_v46 = vmul.u32 43690, %v2251_v53  ;;  %v9605_v48 = vadd.s32 32, %v9436_v33  ;;  %v8363_v58 = vmov 0.0  }
 0x284   : > { %1789 = vmatmul.f32.gmra.mxu3 %v9347_v30  ;;  %3463 = vmatmul.f32.gmra.mxu1 %v3389_v13  ;;  %v9602_v30 = vadd.f32 %v9392_v16, %v1239_v11  ;;  %333 = vst [vmem:[#allocation2 + $0x8] sm:$0xff] %v8363_v58  ;;  %v2240_v43 = vadd.s32 %v2239_v41, %v2229_v23  ;;  %v2259_v56 = vshll.u32 %v9595_v35, 16  ;;  %v9618_v13 = vld [vmem:[%s8515_s10 + $0x120] sm:$0xff]  ;;  %v13389_v23 = vld [vmem:[#allocation19_spill] sm:$0xff] }
 0x285   : > { %13387 = vst [vmem:[#allocation32_spill] sm:$0xff] %v9605_v48  ;;  %vm2261_vm6 = vc.u32 %v2253_v25, %v2257_v49  ;;  %v9610_v16 = vadd.f32 %v9405_v45, %v1240_v5  ;;  %v9613_v57 = vadd.f32 %v9418_v22, %v1241_v55  ;;  %v3390_v45 = vld [vmem:[%s8515_s10 + $0x171] sm:$0xff]  ;;  %v2214_v5 = vmul.u32 24, %v2213_v26  ;;  %v13388_v55 = vld [vmem:[#allocation17_spill] sm:$0xff]  ;;  %3910 = vmatpush.msra.mxu3 %v3907_v50 }
 0x286   : > { %v1548_v7 = vpop.f32.mrf.mxu2  ;;  %332 = vst [vmem:[#allocation2] sm:$0xff] %v8363_v58  ;;  %v2262_v27 = vsel %vm2261_vm6, 1, %v13368_v9  ;;  %v2241_v19 = vadd.s32 %v2240_v43, %v2231_v40  ;;  %v2263_v22 = vadd.s32 %v2257_v49, %v2253_v25  ;;  %v1242_v60 = vadd.f32 %v9423_v32, %v13388_v55  ;;  %v4013_v26 = vld [vmem:[#allocation6 + $0x338] sm:$0xff] }
 0x287   : > { %v1618_v6 = vadd.f32 %v1548_v7, %v9496_v34  ;;  %v1742_v39 = vpop.f32.mrf.mxu3  ;;  %v9622_v34 = vsub.s32 %v9436_v33, %v2185_v1  ;;  %334 = vst [vmem:[#allocation2 + $0x10] sm:$0xff] %v8363_v58  ;;  %v1243_v53 = vadd.f32 %v9438_v37, %v13389_v23  ;;  %v3794_v1 = vld [vmem:[#allocation6 + $0x270] sm:$0xff]  ;;  %v2264_v41 = vadd.s32 %v2262_v27, %v2256_v46  ;;  %v4134_v40 = vld [vmem:[#allocation6 + $0x3f8] sm:$0xff] }
 0x288   : > { %v9615_v11 = vpop.f32.mrf.mxu0  ;;  %335 = vst [vmem:[#allocation2 + $0x18] sm:$0xff] %v8363_v58  ;;  %v2279_v7 = vand.u32 65535, %v9605_v48  ;;  %v2258_v25 = vshrl.u32 %v9590_v38, 16  ;;  %vm2265_vm7 = vc.u32 %v2263_v22, %v2259_v56  ;;  %v2280_v37 = vshrl.u32 %v9605_v48, 16  ;;  %3797 = vmatpush.msra.mxu2 %v3794_v1  ;;  %4030 = vmatpush.msrb.mxu0 %v4013_v26  ;;  %v9670_v50 = vld [vmem:[%s8515_s10 + $0x128] sm:$0xff]  ;;  %v3906_v26 = vld [vmem:[#allocation6 + $0x2e8] sm:$0xff] }
 0x289   : > { %v9625_v63 = vadd.f32 %v1742_v39, %v1618_v6  ;;  %v9627_v47 = vpop.f32.mrf.mxu1  ;;  %336 = vst [vmem:[#allocation2 + $0x1a0] sm:$0xff] %v8363_v58  ;;  %v13390_v6 = vld [vmem:[#allocation21_spill] sm:$0xff]  ;;  %vm3088_vm8 = vcmp.ne.s32.totalorder %v9622_v34, 0  ;;  %vm3120_vm9 = vcmp.lt.s32.totalorder %v9622_v34, 0  ;;  %v2266_v32 = vsel %vm2265_vm7, 1, %v13368_v9  ;;  %4135 = vmatpush.msra.mxu1 %v4134_v40  ;;  %3911 = vmatpush.msra.mxu3 %v3906_v26 }
 0x28a   : > { %v1244_v39 = vadd.f32 %v9467_v21, %v13390_v6  ;;  %337 = vst [vmem:[#allocation2 + $0x1a8] sm:$0xff] %v8363_v58  ;;  %v9645_v21 = vsub.s32 %v9461_v10, %v2214_v5  ;;  %v2242_v38 = vshrl.u32 %v2241_v19, 4  ;;  %v2268_v49 = vadd.s32 %v2266_v32, %v2264_v41  ;;  %vm9677_vm10 = vmand %vm3120_vm9, %vm3088_vm8  ;;  %v4133_v32 = vld [vmem:[#allocation6 + $0x3f0] sm:$0xff] }
 0x28b   : > { %1598 = vmatmul.f32.gmra.mxu2 %v9618_v13  ;;  %1938 = vmatmul.f32.gmra.mxu0 %v1845_v20  ;;  %338 = vst [vmem:[#allocation2 + $0x1b0] sm:$0xff] %v8363_v58  ;;  %v9647_v46 = vmul.u32 43690, %v2279_v7  ;;  %v2260_v43 = vshrl.u32 %v9595_v35, 16  ;;  %v2282_v56 = vmul.u32 43691, %v2279_v7  ;;  %v9650_v20 = vmul.u32 43691, %v2280_v37  ;;  %v8179_v10 = vld [vmem:[%s8515_s10 + $0x102] sm:$0xff] }
 0x28c   : > { %1792 = vmatmul.f32.gmra.mxu3 %v9363_v4  ;;  %3466 = vmatmul.f32.gmra.mxu1 %v3390_v45  ;;  %339 = vst [vmem:[#allocation2 + $0x1b8] sm:$0xff] %v8363_v58  ;;  %v9653_v27 = vadd.s32 40, %v9436_v33  ;;  %v3184_v19 = vadd.s32 24, %v9622_v34  ;;  %v2269_v58 = vadd.s32 %v2268_v49, %v2258_v25  ;;  %v9659_v55 = vadd.f32 %v9431_v42, %v1242_v60 }
 0x28d   : > { %v2286_v22 = vshll.u32 %v9647_v46, 16  ;;  %v9662_v35 = vadd.f32 %v9449_v51, %v1243_v53  ;;  %v9665_v23 = vadd.f32 %v9477_v15, %v1244_v39  ;;  %v2285_v42 = vmul.u32 43690, %v2280_v37  ;;  %v3391_v15 = vld [vmem:[%s8515_s10 + $0x179] sm:$0xff]  ;;  %4136 = vmatpush.msra.mxu1 %v4133_v32 }
 0x28e   : > { %v1551_v4 = vpop.f32.mrf.mxu2  ;;  %13391 = vst [vmem:[#allocation33_spill] sm:$0xff] %v9653_v27  ;;  %vm3089_vm11 = vcmp.ne.s32.totalorder %v9645_v21, 0  ;;  %v2288_v53 = vshll.u32 %v9650_v20, 16  ;;  %v2308_v7 = vand.u32 65535, %v9653_v27  ;;  %vm3121_vm12 = vcmp.lt.s32.totalorder %v9645_v21, 0  ;;  %v3793_v39 = vld [vmem:[#allocation6 + $0x268] sm:$0xff] }
 0x28f   : > { %v1619_v45 = vadd.f32 %v1551_v4, %v9501_v52  ;;  %v1745_v5 = vpop.f32.mrf.mxu3  ;;  %v1846_v52 = vld [vmem:[%s8515_s10 + $0xaa] sm:$0xff]  ;;  %v2243_v6 = vmul.u32 24, %v2242_v38  ;;  %v2270_v40 = vadd.s32 %v2269_v58, %v2260_v43  ;;  %vm2290_vm13 = vc.u32 %v2282_v56, %v2286_v22  ;;  %vm9708_vm14 = vmand %vm3121_vm12, %vm3089_vm11  ;;  %3798 = vmatpush.msra.mxu2 %v3793_v39 }
 0x290   : > { %v9667_v1 = vpop.f32.mrf.mxu0  ;;  %v3216_v25 = vsel %vm9677_vm10, %v3184_v19, %v9622_v34  ;;  %v2291_v37 = vsel %vm2290_vm13, 1, %v13368_v9  ;;  %v2292_v49 = vadd.s32 %v2286_v22, %v2282_v56  ;;  %v2309_v4 = vshrl.u32 %v9653_v27, 16 }
 0x291   : > { %v9681_v60 = vadd.f32 %v1745_v5, %v1619_v45  ;;  %v9683_v51 = vpop.f32.mrf.mxu1  ;;  %v13394_v45 = vld [vmem:[#allocation23_spill] sm:$0xff]  ;;  %v9702_v43 = vadd.s32 24, %v9645_v21  ;;  %v2271_v5 = vshrl.u32 %v2270_v40, 4  ;;  %v2293_v58 = vadd.s32 %v2291_v37, %v2285_v42 }
 0x292   : > { %v9698_v38 = vadd.f32 %v9513_v28, %v13394_v45  ;;  %v2287_v28 = vshrl.u32 %v9647_v46, 16  ;;  %vm2294_vm15 = vc.u32 %v2292_v49, %v2288_v53  ;;  %v9713_v56 = vmul.u32 43690, %v2308_v7 }
 0x293   : > { %1601 = vmatmul.f32.gmra.mxu2 %v9670_v50  ;;  %1941 = vmatmul.f32.gmra.mxu0 %v1846_v52  ;;  %vm9715_vm0 = vcmp.lt.s32.totalorder %v3216_v25, 16  ;;  %v9720_v52 = vsub.s32 %v9505_v3, %v2243_v6  ;;  %v2272_v41 = vmul.u32 24, %v2271_v5  ;;  %v2295_v42 = vsel %vm2294_vm15, 1, %v13368_v9  ;;  %v1847_v25 = vld [vmem:[%s8515_s10 + $0xb2] sm:$0xff] }
 0x294   : > { %1795 = vmatmul.f32.gmra.mxu3 %v9379_v29  ;;  %3469 = vmatmul.f32.gmra.mxu1 %v3391_v15  ;;  %v2311_v29 = vmul.u32 43691, %v2308_v7  ;;  %v9723_v15 = vmul.u32 43691, %v2309_v4  ;;  %v9729_v7 = vld [vmem:[%s13219_s2] ss:$0 sm:$0xff]  ;;  %v2289_v39 = vshrl.u32 %v9650_v20, 16  ;;  %v2297_v26 = vadd.s32 %v2295_v42, %v2293_v58  ;;  %v13400_v5 = vld [vmem:[#allocation39_spill] sm:$0xff] }
 0x295   : > { %v2315_v6 = vshll.u32 %v9713_v56, 16  ;;  %v2314_v37 = vmul.u32 43690, %v2309_v4  ;;  %v9748_v58 = vld [vmem:[%s13220_s3] ss:$0 sm:$0xff]  ;;  %vm3090_vm2 = vcmp.ne.s32.totalorder %v9720_v52, 0  ;;  %vm3122_vm3 = vcmp.lt.s32.totalorder %v9720_v52, 0 }
 0x296   : > { %v1554_v19 = vpop.f32.mrf.mxu2  ;;  %v2317_v49 = vshll.u32 %v9723_v15, 16  ;;  %v2298_v42 = vadd.s32 %v2297_v26, %v2287_v28  ;;  %v3792_v4 = vld [vmem:[#allocation6 + $0x260] sm:$0xff]  ;;  %v9760_v32 = vadd.s32 24, %v9720_v52  ;;  %v4012_v28 = vld [vmem:[#allocation6 + $0x330] sm:$0xff]  ;;  %v4132_v26 = vld [vmem:[#allocation6 + $0x3e8] sm:$0xff] }
 0x297   : > { %v1620_v46 = vadd.f32 %v1554_v19, %v9533_v54  ;;  %v1748_v53 = vpop.f32.mrf.mxu3  ;;  %v9739_v54 = vsub.s32 %v9556_v12, %v2272_v41  ;;  %vm2319_vm1 = vc.u32 %v2311_v29, %v2315_v6  ;;  %v3905_v41 = vld [vmem:[#allocation6 + $0x2e0] sm:$0xff]  ;;  %3799 = vmatpush.msra.mxu2 %v3792_v4  ;;  %4031 = vmatpush.msrb.mxu0 %v4012_v28  ;;  %vm9782_vm7 = vmand %vm3122_vm3, %vm3090_vm2 }
 0x298   : > { %v1897_v40 = vpop.f32.mrf.mxu0  ;;  %v2299_v12 = vadd.s32 %v2298_v42, %v2289_v39  ;;  %v2320_v3 = vsel %vm2319_vm1, 1, %v13368_v9  ;;  %3912 = vmatpush.msra.mxu3 %v3905_v41  ;;  %4137 = vmatpush.msra.mxu1 %v4132_v26 }
 0x299   : > { %v9742_v45 = vadd.f32 %v1748_v53, %v1620_v46  ;;  %v1993_v20 = vadd.f32 %v1897_v40, %v13400_v5  ;;  %v9750_v19 = vpop.f32.mrf.mxu1  ;;  %v2321_v46 = vadd.s32 %v2315_v6, %v2311_v29  ;;  %v9755_v53 = vadd.s32 48, %v9436_v33  ;;  %v13403_v5 = vld [vmem:[#allocation49_spill] sm:$0xff] }
 0x29a   : > { %13401 = vst [vmem:[#allocation36_spill] sm:$0xff] %v9750_v19  ;;  %vm3091_vm4 = vcmp.ne.s32.totalorder %v9739_v54, 0  ;;  %v2316_v29 = vshrl.u32 %v9713_v56, 16  ;;  %v2322_v6 = vadd.s32 %v2320_v3, %v2314_v37  ;;  %vm3123_vm6 = vcmp.lt.s32.totalorder %v9739_v54, 0 }
 0x29b   : > { %13399 = vst [vmem:[#allocation34_spill] sm:$0xff] %v9742_v45  ;;  %v2028_v40 = vmul.f32 %v9729_v7, %v1993_v20  ;;  %1944 = vmatmul.f32.gmra.mxu0 %v1847_v25  ;;  %3489 = vmatmul.f32.vlgmr.msrb.gmra.mxu2 %v13403_v5  ;;  %vm2323_vm5 = vc.u32 %v2321_v46, %v2317_v49  ;;  %v2300_v39 = vshrl.u32 %v2299_v12, 4  ;;  %v2337_v56 = vand.u32 65535, %v9755_v53  ;;  %vm9808_vm8 = vmand %vm3123_vm6, %vm3091_vm4 }
 0x29c   : > { %13402 = vst [vmem:[#allocation14_spill] sm:$0xff] %v9755_v53  ;;  %3586 = vmatmul.f32.vlgmr.msrb.gmra.mxu3 %v8179_v10  ;;  %3699 = vmatmul.f32.vlgmr.msrb.gmra.mxu1 %v9569_v59  ;;  %v2324_v20 = vsel %vm2323_vm5, 1, %v13368_v9  ;;  %v2318_v10 = vshrl.u32 %v9723_v15, 16  ;;  %v2338_v3 = vshrl.u32 %v9755_v53, 16  ;;  %v9775_v4 = vadd.s32 24, %v9739_v54 }
 0x29d   : > { %v2063_v25 = vadd.f32 %v9748_v58, %v2028_v40  ;;  %v2326_v5 = vadd.s32 %v2324_v20, %v2322_v6  ;;  %v2301_v12 = vmul.u32 24, %v2300_v39  ;;  %v1848_v40 = vld [vmem:[%s8515_s10 + $0xba] sm:$0xff]  ;;  %v9786_v26 = vmul.u32 43690, %v2337_v56 }
 0x29e   : > { %v1557_v42 = vpop.f32.mrf.mxu2  ;;  %v9788_v6 = vmul.u32 43691, %v2338_v3  ;;  %v13407_v20 = vld [vmem:[#allocation40_spill] sm:$0xff]  ;;  %v2340_v45 = vmul.u32 43691, %v2337_v56 }
 0x29f   : > { %v2095_v37 = vmax.f32 %v2063_v25, 0.0  ;;  %v1621_v49 = vadd.f32 %v1557_v42, %v9546_v31  ;;  %v1751_v46 = vpop.f32.mrf.mxu3  ;;  %v2327_v28 = vadd.s32 %v2326_v5, %v2316_v29  ;;  %v9791_v31 = vadd.s32 56, %v9436_v33 }
 0x2a0   : > { %v1900_v41 = vpop.f32.mrf.mxu0  ;;  %v9802_v29 = vadd.f32 %v9525_v44, %v9698_v38  ;;  %v9813_v5 = vsub.s32 %v9605_v48, %v2301_v12  ;;  %v13411_v44 = vld [vmem:[#allocation35_spill] sm:$0xff]  ;;  %v3218_v12 = vsel %vm9782_vm7, %v9760_v32, %v9720_v52  ;;  %v2343_v48 = vmul.u32 43690, %v2338_v3 }
 0x2a1   : > { %13406 = vst [vmem:[#allocation27_spill] sm:$0xff] %v9791_v31  ;;  %v3280_v25 = vsel %vm9715_vm0, %v2095_v37, 0.0  ;;  %v9795_v39 = vadd.f32 %v1751_v46, %v1621_v49  ;;  %v1994_v42 = vadd.f32 %v1900_v41, %v13407_v20  ;;  %v9798_v19 = vpop.f32.mrf.mxu1  ;;  %v3791_v37 = vld [vmem:[#allocation6 + $0x258] sm:$0xff]  ;;  %v2328_v56 = vadd.s32 %v2327_v28, %v2318_v10  ;;  %v4131_v20 = vld [vmem:[#allocation6 + $0x3e0] sm:$0xff] }
 0x2a2   : > { %13408 = vst [vmem:[#allocation31_spill] sm:$0xff] %v9798_v19  ;;  %v3904_v49 = vld [vmem:[#allocation6 + $0x2d8] sm:$0xff]  ;;  %v2344_v46 = vshll.u32 %v9786_v26, 16  ;;  %v9818_v38 = vadd.f32 %v9566_v14, %v13411_v44  ;;  %v13414_v14 = vsel %vm9708_vm14, %v9702_v43, %v9645_v21  ;;  %v2346_v32 = vshll.u32 %v9788_v6, 16  ;;  %3800 = vmatpush.msra.mxu2 %v3791_v37  ;;  %4138 = vmatpush.msra.mxu1 %v4131_v20 }
 0x2a3   : > { %3312 = vst [vmem:[#allocation2 + $0x20] sm:$0xff] %v3280_v25  ;;  %v2029_v41 = vmul.f32 %v9729_v7, %v1994_v42  ;;  %1947 = vmatmul.f32.gmra.mxu0 %v1848_v40  ;;  %v13412_v25 = vld [vmem:[#allocation52_spill] sm:$0xff]  ;;  %v13413_v19 = vld [vmem:[#allocation37_spill] sm:$0xff]  ;;  %vm9835_vm9 = vcmp.lt.s32.totalorder %v13414_v14, 16  ;;  %v2329_v52 = vshrl.u32 %v2328_v56, 4  ;;  %3913 = vmatpush.msra.mxu3 %v3904_v49  ;;  %v2366_v21 = vand.u32 65535, %v9791_v31 }
 0x2a4   : > { %3492 = vmatmul.f32.gmra.mxu2 %v13412_v25  ;;  %v9828_v10 = vadd.f32 %v9615_v11, %v13413_v19  ;;  %v8180_v28 = vld [vmem:[%s8515_s10 + $0x10a] sm:$0xff]  ;;  %3702 = vmatmul.f32.gmra.mxu1 %v9618_v13  ;;  %vm2348_vm10 = vc.u32 %v2340_v45, %v2344_v46  ;;  %vm9848_vm11 = vcmp.lt.s32.totalorder %v3218_v12, 16  ;;  %vm3092_vm12 = vcmp.ne.s32.totalorder %v9813_v5, 0  ;;  %v1849_v14 = vld [vmem:[%s8515_s10 + $0xc2] sm:$0xff] }
 0x2a5   : > { %3589 = vmatmul.f32.gmra.mxu3 %v8180_v28  ;;  %v2064_v3 = vadd.f32 %v9748_v58, %v2029_v41  ;;  %v2330_v19 = vmul.u32 24, %v2329_v52  ;;  %v2349_v15 = vsel %vm2348_vm10, 1, %v13368_v9  ;;  %v2350_v42 = vadd.s32 %v2344_v46, %v2340_v45 }
 0x2a6   : > { %v1560_v43 = vpop.f32.mrf.mxu2  ;;  %v2351_v44 = vadd.s32 %v2349_v15, %v2343_v48  ;;  %v2367_v41 = vshrl.u32 %v9791_v31, 16  ;;  %v2345_v28 = vshrl.u32 %v9786_v26, 16  ;;  %v9861_v20 = vmul.u32 43690, %v2366_v21  ;;  %v3903_v26 = vld [vmem:[#allocation6 + $0x2d0] sm:$0xff] }
 0x2a7   : > { %v2096_v56 = vmax.f32 %v2064_v3, 0.0  ;;  %v1622_v37 = vadd.f32 %v1560_v43, %v9549_v17  ;;  %v1754_v49 = vpop.f32.mrf.mxu3  ;;  %v9858_v12 = vsub.s32 %v9653_v27, %v2330_v19  ;;  %vm2352_vm13 = vc.u32 %v2350_v42, %v2346_v32  ;;  %v13419_v17 = vld [vmem:[#allocation41_spill] sm:$0xff]  ;;  %v3790_v43 = vld [vmem:[#allocation6 + $0x250] sm:$0xff]  ;;  %3914 = vmatpush.msra.mxu3 %v3903_v26 }
 0x2a8   : > { %v1903_v25 = vpop.f32.mrf.mxu0  ;;  %v2353_v3 = vsel %vm2352_vm13, 1, %v13368_v9  ;;  %vm3124_vm14 = vcmp.lt.s32.totalorder %v9813_v5, 0  ;;  %v2347_v32 = vshrl.u32 %v9788_v6, 16  ;;  %v2369_v15 = vmul.u32 43691, %v2366_v21  ;;  %3801 = vmatpush.msra.mxu2 %v3790_v43  ;;  %v1850_v27 = vld [vmem:[%s8515_s10 + $0xca] sm:$0xff] }
 0x2a9   : > { %v3281_v45 = vsel %vm9835_vm9, %v2096_v56, 0.0  ;;  %v9865_v46 = vadd.f32 %v1754_v49, %v1622_v37  ;;  %v1995_v52 = vadd.f32 %v1903_v25, %v13419_v17  ;;  %v9868_v48 = vpop.f32.mrf.mxu1  ;;  %v2355_v19 = vadd.s32 %v2353_v3, %v2351_v44  ;;  %v4011_v56 = vld [vmem:[#allocation6 + $0x328] sm:$0xff]  ;;  %v4130_v37 = vld [vmem:[#allocation6 + $0x3d8] sm:$0xff]  ;;  %vm9914_vm3 = vmand %vm3124_vm14, %vm3092_vm12 }
 0x2aa   : > { %13420 = vst [vmem:[#allocation16_spill] sm:$0xff] %v9868_v48  ;;  %v9876_v42 = vadd.s32 24, %v9813_v5  ;;  %v9878_v49 = vmul.u32 43691, %v2367_v41  ;;  %v2373_v25 = vshll.u32 %v9861_v20, 16  ;;  %vm3093_vm15 = vcmp.ne.s32.totalorder %v9858_v12, 0  ;;  %4032 = vmatpush.msrb.mxu0 %v4011_v56  ;;  %4139 = vmatpush.msra.mxu1 %v4130_v37 }
 0x2ab   : > { %3313 = vst [vmem:[#allocation2 + $0x28] sm:$0xff] %v3281_v45  ;;  %v2030_v40 = vmul.f32 %v9729_v7, %v1995_v52  ;;  %1950 = vmatmul.f32.gmra.mxu0 %v1849_v14  ;;  %v8181_v45 = vld [vmem:[%s8515_s10 + $0x112] sm:$0xff]  ;;  %v2356_v6 = vadd.s32 %v2355_v19, %v2345_v28  ;;  %v2372_v21 = vmul.u32 43690, %v2367_v41  ;;  %v9885_v44 = vadd.s32 64, %v9436_v33 }
 0x2ac   : > { %3495 = vmatmul.f32.gmra.mxu2 %v9516_v18  ;;  %3705 = vmatmul.f32.gmra.mxu1 %v9670_v50  ;;  %vm3125_vm0 = vcmp.lt.s32.totalorder %v9858_v12, 0  ;;  %v9890_v14 = vadd.s32 24, %v9858_v12  ;;  %v2375_v17 = vshll.u32 %v9878_v49, 16  ;;  %vm2377_vm1 = vc.u32 %v2369_v15, %v2373_v25 }
 0x2ad   : > { %3592 = vmatmul.f32.gmra.mxu3 %v8181_v45  ;;  %13421 = vst [vmem:[#allocation18_spill] sm:$0xff] %v9885_v44  ;;  %v2065_v18 = vadd.f32 %v9748_v58, %v2030_v40  ;;  %v2357_v28 = vadd.s32 %v2356_v6, %v2347_v32  ;;  %v2379_v41 = vadd.s32 %v2373_v25, %v2369_v15  ;;  %v2395_v3 = vand.u32 65535, %v9885_v44  ;;  %v13422_v25 = vld [vmem:[#allocation42_spill] sm:$0xff]  ;;  %vm9923_vm4 = vmand %vm3125_vm0, %vm3093_vm15 }
 0x2ae   : > { %v1563_v52 = vpop.f32.mrf.mxu2  ;;  %v2378_v43 = vsel %vm2377_vm1, 1, %v13368_v9  ;;  %v2396_v26 = vshrl.u32 %v9885_v44, 16  ;;  %v2374_v56 = vshrl.u32 %v9861_v20, 16 }
 0x2af   : > { %v2097_v19 = vmax.f32 %v2065_v18, 0.0  ;;  %v1623_v40 = vadd.f32 %v1563_v52, %v9552_v24  ;;  %v1757_v45 = vpop.f32.mrf.mxu3  ;;  %v2358_v48 = vshrl.u32 %v2357_v28, 4  ;;  %v2380_v32 = vadd.s32 %v2378_v43, %v2372_v21  ;;  %v3541_v18 = vld [vmem:[%s8515_s10 + $0x11a] sm:$0xff]  ;;  %v9908_v52 = vld [vmem:[%s8515_s10 + $0x130] sm:$0xff] }
 0x2b0   : > { %v1906_v11 = vpop.f32.mrf.mxu0  ;;  %vm2381_vm2 = vc.u32 %v2379_v41, %v2375_v17  ;;  %v3789_v17 = vld [vmem:[#allocation6 + $0x248] sm:$0xff]  ;;  %v2376_v41 = vshrl.u32 %v9878_v49, 16  ;;  %v4129_v43 = vld [vmem:[#allocation6 + $0x3d0] sm:$0xff]  ;;  %v2401_v22 = vmul.u32 43690, %v2396_v26 }
 0x2b1   : > { %v3282_v15 = vsel %vm9848_vm11, %v2097_v19, 0.0  ;;  %v9901_v37 = vadd.f32 %v1757_v45, %v1623_v40  ;;  %v1996_v6 = vadd.f32 %v1906_v11, %v13422_v25  ;;  %v9904_v24 = vpop.f32.mrf.mxu1  ;;  %v2382_v34 = vsel %vm2381_vm2, 1, %v13368_v9  ;;  %v3902_v28 = vld [vmem:[#allocation6 + $0x2c8] sm:$0xff]  ;;  %3802 = vmatpush.msra.mxu2 %v3789_v17  ;;  %4140 = vmatpush.msra.mxu1 %v4129_v43  ;;  %v3542_v43 = vld [vmem:[%s8515_s10 + $0x122] sm:$0xff] }
 0x2b2   : > { %13423 = vst [vmem:[#allocation38_spill] sm:$0xff] %v9904_v24  ;;  %v2359_v21 = vmul.u32 24, %v2358_v48  ;;  %v2384_v19 = vadd.s32 %v2382_v34, %v2380_v32  ;;  %v9928_v40 = vmul.u32 43690, %v2395_v3  ;;  %v9932_v25 = vmul.u32 43691, %v2396_v26  ;;  %3915 = vmatpush.msra.mxu3 %v3902_v28  ;;  %v1851_v11 = vld [vmem:[%s8515_s10 + $0xd2] sm:$0xff] }
 0x2b3   : > { %3314 = vst [vmem:[#allocation2 + $0x30] sm:$0xff] %v3282_v15  ;;  %v2031_v45 = vmul.f32 %v9729_v7, %v1996_v6  ;;  %1953 = vmatmul.f32.gmra.mxu0 %v1850_v27  ;;  %v2398_v15 = vmul.u32 43691, %v2395_v3  ;;  %v9935_v24 = vadd.s32 72, %v9436_v33  ;;  %v13429_v48 = vsel %vm9808_vm8, %v9775_v4, %v9739_v54 }
 0x2b4   : > { %3498 = vmatmul.f32.gmra.mxu2 %v9569_v59  ;;  %vm9942_vm5 = vcmp.lt.s32.totalorder %v13429_v48, 16  ;;  %3708 = vmatmul.f32.gmra.mxu1 %v9908_v52  ;;  %v9948_v59 = vsub.s32 %v9755_v53, %v2359_v21  ;;  %v2385_v27 = vadd.s32 %v2384_v19, %v2374_v56  ;;  %v2402_v3 = vshll.u32 %v9928_v40, 16 }
 0x2b5   : > { %13428 = vst [vmem:[#allocation20_spill] sm:$0xff] %v9935_v24  ;;  %3595 = vmatmul.f32.gmra.mxu3 %v3541_v18  ;;  %v2066_v32 = vadd.f32 %v9748_v58, %v2031_v45  ;;  %v3220_v54 = vsel %vm9914_vm3, %v9876_v42, %v9813_v5  ;;  %v3221_v4 = vsel %vm9923_vm4, %v9890_v14, %v9858_v12  ;;  %v2403_v18 = vshrl.u32 %v9928_v40, 16  ;;  %v13432_v40 = vld [vmem:[#allocation43_spill] sm:$0xff] }
 0x2b6   : > { %v1566_v6 = vpop.f32.mrf.mxu2  ;;  %v2386_v56 = vadd.s32 %v2385_v27, %v2376_v41  ;;  %v2404_v34 = vshll.u32 %v9932_v25, 16  ;;  %v2424_v21 = vand.u32 65535, %v9935_v24  ;;  %vm2406_vm6 = vc.u32 %v2398_v15, %v2402_v3  ;;  %v3788_v27 = vld [vmem:[#allocation6 + $0x240] sm:$0xff] }
 0x2b7   : > { %v2098_v5 = vmax.f32 %v2066_v32, 0.0  ;;  %v1624_v42 = vadd.f32 %v1566_v6, %v9559_v0  ;;  %v1760_v20 = vpop.f32.mrf.mxu3  ;;  %v2408_v12 = vadd.s32 %v2402_v3, %v2398_v15  ;;  %vm3094_vm7 = vcmp.ne.s32.totalorder %v9948_v59, 0  ;;  %v9977_v15 = vld [vmem:[%s8515_s10 + $0x138] sm:$0xff]  ;;  %v3901_v3 = vld [vmem:[#allocation6 + $0x2c0] sm:$0xff]  ;;  %3803 = vmatpush.msra.mxu2 %v3788_v27 }
 0x2b8   : > { %v1909_v14 = vpop.f32.mrf.mxu0  ;;  %v2387_v26 = vshrl.u32 %v2386_v56, 4  ;;  %v2407_v17 = vsel %vm2406_vm6, 1, %v13368_v9  ;;  %v2425_v28 = vshrl.u32 %v9935_v24, 16  ;;  %vm3126_vm8 = vcmp.lt.s32.totalorder %v9948_v59, 0  ;;  %v4010_v56 = vld [vmem:[#allocation6 + $0x320] sm:$0xff]  ;;  %3916 = vmatpush.msra.mxu3 %v3901_v3 }
 0x2b9   : > { %v3283_v41 = vsel %vm9942_vm5, %v2098_v5, 0.0  ;;  %v9970_v19 = vadd.f32 %v1760_v20, %v1624_v42  ;;  %v1997_v45 = vadd.f32 %v1909_v14, %v13432_v40  ;;  %v9973_v0 = vpop.f32.mrf.mxu1  ;;  %v9981_v48 = vadd.s32 24, %v9948_v59  ;;  %v4128_v5 = vld [vmem:[#allocation6 + $0x3c8] sm:$0xff]  ;;  %vm9999_vm10 = vmand %vm3126_vm8, %vm3094_vm7  ;;  %4033 = vmatpush.msrb.mxu0 %v4010_v56 }
 0x2ba   : > { %3315 = vst [vmem:[#allocation2 + $0x38] sm:$0xff] %v3283_v41  ;;  %v2409_v32 = vadd.s32 %v2407_v17, %v2401_v22  ;;  %vm2410_vm9 = vc.u32 %v2408_v12, %v2404_v34  ;;  %v2427_v49 = vmul.u32 43691, %v2424_v21  ;;  %v9986_v20 = vmul.u32 43690, %v2424_v21  ;;  %4141 = vmatpush.msra.mxu1 %v4128_v5  ;;  %v13440_v5 = vld [vmem:[#allocation44_spill] sm:$0xff] }
 0x2bb   : > { %v2032_v6 = vmul.f32 %v9729_v7, %v1997_v45  ;;  %1956 = vmatmul.f32.gmra.mxu0 %v1851_v11  ;;  %v2411_v42 = vsel %vm2410_vm9, 1, %v13368_v9  ;;  %v9988_v14 = vmul.u32 43691, %v2425_v28  ;;  %v9992_v41 = vadd.f32 %v9579_v36, %v9818_v38 }
 0x2bc   : > { %3501 = vmatmul.f32.gmra.mxu2 %v9618_v13  ;;  %3711 = vmatmul.f32.gmra.mxu1 %v9977_v15  ;;  %v2388_v22 = vmul.u32 24, %v2387_v26  ;;  %v2405_v34 = vshrl.u32 %v9932_v25, 16  ;;  %v2413_v21 = vadd.s32 %v2411_v42, %v2409_v32  ;;  %v10006_v12 = vadd.f32 %v9627_v47, %v9828_v10 }
 0x2bd   : > { %3598 = vmatmul.f32.gmra.mxu3 %v3542_v43  ;;  %v2067_v36 = vadd.f32 %v9748_v58, %v2032_v6  ;;  %vm10009_vm11 = vcmp.lt.s32.totalorder %v3220_v54, 16  ;;  %v2431_v11 = vshll.u32 %v9986_v20, 16  ;;  %vm10014_vm12 = vcmp.lt.s32.totalorder %v3221_v4, 16 }
 0x2be   : > { %v1569_v17 = vpop.f32.mrf.mxu2  ;;  %v2414_v47 = vadd.s32 %v2413_v21, %v2403_v18  ;;  %v2430_v10 = vmul.u32 43690, %v2425_v28  ;;  %v2433_v25 = vshll.u32 %v9988_v14, 16  ;;  %v10020_v54 = vadd.s32 80, %v9436_v33  ;;  %v1852_v18 = vld [vmem:[%s8515_s10 + $0xda] sm:$0xff] }
 0x2bf   : > { %v2099_v40 = vmax.f32 %v2067_v36, 0.0  ;;  %v1625_v45 = vadd.f32 %v1569_v17, %v9562_v2  ;;  %v1763_v43 = vpop.f32.mrf.mxu3  ;;  %v3222_v4 = vsel %vm9999_vm10, %v9981_v48, %v9948_v59  ;;  %vm2435_vm13 = vc.u32 %v2427_v49, %v2431_v11  ;;  %v3543_v59 = vld [vmem:[%s8515_s10 + $0x12a] sm:$0xff]  ;;  %v10041_v48 = vld [vmem:[%s8515_s10 + $0x140] sm:$0xff] }
 0x2c0   : > { %13439 = vst [vmem:[#allocation22_spill] sm:$0xff] %v10020_v54  ;;  %v1912_v27 = vpop.f32.mrf.mxu0  ;;  %v10029_v28 = vsub.s32 %v9791_v31, %v2388_v22  ;;  %v2415_v3 = vadd.s32 %v2414_v47, %v2405_v34  ;;  %v2436_v32 = vsel %vm2435_vm13, 1, %v13368_v9  ;;  %v2437_v6 = vadd.s32 %v2431_v11, %v2427_v49  ;;  %v3787_v34 = vld [vmem:[#allocation6 + $0x238] sm:$0xff]  ;;  %v4127_v11 = vld [vmem:[#allocation6 + $0x3c0] sm:$0xff]  ;;  %v10203_v31 = vld [vmem:[%s8515_s10 + $0x158] sm:$0xff] }
 0x2c1   : > { %v3284_v56 = vsel %vm10009_vm11, %v2099_v40, 0.0  ;;  %v10034_v2 = vadd.f32 %v1763_v43, %v1625_v45  ;;  %v1998_v42 = vadd.f32 %v1912_v27, %v13440_v5  ;;  %v10037_v21 = vpop.f32.mrf.mxu1  ;;  %v2432_v13 = vshrl.u32 %v9986_v20, 16  ;;  %v3900_v36 = vld [vmem:[#allocation6 + $0x2b8] sm:$0xff]  ;;  %3804 = vmatpush.msra.mxu2 %v3787_v34  ;;  %4142 = vmatpush.msra.mxu1 %v4127_v11 }
 0x2c2   : > { %3316 = vst [vmem:[#allocation2 + $0x40] sm:$0xff] %v3284_v56  ;;  %v2416_v22 = vshrl.u32 %v2415_v3, 4  ;;  %v2438_v17 = vadd.s32 %v2436_v32, %v2430_v10  ;;  %vm2439_vm14 = vc.u32 %v2437_v6, %v2433_v25  ;;  %v2453_v49 = vand.u32 65535, %v10020_v54  ;;  %3917 = vmatpush.msra.mxu3 %v3900_v36  ;;  %v1853_v36 = vld [vmem:[%s8515_s10 + $0xe2] sm:$0xff] }
 0x2c3   : > { %v2033_v38 = vmul.f32 %v9729_v7, %v1998_v42  ;;  %1959 = vmatmul.f32.gmra.mxu0 %v1852_v18  ;;  %v2434_v47 = vshrl.u32 %v9988_v14, 16  ;;  %v2440_v40 = vsel %vm2439_vm14, 1, %v13368_v9  ;;  %v2454_v20 = vshrl.u32 %v10020_v54, 16 }
 0x2c4   : > { %3504 = vmatmul.f32.gmra.mxu2 %v9670_v50  ;;  %3714 = vmatmul.f32.gmra.mxu1 %v10041_v48  ;;  %v2417_v45 = vmul.u32 24, %v2416_v22  ;;  %v2442_v10 = vadd.s32 %v2440_v40, %v2438_v17  ;;  %v10051_v25 = vmul.u32 43690, %v2453_v49  ;;  %v10054_v43 = vadd.s32 88, %v9436_v33 }
 0x2c5   : > { %3601 = vmatmul.f32.gmra.mxu3 %v3543_v59  ;;  %v2068_v27 = vadd.f32 %v9748_v58, %v2033_v38  ;;  %vm3095_vm15 = vcmp.ne.s32.totalorder %v10029_v28, 0  ;;  %v2456_v50 = vmul.u32 43691, %v2453_v49  ;;  %v10058_v14 = vmul.u32 43691, %v2454_v20 }
 0x2c6   : > { %13441 = vst [vmem:[#allocation24_spill] sm:$0xff] %v10054_v43  ;;  %v1572_v18 = vpop.f32.mrf.mxu2  ;;  %vm10060_vm0 = vcmp.lt.s32.totalorder %v3222_v4, 16  ;;  %vm3127_vm1 = vcmp.lt.s32.totalorder %v10029_v28, 0  ;;  %v10066_v32 = vadd.s32 24, %v10029_v28  ;;  %v2443_v6 = vadd.s32 %v2442_v10, %v2432_v13 }
 0x2c7   : > { %v2460_v56 = vshll.u32 %v10051_v25, 16  ;;  %v2100_v5 = vmax.f32 %v2068_v27, 0.0  ;;  %v1626_v42 = vadd.f32 %v1572_v18, %v9599_v62  ;;  %v1766_v59 = vpop.f32.mrf.mxu3  ;;  %v10071_v4 = vsub.s32 %v9885_v44, %v2417_v45  ;;  %v13444_v62 = vld [vmem:[#allocation45_spill] sm:$0xff]  ;;  %v3544_v45 = vld [vmem:[%s8515_s10 + $0x132] sm:$0xff]  ;;  %vm10099_vm4 = vmand %vm3127_vm1, %vm3095_vm15 }
 0x2c8   : > { %v2459_v22 = vmul.u32 43690, %v2454_v20  ;;  %v1915_v34 = vpop.f32.mrf.mxu0  ;;  %v2444_v17 = vadd.s32 %v2443_v6, %v2434_v47  ;;  %v2461_v49 = vshrl.u32 %v10051_v25, 16  ;;  %v2462_v38 = vshll.u32 %v10058_v14, 16  ;;  %v10086_v20 = vld [vmem:[%s8515_s10 + $0x148] sm:$0xff]  ;;  %v3786_v25 = vld [vmem:[#allocation6 + $0x230] sm:$0xff] }
 0x2c9   : > { %v2482_v13 = vand.u32 65535, %v10054_v43  ;;  %v3285_v11 = vsel %vm10014_vm12, %v2100_v5, 0.0  ;;  %v10079_v40 = vadd.f32 %v1766_v59, %v1626_v42  ;;  %v1999_v10 = vadd.f32 %v1915_v34, %v13444_v62  ;;  %v10082_v27 = vpop.f32.mrf.mxu1  ;;  %v3899_v18 = vld [vmem:[#allocation6 + $0x2b0] sm:$0xff]  ;;  %v4009_v42 = vld [vmem:[#allocation6 + $0x318] sm:$0xff]  ;;  %3805 = vmatpush.msra.mxu2 %v3786_v25 }
 0x2ca   : > { %13445 = vst [vmem:[#allocation26_spill] sm:$0xff] %v10082_v27  ;;  %vm2464_vm2 = vc.u32 %v2456_v50, %v2460_v56  ;;  %v2445_v47 = vshrl.u32 %v2444_v17, 4  ;;  %v2463_v6 = vshrl.u32 %v10058_v14, 16  ;;  %v2466_v26 = vadd.s32 %v2460_v56, %v2456_v50  ;;  %v4126_v59 = vld [vmem:[#allocation6 + $0x3b8] sm:$0xff]  ;;  %3918 = vmatpush.msra.mxu3 %v3899_v18  ;;  %4034 = vmatpush.msrb.mxu0 %v4009_v42  ;;  %v13450_v50 = vld [vmem:[#allocation46_spill] sm:$0xff] }
 0x2cb   : > { %3317 = vst [vmem:[#allocation2 + $0x48] sm:$0xff] %v3285_v11  ;;  %v2465_v44 = vsel %vm2464_vm2, 1, %v13368_v9  ;;  %v2034_v5 = vmul.f32 %v9729_v7, %v1999_v10  ;;  %1962 = vmatmul.f32.gmra.mxu0 %v1853_v36  ;;  %vm3096_vm3 = vcmp.ne.s32.totalorder %v10071_v4, 0  ;;  %v2483_v11 = vshrl.u32 %v10054_v43, 16  ;;  %4143 = vmatpush.msra.mxu1 %v4126_v59  ;;  %v1854_v59 = vld [vmem:[%s8515_s10 + $0xea] sm:$0xff] }
 0x2cc   : > { %3507 = vmatmul.f32.gmra.mxu2 %v9908_v52  ;;  %v2467_v34 = vadd.s32 %v2465_v44, %v2459_v22  ;;  %3717 = vmatmul.f32.gmra.mxu1 %v10086_v20  ;;  %vm3128_vm5 = vcmp.lt.s32.totalorder %v10071_v4, 0  ;;  %v2446_v52 = vmul.u32 24, %v2445_v47  ;;  %vm2468_vm6 = vc.u32 %v2466_v26, %v2462_v38 }
 0x2cd   : > { %3604 = vmatmul.f32.gmra.mxu3 %v3544_v45  ;;  %v10104_v14 = vmul.u32 43690, %v2482_v13  ;;  %v2069_v44 = vadd.f32 %v9748_v58, %v2034_v5  ;;  %v2469_v56 = vsel %vm2468_vm6, 1, %v13368_v9  ;;  %v2485_v22 = vmul.u32 43691, %v2482_v13  ;;  %vm10124_vm7 = vmand %vm3128_vm5, %vm3096_vm3 }
 0x2ce   : > { %v10108_v36 = vmul.u32 43691, %v2483_v11  ;;  %v1575_v17 = vpop.f32.mrf.mxu2  ;;  %v3192_v62 = vadd.s32 24, %v10071_v4  ;;  %v10112_v10 = vsub.s32 %v9935_v24, %v2446_v52  ;;  %v2471_v38 = vadd.s32 %v2469_v56, %v2467_v34  ;;  %v3545_v56 = vld [vmem:[%s8515_s10 + $0x13a] sm:$0xff] }
 0x2cf   : > { %v2489_v45 = vshll.u32 %v10104_v14, 16  ;;  %v2101_v47 = vmax.f32 %v2069_v44, 0.0  ;;  %v1627_v25 = vadd.f32 %v1575_v17, %v9602_v30  ;;  %v1769_v13 = vpop.f32.mrf.mxu3  ;;  %v3223_v18 = vsel %vm10099_vm4, %v10066_v32, %v10029_v28  ;;  %v3898_v24 = vld [vmem:[#allocation6 + $0x2a8] sm:$0xff] }
 0x2d0   : > { %v2488_v5 = vmul.u32 43690, %v2483_v11  ;;  %v1918_v42 = vpop.f32.mrf.mxu0  ;;  %vm3097_vm8 = vcmp.ne.s32.totalorder %v10112_v10, 0  ;;  %vm3129_vm9 = vcmp.lt.s32.totalorder %v10112_v10, 0  ;;  %v2472_v30 = vadd.s32 %v2471_v38, %v2461_v49  ;;  %v10141_v11 = vld [vmem:[%s8515_s10 + $0x150] sm:$0xff]  ;;  %3919 = vmatpush.msra.mxu3 %v3898_v24 }
 0x2d1   : > { %v2491_v34 = vshll.u32 %v10108_v36, 16  ;;  %v3286_v28 = vsel %vm10060_vm0, %v2101_v47, 0.0  ;;  %v10134_v32 = vadd.f32 %v1769_v13, %v1627_v25  ;;  %v2000_v52 = vadd.f32 %v1918_v42, %v13450_v50  ;;  %v10137_v44 = vpop.f32.mrf.mxu1  ;;  %v3785_v38 = vld [vmem:[#allocation6 + $0x228] sm:$0xff]  ;;  %v4125_v42 = vld [vmem:[#allocation6 + $0x3b0] sm:$0xff]  ;;  %vm10164_vm12 = vmand %vm3129_vm9, %vm3097_vm8 }
 0x2d2   : > { %13451 = vst [vmem:[#allocation28_spill] sm:$0xff] %v10137_v44  ;;  %vm2493_vm10 = vc.u32 %v2485_v22, %v2489_v45  ;;  %v3224_v49 = vsel %vm10124_vm7, %v3192_v62, %v10071_v4  ;;  %v2473_v17 = vadd.s32 %v2472_v30, %v2463_v6  ;;  %v2495_v47 = vadd.s32 %v2489_v45, %v2485_v22 }
 0x2d3   : > { %3318 = vst [vmem:[#allocation2 + $0x50] sm:$0xff] %v3286_v28  ;;  %v2494_v3 = vsel %vm2493_vm10, 1, %v13368_v9  ;;  %v2035_v25 = vmul.f32 %v9729_v7, %v2000_v52  ;;  %1965 = vmatmul.f32.gmra.mxu0 %v1854_v59  ;;  %v10150_v13 = vadd.s32 24, %v10112_v10  ;;  %v10153_v50 = vadd.s32 96, %v9436_v33  ;;  %3806 = vmatpush.msra.mxu2 %v3785_v38 }
 0x2d4   : > { %3510 = vmatmul.f32.gmra.mxu2 %v9977_v15  ;;  %v2496_v28 = vadd.s32 %v2494_v3, %v2488_v5  ;;  %vm10155_vm11 = vcmp.lt.s32.totalorder %v3223_v18, 16  ;;  %3720 = vmatmul.f32.gmra.mxu1 %v10141_v11  ;;  %v2474_v6 = vshrl.u32 %v2473_v17, 4  ;;  %v2490_v22 = vshrl.u32 %v10104_v14, 16  ;;  %v4123_v15 = vld [vmem:[#allocation6 + $0x3a0] sm:$0xff] }
 0x2d5   : > { %13452 = vst [vmem:[#allocation15_spill] sm:$0xff] %v10153_v50  ;;  %3607 = vmatmul.f32.gmra.mxu3 %v3545_v56  ;;  %vm2497_vm13 = vc.u32 %v2495_v47, %v2491_v34  ;;  %v2070_v62 = vadd.f32 %v9748_v58, %v2035_v25  ;;  %v2511_v18 = vand.u32 65535, %v10153_v50  ;;  %v2512_v26 = vshrl.u32 %v10153_v50, 16  ;;  %4144 = vmatpush.msra.mxu1 %v4125_v42  ;;  %v1855_v47 = vld [vmem:[%s8515_s10 + $0xf2] sm:$0xff] }
 0x2d6   : > { %v2498_v45 = vsel %vm2497_vm13, 1, %v13368_v9  ;;  %v1578_v5 = vpop.f32.mrf.mxu2  ;;  %vm10173_vm14 = vcmp.lt.s32.totalorder %v3224_v49, 16  ;;  %v2475_v30 = vmul.u32 24, %v2474_v6  ;;  %v2492_v14 = vshrl.u32 %v10108_v36, 16  ;;  %v3546_v49 = vld [vmem:[%s8515_s10 + $0x142] sm:$0xff] }
 0x2d7   : > { %v2500_v34 = vadd.s32 %v2498_v45, %v2496_v28  ;;  %v10179_v52 = vadd.s32 104, %v9436_v33  ;;  %v2102_v24 = vmax.f32 %v2070_v62, 0.0  ;;  %v1628_v56 = vadd.f32 %v1578_v5, %v9610_v16  ;;  %v1772_v17 = vpop.f32.mrf.mxu3  ;;  %v13461_v62 = vld [vmem:[#allocation47_spill] sm:$0xff] }
 0x2d8   : > { %v10186_v38 = vmul.u32 43690, %v2511_v18  ;;  %v1921_v3 = vpop.f32.mrf.mxu0  ;;  %v10190_v36 = vsub.s32 %v10020_v54, %v2475_v30  ;;  %v2514_v42 = vmul.u32 43691, %v2511_v18  ;;  %v10192_v28 = vmul.u32 43691, %v2512_v26  ;;  %v3897_v18 = vld [vmem:[#allocation6 + $0x2a0] sm:$0xff] }
 0x2d9   : > { %13459 = vst [vmem:[#allocation17_spill] sm:$0xff] %v10179_v52  ;;  %v2501_v25 = vadd.s32 %v2500_v34, %v2490_v22  ;;  %v3287_v16 = vsel %vm10155_vm11, %v2102_v24, 0.0  ;;  %v10196_v6 = vadd.f32 %v1772_v17, %v1628_v56  ;;  %v2001_v45 = vadd.f32 %v1921_v3, %v13461_v62  ;;  %v10199_v5 = vpop.f32.mrf.mxu1  ;;  %v3784_v22 = vld [vmem:[#allocation6 + $0x220] sm:$0xff]  ;;  %v4008_v56 = vld [vmem:[#allocation6 + $0x310] sm:$0xff]  ;;  %v4124_v17 = vld [vmem:[#allocation6 + $0x3a8] sm:$0xff]  ;;  %3920 = vmatpush.msra.mxu3 %v3897_v18 }
 0x2da   : > { %13462 = vst [vmem:[#allocation21_spill] sm:$0xff] %v10199_v5  ;;  %v2518_v53 = vshll.u32 %v10186_v38, 16  ;;  %v2517_v34 = vmul.u32 43690, %v2512_v26  ;;  %v2540_v54 = vand.u32 65535, %v10179_v52  ;;  %v2541_v4 = vshrl.u32 %v10179_v52, 16  ;;  %3807 = vmatpush.msra.mxu2 %v3784_v22  ;;  %4035 = vmatpush.msrb.mxu0 %v4008_v56 }
 0x2db   : > { %13460 = vst [vmem:[#allocation19_spill] sm:$0xff] %v10196_v6  ;;  %v2502_v30 = vadd.s32 %v2501_v25, %v2492_v14  ;;  %v2036_v24 = vmul.f32 %v9729_v7, %v2001_v45  ;;  %1968 = vmatmul.f32.gmra.mxu0 %v1855_v47  ;;  %vm3098_vm15 = vcmp.ne.s32.totalorder %v10190_v36, 0  ;;  %vm3130_vm0 = vcmp.lt.s32.totalorder %v10190_v36, 0  ;;  %4145 = vmatpush.msra.mxu1 %v4124_v17  ;;  %v10249_v6 = vld [vmem:[%s8515_s10 + $0x160] sm:$0xff] }
 0x2dc   : > { %3319 = vst [vmem:[#allocation2 + $0x58] sm:$0xff] %v3287_v16  ;;  %3513 = vmatmul.f32.gmra.mxu2 %v10041_v48  ;;  %v2520_v14 = vshll.u32 %v10192_v28, 16  ;;  %3723 = vmatmul.f32.gmra.mxu1 %v10203_v31  ;;  %v10215_v26 = vadd.s32 24, %v10190_v36  ;;  %vm2522_vm1 = vc.u32 %v2514_v42, %v2518_v53  ;;  %v2524_v25 = vadd.s32 %v2518_v53, %v2514_v42  ;;  %vm10227_vm3 = vmand %vm3130_vm0, %vm3098_vm15 }
 0x2dd   : > { %3610 = vmatmul.f32.gmra.mxu3 %v3546_v49  ;;  %v2503_v3 = vshrl.u32 %v2502_v30, 4  ;;  %v2071_v47 = vadd.f32 %v9748_v58, %v2036_v24  ;;  %v2519_v48 = vshrl.u32 %v10186_v38, 16  ;;  %v2523_v16 = vsel %vm2522_vm1, 1, %v13368_v9  ;;  %4146 = vmatpush.msra.mxu1 %v4123_v15  ;;  %v10307_v15 = vld [vmem:[%s8515_s10 + $0x168] sm:$0xff] }
 0x2de   : > { %v2543_v62 = vmul.u32 43691, %v2540_v54  ;;  %v1581_v45 = vpop.f32.mrf.mxu2  ;;  %v2525_v5 = vadd.s32 %v2523_v16, %v2517_v34  ;;  %vm2526_vm2 = vc.u32 %v2524_v25, %v2520_v14  ;;  %v10220_v44 = vmul.u32 43690, %v2540_v54  ;;  %v1856_v34 = vld [vmem:[%s8515_s10 + $0xfa] sm:$0xff]  ;;  %v13465_v25 = vld [vmem:[#allocation50_spill] sm:$0xff] }
 0x2df   : > { %v2504_v49 = vmul.u32 24, %v2503_v3  ;;  %v2103_v30 = vmax.f32 %v2071_v47, 0.0  ;;  %v1629_v53 = vadd.f32 %v1581_v45, %v9613_v57  ;;  %v1775_v42 = vpop.f32.mrf.mxu3  ;;  %v2527_v22 = vsel %vm2526_vm2, 1, %v13368_v9  ;;  %v3547_v45 = vld [vmem:[%s8515_s10 + $0x14a] sm:$0xff] }
 0x2e0   : > { %v10232_v18 = vmul.u32 43691, %v2541_v4  ;;  %v1924_v54 = vpop.f32.mrf.mxu0  ;;  %v2521_v57 = vshrl.u32 %v10192_v28, 16  ;;  %v2529_v56 = vadd.s32 %v2527_v22, %v2525_v5  ;;  %v2547_v17 = vshll.u32 %v10220_v44, 16 }
 0x2e1   : > { %v10236_v24 = vsub.s32 %v10054_v43, %v2504_v49  ;;  %v3288_v14 = vsel %vm10173_vm14, %v2103_v30, 0.0  ;;  %v10242_v3 = vadd.f32 %v1775_v42, %v1629_v53  ;;  %v2002_v47 = vadd.f32 %v1924_v54, %v13465_v25  ;;  %v10245_v16 = vpop.f32.mrf.mxu1  ;;  %v13466_v49 = vld [vmem:[#allocation30_spill] sm:$0xff]  ;;  %v3783_v30 = vld [vmem:[#allocation6 + $0x218] sm:$0xff] }
 0x2e2   : > { %v2546_v27 = vmul.u32 43690, %v2541_v4  ;;  %v10253_v43 = vadd.f32 %v9667_v1, %v13466_v49  ;;  %3320 = vst [vmem:[#allocation2 + $0x60] sm:$0xff] %v3288_v14  ;;  %v13467_v59 = vsel %vm10164_vm12, %v10150_v13, %v10112_v10  ;;  %v3226_v5 = vsel %vm10227_vm3, %v10215_v26, %v10190_v36  ;;  %v3896_v53 = vld [vmem:[#allocation6 + $0x298] sm:$0xff]  ;;  %3808 = vmatpush.msra.mxu2 %v3783_v30 }
 0x2e3   : > { %vm10260_vm4 = vcmp.lt.s32.totalorder %v13467_v59, 16  ;;  %v2530_v4 = vadd.s32 %v2529_v56, %v2519_v48  ;;  %v2037_v1 = vmul.f32 %v9729_v7, %v2002_v47  ;;  %1971 = vmatmul.f32.gmra.mxu0 %v1856_v34  ;;  %v2548_v10 = vshrl.u32 %v10220_v44, 16  ;;  %3921 = vmatpush.msra.mxu3 %v3896_v53 }
 0x2e4   : > { %3516 = vmatmul.f32.gmra.mxu2 %v10086_v20  ;;  %v2549_v13 = vshll.u32 %v10232_v18, 16  ;;  %vm2551_vm5 = vc.u32 %v2543_v62, %v2547_v17  ;;  %3726 = vmatmul.f32.gmra.mxu1 %v10249_v6  ;;  %vm3099_vm6 = vcmp.ne.s32.totalorder %v10236_v24, 0  ;;  %v2553_v48 = vadd.s32 %v2547_v17, %v2543_v62  ;;  %v1857_v17 = vld [vmem:[%s8515_s10 + $0x102] sm:$0xff] }
 0x2e5   : > { %3613 = vmatmul.f32.gmra.mxu3 %v3547_v45  ;;  %v2531_v36 = vadd.s32 %v2530_v4, %v2521_v57  ;;  %v2552_v26 = vsel %vm2551_vm5, 1, %v13368_v9  ;;  %v2072_v7 = vadd.f32 %v9748_v58, %v2037_v1  ;;  %vm3131_vm7 = vcmp.lt.s32.totalorder %v10236_v24, 0  ;;  %v13474_v4 = vld [vmem:[#allocation53_spill] sm:$0xff]  ;;  %v3548_v1 = vld [vmem:[%s8515_s10 + $0x152] sm:$0xff] }
 0x2e6   : > { %v2554_v20 = vadd.s32 %v2552_v26, %v2546_v27  ;;  %v10278_v44 = vadd.s32 112, %v9436_v33  ;;  %v1584_v42 = vpop.f32.mrf.mxu2  ;;  %v3195_v38 = vadd.s32 24, %v10236_v24  ;;  %vm2555_vm8 = vc.u32 %v2553_v48, %v2549_v13  ;;  %vm10292_vm9 = vmand %vm3131_vm7, %vm3099_vm6  ;;  %v3782_v26 = vld [vmem:[#allocation6 + $0x210] sm:$0xff] }
 0x2e7   : > { %v2532_v22 = vshrl.u32 %v2531_v36, 4  ;;  %v10282_v54 = vadd.s32 120, %v9436_v33  ;;  %v2104_v62 = vmax.f32 %v2072_v7, 0.0  ;;  %v1630_v58 = vadd.f32 %v1584_v42, %v9659_v55  ;;  %v1778_v34 = vpop.f32.mrf.mxu3  ;;  %v3895_v48 = vld [vmem:[#allocation6 + $0x290] sm:$0xff]  ;;  %3809 = vmatpush.msra.mxu2 %v3782_v26  ;;  %v1858_v26 = vld [vmem:[%s8515_s10 + $0x10a] sm:$0xff] }
 0x2e8   : > { %13470 = vst [vmem:[#allocation23_spill] sm:$0xff] %v10278_v44  ;;  %v2556_v27 = vsel %vm2555_vm8, 1, %v13368_v9  ;;  %v2569_v57 = vand.u32 65535, %v10278_v44  ;;  %v1927_v56 = vpop.f32.mrf.mxu0  ;;  %v2550_v47 = vshrl.u32 %v10232_v18, 16  ;;  %v2570_v45 = vshrl.u32 %v10278_v44, 16  ;;  %3922 = vmatpush.msra.mxu3 %v3895_v48 }
 0x2e9   : > { %13471 = vst [vmem:[#allocation39_spill] sm:$0xff] %v10282_v54  ;;  %v2533_v25 = vmul.u32 24, %v2532_v22  ;;  %v2558_v55 = vadd.s32 %v2556_v27, %v2554_v20  ;;  %v3289_v49 = vsel %vm10260_vm4, %v2104_v62, 0.0  ;;  %v10300_v59 = vadd.f32 %v1778_v34, %v1630_v58  ;;  %v10303_v53 = vpop.f32.mrf.mxu1  ;;  %v10320_v20 = vld [vmem:[%s13219_s2] ss:$0 sm:$0xff]  ;;  %v4007_v62 = vld [vmem:[#allocation6 + $0x308] sm:$0xff] }
 0x2ea   : > { %v2003_v30 = vadd.f32 %v1927_v56, %v13474_v4  ;;  %13475 = vst [vmem:[#allocation49_spill] sm:$0xff] %v10303_v53  ;;  %v2598_v13 = vand.u32 65535, %v10282_v54  ;;  %v10313_v28 = vmul.u32 43690, %v2569_v57  ;;  %v10315_v7 = vmul.u32 43691, %v2570_v45  ;;  %v4122_v58 = vld [vmem:[#allocation6 + $0x398] sm:$0xff]  ;;  %4036 = vmatpush.msrb.mxu0 %v4007_v62  ;;  %v3894_v22 = vld [vmem:[#allocation6 + $0x288] sm:$0xff] }
 0x2eb   : > { %3321 = vst [vmem:[#allocation2 + $0x68] sm:$0xff] %v3289_v49  ;;  %v10311_v18 = vsub.s32 %v10153_v50, %v2533_v25  ;;  %v2559_v36 = vadd.s32 %v2558_v55, %v2548_v10  ;;  %vm10323_vm10 = vcmp.lt.s32.totalorder %v3226_v5, 16  ;;  %1974 = vmatmul.f32.gmra.mxu0 %v1857_v17  ;;  %v3227_v10 = vsel %vm10292_vm9, %v3195_v38, %v10236_v24  ;;  %v10377_v50 = vld [vmem:[%s8515_s10 + $0x170] sm:$0xff]  ;;  %v10459_v17 = vld [vmem:[%s8515_s10 + $0x11a] sm:$0xff] }
 0x2ec   : > { %v2038_v42 = vmul.f32 %v10320_v20, %v2003_v30  ;;  %3519 = vmatmul.f32.gmra.mxu2 %v10141_v11  ;;  %v2572_v34 = vmul.u32 43691, %v2569_v57  ;;  %3729 = vmatmul.f32.gmra.mxu1 %v10307_v15  ;;  %v2575_v56 = vmul.u32 43690, %v2570_v45  ;;  %v2599_v5 = vshrl.u32 %v10282_v54, 16  ;;  %v10339_v11 = vld [vmem:[%s13220_s3] ss:$0 sm:$0xff] }
 0x2ed   : > { %3616 = vmatmul.f32.gmra.mxu3 %v3548_v1  ;;  %v2560_v27 = vadd.s32 %v2559_v36, %v2550_v47  ;;  %v10334_v25 = vadd.s32 128, %v9436_v33  ;;  %vm3100_vm11 = vcmp.ne.s32.totalorder %v10311_v18, 0  ;;  %vm3132_vm12 = vcmp.lt.s32.totalorder %v10311_v18, 0  ;;  %4147 = vmatpush.msra.mxu1 %v4122_v58 }
 0x2ee   : > { %v2073_v24 = vadd.f32 %v10339_v11, %v2038_v42  ;;  %v2576_v38 = vshll.u32 %v10313_v28, 16  ;;  %v1587_v57 = vpop.f32.mrf.mxu2  ;;  %vm10345_vm13 = vcmp.lt.s32.totalorder %v3227_v10, 16  ;;  %v2578_v47 = vshll.u32 %v10315_v7, 16  ;;  %vm10361_vm15 = vmand %vm3132_vm12, %vm3100_vm11  ;;  %3923 = vmatpush.msra.mxu3 %v3894_v22 }
 0x2ef   : > { %v2561_v14 = vshrl.u32 %v2560_v27, 4  ;;  %v2601_v55 = vmul.u32 43691, %v2598_v13  ;;  %v10350_v45 = vmul.u32 43690, %v2598_v13  ;;  %v1631_v4 = vadd.f32 %v1587_v57, %v9662_v35  ;;  %v1781_v30 = vpop.f32.mrf.mxu3  ;;  %v3549_v57 = vld [vmem:[%s8515_s10 + $0x15a] sm:$0xff] }
 0x2f0   : > { %v2105_v49 = vmax.f32 %v2073_v24, 0.0  ;;  %v10354_v1 = vadd.s32 24, %v10311_v18  ;;  %vm2580_vm14 = vc.u32 %v2572_v34, %v2576_v38  ;;  %v1930_v36 = vpop.f32.mrf.mxu0  ;;  %v2582_v35 = vadd.s32 %v2576_v38, %v2572_v34  ;;  %v3781_v38 = vld [vmem:[#allocation6 + $0x208] sm:$0xff] }
 0x2f1   : > { %v2562_v13 = vmul.u32 24, %v2561_v14  ;;  %v2581_v42 = vsel %vm2580_vm14, 1, %v13368_v9  ;;  %v10366_v10 = vmul.u32 43691, %v2599_v5  ;;  %v10370_v58 = vadd.f32 %v1781_v30, %v1631_v4  ;;  %v10373_v24 = vpop.f32.mrf.mxu1  ;;  %v4121_v30 = vld [vmem:[#allocation6 + $0x390] sm:$0xff]  ;;  %3810 = vmatpush.msra.mxu2 %v3781_v38  ;;  %v4120_v38 = vld [vmem:[#allocation6 + $0x388] sm:$0xff] }
 0x2f2   : > { %v3290_v62 = vsel %vm10323_vm10, %v2105_v49, 0.0  ;;  %v2004_v27 = vadd.f32 %v1930_v36, %v9523_v61  ;;  %v2583_v53 = vadd.s32 %v2581_v42, %v2575_v56  ;;  %v2577_v34 = vshrl.u32 %v10313_v28, 16  ;;  %4148 = vmatpush.msra.mxu1 %v4121_v30  ;;  %v3550_v30 = vld [vmem:[%s8515_s10 + $0x162] sm:$0xff] }
 0x2f3   : > { %3322 = vst [vmem:[#allocation2 + $0x70] sm:$0xff] %v3290_v62  ;;  %v10380_v14 = vsub.s32 %v10179_v52, %v2562_v13  ;;  %vm2584_vm0 = vc.u32 %v2582_v35, %v2578_v47  ;;  %v2605_v49 = vshll.u32 %v10350_v45, 16  ;;  %1977 = vmatmul.f32.gmra.mxu0 %v1858_v26  ;;  %v3228_v61 = vsel %vm10361_vm15, %v10354_v1, %v10311_v18 }
 0x2f4   : > { %v2039_v4 = vmul.f32 %v10320_v20, %v2004_v27  ;;  %3522 = vmatmul.f32.gmra.mxu2 %v10203_v31  ;;  %v2585_v56 = vsel %vm2584_vm0, 1, %v13368_v9  ;;  %v2604_v36 = vmul.u32 43690, %v2599_v5  ;;  %3732 = vmatmul.f32.gmra.mxu1 %v10377_v50  ;;  %v2579_v28 = vshrl.u32 %v10315_v7, 16  ;;  %v1859_v27 = vld [vmem:[%s8515_s10 + $0x112] sm:$0xff] }
 0x2f5   : > { %3619 = vmatmul.f32.gmra.mxu3 %v3549_v57  ;;  %v2587_v47 = vadd.s32 %v2585_v56, %v2583_v53  ;;  %v2606_v13 = vshrl.u32 %v10350_v45, 16  ;;  %v2607_v26 = vshll.u32 %v10366_v10, 16  ;;  %vm3101_vm1 = vcmp.ne.s32.totalorder %v10380_v14, 0  ;;  %4149 = vmatpush.msra.mxu1 %v4120_v38 }
 0x2f6   : > { %v2074_v31 = vadd.f32 %v10339_v11, %v2039_v4  ;;  %vm2609_vm2 = vc.u32 %v2601_v55, %v2605_v49  ;;  %v2611_v18 = vadd.s32 %v2605_v49, %v2601_v55  ;;  %v1590_v5 = vpop.f32.mrf.mxu2  ;;  %vm3133_vm3 = vcmp.lt.s32.totalorder %v10380_v14, 0 }
 0x2f7   : > { %v2588_v1 = vadd.s32 %v2587_v47, %v2577_v34  ;;  %v2610_v53 = vsel %vm2609_vm2, 1, %v13368_v9  ;;  %v2627_v7 = vand.u32 65535, %v10334_v25  ;;  %v1632_v48 = vadd.f32 %v1590_v5, %v9665_v23  ;;  %v1784_v42 = vpop.f32.mrf.mxu3  ;;  %vm10423_vm5 = vmand %vm3133_vm3, %vm3101_vm1 }
 0x2f8   : > { %v2106_v45 = vmax.f32 %v2074_v31, 0.0  ;;  %v10402_v35 = vadd.s32 24, %v10380_v14  ;;  %v2612_v62 = vadd.s32 %v2610_v53, %v2604_v36  ;;  %v1933_v55 = vpop.f32.mrf.mxu0  ;;  %v2608_v34 = vshrl.u32 %v10366_v10, 16  ;;  %v10416_v36 = vld [vmem:[%s8515_s10 + $0x178] sm:$0xff]  ;;  %v4006_v53 = vld [vmem:[#allocation6 + $0x300] sm:$0xff] }
 0x2f9   : > { %v2589_v57 = vadd.s32 %v2588_v1, %v2579_v28  ;;  %vm2613_vm4 = vc.u32 %v2611_v18, %v2607_v26  ;;  %v2628_v22 = vshrl.u32 %v10334_v25, 16  ;;  %v10409_v4 = vadd.f32 %v1784_v42, %v1632_v48  ;;  %v10412_v56 = vpop.f32.mrf.mxu1  ;;  %v3893_v26 = vld [vmem:[#allocation6 + $0x280] sm:$0xff]  ;;  %4037 = vmatpush.msrb.mxu0 %v4006_v53 }
 0x2fa   : > { %v3291_v49 = vsel %vm10345_vm13, %v2106_v45, 0.0  ;;  %v2005_v23 = vadd.f32 %v1933_v55, %v9577_v8  ;;  %v2614_v28 = vsel %vm2613_vm4, 1, %v13368_v9  ;;  %v3780_v8 = vld [vmem:[#allocation6 + $0x200] sm:$0xff]  ;;  %v2630_v31 = vmul.u32 43691, %v2627_v7  ;;  %3924 = vmatpush.msra.mxu3 %v3893_v26 }
 0x2fb   : > { %3323 = vst [vmem:[#allocation2 + $0x78] sm:$0xff] %v3291_v49  ;;  %v2590_v10 = vshrl.u32 %v2589_v57, 4  ;;  %v2616_v47 = vadd.s32 %v2614_v28, %v2612_v62  ;;  %v10427_v18 = vmul.u32 43690, %v2627_v7  ;;  %v10431_v5 = vadd.f32 %v9683_v51, %v10253_v43  ;;  %1980 = vmatmul.f32.gmra.mxu0 %v1859_v27  ;;  %v4119_v62 = vld [vmem:[#allocation6 + $0x380] sm:$0xff]  ;;  %3811 = vmatpush.msra.mxu2 %v3780_v8 }
 0x2fc   : > { %v2040_v1 = vmul.f32 %v10320_v20, %v2005_v23  ;;  %3525 = vmatmul.f32.gmra.mxu2 %v10249_v6  ;;  %v10435_v45 = vmul.u32 43691, %v2628_v22  ;;  %v10438_v48 = vadd.s32 136, %v9436_v33  ;;  %vm10440_vm6 = vcmp.lt.s32.totalorder %v3228_v61, 16  ;;  %3735 = vmatmul.f32.gmra.mxu1 %v10416_v36  ;;  %v3551_v53 = vld [vmem:[%s8515_s10 + $0x16a] sm:$0xff] }
 0x2fd   : > { %3622 = vmatmul.f32.gmra.mxu3 %v3550_v30  ;;  %v2591_v51 = vmul.u32 24, %v2590_v10  ;;  %v2617_v43 = vadd.s32 %v2616_v47, %v2606_v13  ;;  %v2634_v7 = vshll.u32 %v10427_v18, 16  ;;  %v3229_v55 = vsel %vm10423_vm5, %v10402_v35, %v10380_v14  ;;  %4150 = vmatpush.msra.mxu1 %v4119_v62 }
 0x2fe   : > { %v2075_v6 = vadd.f32 %v10339_v11, %v2040_v1  ;;  %v2633_v61 = vmul.u32 43690, %v2628_v22  ;;  %v2636_v27 = vshll.u32 %v10435_v45, 16  ;;  %v1593_v57 = vpop.f32.mrf.mxu2  ;;  %v2656_v22 = vand.u32 65535, %v10438_v48 }
 0x2ff   : > { %v10453_v38 = vsub.s32 %v10278_v44, %v2591_v51  ;;  %v2618_v13 = vadd.s32 %v2617_v43, %v2608_v34  ;;  %vm2638_vm7 = vc.u32 %v2630_v31, %v2634_v7  ;;  %v2640_v49 = vadd.s32 %v2634_v7, %v2630_v31  ;;  %v1787_v14 = vpop.f32.mrf.mxu3  ;;  %v3664_v51 = vld [vmem:[%s8515_s10 + $0x180] sm:$0xff] }
 0x300   : > { %v2107_v23 = vmax.f32 %v2075_v6, 0.0  ;;  %v1633_v30 = vadd.f32 %v1593_v57, %v9802_v29  ;;  %v2639_v35 = vsel %vm2638_vm7, 1, %v13368_v9  ;;  %v1936_v28 = vpop.f32.mrf.mxu0  ;;  %v2635_v34 = vshrl.u32 %v10427_v18, 16  ;;  %v5081_v7 = vld [vmem:[#allocation8 + $0xf8] sm:$0xff] }
 0x301   : > { %v2619_v10 = vshrl.u32 %v2618_v13, 4  ;;  %v2637_v47 = vshrl.u32 %v10435_v45, 16  ;;  %v2657_v8 = vshrl.u32 %v10438_v48, 16  ;;  %v2006_v31 = vadd.f32 %v1936_v28, %v9625_v63  ;;  %v10469_v1 = vpop.f32.mrf.mxu1  ;;  %v4247_v45 = vld [vmem:[#allocation6 + $0x478] sm:$0xff]  ;;  %5082 = vmatpush.msrb.mxu3 %v5081_v7 }
 0x302   : > { %v3292_v29 = vsel %vm10440_vm6, %v2107_v23, 0.0  ;;  %v10466_v26 = vadd.f32 %v1787_v14, %v1633_v30  ;;  %v2641_v43 = vadd.s32 %v2639_v35, %v2633_v61  ;;  %vm3102_vm8 = vcmp.ne.s32.totalorder %v10453_v38, 0  ;;  %4248 = vmatpush.msrb.mxu2 %v4247_v45  ;;  %v5080_v23 = vld [vmem:[#allocation8 + $0xf0] sm:$0xff] }
 0x303   : > { %3324 = vst [vmem:[#allocation2 + $0x80] sm:$0xff] %v3292_v29  ;;  %vm3134_vm9 = vcmp.lt.s32.totalorder %v10453_v38, 0  ;;  %v2620_v18 = vmul.u32 24, %v2619_v10  ;;  %vm2642_vm10 = vc.u32 %v2640_v49, %v2636_v27  ;;  %v2041_v42 = vmul.f32 %v10320_v20, %v2006_v31  ;;  %1983 = vmatmul.f32.gmra.mxu0 %v10459_v17  ;;  %5083 = vmatpush.msrb.mxu3 %v5080_v23 }
 0x304   : > { %3528 = vmatmul.f32.gmra.mxu2 %v10307_v15  ;;  %v3198_v63 = vadd.s32 24, %v10453_v38  ;;  %v2643_v62 = vsel %vm2642_vm10, 1, %v13368_v9  ;;  %v10480_v6 = vmul.u32 43690, %v2656_v22  ;;  %3738 = vmatmul.f32.gmra.mxu1 %v3664_v51  ;;  %v2659_v57 = vmul.u32 43691, %v2656_v22  ;;  %vm10496_vm12 = vmand %vm3134_vm9, %vm3102_vm8 }
 0x305   : > { %3625 = vmatmul.f32.gmra.mxu3 %v3551_v53  ;;  %v10483_v61 = vsub.s32 %v10282_v54, %v2620_v18  ;;  %v2645_v27 = vadd.s32 %v2643_v62, %v2641_v43  ;;  %v10485_v13 = vmul.u32 43691, %v2657_v8  ;;  %v2076_v49 = vadd.f32 %v10339_v11, %v2041_v42  ;;  %v10517_v43 = vld [vmem:[%s8515_s10 + $0x122] sm:$0xff] }
 0x306   : > { %vm10488_vm11 = vcmp.lt.s32.totalorder %v3229_v55, 16  ;;  %v2662_v30 = vmul.u32 43690, %v2657_v8  ;;  %v2663_v14 = vshll.u32 %v10480_v6, 16  ;;  %v1596_v35 = vpop.f32.mrf.mxu2  ;;  %v10511_v53 = vadd.s32 144, %v9436_v33 }
 0x307   : > { %vm3103_vm13 = vcmp.ne.s32.totalorder %v10483_v61, 0  ;;  %vm3135_vm14 = vcmp.lt.s32.totalorder %v10483_v61, 0  ;;  %v3199_v55 = vadd.s32 24, %v10483_v61  ;;  %v2646_v22 = vadd.s32 %v2645_v27, %v2635_v34  ;;  %v1790_v29 = vpop.f32.mrf.mxu3  ;;  %v3552_v27 = vld [vmem:[%s8515_s10 + $0x172] sm:$0xff] }
 0x308   : > { %v2108_v28 = vmax.f32 %v2076_v49, 0.0  ;;  %v1634_v10 = vadd.f32 %v1596_v35, %v9992_v41  ;;  %vm10505_vm15 = vmand %vm3135_vm14, %vm3103_vm13  ;;  %v2665_v8 = vshll.u32 %v10485_v13, 16  ;;  %v1939_v51 = vpop.f32.mrf.mxu0  ;;  %v3230_v34 = vsel %vm10496_vm12, %v3198_v63, %v10453_v38  ;;  %v3665_v49 = vld [vmem:[%s8515_s10 + $0x188] sm:$0xff] }
 0x309   : > { %v2647_v18 = vadd.s32 %v2646_v22, %v2637_v47  ;;  %vm2667_vm0 = vc.u32 %v2659_v57, %v2663_v14  ;;  %v2669_v41 = vadd.s32 %v2663_v14, %v2659_v57  ;;  %v2007_v42 = vadd.f32 %v1939_v51, %v9681_v60  ;;  %v10524_v62 = vpop.f32.mrf.mxu1  ;;  %v4246_v57 = vld [vmem:[#allocation6 + $0x470] sm:$0xff]  ;;  %v5032_v14 = vld [vmem:[#allocation8 + $0x78] sm:$0xff] }
 0x30a   : > { %v3293_v45 = vsel %vm10488_vm11, %v2108_v28, 0.0  ;;  %v10521_v7 = vadd.f32 %v1790_v29, %v1634_v10  ;;  %v2664_v35 = vshrl.u32 %v10480_v6, 16  ;;  %v3231_v38 = vsel %vm10505_vm15, %v3199_v55, %v10483_v61  ;;  %v5356_v22 = vld [vmem:[#allocation8 + $0x178] sm:$0xff]  ;;  %4249 = vmatpush.msrb.mxu2 %v4246_v57  ;;  %5195 = vmatpush.msra.mxu0 %v5032_v14  ;;  %v4245_v61 = vld [vmem:[#allocation6 + $0x468] sm:$0xff] }
 0x30b   : > { %3325 = vst [vmem:[#allocation2 + $0x88] sm:$0xff] %v3293_v45  ;;  %v2648_v47 = vshrl.u32 %v2647_v18, 4  ;;  %v2668_v63 = vsel %vm2667_vm0, 1, %v13368_v9  ;;  %vm2671_vm1 = vc.u32 %v2669_v41, %v2665_v8  ;;  %v2042_v15 = vmul.f32 %v10320_v20, %v2007_v42  ;;  %1986 = vmatmul.f32.gmra.mxu0 %v10517_v43  ;;  %5357 = vmatpush.msrb.mxu1 %v5356_v22  ;;  %v10560_v57 = vld [vmem:[%s8515_s10 + $0x12a] sm:$0xff] }
 0x30c   : > { %3531 = vmatmul.f32.gmra.mxu2 %v10377_v50  ;;  %v2670_v60 = vadd.s32 %v2668_v63, %v2662_v30  ;;  %v2672_v6 = vsel %vm2671_vm1, 1, %v13368_v9  ;;  %v2685_v28 = vand.u32 65535, %v10511_v53  ;;  %vm10538_vm2 = vcmp.lt.s32.totalorder %v3230_v34, 16  ;;  %3741 = vmatmul.f32.gmra.mxu1 %v3665_v49  ;;  %v3666_v22 = vld [vmem:[%s8515_s10 + $0x190] sm:$0xff] }
 0x30d   : > { %3628 = vmatmul.f32.gmra.mxu3 %v3552_v27  ;;  %v2649_v55 = vmul.u32 24, %v2648_v47  ;;  %v2686_v10 = vshrl.u32 %v10511_v53, 16  ;;  %v10544_v29 = vadd.s32 152, %v9436_v33  ;;  %v2077_v50 = vadd.f32 %v10339_v11, %v2042_v15  ;;  %4250 = vmatpush.msrb.mxu2 %v4245_v61 }
 0x30e   : > { %v2666_v30 = vshrl.u32 %v10485_v13, 16  ;;  %v2674_v31 = vadd.s32 %v2672_v6, %v2670_v60  ;;  %v10548_v8 = vmul.u32 43690, %v2685_v28  ;;  %v1599_v51 = vpop.f32.mrf.mxu2  ;;  %vm10550_vm3 = vcmp.lt.s32.totalorder %v3231_v38, 16  ;;  %v13496_v6 = vld [vmem:[#allocation34_spill] sm:$0xff] }
 0x30f   : > { %v2650_v18 = vsub.s32 %v10334_v25, %v2649_v55  ;;  %v2688_v41 = vmul.u32 43691, %v2685_v28  ;;  %v10555_v45 = vmul.u32 43691, %v2686_v10  ;;  %v2691_v42 = vmul.u32 43690, %v2686_v10  ;;  %v1793_v49 = vpop.f32.mrf.mxu3 }
 0x310   : > { %v2109_v13 = vmax.f32 %v2077_v50, 0.0  ;;  %v1635_v27 = vadd.f32 %v1599_v51, %v10006_v12  ;;  %v2675_v47 = vadd.s32 %v2674_v31, %v2664_v35  ;;  %v2692_v38 = vshll.u32 %v10548_v8, 16  ;;  %v1942_v63 = vpop.f32.mrf.mxu0  ;;  %v3553_v35 = vld [vmem:[%s8515_s10 + $0x17a] sm:$0xff] }
 0x311   : > { %vm3104_vm4 = vcmp.ne.s32.totalorder %v2650_v18, 0  ;;  %vm3136_vm5 = vcmp.lt.s32.totalorder %v2650_v18, 0  ;;  %v3200_v25 = vadd.s32 24, %v2650_v18  ;;  %v2714_v23 = vand.u32 65535, %v10544_v29  ;;  %v10568_v12 = vpop.f32.mrf.mxu1  ;;  %v5079_v31 = vld [vmem:[#allocation8 + $0xe8] sm:$0xff] }
 0x312   : > { %v3294_v15 = vsel %vm10538_vm2, %v2109_v13, 0.0  ;;  %v10565_v60 = vadd.f32 %v1793_v49, %v1635_v27  ;;  %v2008_v14 = vadd.f32 %v1942_v63, %v13496_v6  ;;  %vm10572_vm6 = vmand %vm3136_vm5, %vm3104_vm4  ;;  %v2676_v55 = vadd.s32 %v2675_v47, %v2666_v30  ;;  %v5031_v49 = vld [vmem:[#allocation8 + $0x70] sm:$0xff]  ;;  %5084 = vmatpush.msrb.mxu3 %v5079_v31 }
 0x313   : > { %3326 = vst [vmem:[#allocation2 + $0x90] sm:$0xff] %v3294_v15  ;;  %v2693_v10 = vshrl.u32 %v10548_v8, 16  ;;  %v2694_v50 = vshll.u32 %v10555_v45, 16  ;;  %vm2696_vm7 = vc.u32 %v2688_v41, %v2692_v38  ;;  %v10579_v51 = vadd.s32 160, %v9436_v33  ;;  %1989 = vmatmul.f32.gmra.mxu0 %v10560_v57  ;;  %v5355_v47 = vld [vmem:[#allocation8 + $0x170] sm:$0xff] }
 0x314   : > { %v2043_v13 = vmul.f32 %v10320_v20, %v2008_v14  ;;  %3534 = vmatmul.f32.gmra.mxu2 %v10416_v36  ;;  %v3232_v30 = vsel %vm10572_vm6, %v3200_v25, %v2650_v18  ;;  %v2677_v27 = vshrl.u32 %v2676_v55, 4  ;;  %v2697_v8 = vsel %vm2696_vm7, 1, %v13368_v9  ;;  %3744 = vmatmul.f32.gmra.mxu1 %v3666_v22  ;;  %v3764_v31 = vld [vmem:[%s8515_s10 + $0x119] sm:$0xff] }
 0x315   : > { %3631 = vmatmul.f32.gmra.mxu3 %v3553_v35  ;;  %v2695_v63 = vshrl.u32 %v10555_v45, 16  ;;  %v2698_v15 = vadd.s32 %v2692_v38, %v2688_v41  ;;  %v2699_v6 = vadd.s32 %v2697_v8, %v2691_v42  ;;  %v2715_v14 = vshrl.u32 %v10544_v29, 16  ;;  %5196 = vmatpush.msra.mxu0 %v5031_v49 }
 0x316   : > { %v2078_v54 = vadd.f32 %v10339_v11, %v2043_v13  ;;  %v2678_v44 = vmul.u32 24, %v2677_v27  ;;  %v2717_v36 = vmul.u32 43691, %v2714_v23  ;;  %v10590_v18 = vmul.u32 43690, %v2714_v23  ;;  %v1602_v25 = vpop.f32.mrf.mxu2  ;;  %5358 = vmatpush.msrb.mxu1 %v5355_v47  ;;  %v3990_v13 = vld [vmem:[%s8515_s10 + $0x130] sm:$0xff] }
 0x317   : > { %vm10592_vm8 = vcmp.lt.s32.totalorder %v3232_v30, 16  ;;  %vm2700_vm9 = vc.u32 %v2698_v15, %v2694_v50  ;;  %v10596_v41 = vmul.u32 43691, %v2715_v14  ;;  %v2720_v45 = vmul.u32 43690, %v2715_v14  ;;  %v1796_v23 = vpop.f32.mrf.mxu3  ;;  %v4244_v14 = vld [vmem:[#allocation6 + $0x460] sm:$0xff] }
 0x318   : > { %v2743_v42 = vand.u32 65535, %v10579_v51  ;;  %v2110_v38 = vmax.f32 %v2078_v54, 0.0  ;;  %v1636_v22 = vadd.f32 %v1602_v25, %v10431_v5  ;;  %v2679_v28 = vsub.s32 %v10438_v48, %v2678_v44  ;;  %v1945_v61 = vpop.f32.mrf.mxu0  ;;  %v10615_v48 = vld [vmem:[%s8515_s10 + $0x131] sm:$0xff]  ;;  %4251 = vmatpush.msrb.mxu2 %v4244_v14 }
 0x319   : > { %v2701_v55 = vsel %vm2700_vm9, 1, %v13368_v9  ;;  %v2721_v30 = vshll.u32 %v10590_v18, 16  ;;  %v2723_v27 = vshll.u32 %v10596_v41, 16  ;;  %v2744_v8 = vshrl.u32 %v10579_v51, 16  ;;  %v10612_v44 = vpop.f32.mrf.mxu1  ;;  %v5078_v25 = vld [vmem:[#allocation8 + $0xe0] sm:$0xff] }
 0x31a   : > { %v2703_v50 = vadd.s32 %v2701_v55, %v2699_v6  ;;  %v3295_v54 = vsel %vm10550_vm3, %v2110_v38, 0.0  ;;  %v10609_v49 = vadd.f32 %v1796_v23, %v1636_v22  ;;  %v2009_v5 = vadd.f32 %v1945_v61, %v9795_v39  ;;  %v5030_v23 = vld [vmem:[#allocation8 + $0x68] sm:$0xff]  ;;  %5085 = vmatpush.msrb.mxu3 %v5078_v25  ;;  %v3765_v25 = vld [vmem:[%s8515_s10 + $0x121] sm:$0xff] }
 0x31b   : > { %vm3105_vm10 = vcmp.ne.s32.totalorder %v2679_v28, 0  ;;  %3327 = vst [vmem:[#allocation2 + $0x98] sm:$0xff] %v3295_v54  ;;  %vm3137_vm11 = vcmp.lt.s32.totalorder %v2679_v28, 0  ;;  %v3201_v47 = vadd.s32 24, %v2679_v28  ;;  %v2722_v6 = vshrl.u32 %v10590_v18, 16  ;;  %4038 = vmatmul.f32.vlgmr.msrb.gmra.mxu0 %v3990_v13  ;;  %v5354_v55 = vld [vmem:[#allocation8 + $0x168] sm:$0xff] }
 0x31c   : > { %v2704_v15 = vadd.s32 %v2703_v50, %v2693_v10  ;;  %v2044_v34 = vmul.f32 %v10320_v20, %v2009_v5  ;;  %3812 = vmatmul.f32.vlgmr.msra.gmra.mxu2 %v3764_v31  ;;  %vm10619_vm12 = vmand %vm3137_vm11, %vm3105_vm10  ;;  %v2724_v39 = vshrl.u32 %v10596_v41, 16  ;;  %vm2725_vm13 = vc.u32 %v2717_v36, %v2721_v30  ;;  %4151 = vmatmul.f32.vlgmr.msra.gmra.mxu1 %v10615_v48 }
 0x31d   : > { %v2727_v22 = vadd.s32 %v2721_v30, %v2717_v36  ;;  %3925 = vmatmul.f32.vlgmr.msra.gmra.mxu3 %v10459_v17  ;;  %v3233_v10 = vsel %vm10619_vm12, %v3201_v47, %v2679_v28  ;;  %v2726_v61 = vsel %vm2725_vm13, 1, %v13368_v9  ;;  %v10629_v31 = vmul.u32 43690, %v2743_v42  ;;  %5197 = vmatpush.msra.mxu0 %v5030_v23 }
 0x31e   : > { %v2705_v18 = vadd.s32 %v2704_v15, %v2695_v63  ;;  %v2079_v13 = vadd.f32 %v10339_v11, %v2044_v34  ;;  %v2728_v50 = vadd.s32 %v2726_v61, %v2720_v45  ;;  %v2746_v36 = vmul.u32 43691, %v2743_v42  ;;  %v3490_v17 = vpop.f32.mrf.mxu2  ;;  %5359 = vmatpush.msrb.mxu1 %v5354_v55  ;;  %v3991_v34 = vld [vmem:[%s8515_s10 + $0x138] sm:$0xff] }
 0x31f   : > { %vm2729_vm14 = vc.u32 %v2727_v22, %v2723_v27  ;;  %vm10632_vm15 = vcmp.lt.s32.totalorder %v3233_v10, 16  ;;  %v10637_v30 = vmul.u32 43691, %v2744_v8  ;;  %v2749_v54 = vmul.u32 43690, %v2744_v8  ;;  %v13505_v27 = vld [vmem:[#allocation36_spill] sm:$0xff]  ;;  %v3587_v47 = vpop.f32.mrf.mxu3 }
 0x320   : > { %v2706_v28 = vshrl.u32 %v2705_v18, 4  ;;  %v2730_v63 = vsel %vm2729_vm14, 1, %v13368_v9  ;;  %v2111_v45 = vmax.f32 %v2079_v13, 0.0  ;;  %v3491_v5 = vadd.f32 %v3490_v17, %v13505_v27  ;;  %v1948_v14 = vpop.f32.mrf.mxu0  ;;  %v10654_v13 = vld [vmem:[%s8515_s10 + $0x139] sm:$0xff] }
 0x321   : > { %v2732_v42 = vadd.s32 %v2730_v63, %v2728_v50  ;;  %v2750_v15 = vshll.u32 %v10629_v31, 16  ;;  %v2751_v22 = vshrl.u32 %v10629_v31, 16  ;;  %v2752_v23 = vshll.u32 %v10637_v30, 16  ;;  %v10651_v61 = vpop.f32.mrf.mxu1  ;;  %v4243_v63 = vld [vmem:[#allocation6 + $0x458] sm:$0xff] }
 0x322   : > { %v2707_v38 = vmul.u32 24, %v2706_v28  ;;  %v3296_v8 = vsel %vm10592_vm8, %v2111_v45, 0.0  ;;  %v10648_v10 = vadd.f32 %v3587_v47, %v3491_v5  ;;  %v2010_v18 = vadd.f32 %v1948_v14, %v9865_v46  ;;  %v5077_v27 = vld [vmem:[#allocation8 + $0xd8] sm:$0xff]  ;;  %v5029_v5 = vld [vmem:[#allocation8 + $0x60] sm:$0xff]  ;;  %4252 = vmatpush.msrb.mxu2 %v4243_v63 }
 0x323   : > { %v2733_v50 = vadd.s32 %v2732_v42, %v2722_v6  ;;  %3328 = vst [vmem:[#allocation2 + $0xa0] sm:$0xff] %v3296_v8  ;;  %vm2754_vm0 = vc.u32 %v2746_v36, %v2750_v15  ;;  %v2756_v28 = vadd.s32 %v2750_v15, %v2746_v36  ;;  %v10658_v55 = vadd.s32 168, %v9436_v33  ;;  %4041 = vmatmul.f32.gmra.mxu0 %v3991_v34  ;;  %v5353_v47 = vld [vmem:[#allocation8 + $0x160] sm:$0xff] }
 0x324   : > { %v2708_v17 = vsub.s32 %v10511_v53, %v2707_v38  ;;  %v2045_v35 = vmul.f32 %v10320_v20, %v2010_v18  ;;  %3815 = vmatmul.f32.gmra.mxu2 %v3765_v25  ;;  %v2755_v45 = vsel %vm2754_vm0, 1, %v13368_v9  ;;  %v10663_v6 = vadd.s32 176, %v9436_v33  ;;  %4154 = vmatmul.f32.gmra.mxu1 %v10654_v13 }
 0x325   : > { %v2734_v46 = vadd.s32 %v2733_v50, %v2724_v39  ;;  %3928 = vmatmul.f32.gmra.mxu3 %v10517_v43  ;;  %v2757_v36 = vadd.s32 %v2755_v45, %v2749_v54  ;;  %vm2758_vm4 = vc.u32 %v2756_v28, %v2752_v23  ;;  %v2772_v43 = vand.u32 65535, %v10658_v55  ;;  %5198 = vmatpush.msra.mxu0 %v5029_v5  ;;  %v13508_v23 = vld [vmem:[#allocation31_spill] sm:$0xff] }
 0x326   : > { %vm3106_vm1 = vcmp.ne.s32.totalorder %v2708_v17, 0  ;;  %vm3138_vm2 = vcmp.lt.s32.totalorder %v2708_v17, 0  ;;  %v3202_v53 = vadd.s32 24, %v2708_v17  ;;  %v2080_v42 = vadd.f32 %v10339_v11, %v2045_v35  ;;  %5086 = vmatpush.msrb.mxu3 %v5077_v27  ;;  %5360 = vmatpush.msrb.mxu1 %v5353_v47  ;;  %v3992_v35 = vld [vmem:[%s8515_s10 + $0x140] sm:$0xff]  ;;  %v4241_v28 = vld [vmem:[#allocation6 + $0x448] sm:$0xff] }
 0x327   : > { %vm10668_vm3 = vmand %vm3138_vm2, %vm3106_vm1  ;;  %v2735_v39 = vshrl.u32 %v2734_v46, 4  ;;  %v3493_v14 = vpop.f32.mrf.mxu2  ;;  %v2759_v54 = vsel %vm2758_vm4, 1, %v13368_v9  ;;  %v2773_v34 = vshrl.u32 %v10658_v55, 16  ;;  %v2801_v38 = vand.u32 65535, %v10663_v6 }
 0x328   : > { %v3234_v25 = vsel %vm10668_vm3, %v3202_v53, %v2708_v17  ;;  %v2112_v8 = vmax.f32 %v2080_v42, 0.0  ;;  %v3494_v18 = vadd.f32 %v3493_v14, %v13508_v23  ;;  %v3590_v50 = vpop.f32.mrf.mxu3  ;;  %v1951_v27 = vpop.f32.mrf.mxu0  ;;  %v3766_v17 = vld [vmem:[%s8515_s10 + $0x129] sm:$0xff]  ;;  %v2761_v46 = vadd.s32 %v2759_v54, %v2757_v36  ;;  %v5076_v23 = vld [vmem:[#allocation8 + $0xd0] sm:$0xff] }
 0x329   : > { %vm10679_vm5 = vcmp.lt.s32.totalorder %v3234_v25, 16  ;;  %v2736_v63 = vmul.u32 24, %v2735_v39  ;;  %v2775_v45 = vmul.u32 43691, %v2772_v43  ;;  %v10685_v5 = vmul.u32 43690, %v2772_v43  ;;  %v10694_v14 = vpop.f32.mrf.mxu1  ;;  %v10697_v25 = vld [vmem:[%s8515_s10 + $0x141] sm:$0xff]  ;;  %5087 = vmatpush.msrb.mxu3 %v5076_v23 }
 0x32a   : > { %v10687_v47 = vmul.u32 43691, %v2773_v34  ;;  %v3297_v53 = vsel %vm10632_vm15, %v2112_v8, 0.0  ;;  %v10691_v42 = vadd.f32 %v3590_v50, %v3494_v18  ;;  %v2011_v15 = vadd.f32 %v1951_v27, %v9901_v37  ;;  %v4242_v8 = vld [vmem:[#allocation6 + $0x450] sm:$0xff]  ;;  %v5028_v50 = vld [vmem:[#allocation8 + $0x58] sm:$0xff] }
 0x32b   : > { %v2737_v39 = vsub.s32 %v10544_v29, %v2736_v63  ;;  %3329 = vst [vmem:[#allocation2 + $0xa8] sm:$0xff] %v3297_v53  ;;  %v2762_v36 = vadd.s32 %v2761_v46, %v2751_v22  ;;  %v2778_v43 = vmul.u32 43690, %v2773_v34  ;;  %v2779_v54 = vshll.u32 %v10685_v5, 16  ;;  %4044 = vmatmul.f32.gmra.mxu0 %v3992_v35  ;;  %v5352_v29 = vld [vmem:[#allocation8 + $0x158] sm:$0xff]  ;;  %4253 = vmatpush.msrb.mxu2 %v4242_v8 }
 0x32c   : > { %v2780_v41 = vshrl.u32 %v10685_v5, 16  ;;  %v2046_v18 = vmul.f32 %v10320_v20, %v2011_v15  ;;  %3818 = vmatmul.f32.gmra.mxu2 %v3766_v17  ;;  %4157 = vmatmul.f32.gmra.mxu1 %v10697_v25  ;;  %v13511_v31 = vshrl.u32 %v10637_v30, 16  ;;  %v2781_v34 = vshll.u32 %v10687_v47, 16  ;;  %v3993_v23 = vld [vmem:[%s8515_s10 + $0x148] sm:$0xff] }
 0x32d   : > { %vm3107_vm6 = vcmp.ne.s32.totalorder %v2737_v39, 0  ;;  %vm3139_vm7 = vcmp.lt.s32.totalorder %v2737_v39, 0  ;;  %v3203_v37 = vadd.s32 24, %v2737_v39  ;;  %3931 = vmatmul.f32.gmra.mxu3 %v10560_v57  ;;  %v2782_v63 = vshrl.u32 %v10687_v47, 16  ;;  %5199 = vmatpush.msra.mxu0 %v5028_v50  ;;  %v4240_v5 = vld [vmem:[#allocation6 + $0x440] sm:$0xff] }
 0x32e   : > { %vm3171_vm8 = vmand %vm3139_vm7, %vm3107_vm6  ;;  %v2763_v22 = vadd.s32 %v2762_v36, %v13511_v31  ;;  %vm2783_vm9 = vc.u32 %v2775_v45, %v2779_v54  ;;  %v2081_v27 = vadd.f32 %v10339_v11, %v2046_v18  ;;  %v2785_v46 = vadd.s32 %v2779_v54, %v2775_v45  ;;  %5361 = vmatpush.msrb.mxu1 %v5352_v29 }
 0x32f   : > { %v3235_v17 = vsel %vm3171_vm8, %v3203_v37, %v2737_v39  ;;  %v2784_v35 = vsel %vm2783_vm9, 1, %v13368_v9  ;;  %v3496_v57 = vpop.f32.mrf.mxu2  ;;  %v2802_v47 = vshrl.u32 %v10663_v6, 16  ;;  %v13514_v39 = vld [vmem:[#allocation16_spill] sm:$0xff]  ;;  %v2804_v54 = vmul.u32 43691, %v2801_v38  ;;  %4254 = vmatpush.msrb.mxu2 %v4241_v28  ;;  %v3994_v28 = vld [vmem:[%s8515_s10 + $0x150] sm:$0xff] }
 0x330   : > { %vm10713_vm10 = vcmp.lt.s32.totalorder %v3235_v17, 16  ;;  %v2764_v30 = vshrl.u32 %v2763_v22, 4  ;;  %v2786_v53 = vadd.s32 %v2784_v35, %v2778_v43  ;;  %v2113_v15 = vmax.f32 %v2081_v27, 0.0  ;;  %v3593_v45 = vpop.f32.mrf.mxu3  ;;  %v1954_v8 = vpop.f32.mrf.mxu0  ;;  %v3880_v27 = vld [vmem:[%s8515_s10 + $0x132] sm:$0xff]  ;;  %v10738_v17 = vld [vmem:[%s8515_s10 + $0x149] sm:$0xff] }
 0x331   : > { %v3497_v36 = vadd.f32 %v3496_v57, %v13514_v39  ;;  %vm2787_vm11 = vc.u32 %v2785_v46, %v2781_v34  ;;  %v10725_v43 = vmul.u32 43690, %v2801_v38  ;;  %v10727_v50 = vmul.u32 43691, %v2802_v47  ;;  %v10734_v34 = vpop.f32.mrf.mxu1  ;;  %4255 = vmatpush.msrb.mxu2 %v4240_v5 }
 0x332   : > { %v2765_v18 = vmul.u32 24, %v2764_v30  ;;  %v2788_v37 = vsel %vm2787_vm11, 1, %v13368_v9  ;;  %v3298_v29 = vsel %vm10679_vm5, %v2113_v15, 0.0  ;;  %v2012_v22 = vadd.f32 %v1954_v8, %v9970_v19  ;;  %v5075_v15 = vld [vmem:[#allocation8 + $0xc8] sm:$0xff]  ;;  %v5351_v8 = vld [vmem:[#allocation8 + $0x150] sm:$0xff] }
 0x333   : > { %v10731_v31 = vadd.f32 %v3593_v45, %v3497_v36  ;;  %v2790_v35 = vadd.s32 %v2788_v37, %v2786_v53  ;;  %3330 = vst [vmem:[#allocation2 + $0xb0] sm:$0xff] %v3298_v29  ;;  %v2807_v38 = vmul.u32 43690, %v2802_v47  ;;  %v2808_v57 = vshll.u32 %v10725_v43, 16  ;;  %4047 = vmatmul.f32.gmra.mxu0 %v3993_v23  ;;  %v5027_v45 = vld [vmem:[#allocation8 + $0x50] sm:$0xff]  ;;  %5088 = vmatpush.msrb.mxu3 %v5075_v15 }
 0x334   : > { %v2766_v46 = vsub.s32 %v10579_v51, %v2765_v18  ;;  %v2809_v30 = vshrl.u32 %v10725_v43, 16  ;;  %v2047_v39 = vmul.f32 %v10320_v20, %v2012_v22  ;;  %3821 = vmatmul.f32.gmra.mxu2 %v10615_v48  ;;  %v2810_v36 = vshll.u32 %v10727_v50, 16  ;;  %4160 = vmatmul.f32.gmra.mxu1 %v10738_v17  ;;  %v3881_v20 = vld [vmem:[%s8515_s10 + $0x13a] sm:$0xff] }
 0x335   : > { %v2791_v19 = vadd.s32 %v2790_v35, %v2780_v41  ;;  %3934 = vmatmul.f32.gmra.mxu3 %v3880_v27  ;;  %vm2812_vm14 = vc.u32 %v2804_v54, %v2808_v57  ;;  %v2814_v23 = vadd.s32 %v2808_v57, %v2804_v54  ;;  %5200 = vmatpush.msra.mxu0 %v5027_v45  ;;  %v10760_v22 = vadd.s32 192, %v9436_v33  ;;  %v13517_v27 = vld [vmem:[#allocation38_spill] sm:$0xff]  ;;  %v3995_v43 = vld [vmem:[%s8515_s10 + $0x158] sm:$0xff] }
 0x336   : > { %vm3108_vm12 = vcmp.ne.s32.totalorder %v2766_v46, 0  ;;  %vm3140_vm13 = vcmp.lt.s32.totalorder %v2766_v46, 0  ;;  %v3204_v51 = vadd.s32 24, %v2766_v46  ;;  %v2082_v47 = vadd.f32 %v10339_v11, %v2047_v39  ;;  %5362 = vmatpush.msrb.mxu1 %v5351_v8 }
 0x337   : > { %vm10749_vm15 = vmand %vm3140_vm13, %vm3108_vm12  ;;  %v2792_v48 = vadd.s32 %v2791_v19, %v2782_v63  ;;  %v2813_v41 = vsel %vm2812_vm14, 1, %v13368_v9  ;;  %v3499_v18 = vpop.f32.mrf.mxu2  ;;  %v10757_v11 = vadd.s32 184, %v9436_v33  ;;  %vm2816_vm1 = vc.u32 %v2814_v23, %v2810_v36 }
 0x338   : > { %v3236_v37 = vsel %vm10749_vm15, %v3204_v51, %v2766_v46  ;;  %v2815_v29 = vadd.s32 %v2813_v41, %v2807_v38  ;;  %v2114_v63 = vmax.f32 %v2082_v47, 0.0  ;;  %v3500_v54 = vadd.f32 %v3499_v18, %v13517_v27  ;;  %v3596_v35 = vpop.f32.mrf.mxu3  ;;  %v1957_v38 = vpop.f32.mrf.mxu0 }
 0x339   : > { %vm10763_vm0 = vcmp.lt.s32.totalorder %v3236_v37, 16  ;;  %v2793_v46 = vshrl.u32 %v2792_v48, 4  ;;  %v2830_v15 = vand.u32 65535, %v10757_v11  ;;  %v2831_v39 = vshrl.u32 %v10757_v11, 16  ;;  %v10776_v47 = vpop.f32.mrf.mxu1  ;;  %v10780_v48 = vld [vmem:[%s8515_s10 + $0x151] sm:$0xff] }
 0x33a   : > { %v3299_v45 = vsel %vm10713_vm10, %v2114_v63, 0.0  ;;  %v10773_v8 = vadd.f32 %v3596_v35, %v3500_v54  ;;  %v2013_v51 = vadd.f32 %v1957_v38, %v10034_v2  ;;  %13520 = vst [vmem:[#allocation40_spill] sm:$0xff] %v10776_v47  ;;  %v2817_v36 = vsel %vm2816_vm1, 1, %v13368_v9  ;;  %v10790_v63 = vld [vmem:[%s13219_s2] ss:$0 sm:$0xff]  ;;  %v5026_v38 = vld [vmem:[#allocation8 + $0x48] sm:$0xff] }
 0x33b   : > { %v2794_v41 = vmul.u32 24, %v2793_v46  ;;  %3331 = vst [vmem:[#allocation2 + $0xb8] sm:$0xff] %v3299_v45  ;;  %v2833_v23 = vmul.u32 43691, %v2830_v15  ;;  %v10783_v18 = vmul.u32 43690, %v2830_v15  ;;  %v10785_v37 = vmul.u32 43691, %v2831_v39  ;;  %4050 = vmatmul.f32.gmra.mxu0 %v3994_v28  ;;  %v5074_v46 = vld [vmem:[#allocation8 + $0xc0] sm:$0xff] }
 0x33c   : > { %v2048_v2 = vmul.f32 %v10790_v63, %v2013_v51  ;;  %3824 = vmatmul.f32.gmra.mxu2 %v10654_v13  ;;  %v2819_v54 = vadd.s32 %v2817_v36, %v2815_v29  ;;  %v2836_v35 = vmul.u32 43690, %v2831_v39  ;;  %v5350_v15 = vld [vmem:[#allocation8 + $0x148] sm:$0xff]  ;;  %4163 = vmatmul.f32.gmra.mxu1 %v10780_v48 }
 0x33d   : > { %v2795_v27 = vsub.s32 %v10658_v55, %v2794_v41  ;;  %3937 = vmatmul.f32.gmra.mxu3 %v3881_v20  ;;  %v2837_v45 = vshll.u32 %v10783_v18, 16  ;;  %v2838_v19 = vshrl.u32 %v10783_v18, 16  ;;  %v2839_v53 = vshll.u32 %v10785_v37, 16  ;;  %v10803_v55 = vld [vmem:[%s13220_s3] ss:$0 sm:$0xff]  ;;  %5201 = vmatpush.msra.mxu0 %v5026_v38 }
 0x33e   : > { %v2083_v13 = vadd.f32 %v10803_v55, %v2048_v2  ;;  %5089 = vmatpush.msrb.mxu3 %v5074_v46  ;;  %v2820_v39 = vadd.s32 %v2819_v54, %v2809_v30  ;;  %5363 = vmatpush.msrb.mxu1 %v5350_v15  ;;  %v2860_v41 = vshrl.u32 %v10760_v22, 16  ;;  %v13523_v30 = vshrl.u32 %v10727_v50, 16 }
 0x33f   : > { %vm3109_vm2 = vcmp.ne.s32.totalorder %v2795_v27, 0  ;;  %vm3141_vm3 = vcmp.lt.s32.totalorder %v2795_v27, 0  ;;  %v3205_v29 = vadd.s32 24, %v2795_v27  ;;  %v3502_v28 = vpop.f32.mrf.mxu2  ;;  %vm2841_vm5 = vc.u32 %v2833_v23, %v2837_v45 }
 0x340   : > { %vm3173_vm4 = vmand %vm3141_vm3, %vm3109_vm2  ;;  %v2843_v20 = vadd.s32 %v2837_v45, %v2833_v23  ;;  %v2115_v36 = vmax.f32 %v2083_v13, 0.0  ;;  %v3503_v18 = vadd.f32 %v3502_v28, %v9973_v0  ;;  %v3599_v2 = vpop.f32.mrf.mxu3  ;;  %v2842_v46 = vsel %vm2841_vm5, 1, %v13368_v9  ;;  %v1960_v51 = vpop.f32.mrf.mxu0  ;;  %v3882_v45 = vld [vmem:[%s8515_s10 + $0x142] sm:$0xff]  ;;  %v10827_v13 = vld [vmem:[%s8515_s10 + $0x159] sm:$0xff] }
 0x341   : > { %v3237_v5 = vsel %vm3173_vm4, %v3205_v29, %v2795_v27  ;;  %v2821_v23 = vadd.s32 %v2820_v39, %v13523_v30  ;;  %v2844_v54 = vadd.s32 %v2842_v46, %v2836_v35  ;;  %v2014_v0 = vadd.f32 %v1960_v51, %v10079_v40  ;;  %v10823_v27 = vpop.f32.mrf.mxu1 }
 0x342   : > { %vm10811_vm6 = vcmp.lt.s32.totalorder %v3237_v5, 16  ;;  %vm2845_vm7 = vc.u32 %v2843_v20, %v2839_v53  ;;  %v3300_v38 = vsel %vm10763_vm0, %v2115_v36, 0.0  ;;  %v10820_v15 = vadd.f32 %v3599_v2, %v3503_v18  ;;  %13525 = vst [vmem:[#allocation52_spill] sm:$0xff] %v10823_v27  ;;  %v4239_v20 = vld [vmem:[#allocation6 + $0x438] sm:$0xff]  ;;  %v5025_v2 = vld [vmem:[#allocation8 + $0x40] sm:$0xff]  ;;  %v5072_v27 = vld [vmem:[#allocation8 + $0xb0] sm:$0xff] }
 0x343   : > { %v2846_v29 = vsel %vm2845_vm7, 1, %v13368_v9  ;;  %3332 = vst [vmem:[#allocation2 + $0xc0] sm:$0xff] %v3300_v38  ;;  %v2822_v28 = vshrl.u32 %v2821_v23, 4  ;;  %v13526_v35 = vand.u32 65535, %v10760_v22  ;;  %v5073_v36 = vld [vmem:[#allocation8 + $0xb8] sm:$0xff]  ;;  %v2049_v40 = vmul.f32 %v10790_v63, %v2014_v0  ;;  %4053 = vmatmul.f32.gmra.mxu0 %v3995_v43  ;;  %v5349_v38 = vld [vmem:[#allocation8 + $0x140] sm:$0xff]  ;;  %4256 = vmatpush.msrb.mxu2 %v4239_v20 }
 0x344   : > { %13524 = vst [vmem:[#allocation35_spill] sm:$0xff] %v10820_v15  ;;  %v2848_v50 = vadd.s32 %v2846_v29, %v2844_v54  ;;  %3827 = vmatmul.f32.gmra.mxu2 %v10697_v25  ;;  %v10838_v51 = vmul.u32 43691, %v2860_v41  ;;  %v2865_v18 = vmul.u32 43690, %v2860_v41  ;;  %v10841_v5 = vadd.s32 200, %v9436_v33  ;;  %4166 = vmatmul.f32.gmra.mxu1 %v10827_v13 }
 0x345   : > { %v2862_v53 = vmul.u32 43691, %v13526_v35  ;;  %v13527_v57 = vmov %v13526_v35  ;;  %3940 = vmatmul.f32.gmra.mxu3 %v3882_v45  ;;  %v2823_v46 = vmul.u32 24, %v2822_v28  ;;  %v2084_v25 = vadd.f32 %v10803_v55, %v2049_v40  ;;  %5202 = vmatpush.msra.mxu0 %v5025_v2 }
 0x346   : > { %v10834_v39 = vmul.u32 43690, %v13527_v57  ;;  %v2849_v30 = vadd.s32 %v2848_v50, %v2838_v19  ;;  %v2868_v43 = vshll.u32 %v10838_v51, 16  ;;  %5090 = vmatpush.msrb.mxu3 %v5073_v36  ;;  %v2888_v0 = vand.u32 65535, %v10841_v5  ;;  %5364 = vmatpush.msrb.mxu1 %v5349_v38  ;;  %v10866_v38 = vld [vmem:[%s8515_s10 + $0x161] sm:$0xff] }
 0x347   : > { %v3505_v45 = vpop.f32.mrf.mxu2  ;;  %v2824_v29 = vsub.s32 %v10663_v6, %v2823_v46  ;;  %v13528_v19 = vshrl.u32 %v10785_v37, 16  ;;  %v2116_v35 = vmax.f32 %v2084_v25, 0.0  ;;  %v2889_v36 = vshrl.u32 %v10841_v5, 16  ;;  %v3996_v37 = vld [vmem:[%s8515_s10 + $0x160] sm:$0xff] }
 0x348   : > { %v2866_v23 = vshll.u32 %v10834_v39, 16  ;;  %v3506_v57 = vadd.f32 %v3505_v45, %v10037_v21  ;;  %v3602_v40 = vpop.f32.mrf.mxu3  ;;  %v1963_v41 = vpop.f32.mrf.mxu0  ;;  %v2891_v54 = vmul.u32 43691, %v2888_v0  ;;  %5091 = vmatpush.msrb.mxu3 %v5072_v27 }
 0x349   : > { %v2850_v28 = vadd.s32 %v2849_v30, %v13528_v19  ;;  %vm3110_vm9 = vcmp.ne.s32.totalorder %v2824_v29, 0  ;;  %vm3142_vm10 = vcmp.lt.s32.totalorder %v2824_v29, 0  ;;  %v3206_v6 = vadd.s32 24, %v2824_v29  ;;  %v10862_v30 = vpop.f32.mrf.mxu1 }
 0x34a   : > { %vm2870_vm8 = vc.u32 %v2862_v53, %v2866_v23  ;;  %v2872_v50 = vadd.s32 %v2866_v23, %v2862_v53  ;;  %v3301_v53 = vsel %vm10811_vm6, %v2116_v35, 0.0  ;;  %v10859_v2 = vadd.f32 %v3602_v40, %v3506_v57  ;;  %vm3174_vm11 = vmand %vm3142_vm10, %vm3110_vm9  ;;  %v3883_v23 = vld [vmem:[%s8515_s10 + $0x14a] sm:$0xff] }
 0x34b   : > { %v2871_v20 = vsel %vm2870_vm8, 1, %v13368_v9  ;;  %v2851_v46 = vshrl.u32 %v2850_v28, 4  ;;  %v2015_v21 = vadd.f32 %v1963_v41, %v10134_v32  ;;  %3333 = vst [vmem:[#allocation2 + $0xc8] sm:$0xff] %v3301_v53  ;;  %v3238_v45 = vsel %vm3174_vm11, %v3206_v6, %v2824_v29  ;;  %v4238_v28 = vld [vmem:[#allocation6 + $0x430] sm:$0xff]  ;;  %4056 = vmatmul.f32.gmra.mxu0 %v3996_v37  ;;  %v5348_v29 = vld [vmem:[#allocation8 + $0x138] sm:$0xff] }
 0x34c   : > { %13529 = vst [vmem:[#allocation37_spill] sm:$0xff] %v10859_v2  ;;  %v2873_v25 = vadd.s32 %v2871_v20, %v2865_v18  ;;  %vm2874_vm12 = vc.u32 %v2872_v50, %v2868_v43  ;;  %vm10869_vm13 = vcmp.lt.s32.totalorder %v3238_v45, 16  ;;  %3830 = vmatmul.f32.gmra.mxu2 %v10738_v17  ;;  %v10875_v41 = vmul.u32 43690, %v2888_v0  ;;  %v5024_v18 = vld [vmem:[#allocation8 + $0x38] sm:$0xff]  ;;  %4169 = vmatmul.f32.gmra.mxu1 %v10866_v38 }
 0x34d   : > { %v2852_v19 = vmul.u32 24, %v2851_v46  ;;  %v2050_v52 = vmul.f32 %v10790_v63, %v2015_v21  ;;  %v2875_v32 = vsel %vm2874_vm12, 1, %v13368_v9  ;;  %3943 = vmatmul.f32.gmra.mxu3 %v3883_v23  ;;  %v10879_v57 = vmul.u32 43691, %v2889_v36  ;;  %4257 = vmatpush.msrb.mxu2 %v4238_v28  ;;  %v13533_v21 = vld [vmem:[#allocation26_spill] sm:$0xff] }
 0x34e   : > { %v2877_v50 = vadd.s32 %v2875_v32, %v2873_v25  ;;  %v2894_v40 = vmul.u32 43690, %v2889_v36  ;;  %v2895_v17 = vshll.u32 %v10875_v41, 16  ;;  %v2896_v6 = vshrl.u32 %v10875_v41, 16  ;;  %5203 = vmatpush.msra.mxu0 %v5024_v18  ;;  %5365 = vmatpush.msrb.mxu1 %v5348_v29  ;;  %v3885_v41 = vld [vmem:[%s8515_s10 + $0x15a] sm:$0xff] }
 0x34f   : > { %v2853_v43 = vsub.s32 %v10757_v11, %v2852_v19  ;;  %v2085_v20 = vadd.f32 %v10803_v55, %v2050_v52  ;;  %v10885_v0 = vadd.s32 208, %v9436_v33  ;;  %v3508_v37 = vpop.f32.mrf.mxu2  ;;  %v13532_v46 = vshrl.u32 %v10834_v39, 16  ;;  %v3997_v52 = vld [vmem:[%s8515_s10 + $0x168] sm:$0xff] }
 0x350   : > { %v3509_v23 = vadd.f32 %v3508_v37, %v13533_v21  ;;  %v3605_v25 = vpop.f32.mrf.mxu3  ;;  %v2897_v27 = vshll.u32 %v10879_v57, 16  ;;  %v1966_v19 = vpop.f32.mrf.mxu0  ;;  %v13534_v32 = vshrl.u32 %v10838_v51, 16  ;;  %vm2899_vm1 = vc.u32 %v2891_v54, %v2895_v17 }
 0x351   : > { %vm3111_vm14 = vcmp.ne.s32.totalorder %v2853_v43, 0  ;;  %vm3143_vm15 = vcmp.lt.s32.totalorder %v2853_v43, 0  ;;  %v3207_v11 = vadd.s32 24, %v2853_v43  ;;  %v2878_v53 = vadd.s32 %v2877_v50, %v13532_v46  ;;  %v10904_v21 = vpop.f32.mrf.mxu1 }
 0x352   : > { %v2117_v36 = vmax.f32 %v2085_v20, 0.0  ;;  %vm3175_vm0 = vmand %vm3143_vm15, %vm3111_vm14  ;;  %v2901_v18 = vadd.s32 %v2895_v17, %v2891_v54  ;;  %v10897_v50 = vadd.f32 %v3605_v25, %v3509_v23  ;;  %v13535_v20 = vld [vmem:[#allocation19_spill] sm:$0xff]  ;;  %v2900_v54 = vsel %vm2899_vm1, 1, %v13368_v9 }
 0x353   : > { %v3239_v28 = vsel %vm3175_vm0, %v3207_v11, %v2853_v43  ;;  %v2879_v39 = vadd.s32 %v2878_v53, %v13534_v32  ;;  %v2016_v37 = vadd.f32 %v1966_v19, %v13535_v20  ;;  %v3884_v43 = vld [vmem:[%s8515_s10 + $0x152] sm:$0xff]  ;;  %v10908_v11 = vld [vmem:[%s8515_s10 + $0x169] sm:$0xff]  ;;  %v2917_v35 = vand.u32 65535, %v10885_v0  ;;  %4059 = vmatmul.f32.gmra.mxu0 %v3997_v52 }
 0x354   : > { %v3302_v29 = vsel %vm10869_vm13, %v2117_v36, 0.0  ;;  %vm10900_vm2 = vcmp.lt.s32.totalorder %v3239_v28, 16  ;;  %vm2903_vm3 = vc.u32 %v2901_v18, %v2897_v27  ;;  %v4237_v17 = vld [vmem:[#allocation6 + $0x428] sm:$0xff]  ;;  %3833 = vmatmul.f32.gmra.mxu2 %v10780_v48  ;;  %v2902_v23 = vadd.s32 %v2900_v54, %v2894_v40  ;;  %v5023_v28 = vld [vmem:[#allocation8 + $0x30] sm:$0xff]  ;;  %4172 = vmatmul.f32.gmra.mxu1 %v10908_v11 }
 0x355   : > { %3334 = vst [vmem:[#allocation2 + $0xd0] sm:$0xff] %v3302_v29  ;;  %v2880_v51 = vshrl.u32 %v2879_v39, 4  ;;  %v5071_v53 = vld [vmem:[#allocation8 + $0xa8] sm:$0xff]  ;;  %v2051_v36 = vmul.f32 %v10790_v63, %v2016_v37  ;;  %v2904_v25 = vsel %vm2903_vm3, 1, %v13368_v9  ;;  %v2918_v19 = vshrl.u32 %v10885_v0, 16  ;;  %v5347_v32 = vld [vmem:[#allocation8 + $0x130] sm:$0xff]  ;;  %3946 = vmatmul.f32.gmra.mxu3 %v3884_v43  ;;  %4258 = vmatpush.msrb.mxu2 %v4237_v17 }
 0x356   : > { %v2920_v39 = vmul.u32 43691, %v2917_v35  ;;  %v10917_v18 = vmul.u32 43690, %v2917_v35  ;;  %v10920_v29 = vadd.s32 216, %v9436_v33  ;;  %v2906_v52 = vadd.s32 %v2904_v25, %v2902_v23  ;;  %5092 = vmatpush.msrb.mxu3 %v5071_v53  ;;  %5204 = vmatpush.msra.mxu0 %v5023_v28 }
 0x357   : > { %v2881_v27 = vmul.u32 24, %v2880_v51  ;;  %v2086_v48 = vadd.f32 %v10803_v55, %v2051_v36  ;;  %v10923_v40 = vmul.u32 43691, %v2918_v19  ;;  %v2923_v20 = vmul.u32 43690, %v2918_v19  ;;  %v3511_v37 = vpop.f32.mrf.mxu2  ;;  %5366 = vmatpush.msrb.mxu1 %v5347_v32  ;;  %v13538_v36 = vld [vmem:[#allocation28_spill] sm:$0xff] }
 0x358   : > { %v2924_v51 = vshll.u32 %v10917_v18, 16  ;;  %v2946_v35 = vand.u32 65535, %v10920_v29  ;;  %v3512_v23 = vadd.f32 %v3511_v37, %v13538_v36  ;;  %v3608_v25 = vpop.f32.mrf.mxu3  ;;  %v2907_v17 = vadd.s32 %v2906_v52, %v2896_v6  ;;  %v10944_v6 = vld [vmem:[%s8515_s10 + $0x171] sm:$0xff] }
 0x359   : > { %v2882_v43 = vsub.s32 %v10760_v22, %v2881_v27  ;;  %v2118_v45 = vmax.f32 %v2086_v48, 0.0  ;;  %v2926_v53 = vshll.u32 %v10923_v40, 16  ;;  %v1969_v22 = vpop.f32.mrf.mxu0  ;;  %v3998_v27 = vld [vmem:[%s8515_s10 + $0x170] sm:$0xff]  ;;  %v10940_v36 = vpop.f32.mrf.mxu1  ;;  %v13539_v52 = vshrl.u32 %v10879_v57, 16 }
 0x35a   : > { %v10937_v48 = vadd.f32 %v3608_v25, %v3512_v23  ;;  %v2017_v37 = vadd.f32 %v1969_v22, %v10242_v3  ;;  %vm2928_vm7 = vc.u32 %v2920_v39, %v2924_v51  ;;  %v2930_v28 = vadd.s32 %v2924_v51, %v2920_v39  ;;  %v5070_v23 = vld [vmem:[#allocation8 + $0xa0] sm:$0xff] }
 0x35b   : > { %vm3112_vm4 = vcmp.ne.s32.totalorder %v2882_v43, 0  ;;  %vm3144_vm5 = vcmp.lt.s32.totalorder %v2882_v43, 0  ;;  %v3208_v19 = vadd.s32 24, %v2882_v43  ;;  %v3303_v32 = vsel %vm10900_vm2, %v2118_v45, 0.0  ;;  %v4236_v45 = vld [vmem:[#allocation6 + $0x420] sm:$0xff]  ;;  %4062 = vmatmul.f32.gmra.mxu0 %v3998_v27  ;;  %5093 = vmatpush.msrb.mxu3 %v5070_v23 }
 0x35c   : > { %vm3176_vm6 = vmand %vm3144_vm5, %vm3112_vm4  ;;  %v2908_v54 = vadd.s32 %v2907_v17, %v13539_v52  ;;  %3335 = vst [vmem:[#allocation2 + $0xd8] sm:$0xff] %v3303_v32  ;;  %v2947_v46 = vshrl.u32 %v10920_v29, 16  ;;  %v2052_v25 = vmul.f32 %v10790_v63, %v2017_v37  ;;  %3836 = vmatmul.f32.gmra.mxu2 %v10827_v13  ;;  %v2929_v57 = vsel %vm2928_vm7, 1, %v13368_v9  ;;  %v5022_v17 = vld [vmem:[#allocation8 + $0x28] sm:$0xff]  ;;  %4175 = vmatmul.f32.gmra.mxu1 %v10944_v6 }
 0x35d   : > { %v3240_v2 = vsel %vm3176_vm6, %v3208_v19, %v2882_v43  ;;  %v5346_v43 = vld [vmem:[#allocation8 + $0x128] sm:$0xff]  ;;  %3949 = vmatmul.f32.gmra.mxu3 %v3885_v41  ;;  %v2931_v39 = vadd.s32 %v2929_v57, %v2923_v20  ;;  %vm2932_vm9 = vc.u32 %v2930_v28, %v2926_v53  ;;  %v2949_v51 = vmul.u32 43691, %v2946_v35  ;;  %4259 = vmatpush.msrb.mxu2 %v4236_v45  ;;  %v13542_v53 = vld [vmem:[#allocation21_spill] sm:$0xff] }
 0x35e   : > { %vm10950_vm8 = vcmp.lt.s32.totalorder %v3240_v2, 16  ;;  %v2909_v22 = vshrl.u32 %v2908_v54, 4  ;;  %v10957_v19 = vmul.u32 43690, %v2946_v35  ;;  %v2087_v2 = vadd.f32 %v10803_v55, %v2052_v25  ;;  %5205 = vmatpush.msra.mxu0 %v5022_v17  ;;  %5367 = vmatpush.msrb.mxu1 %v5346_v43  ;;  %v3999_v57 = vld [vmem:[%s8515_s10 + $0x178] sm:$0xff] }
 0x35f   : > { %v2933_v37 = vsel %vm2932_vm9, 1, %v13368_v9  ;;  %v10961_v13 = vmul.u32 43691, %v2947_v46  ;;  %v3514_v54 = vpop.f32.mrf.mxu2  ;;  %v2952_v41 = vmul.u32 43690, %v2947_v46  ;;  %v13543_v46 = vshrl.u32 %v10917_v18, 16 }
 0x360   : > { %v2910_v32 = vmul.u32 24, %v2909_v22  ;;  %v2935_v27 = vadd.s32 %v2933_v37, %v2931_v39  ;;  %v2953_v52 = vshll.u32 %v10957_v19, 16  ;;  %v2954_v20 = vshrl.u32 %v10957_v19, 16  ;;  %v3611_v25 = vpop.f32.mrf.mxu3 }
 0x361   : > { %v2119_v35 = vmax.f32 %v2087_v2, 0.0  ;;  %v3515_v28 = vadd.f32 %v3514_v54, %v13542_v53  ;;  %v2955_v45 = vshll.u32 %v10961_v13, 16  ;;  %v1972_v23 = vpop.f32.mrf.mxu0  ;;  %v2956_v37 = vshrl.u32 %v10961_v13, 16  ;;  %v10983_v54 = vld [vmem:[%s8515_s10 + $0x179] sm:$0xff] }
 0x362   : > { %v2911_v22 = vsub.s32 %v10841_v5, %v2910_v32  ;;  %v2936_v39 = vadd.s32 %v2935_v27, %v13543_v46  ;;  %vm2957_vm10 = vc.u32 %v2949_v51, %v2953_v52  ;;  %v2959_v17 = vadd.s32 %v2953_v52, %v2949_v51  ;;  %v10977_v5 = vpop.f32.mrf.mxu1  ;;  %v10980_v32 = vld [vmem:[%s8515_s10 + $0x162] sm:$0xff] }
 0x363   : > { %v3304_v43 = vsel %vm10950_vm8, %v2119_v35, 0.0  ;;  %v10974_v19 = vadd.f32 %v3611_v25, %v3515_v28  ;;  %v2018_v2 = vadd.f32 %v1972_v23, %v10300_v59  ;;  %13544 = vst [vmem:[#allocation41_spill] sm:$0xff] %v10980_v32  ;;  %v13545_v13 = vshrl.u32 %v10923_v40, 16  ;;  %v4235_v27 = vld [vmem:[#allocation6 + $0x418] sm:$0xff]  ;;  %4065 = vmatmul.f32.gmra.mxu0 %v3999_v57  ;;  %v5021_v28 = vld [vmem:[#allocation8 + $0x20] sm:$0xff] }
 0x364   : > { %vm3113_vm11 = vcmp.ne.s32.totalorder %v2911_v22, 0  ;;  %3336 = vst [vmem:[#allocation2 + $0xe0] sm:$0xff] %v3304_v43  ;;  %vm3145_vm12 = vcmp.lt.s32.totalorder %v2911_v22, 0  ;;  %v3209_v18 = vadd.s32 24, %v2911_v22  ;;  %v2958_v3 = vsel %vm2957_vm10, 1, %v13368_v9  ;;  %v5069_v52 = vld [vmem:[#allocation8 + $0x98] sm:$0xff]  ;;  %3839 = vmatmul.f32.gmra.mxu2 %v10866_v38  ;;  %4178 = vmatmul.f32.gmra.mxu1 %v10983_v54 }
 0x365   : > { %v2937_v51 = vadd.s32 %v2936_v39, %v13545_v13  ;;  %v2053_v35 = vmul.f32 %v10790_v63, %v2018_v2  ;;  %vm3177_vm13 = vmand %vm3145_vm12, %vm3113_vm11  ;;  %v2960_v59 = vadd.s32 %v2958_v3, %v2952_v41  ;;  %vm2961_vm14 = vc.u32 %v2959_v17, %v2955_v45  ;;  %v5345_v25 = vld [vmem:[#allocation8 + $0x120] sm:$0xff]  ;;  %3952 = vmatmul.f32.gmra.mxu3 %v10980_v32 }
 0x366   : > { %v10991_v53 = vadd.s32 224, %v9436_v33  ;;  %v3241_v23 = vsel %vm3177_vm13, %v3209_v18, %v2911_v22  ;;  %v2962_v46 = vsel %vm2961_vm14, 1, %v13368_v9  ;;  %v10997_v39 = vadd.s32 232, %v9436_v33  ;;  %4260 = vmatpush.msrb.mxu2 %v4235_v27  ;;  %5094 = vmatpush.msrb.mxu3 %v5069_v52 }
 0x367   : > { %v2938_v40 = vshrl.u32 %v2937_v51, 4  ;;  %v2088_v38 = vadd.f32 %v10803_v55, %v2053_v35  ;;  %vm11000_vm15 = vcmp.lt.s32.totalorder %v3241_v23, 16  ;;  %v2964_v45 = vadd.s32 %v2962_v46, %v2960_v59  ;;  %v3517_v22 = vpop.f32.mrf.mxu2  ;;  %5206 = vmatpush.msra.mxu0 %v5021_v28  ;;  %5368 = vmatpush.msrb.mxu1 %v5345_v25  ;;  %v4000_v23 = vld [vmem:[%s8515_s10 + $0x180] sm:$0xff] }
 0x368   : > { %v2975_v57 = vand.u32 65535, %v10991_v53  ;;  %v2976_v43 = vshrl.u32 %v10991_v53, 16  ;;  %v3004_v2 = vand.u32 65535, %v10997_v39  ;;  %v3005_v18 = vshrl.u32 %v10997_v39, 16  ;;  %v3614_v3 = vpop.f32.mrf.mxu3 }
 0x369   : > { %v2939_v17 = vmul.u32 24, %v2938_v40  ;;  %v2120_v13 = vmax.f32 %v2088_v38, 0.0  ;;  %v3518_v51 = vadd.f32 %v3517_v22, %v10245_v16  ;;  %v2965_v35 = vadd.s32 %v2964_v45, %v2954_v20  ;;  %v1975_v59 = vpop.f32.mrf.mxu0  ;;  %v11023_v20 = vld [vmem:[%s8515_s10 + $0x16a] sm:$0xff]  ;;  %v11026_v45 = vld [vmem:[%s8515_s10 + $0x181] sm:$0xff] }
 0x36a   : > { %v2978_v27 = vmul.u32 43691, %v2975_v57  ;;  %v11011_v40 = vmul.u32 43690, %v2975_v57  ;;  %v11013_v28 = vmul.u32 43691, %v2976_v43  ;;  %v2981_v25 = vmul.u32 43690, %v2976_v43  ;;  %v11020_v16 = vpop.f32.mrf.mxu1  ;;  %13548 = vst [vmem:[#allocation42_spill] sm:$0xff] %v11023_v20 }
 0x36b   : > { %v2940_v52 = vsub.s32 %v10885_v0, %v2939_v17  ;;  %v3305_v46 = vsel %vm11000_vm15, %v2120_v13, 0.0  ;;  %v11017_v32 = vadd.f32 %v3614_v3, %v3518_v51  ;;  %v2019_v38 = vadd.f32 %v1975_v59, %v10370_v58  ;;  %v4234_v17 = vld [vmem:[#allocation6 + $0x410] sm:$0xff]  ;;  %4068 = vmatmul.f32.gmra.mxu0 %v4000_v23  ;;  %v5020_v3 = vld [vmem:[#allocation8 + $0x18] sm:$0xff] }
 0x36c   : > { %v2966_v0 = vadd.s32 %v2965_v35, %v2956_v37  ;;  %3337 = vst [vmem:[#allocation2 + $0xe8] sm:$0xff] %v3305_v46  ;;  %v2982_v22 = vshll.u32 %v11011_v40, 16  ;;  %3842 = vmatmul.f32.gmra.mxu2 %v10908_v11  ;;  %v2983_v13 = vshrl.u32 %v11011_v40, 16  ;;  %v2984_v37 = vshll.u32 %v11013_v28, 16  ;;  %v5068_v51 = vld [vmem:[#allocation8 + $0x90] sm:$0xff]  ;;  %4181 = vmatmul.f32.gmra.mxu1 %v11026_v45  ;;  %v5344_v11 = vld [vmem:[#allocation8 + $0x118] sm:$0xff] }
 0x36d   : > { %vm3114_vm0 = vcmp.ne.s32.totalorder %v2940_v52, 0  ;;  %vm3146_vm1 = vcmp.lt.s32.totalorder %v2940_v52, 0  ;;  %v3210_v57 = vadd.s32 24, %v2940_v52  ;;  %v2054_v41 = vmul.f32 %v10790_v63, %v2019_v38  ;;  %3955 = vmatmul.f32.gmra.mxu3 %v11023_v20  ;;  %4261 = vmatpush.msrb.mxu2 %v4234_v17 }
 0x36e   : > { %vm11030_vm2 = vmand %vm3146_vm1, %vm3114_vm0  ;;  %v2967_v58 = vshrl.u32 %v2966_v0, 4  ;;  %v2985_v59 = vshrl.u32 %v11013_v28, 16  ;;  %vm2986_vm3 = vc.u32 %v2978_v27, %v2982_v22  ;;  %v2988_v46 = vadd.s32 %v2982_v22, %v2978_v27  ;;  %5095 = vmatpush.msrb.mxu3 %v5068_v51  ;;  %5207 = vmatpush.msra.mxu0 %v5020_v3  ;;  %v13553_v22 = vld [vmem:[#allocation49_spill] sm:$0xff] }
 0x36f   : > { %v3242_v35 = vsel %vm11030_vm2, %v3210_v57, %v2940_v52  ;;  %v2089_v23 = vadd.f32 %v10803_v55, %v2054_v41  ;;  %v2987_v0 = vsel %vm2986_vm3, 1, %v13368_v9  ;;  %v3520_v52 = vpop.f32.mrf.mxu2  ;;  %v3007_v43 = vmul.u32 43691, %v3004_v2  ;;  %5369 = vmatpush.msrb.mxu1 %v5344_v11  ;;  %v4001_v51 = vld [vmem:[%s8515_s10 + $0x188] sm:$0xff] }
 0x370   : > { %vm11043_vm4 = vcmp.lt.s32.totalorder %v3242_v35, 16  ;;  %v2968_v38 = vmul.u32 24, %v2967_v58  ;;  %v2989_v57 = vadd.s32 %v2987_v0, %v2981_v25  ;;  %vm2990_vm5 = vc.u32 %v2988_v46, %v2984_v37  ;;  %v3617_v35 = vpop.f32.mrf.mxu3 }
 0x371   : > { %v11048_v28 = vmul.u32 43690, %v3004_v2  ;;  %v2121_v27 = vmax.f32 %v2089_v23, 0.0  ;;  %v3521_v41 = vadd.f32 %v3520_v52, %v13553_v22  ;;  %v2991_v20 = vsel %vm2990_vm5, 1, %v13368_v9  ;;  %v1978_v17 = vpop.f32.mrf.mxu0 }
 0x372   : > { %v2969_v58 = vsub.s32 %v10920_v29, %v2968_v38  ;;  %v2993_v47 = vadd.s32 %v2991_v20, %v2989_v57  ;;  %v11054_v25 = vmul.u32 43691, %v3005_v18  ;;  %v3010_v37 = vmul.u32 43690, %v3005_v18  ;;  %v11062_v23 = vpop.f32.mrf.mxu1  ;;  %v11065_v29 = vld [vmem:[%s8515_s10 + $0x172] sm:$0xff]  ;;  %v11068_v38 = vld [vmem:[%s8515_s10 + $0x189] sm:$0xff] }
 0x373   : > { %v3011_v2 = vshll.u32 %v11048_v28, 16  ;;  %v3306_v3 = vsel %vm11043_vm4, %v2121_v27, 0.0  ;;  %v11059_v46 = vadd.f32 %v3617_v35, %v3521_v41  ;;  %v2020_v11 = vadd.f32 %v1978_v17, %v10409_v4  ;;  %13554 = vst [vmem:[#allocation43_spill] sm:$0xff] %v11065_v29  ;;  %4071 = vmatmul.f32.gmra.mxu0 %v4001_v51  ;;  %v4233_v35 = vld [vmem:[#allocation6 + $0x408] sm:$0xff]  ;;  %v5019_v51 = vld [vmem:[#allocation8 + $0x10] sm:$0xff] }
 0x374   : > { %vm3115_vm6 = vcmp.ne.s32.totalorder %v2969_v58, 0  ;;  %3338 = vst [vmem:[#allocation2 + $0xf0] sm:$0xff] %v3306_v3  ;;  %vm3147_vm7 = vcmp.lt.s32.totalorder %v2969_v58, 0  ;;  %v3211_v20 = vadd.s32 24, %v2969_v58  ;;  %v2994_v18 = vadd.s32 %v2993_v47, %v2983_v13  ;;  %3845 = vmatmul.f32.gmra.mxu2 %v10944_v6  ;;  %4184 = vmatmul.f32.gmra.mxu1 %v11068_v38  ;;  %v5067_v17 = vld [vmem:[#allocation8 + $0x88] sm:$0xff] }
 0x375   : > { %v2055_v0 = vmul.f32 %v10790_v63, %v2020_v11  ;;  %vm11071_vm8 = vmand %vm3147_vm7, %vm3115_vm6  ;;  %v3013_v4 = vshll.u32 %v11054_v25, 16  ;;  %vm3015_vm9 = vc.u32 %v3007_v43, %v3011_v2  ;;  %3958 = vmatmul.f32.gmra.mxu3 %v11065_v29  ;;  %v3017_v57 = vadd.s32 %v3011_v2, %v3007_v43  ;;  %4262 = vmatpush.msrb.mxu2 %v4233_v35  ;;  %v5343_v43 = vld [vmem:[#allocation8 + $0x110] sm:$0xff] }
 0x376   : > { %v3243_v52 = vsel %vm11071_vm8, %v3211_v20, %v2969_v58  ;;  %v2995_v47 = vadd.s32 %v2994_v18, %v2985_v59  ;;  %v3016_v13 = vsel %vm3015_vm9, 1, %v13368_v9  ;;  %v3012_v22 = vshrl.u32 %v11048_v28, 16  ;;  %5096 = vmatpush.msrb.mxu3 %v5067_v17  ;;  %5208 = vmatpush.msra.mxu0 %v5019_v51  ;;  %v11108_v17 = vld [vmem:[%s8515_s10 + $0x17a] sm:$0xff]  ;;  %v11111_v51 = vld [vmem:[%s8515_s10 + $0x191] sm:$0xff] }
 0x377   : > { %v2090_v27 = vadd.f32 %v10803_v55, %v2055_v0  ;;  %v3018_v6 = vadd.s32 %v3016_v13, %v3010_v37  ;;  %v11085_v41 = vadd.s32 240, %v9436_v33  ;;  %vm11087_vm10 = vcmp.lt.s32.totalorder %v3243_v52, 16  ;;  %v3523_v3 = vpop.f32.mrf.mxu2  ;;  %5370 = vmatpush.msrb.mxu1 %v5343_v43  ;;  %13560 = vst [vmem:[#allocation45_spill] sm:$0xff] %v11108_v17  ;;  %v5018_v43 = vld [vmem:[#allocation8 + $0x8] sm:$0xff] }
 0x378   : > { %v2996_v59 = vshrl.u32 %v2995_v47, 4  ;;  %vm3019_vm11 = vc.u32 %v3017_v57, %v3013_v4  ;;  %v11092_v28 = vadd.s32 248, %v9436_v33  ;;  %v3524_v2 = vadd.f32 %v3523_v3, %v10373_v24  ;;  %v3620_v11 = vpop.f32.mrf.mxu3  ;;  %v4002_v4 = vld [vmem:[%s8515_s10 + $0x190] sm:$0xff]  ;;  %v5550_v33 = vld [vmem:[#allocation8 + $0x1f8] sm:$0xff]  ;;  %5209 = vmatpush.msra.mxu0 %v5018_v43 }
 0x379   : > { %v2122_v37 = vmax.f32 %v2090_v27, 0.0  ;;  %v3020_v20 = vsel %vm3019_vm11, 1, %v13368_v9  ;;  %v3033_v18 = vand.u32 65535, %v11085_v41  ;;  %v1981_v0 = vpop.f32.mrf.mxu0  ;;  %v3014_v52 = vshrl.u32 %v11054_v25, 16 }
 0x37a   : > { %v2997_v40 = vmul.u32 24, %v2996_v59  ;;  %v3022_v47 = vadd.s32 %v3020_v20, %v3018_v6  ;;  %v3034_v13 = vshrl.u32 %v11085_v41, 16  ;;  %v11102_v57 = vadd.f32 %v3620_v11, %v3524_v2  ;;  %v11105_v35 = vpop.f32.mrf.mxu1  ;;  %v4232_v20 = vld [vmem:[#allocation6 + $0x400] sm:$0xff] }
 0x37b   : > { %v3307_v24 = vsel %vm11087_vm10, %v2122_v37, 0.0  ;;  %v2021_v27 = vadd.f32 %v1981_v0, %v10466_v26  ;;  %13559 = vst [vmem:[#allocation44_spill] sm:$0xff] %v11105_v35  ;;  %v3062_v3 = vand.u32 65535, %v11092_v28  ;;  %v11115_v59 = vmul.u32 43690, %v3033_v18  ;;  %4074 = vmatmul.f32.gmra.mxu0 %v4002_v4  ;;  %v5066_v0 = vld [vmem:[#allocation8 + $0x80] sm:$0xff]  ;;  %4263 = vmatpush.msrb.mxu2 %v4232_v20  ;;  %v5744_v35 = vld [vmem:[#allocation8 + $0x278] sm:$0xff] }
 0x37c   : > { %3339 = vst [vmem:[#allocation2 + $0xf8] sm:$0xff] %v3307_v24  ;;  %v2998_v25 = vsub.s32 %v10991_v53, %v2997_v40  ;;  %v3023_v6 = vadd.s32 %v3022_v47, %v3012_v22  ;;  %v11117_v58 = vmul.u32 43691, %v3034_v13  ;;  %3848 = vmatmul.f32.gmra.mxu2 %v10983_v54  ;;  %v3036_v26 = vmul.u32 43691, %v3033_v18  ;;  %v5342_v24 = vld [vmem:[#allocation8 + $0x108] sm:$0xff]  ;;  %4187 = vmatmul.f32.gmra.mxu1 %v11111_v51  ;;  %v5017_v40 = vld [vmem:[#allocation8] sm:$0xff] }
 0x37d   : > { %v2056_v37 = vmul.f32 %v10790_v63, %v2021_v27  ;;  %v3039_v2 = vmul.u32 43690, %v3034_v13  ;;  %v3063_v11 = vshrl.u32 %v11092_v28, 16  ;;  %3961 = vmatmul.f32.gmra.mxu3 %v11108_v17  ;;  %v3040_v18 = vshll.u32 %v11115_v59, 16  ;;  %v5341_v27 = vld [vmem:[#allocation8 + $0x100] sm:$0xff]  ;;  %5371 = vmatpush.msrb.mxu1 %v5342_v24 }
 0x37e   : > { %vm3116_vm12 = vcmp.ne.s32.totalorder %v2998_v25, 0  ;;  %vm3148_vm13 = vcmp.lt.s32.totalorder %v2998_v25, 0  ;;  %v3212_v53 = vadd.s32 24, %v2998_v25  ;;  %v3024_v22 = vadd.s32 %v3023_v6, %v3014_v52  ;;  %5097 = vmatpush.msrb.mxu3 %v5066_v0  ;;  %5551 = vmatpush.msra.mxu2 %v5550_v33  ;;  %v4116_v33 = vld [vmem:[%s8515_s10 + $0x199] sm:$0xff] }
 0x37f   : > { %v2091_v47 = vadd.f32 %v10803_v55, %v2056_v37  ;;  %vm11125_vm14 = vmand %vm3148_vm13, %vm3116_vm12  ;;  %v3041_v4 = vshrl.u32 %v11115_v59, 16  ;;  %v3065_v13 = vmul.u32 43691, %v3062_v3  ;;  %v3526_v52 = vpop.f32.mrf.mxu2  ;;  %v3042_v37 = vshll.u32 %v11117_v58, 16  ;;  %5210 = vmatpush.msra.mxu0 %v5017_v40  ;;  %5372 = vmatpush.msrb.mxu1 %v5341_v27 }
 0x380   : > { %v3244_v17 = vsel %vm11125_vm14, %v3212_v53, %v2998_v25  ;;  %v3025_v6 = vshrl.u32 %v3024_v22, 4  ;;  %v11134_v29 = vmul.u32 43690, %v3062_v3  ;;  %v3527_v59 = vadd.f32 %v3526_v52, %v10412_v56  ;;  %v3623_v20 = vpop.f32.mrf.mxu3  ;;  %5745 = vmatpush.msra.mxu3 %v5744_v35  ;;  %v4003_v53 = vld [vmem:[%s8515_s10 + $0x198] sm:$0xff] }
 0x381   : > { %v2123_v15 = vmax.f32 %v2091_v47, 0.0  ;;  %vm3276_vm15 = vcmp.lt.s32.totalorder %v3244_v17, 16  ;;  %vm3044_vm0 = vc.u32 %v3036_v26, %v3040_v18  ;;  %v1984_v25 = vpop.f32.mrf.mxu0  ;;  %v3046_v3 = vadd.s32 %v3040_v18, %v3036_v26  ;;  %v11147_v47 = vld [vmem:[%s8515_s10 + $0x182] sm:$0xff] }
 0x382   : > { %v3026_v0 = vmul.u32 24, %v3025_v6  ;;  %v3045_v22 = vsel %vm3044_vm0, 1, %v13368_v9  ;;  %v11139_v54 = vmul.u32 43691, %v3063_v11  ;;  %v11141_v17 = vadd.f32 %v3623_v20, %v3527_v59  ;;  %v11144_v24 = vpop.f32.mrf.mxu1 }
 0x383   : > { %v3308_v43 = vsel %vm3276_vm15, %v2123_v15, 0.0  ;;  %v2022_v56 = vadd.f32 %v1984_v25, %v10521_v7  ;;  %v3047_v35 = vadd.s32 %v3045_v22, %v3039_v2  ;;  %v3043_v26 = vshrl.u32 %v11117_v58, 16  ;;  %4077 = vmatmul.f32.gmra.mxu0 %v4003_v53  ;;  %v5549_v58 = vld [vmem:[#allocation8 + $0x1f0] sm:$0xff] }
 0x384   : > { %3340 = vst [vmem:[#allocation2 + $0x100] sm:$0xff] %v3308_v43  ;;  %v3027_v52 = vsub.s32 %v10997_v39, %v3026_v0  ;;  %vm3048_vm1 = vc.u32 %v3046_v3, %v3042_v37  ;;  %v3069_v40 = vshll.u32 %v11134_v29, 16  ;;  %3851 = vmatmul.f32.gmra.mxu2 %v11026_v45  ;;  %v3068_v18 = vmul.u32 43690, %v3063_v11  ;;  %4190 = vmatmul.f32.gmra.mxu1 %v4116_v33  ;;  %v5938_v45 = vld [vmem:[#allocation8 + $0x2f8] sm:$0xff] }
 0x385   : > { %v2057_v15 = vmul.f32 %v10790_v63, %v2022_v56  ;;  %v3049_v7 = vsel %vm3048_vm1, 1, %v13368_v9  ;;  %v3071_v27 = vshll.u32 %v11139_v54, 16  ;;  %3964 = vmatmul.f32.gmra.mxu3 %v11147_v47  ;;  %5552 = vmatpush.msra.mxu2 %v5549_v58  ;;  %v4004_v43 = vld [vmem:[%s8515_s10 + $0x1a0] sm:$0xff] }
 0x386   : > { %vm3117_vm2 = vcmp.ne.s32.totalorder %v3027_v52, 0  ;;  %vm3149_vm3 = vcmp.lt.s32.totalorder %v3027_v52, 0  ;;  %v3213_v2 = vadd.s32 24, %v3027_v52  ;;  %v3051_v39 = vadd.s32 %v3049_v7, %v3047_v35  ;;  %5939 = vmatpush.msrb.mxu0 %v5938_v45  ;;  %v5743_v58 = vld [vmem:[#allocation8 + $0x270] sm:$0xff] }
 0x387   : > { %v2092_v6 = vadd.f32 %v10803_v55, %v2057_v15  ;;  %vm3181_vm4 = vmand %vm3149_vm3, %vm3117_vm2  ;;  %vm3073_vm5 = vc.u32 %v3065_v13, %v3069_v40  ;;  %v3075_v63 = vadd.s32 %v3069_v40, %v3065_v13  ;;  %v3529_v11 = vpop.f32.mrf.mxu2  ;;  %v3070_v13 = vshrl.u32 %v11134_v29, 16  ;;  %v4117_v40 = vld [vmem:[%s8515_s10 + $0x1a1] sm:$0xff]  ;;  %v11177_v29 = vld [vmem:[%s13219_s2] ss:$0 sm:$0xff]  ;;  %5746 = vmatpush.msra.mxu3 %v5743_v58 }
 0x388   : > { %v3245_v37 = vsel %vm3181_vm4, %v3213_v2, %v3027_v52  ;;  %v3052_v59 = vadd.s32 %v3051_v39, %v3041_v4  ;;  %v3074_v20 = vsel %vm3073_vm5, 1, %v13368_v9  ;;  %v3530_v0 = vadd.f32 %v3529_v11, %v10469_v1  ;;  %v3626_v53 = vpop.f32.mrf.mxu3  ;;  %v11169_v52 = vld [vmem:[%s8515_s10 + $0x18a] sm:$0xff] }
 0x389   : > { %v2124_v25 = vmax.f32 %v2092_v6, 0.0  ;;  %vm3277_vm6 = vcmp.lt.s32.totalorder %v3245_v37, 16  ;;  %v3076_v55 = vadd.s32 %v3074_v20, %v3068_v18  ;;  %v1987_v22 = vpop.f32.mrf.mxu0  ;;  %vm3077_vm7 = vc.u32 %v3075_v63, %v3071_v27  ;;  %v5548_v39 = vld [vmem:[#allocation8 + $0x1e8] sm:$0xff] }
 0x38a   : > { %v3053_v3 = vadd.s32 %v3052_v59, %v3043_v26  ;;  %v11163_v33 = vadd.f32 %v3626_v53, %v3530_v0  ;;  %v2023_v4 = vadd.f32 %v1987_v22, %v10565_v60  ;;  %v11166_v35 = vpop.f32.mrf.mxu1  ;;  %v3078_v1 = vsel %vm3077_vm7, 1, %v13368_v9  ;;  %v6132_v60 = vld [vmem:[#allocation8 + $0x378] sm:$0xff]  ;;  %5553 = vmatpush.msra.mxu2 %v5548_v39 }
 0x38b   : > { %v3309_v56 = vsel %vm3277_vm6, %v2124_v25, 0.0  ;;  %v3072_v26 = vshrl.u32 %v11139_v54, 16  ;;  %v3080_v7 = vadd.s32 %v3078_v1, %v3076_v55  ;;  %4080 = vmatmul.f32.gmra.mxu0 %v4004_v43  ;;  %v11185_v54 = vld [vmem:[%s13220_s3] ss:$0 sm:$0xff]  ;;  %6133 = vmatpush.msra.mxu1 %v6132_v60  ;;  %v11191_v37 = vadd.f32 %v10862_v30, %v10897_v50  ;;  %v4005_v55 = vld [vmem:[%s8515_s10 + $0x1a8] sm:$0xff] }
 0x38c   : > { %3341 = vst [vmem:[#allocation2 + $0x108] sm:$0xff] %v3309_v56  ;;  %v3054_v15 = vshrl.u32 %v3053_v3, 4  ;;  %v2058_v18 = vmul.f32 %v11177_v29, %v2023_v4  ;;  %3854 = vmatmul.f32.gmra.mxu2 %v11068_v38  ;;  %4193 = vmatmul.f32.gmra.mxu1 %v4117_v40  ;;  %v11201_v43 = vld [vmem:[%s8515_s10 + $0x192] sm:$0xff]  ;;  %v4118_v30 = vld [vmem:[%s8515_s10 + $0x1a9] sm:$0xff] }
 0x38d   : > { %3967 = vmatmul.f32.gmra.mxu3 %v11169_v52  ;;  %v3081_v2 = vadd.s32 %v3080_v7, %v3070_v13  ;;  %v5937_v40 = vld [vmem:[#allocation8 + $0x2f0] sm:$0xff] }
 0x38e   : > { %v3055_v27 = vmul.u32 24, %v3054_v15  ;;  %v2093_v6 = vadd.f32 %v11185_v54, %v2058_v18  ;;  %5940 = vmatpush.msrb.mxu0 %v5937_v40  ;;  %v4985_v39 = vld [vmem:[#allocation2 + $0x7] sm:$0xff] }
 0x38f   : > { %v3532_v63 = vpop.f32.mrf.mxu2  ;;  %v3082_v45 = vadd.s32 %v3081_v2, %v3072_v26  ;;  %v4216_v2 = vld [vmem:[%s8515_s10 + $0x132] sm:$0xff] }
 0x390   : > { %v3056_v38 = vsub.s32 %v11085_v41, %v3055_v27  ;;  %v2125_v11 = vmax.f32 %v2093_v6, 0.0  ;;  %v3533_v59 = vadd.f32 %v3532_v63, %v10524_v62  ;;  %v3629_v20 = vpop.f32.mrf.mxu3 }
 0x391   : > { %v1990_v0 = vpop.f32.mrf.mxu0  ;;  %v3083_v53 = vshrl.u32 %v3082_v45, 4  ;;  %v5742_v45 = vld [vmem:[#allocation8 + $0x268] sm:$0xff] }
 0x392   : > { %vm3118_vm8 = vcmp.ne.s32.totalorder %v3056_v38, 0  ;;  %vm3150_vm9 = vcmp.lt.s32.totalorder %v3056_v38, 0  ;;  %v3214_v25 = vadd.s32 24, %v3056_v38  ;;  %v11195_v41 = vadd.f32 %v3629_v20, %v3533_v59  ;;  %v11198_v3 = vpop.f32.mrf.mxu1  ;;  %5747 = vmatpush.msra.mxu3 %v5742_v45 }
 0x393   : > { %vm3182_vm10 = vmand %vm3150_vm9, %vm3118_vm8  ;;  %v2024_v22 = vadd.f32 %v1990_v0, %v10609_v49  ;;  %v3084_v13 = vmul.u32 24, %v3083_v53  ;;  %4083 = vmatmul.f32.gmra.mxu0 %v4005_v55  ;;  %v5547_v49 = vld [vmem:[#allocation8 + $0x1e0] sm:$0xff]  ;;  %v11223_v20 = vadd.f32 %v10940_v36, %v10974_v19  ;;  %v4217_v55 = vld [vmem:[%s8515_s10 + $0x13a] sm:$0xff]  ;;  %v3749_v36 = vadd.f32 %v10651_v61, %v10691_v42 }
 0x394   : > { %v3246_v50 = vsel %vm3182_vm10, %v3214_v25, %v3056_v38  ;;  %3857 = vmatmul.f32.gmra.mxu2 %v11111_v51  ;;  %4196 = vmatmul.f32.gmra.mxu1 %v4118_v30  ;;  %v11211_v51 = vadd.f32 %v10904_v21, %v10937_v48  ;;  %v5308_v38 = vld [vmem:[#allocation2 + $0x9] sm:$0xff]  ;;  %v6131_v21 = vld [vmem:[#allocation8 + $0x370] sm:$0xff]  ;;  %v6130_v42 = vld [vmem:[#allocation8 + $0x368] sm:$0xff] }
 0x395   : > { %vm3278_vm11 = vcmp.lt.s32.totalorder %v3246_v50, 16  ;;  %v2059_v62 = vmul.f32 %v11177_v29, %v2024_v22  ;;  %v3085_v4 = vsub.s32 %v11092_v28, %v3084_v13  ;;  %3970 = vmatmul.f32.gmra.mxu3 %v11201_v43  ;;  %5554 = vmatpush.msra.mxu2 %v5547_v49  ;;  %v8188_v48 = vld [vmem:[#allocation2 + $0x8] sm:$0xff]  ;;  %v5309_v13 = vld [vmem:[#allocation2 + $0x11] sm:$0xff]  ;;  %v5310_v61 = vld [vmem:[#allocation2 + $0x19] sm:$0xff] }
 0x396   : > { %v3310_v56 = vsel %vm3278_vm11, %v2125_v11, 0.0  ;;  %v3748_v11 = vadd.f32 %v10612_v44, %v10648_v10  ;;  %6134 = vmatpush.msra.mxu1 %v6131_v21  ;;  %v4986_v22 = vld [vmem:[#allocation2 + $0xf] sm:$0xff]  ;;  %v5545_v44 = vld [vmem:[#allocation8 + $0x1d0] sm:$0xff]  ;;  %v5936_v10 = vld [vmem:[#allocation8 + $0x2e8] sm:$0xff] }
 0x397   : > { %3342 = vst [vmem:[#allocation2 + $0x110] sm:$0xff] %v3310_v56  ;;  %v2094_v1 = vadd.f32 %v11185_v54, %v2059_v62  ;;  %vm3119_vm12 = vcmp.ne.s32.totalorder %v3085_v4, 0  ;;  %vm3151_vm13 = vcmp.lt.s32.totalorder %v3085_v4, 0  ;;  %v3215_v15 = vadd.s32 24, %v3085_v4  ;;  %v3535_v26 = vpop.f32.mrf.mxu2  ;;  %5941 = vmatpush.msrb.mxu0 %v5936_v10 }
 0x398   : > { %vm3183_vm14 = vmand %vm3151_vm13, %vm3119_vm12  ;;  %v3536_v7 = vadd.f32 %v3535_v26, %v10568_v12  ;;  %v3632_v18 = vpop.f32.mrf.mxu3  ;;  %v5546_v12 = vld [vmem:[#allocation8 + $0x1d8] sm:$0xff]  ;;  %v11234_v56 = vadd.f32 %v10977_v5, %v11017_v32  ;;  %v5741_v5 = vld [vmem:[#allocation8 + $0x260] sm:$0xff]  ;;  %v3750_v32 = vadd.f32 %v10694_v14, %v10731_v31  ;;  %6135 = vmatpush.msra.mxu1 %v6130_v42 }
 0x399   : > { %v2126_v28 = vmax.f32 %v2094_v1, 0.0  ;;  %v3247_v60 = vsel %vm3183_vm14, %v3215_v15, %v3085_v4  ;;  %v4039_v27 = vpop.f32.mrf.mxu0  ;;  %5555 = vmatpush.msra.mxu2 %v5546_v12  ;;  %v4218_v1 = vld [vmem:[%s8515_s10 + $0x142] sm:$0xff]  ;;  %v4987_v15 = vld [vmem:[#allocation2 + $0x17] sm:$0xff]  ;;  %5748 = vmatpush.msra.mxu3 %v5741_v5 }
 0x39a   : > { %vm3279_vm15 = vcmp.lt.s32.totalorder %v3247_v60, 16  ;;  %v11215_v58 = vadd.f32 %v3632_v18, %v3536_v7  ;;  %v11217_v6 = vpop.f32.mrf.mxu1  ;;  %v5544_v18 = vld [vmem:[#allocation8 + $0x1c8] sm:$0xff]  ;;  %v5036_v14 = vld [vmem:[#allocation2 + $0x20] sm:$0xff] }
 0x39b   : > { %v3311_v63 = vsel %vm3279_vm15, %v2126_v28, 0.0  ;;  %5211 = vmatmul.f32.vlgmr.msra.gmra.mxu0 %v4985_v39  ;;  %5556 = vmatpush.msra.mxu2 %v5545_v44  ;;  %v11250_v12 = vld [vmem:[#allocation2 + $0x1f] sm:$0xff]  ;;  %v11264_v44 = vld [vmem:[#allocation2 + $0x27] sm:$0xff] }
 0x39c   : > { %3343 = vst [vmem:[#allocation2 + $0x118] sm:$0xff] %v3311_v63  ;;  %4264 = vmatmul.f32.vlgmr.msrb.gmra.mxu2 %v4216_v2  ;;  %5373 = vmatmul.f32.vlgmr.msrb.gmra.mxu1 %v5308_v38  ;;  %v4219_v63 = vld [vmem:[%s8515_s10 + $0x14a] sm:$0xff]  ;;  %v5311_v31 = vld [vmem:[#allocation2 + $0x21] sm:$0xff] }
 0x39d   : > { %5098 = vmatmul.f32.vlgmr.msrb.gmra.mxu3 %v8188_v48  ;;  %5557 = vmatpush.msra.mxu2 %v5544_v18  ;;  %v4221_v18 = vld [vmem:[%s8515_s10 + $0x15a] sm:$0xff] }
 0x39f   : > { %v3813_v59 = vpop.f32.mrf.mxu2 }
 0x3a0   : > { %v3861_v25 = vadd.f32 %v3813_v59, %v3748_v11  ;;  %v3926_v0 = vpop.f32.mrf.mxu3  ;;  %v3751_v11 = vadd.f32 %v10734_v34, %v10773_v8  ;;  %v5037_v34 = vld [vmem:[#allocation2 + $0x28] sm:$0xff] }
 0x3a1   : > { %v4042_v53 = vpop.f32.mrf.mxu0  ;;  %v5312_v8 = vld [vmem:[#allocation2 + $0x29] sm:$0xff] }
 0x3a2   : > { %v3974_v30 = vadd.f32 %v3926_v0, %v3861_v25  ;;  %v11226_v50 = vpop.f32.mrf.mxu1  ;;  %v11259_v25 = vadd.f32 %v11062_v23, %v11102_v57  ;;  %v5542_v23 = vld [vmem:[#allocation8 + $0x1b8] sm:$0xff] }
 0x3a3   : > { %5214 = vmatmul.f32.gmra.mxu0 %v4986_v22  ;;  %v4220_v22 = vld [vmem:[%s8515_s10 + $0x152] sm:$0xff]  ;;  %v5740_v57 = vld [vmem:[#allocation8 + $0x258] sm:$0xff] }
 0x3a4   : > { %v11228_v62 = vadd.f32 %v4039_v27, %v3974_v30  ;;  %4267 = vmatmul.f32.gmra.mxu2 %v4217_v55  ;;  %5376 = vmatmul.f32.gmra.mxu1 %v5309_v13  ;;  %v11245_v27 = vadd.f32 %v11020_v16, %v11059_v46  ;;  %v5543_v16 = vld [vmem:[#allocation8 + $0x1c0] sm:$0xff] }
 0x3a5   : > { %5101 = vmatmul.f32.gmra.mxu3 %v8188_v48  ;;  %v5935_v46 = vld [vmem:[#allocation8 + $0x2e0] sm:$0xff]  ;;  %5558 = vmatpush.msra.mxu2 %v5543_v16 }
 0x3a6   : > { %5942 = vmatpush.msrb.mxu0 %v5935_v46  ;;  %5749 = vmatpush.msra.mxu3 %v5740_v57  ;;  %v11287_v46 = vadd.f32 %v11144_v24, %v11163_v33  ;;  %v5540_v24 = vld [vmem:[#allocation8 + $0x1a8] sm:$0xff]  ;;  %v5739_v33 = vld [vmem:[#allocation8 + $0x250] sm:$0xff] }
 0x3a7   : > { %v3816_v19 = vpop.f32.mrf.mxu2  ;;  %5559 = vmatpush.msra.mxu2 %v5542_v23  ;;  %v6128_v23 = vld [vmem:[#allocation8 + $0x358] sm:$0xff] }
 0x3a8   : > { %v3862_v4 = vadd.f32 %v3816_v19, %v3749_v36  ;;  %v3929_v49 = vpop.f32.mrf.mxu3  ;;  %v6129_v36 = vld [vmem:[#allocation8 + $0x360] sm:$0xff]  ;;  %v13563_v19 = vld [vmem:[#allocation35_spill] sm:$0xff]  ;;  %5750 = vmatpush.msra.mxu3 %v5739_v33 }
 0x3a9   : > { %v4045_v40 = vpop.f32.mrf.mxu0  ;;  %6136 = vmatpush.msra.mxu1 %v6129_v36  ;;  %v5314_v36 = vld [vmem:[#allocation2 + $0x39] sm:$0xff] }
 0x3aa   : > { %v3975_v26 = vadd.f32 %v3929_v49, %v3862_v4  ;;  %v11237_v28 = vpop.f32.mrf.mxu1  ;;  %v13564_v4 = vld [vmem:[#allocation40_spill] sm:$0xff] }
 0x3ab   : > { %5217 = vmatmul.f32.gmra.mxu0 %v4987_v15  ;;  %v3752_v49 = vadd.f32 %v13564_v4, %v13563_v19  ;;  %6137 = vmatpush.msra.mxu1 %v6128_v23  ;;  %v11299_v19 = vadd.f32 %v11166_v35, %v11195_v41  ;;  %v5539_v35 = vld [vmem:[#allocation8 + $0x1a0] sm:$0xff]  ;;  %v5933_v41 = vld [vmem:[#allocation8 + $0x2d0] sm:$0xff] }
 0x3ac   : > { %v11239_v7 = vadd.f32 %v4042_v53, %v3975_v26  ;;  %4270 = vmatmul.f32.gmra.mxu2 %v4218_v1  ;;  %5379 = vmatmul.f32.gmra.mxu1 %v5310_v61  ;;  %v13565_v1 = vld [vmem:[#allocation44_spill] sm:$0xff] }
 0x3ad   : > { %5104 = vmatmul.f32.gmra.mxu3 %v8188_v48  ;;  %v11273_v15 = vadd.f32 %v13565_v1, %v11141_v17  ;;  %v5541_v17 = vld [vmem:[#allocation8 + $0x1b0] sm:$0xff] }
 0x3ae   : > { %5560 = vmatpush.msra.mxu2 %v5541_v17 }
 0x3af   : > { %v3819_v60 = vpop.f32.mrf.mxu2 }
 0x3b0   : > { %v3863_v2 = vadd.f32 %v3819_v60, %v3750_v32  ;;  %v3932_v39 = vpop.f32.mrf.mxu3  ;;  %v11278_v60 = vld [vmem:[#allocation2 + $0x2f] sm:$0xff]  ;;  %5561 = vmatpush.msra.mxu2 %v5540_v24  ;;  %v11326_v24 = vadd.f32 %v11217_v6, %v11228_v62 }
 0x3b1   : > { %v4048_v38 = vpop.f32.mrf.mxu0 }
 0x3b2   : > { %v3976_v21 = vadd.f32 %v3932_v39, %v3863_v2  ;;  %v11248_v48 = vpop.f32.mrf.mxu1  ;;  %v5038_v39 = vld [vmem:[#allocation2 + $0x30] sm:$0xff]  ;;  %5562 = vmatpush.msra.mxu2 %v5539_v35 }
 0x3b3   : > { %5220 = vmatmul.f32.gmra.mxu0 %v11250_v12 }
 0x3b4   : > { %v11252_v45 = vadd.f32 %v4045_v40, %v3976_v21  ;;  %4273 = vmatmul.f32.gmra.mxu2 %v4219_v63  ;;  %5382 = vmatmul.f32.gmra.mxu1 %v5311_v31  ;;  %v5934_v63 = vld [vmem:[#allocation8 + $0x2d8] sm:$0xff] }
 0x3b5   : > { %5107 = vmatmul.f32.gmra.mxu3 %v5036_v14  ;;  %v13566_v21 = vld [vmem:[#allocation37_spill] sm:$0xff]  ;;  %v13567_v14 = vld [vmem:[#allocation52_spill] sm:$0xff]  ;;  %5943 = vmatpush.msrb.mxu0 %v5934_v63 }
 0x3b6   : > { %v3753_v31 = vadd.f32 %v13567_v14, %v13566_v21 }
 0x3b7   : > { %v3822_v59 = vpop.f32.mrf.mxu2  ;;  %5944 = vmatpush.msrb.mxu0 %v5933_v41  ;;  %v11339_v41 = vadd.f32 %v11226_v50, %v11239_v7 }
 0x3b8   : > { %v3864_v0 = vadd.f32 %v3822_v59, %v3751_v11  ;;  %v3935_v53 = vpop.f32.mrf.mxu3 }
 0x3b9   : > { %v4051_v55 = vpop.f32.mrf.mxu0 }
 0x3ba   : > { %v3977_v30 = vadd.f32 %v3935_v53, %v3864_v0  ;;  %v11262_v13 = vpop.f32.mrf.mxu1 }
 0x3bb   : > { %5223 = vmatmul.f32.gmra.mxu0 %v11264_v44 }
 0x3bc   : > { %v11266_v10 = vadd.f32 %v4048_v38, %v3977_v30  ;;  %4276 = vmatmul.f32.gmra.mxu2 %v4220_v22  ;;  %5385 = vmatmul.f32.gmra.mxu1 %v5312_v8  ;;  %v5313_v38 = vld [vmem:[#allocation2 + $0x31] sm:$0xff] }
 0x3bd   : > { %5110 = vmatmul.f32.gmra.mxu3 %v5037_v34  ;;  %v11291_v22 = vld [vmem:[#allocation2 + $0x37] sm:$0xff]  ;;  %v13568_v34 = vld [vmem:[#allocation41_spill] sm:$0xff] }
 0x3be   : > { %v5039_v8 = vld [vmem:[#allocation2 + $0x38] sm:$0xff] }
 0x3bf   : > { %v3825_v40 = vpop.f32.mrf.mxu2 }
 0x3c0   : > { %v3865_v26 = vadd.f32 %v3825_v40, %v3752_v49  ;;  %v3938_v61 = vpop.f32.mrf.mxu3 }
 0x3c1   : > { %v4054_v42 = vpop.f32.mrf.mxu0 }
 0x3c2   : > { %v3978_v5 = vadd.f32 %v3938_v61, %v3865_v26  ;;  %v11276_v32 = vpop.f32.mrf.mxu1  ;;  %v11304_v61 = vld [vmem:[#allocation2 + $0x3f] sm:$0xff] }
 0x3c3   : > { %5226 = vmatmul.f32.gmra.mxu0 %v11278_v60 }
 0x3c4   : > { %v11280_v2 = vadd.f32 %v4051_v55, %v3978_v5  ;;  %4279 = vmatmul.f32.gmra.mxu2 %v4221_v18  ;;  %5388 = vmatmul.f32.gmra.mxu1 %v5313_v38  ;;  %v13569_v18 = vld [vmem:[#allocation42_spill] sm:$0xff]  ;;  %v5040_v5 = vld [vmem:[#allocation2 + $0x40] sm:$0xff]  ;;  %v11312_v38 = vadd.f32 %v11198_v3, %v11215_v58  ;;  %v5538_v3 = vld [vmem:[#allocation8 + $0x198] sm:$0xff] }
 0x3c5   : > { %5113 = vmatmul.f32.gmra.mxu3 %v5038_v39  ;;  %v5315_v39 = vld [vmem:[#allocation2 + $0x41] sm:$0xff]  ;;  %5563 = vmatpush.msra.mxu2 %v5538_v3 }
 0x3c7   : > { %v3828_v16 = vpop.f32.mrf.mxu2 }
 0x3c8   : > { %v3866_v11 = vadd.f32 %v3828_v16, %v3753_v31  ;;  %v3941_v59 = vpop.f32.mrf.mxu3  ;;  %v11317_v16 = vld [vmem:[#allocation2 + $0x47] sm:$0xff] }
 0x3c9   : > { %v4057_v0 = vpop.f32.mrf.mxu0 }
 0x3ca   : > { %v3979_v53 = vadd.f32 %v3941_v59, %v3866_v11  ;;  %v11289_v55 = vpop.f32.mrf.mxu1  ;;  %v13570_v59 = vld [vmem:[#allocation43_spill] sm:$0xff] }
 0x3cb   : > { %5229 = vmatmul.f32.gmra.mxu0 %v11291_v22 }
 0x3cc   : > { %v11293_v30 = vadd.f32 %v4054_v42, %v3979_v53  ;;  %4282 = vmatmul.f32.gmra.mxu2 %v13568_v34  ;;  %5391 = vmatmul.f32.gmra.mxu1 %v5314_v36  ;;  %v5316_v53 = vld [vmem:[#allocation2 + $0x49] sm:$0xff]  ;;  %v6127_v34 = vld [vmem:[#allocation8 + $0x350] sm:$0xff] }
 0x3cd   : > { %5116 = vmatmul.f32.gmra.mxu3 %v5039_v8  ;;  %6138 = vmatpush.msra.mxu1 %v6127_v34 }
 0x3cf   : > { %v3831_v57 = vpop.f32.mrf.mxu2 }
 0x3d0   : > { %v3867_v4 = vadd.f32 %v3831_v57, %v11191_v37  ;;  %v3944_v49 = vpop.f32.mrf.mxu3 }
 0x3d1   : > { %v4060_v40 = vpop.f32.mrf.mxu0 }
 0x3d2   : > { %v3980_v1 = vadd.f32 %v3944_v49, %v3867_v4  ;;  %v11302_v26 = vpop.f32.mrf.mxu1  ;;  %v11330_v4 = vld [vmem:[#allocation2 + $0x4f] sm:$0xff] }
 0x3d3   : > { %5232 = vmatmul.f32.gmra.mxu0 %v11304_v61 }
 0x3d4   : > { %v11306_v42 = vadd.f32 %v4057_v0, %v3980_v1  ;;  %4285 = vmatmul.f32.gmra.mxu2 %v13569_v18  ;;  %5394 = vmatmul.f32.gmra.mxu1 %v5315_v39  ;;  %v5041_v0 = vld [vmem:[#allocation2 + $0x48] sm:$0xff]  ;;  %v5042_v1 = vld [vmem:[#allocation2 + $0x50] sm:$0xff] }
 0x3d5   : > { %5119 = vmatmul.f32.gmra.mxu3 %v5040_v5  ;;  %v5317_v18 = vld [vmem:[#allocation2 + $0x51] sm:$0xff] }
 0x3d6   : > { %v5932_v5 = vld [vmem:[#allocation8 + $0x2c8] sm:$0xff] }
 0x3d7   : > { %v3834_v37 = vpop.f32.mrf.mxu2  ;;  %5945 = vmatpush.msrb.mxu0 %v5932_v5 }
 0x3d8   : > { %v3868_v17 = vadd.f32 %v3834_v37, %v11211_v51  ;;  %v3947_v63 = vpop.f32.mrf.mxu3  ;;  %v5738_v51 = vld [vmem:[#allocation8 + $0x248] sm:$0xff] }
 0x3d9   : > { %v4063_v21 = vpop.f32.mrf.mxu0  ;;  %5751 = vmatpush.msra.mxu3 %v5738_v51 }
 0x3da   : > { %v3981_v14 = vadd.f32 %v3947_v63, %v3868_v17  ;;  %v11315_v31 = vpop.f32.mrf.mxu1  ;;  %v11343_v63 = vld [vmem:[#allocation2 + $0x57] sm:$0xff] }
 0x3db   : > { %5235 = vmatmul.f32.gmra.mxu0 %v11317_v16 }
 0x3dc   : > { %v11319_v11 = vadd.f32 %v4060_v40, %v3981_v14  ;;  %4288 = vmatmul.f32.gmra.mxu2 %v13570_v59  ;;  %5397 = vmatmul.f32.gmra.mxu1 %v5316_v53  ;;  %v13571_v40 = vld [vmem:[#allocation45_spill] sm:$0xff]  ;;  %v5043_v14 = vld [vmem:[#allocation2 + $0x58] sm:$0xff]  ;;  %v5737_v53 = vld [vmem:[#allocation8 + $0x240] sm:$0xff] }
 0x3dd   : > { %5122 = vmatmul.f32.gmra.mxu3 %v5041_v0  ;;  %v5318_v59 = vld [vmem:[#allocation2 + $0x59] sm:$0xff] }
 0x3de   : > { %v5536_v0 = vld [vmem:[#allocation8 + $0x188] sm:$0xff]  ;;  %5752 = vmatpush.msra.mxu3 %v5737_v53 }
 0x3df   : > { %v3837_v58 = vpop.f32.mrf.mxu2 }
 0x3e0   : > { %v3869_v8 = vadd.f32 %v3837_v58, %v11223_v20  ;;  %v3950_v36 = vpop.f32.mrf.mxu3  ;;  %v5537_v20 = vld [vmem:[#allocation8 + $0x190] sm:$0xff] }
 0x3e1   : > { %v4066_v23 = vpop.f32.mrf.mxu0  ;;  %5564 = vmatpush.msra.mxu2 %v5537_v20  ;;  %v11362_v20 = vadd.f32 %v11248_v48, %v11266_v10 }
 0x3e2   : > { %v3982_v33 = vadd.f32 %v3950_v36, %v3869_v8  ;;  %v11328_v57 = vpop.f32.mrf.mxu1  ;;  %v4996_v8 = vld [vmem:[#allocation2 + $0x5f] sm:$0xff] }
 0x3e3   : > { %5238 = vmatmul.f32.gmra.mxu0 %v11330_v4  ;;  %5565 = vmatpush.msra.mxu2 %v5536_v0  ;;  %v4229_v0 = vld [vmem:[%s8515_s10 + $0x19a] sm:$0xff] }
 0x3e4   : > { %v11332_v49 = vadd.f32 %v4063_v21, %v3982_v33  ;;  %4291 = vmatmul.f32.gmra.mxu2 %v13571_v40  ;;  %5400 = vmatmul.f32.gmra.mxu1 %v5317_v18  ;;  %v5319_v33 = vld [vmem:[#allocation2 + $0x61] sm:$0xff]  ;;  %v5931_v40 = vld [vmem:[#allocation8 + $0x2c0] sm:$0xff] }
 0x3e5   : > { %5125 = vmatmul.f32.gmra.mxu3 %v5042_v1  ;;  %5946 = vmatpush.msrb.mxu0 %v5931_v40 }
 0x3e7   : > { %v3840_v6 = vpop.f32.mrf.mxu2 }
 0x3e8   : > { %v3870_v62 = vadd.f32 %v3840_v6, %v11234_v56  ;;  %v3953_v39 = vpop.f32.mrf.mxu3  ;;  %v6126_v56 = vld [vmem:[#allocation8 + $0x348] sm:$0xff]  ;;  %v4997_v6 = vld [vmem:[#allocation2 + $0x67] sm:$0xff] }
 0x3e9   : > { %v4069_v35 = vpop.f32.mrf.mxu0  ;;  %6139 = vmatpush.msra.mxu1 %v6126_v56 }
 0x3ea   : > { %v3983_v37 = vadd.f32 %v3953_v39, %v3870_v62  ;;  %v11341_v17 = vpop.f32.mrf.mxu1  ;;  %v5045_v39 = vld [vmem:[#allocation2 + $0x68] sm:$0xff] }
 0x3eb   : > { %5241 = vmatmul.f32.gmra.mxu0 %v11343_v63 }
 0x3ec   : > { %v11345_v21 = vadd.f32 %v4066_v23, %v3983_v37  ;;  %4294 = vmatmul.f32.gmra.mxu2 %v11147_v47  ;;  %5403 = vmatmul.f32.gmra.mxu1 %v5318_v59  ;;  %v11352_v47 = vadd.f32 %v11237_v28, %v11252_v45  ;;  %v5044_v23 = vld [vmem:[#allocation2 + $0x60] sm:$0xff]  ;;  %v6125_v37 = vld [vmem:[#allocation8 + $0x340] sm:$0xff] }
 0x3ed   : > { %5128 = vmatmul.f32.gmra.mxu3 %v5043_v14  ;;  %v5736_v14 = vld [vmem:[#allocation8 + $0x238] sm:$0xff]  ;;  %6140 = vmatpush.msra.mxu1 %v6125_v37 }
 0x3ee   : > { %5753 = vmatpush.msra.mxu3 %v5736_v14  ;;  %v5322_v14 = vld [vmem:[#allocation2 + $0x79] sm:$0xff] }
 0x3ef   : > { %v3843_v50 = vpop.f32.mrf.mxu2 }
 0x3f0   : > { %v3871_v7 = vadd.f32 %v3843_v50, %v11245_v27  ;;  %v3956_v34 = vpop.f32.mrf.mxu3  ;;  %v5535_v27 = vld [vmem:[#allocation8 + $0x180] sm:$0xff] }
 0x3f1   : > { %v4072_v3 = vpop.f32.mrf.mxu0  ;;  %5566 = vmatpush.msra.mxu2 %v5535_v27 }
 0x3f2   : > { %v3984_v51 = vadd.f32 %v3956_v34, %v3871_v7  ;;  %v11354_v58 = vpop.f32.mrf.mxu1  ;;  %v4998_v7 = vld [vmem:[#allocation2 + $0x6f] sm:$0xff] }
 0x3f3   : > { %5244 = vmatmul.f32.gmra.mxu0 %v4996_v8 }
 0x3f4   : > { %v11356_v36 = vadd.f32 %v4069_v35, %v3984_v51  ;;  %4297 = vmatmul.f32.gmra.mxu2 %v11169_v52  ;;  %5406 = vmatmul.f32.gmra.mxu1 %v5319_v33  ;;  %v5320_v35 = vld [vmem:[#allocation2 + $0x69] sm:$0xff]  ;;  %v5321_v51 = vld [vmem:[#allocation2 + $0x71] sm:$0xff] }
 0x3f5   : > { %5131 = vmatmul.f32.gmra.mxu3 %v5044_v23 }
 0x3f7   : > { %v3846_v1 = vpop.f32.mrf.mxu2 }
 0x3f8   : > { %v3872_v28 = vadd.f32 %v3846_v1, %v11259_v25  ;;  %v3959_v45 = vpop.f32.mrf.mxu3  ;;  %v6326_v25 = vld [vmem:[#allocation8 + $0x3f8] sm:$0xff] }
 0x3f9   : > { %v4075_v18 = vpop.f32.mrf.mxu0  ;;  %6327 = vmatpush.msrb.mxu2 %v6326_v25  ;;  %v4230_v1 = vld [vmem:[%s8515_s10 + $0x1a2] sm:$0xff]  ;;  %v5047_v25 = vld [vmem:[#allocation2 + $0x78] sm:$0xff] }
 0x3fa   : > { %v3985_v5 = vadd.f32 %v3959_v45, %v3872_v28  ;;  %v11364_v52 = vpop.f32.mrf.mxu1  ;;  %v5930_v28 = vld [vmem:[#allocation8 + $0x2b8] sm:$0xff]  ;;  %v11388_v45 = vadd.f32 %v11276_v32, %v11293_v30  ;;  %v13573_v30 = vld [vmem:[#allocation51_spill] sm:$0xff] }
 0x3fb   : > { %5247 = vmatmul.f32.gmra.mxu0 %v4997_v6 }
 0x3fc   : > { %v11366_v62 = vadd.f32 %v4072_v3, %v3985_v5  ;;  %4300 = vmatmul.f32.gmra.mxu2 %v11201_v43  ;;  %5409 = vmatmul.f32.gmra.mxu1 %v5320_v35  ;;  %v11373_v43 = vadd.f32 %v11262_v13, %v11280_v2  ;;  %v5046_v3 = vld [vmem:[#allocation2 + $0x70] sm:$0xff] }
 0x3fd   : > { %5134 = vmatmul.f32.gmra.mxu3 %v5045_v39  ;;  %5947 = vmatpush.msrb.mxu0 %v5930_v28  ;;  %v6124_v28 = vld [vmem:[#allocation8 + $0x338] sm:$0xff] }
 0x3fe   : > { %6141 = vmatpush.msra.mxu1 %v6124_v28 }
 0x3ff   : > { %v3849_v48 = vpop.f32.mrf.mxu2 }
 0x400   : > { %v3873_v10 = vadd.f32 %v3849_v48, %v11273_v15  ;;  %v3962_v59 = vpop.f32.mrf.mxu3  ;;  %v13572_v15 = vld [vmem:[#allocation48_spill] sm:$0xff] }
 0x401   : > { %v4078_v56 = vpop.f32.mrf.mxu0  ;;  %v11380_v8 = vadd.s32 256, %v13572_v15  ;;  %v4231_v15 = vld [vmem:[%s8515_s10 + $0x1aa] sm:$0xff] }
 0x402   : > { %v3986_v53 = vadd.f32 %v3962_v59, %v3873_v10  ;;  %v11375_v50 = vpop.f32.mrf.mxu1 }
 0x403   : > { %5250 = vmatmul.f32.gmra.mxu0 %v4998_v7  ;;  %v4396_v33 = vand.u32 65535, %v11380_v8  ;;  %v4397_v27 = vshrl.u32 %v11380_v8, 16 }
 0x404   : > { %v11377_v34 = vadd.f32 %v4075_v18, %v3986_v53  ;;  %4303 = vmatmul.f32.gmra.mxu2 %v4229_v0  ;;  %5412 = vmatmul.f32.gmra.mxu1 %v5321_v51  ;;  %v11395_v0 = vadd.s32 256, %v13573_v30  ;;  %v5323_v30 = vld [vmem:[#allocation2 + $0x81] sm:$0xff] }
 0x405   : > { %5137 = vmatmul.f32.gmra.mxu3 %v5046_v3  ;;  %v4399_v6 = vmul.u32 43691, %v4396_v33  ;;  %v4400_v39 = vmul.u32 43690, %v4396_v33  ;;  %v4401_v35 = vmul.u32 43691, %v4397_v27  ;;  %v4402_v48 = vmul.u32 43690, %v4397_v27 }
 0x407   : > { %v3852_v23 = vpop.f32.mrf.mxu2  ;;  %v4403_v10 = vshll.u32 %v4400_v39, 16  ;;  %v4405_v59 = vshll.u32 %v4401_v35, 16  ;;  %v4404_v7 = vshrl.u32 %v4400_v39, 16  ;;  %v4406_v33 = vshrl.u32 %v4401_v35, 16  ;;  %v5000_v35 = vld [vmem:[#allocation2 + $0x7f] sm:$0xff] }
 0x408   : > { %v3874_v13 = vadd.f32 %v3852_v23, %v11287_v46  ;;  %v3965_v2 = vpop.f32.mrf.mxu3  ;;  %v4999_v46 = vld [vmem:[#allocation2 + $0x77] sm:$0xff]  ;;  %v11405_v39 = vadd.f32 %v11289_v55, %v11306_v42 }
 0x409   : > { %v4081_v40 = vpop.f32.mrf.mxu0  ;;  %vm4407_vm0 = vc.u32 %v4399_v6, %v4403_v10  ;;  %v4409_v32 = vadd.s32 %v4403_v10, %v4399_v6  ;;  %v5735_v6 = vld [vmem:[#allocation8 + $0x230] sm:$0xff] }
 0x40a   : > { %v3987_v18 = vadd.f32 %v3965_v2, %v3874_v13  ;;  %v11390_v5 = vpop.f32.mrf.mxu1  ;;  %v4425_v13 = vand.u32 65535, %v11395_v0  ;;  %5754 = vmatpush.msra.mxu3 %v5735_v6 }
 0x40b   : > { %5253 = vmatmul.f32.gmra.mxu0 %v4999_v46  ;;  %vm4411_vm1 = vc.u32 %v4409_v32, %v4405_v59  ;;  %v5048_v32 = vld [vmem:[#allocation2 + $0x80] sm:$0xff] }
 0x40c   : > { %v11392_v37 = vadd.f32 %v4078_v56, %v3987_v18  ;;  %4306 = vmatmul.f32.gmra.mxu2 %v4230_v1  ;;  %5415 = vmatmul.f32.gmra.mxu1 %v5322_v14  ;;  %v4408_v56 = vsel %vm4407_vm0, 1, %v13368_v9  ;;  %v4412_v27 = vsel %vm4411_vm1, 1, %v13368_v9  ;;  %v4426_v1 = vshrl.u32 %v11395_v0, 16  ;;  %v6325_v18 = vld [vmem:[#allocation8 + $0x3f0] sm:$0xff] }
 0x40d   : > { %5140 = vmatmul.f32.gmra.mxu3 %v5047_v25  ;;  %v4410_v23 = vadd.s32 %v4408_v56, %v4402_v48  ;;  %v4428_v14 = vmul.u32 43691, %v4425_v13  ;;  %v4429_v48 = vmul.u32 43690, %v4425_v13  ;;  %6328 = vmatpush.msrb.mxu2 %v6325_v18 }
 0x40e   : > { %v4430_v10 = vmul.u32 43691, %v4426_v1  ;;  %v4431_v55 = vmul.u32 43690, %v4426_v1 }
 0x40f   : > { %v3855_v53 = vpop.f32.mrf.mxu2  ;;  %v4414_v25 = vadd.s32 %v4412_v27, %v4410_v23  ;;  %v4432_v42 = vshll.u32 %v4429_v48, 16  ;;  %v13574_v23 = vld [vmem:[#allocation29_spill] sm:$0xff]  ;;  %v4433_v28 = vshrl.u32 %v4429_v48, 16 }
 0x410   : > { %v3875_v3 = vadd.f32 %v3855_v53, %v11299_v19  ;;  %v3968_v51 = vpop.f32.mrf.mxu3  ;;  %v4434_v56 = vshll.u32 %v4430_v10, 16  ;;  %v11412_v13 = vadd.s32 256, %v13574_v23  ;;  %v5049_v23 = vld [vmem:[#allocation2 + $0x88] sm:$0xff] }
 0x411   : > { %v4084_v2 = vpop.f32.mrf.mxu0  ;;  %v4415_v53 = vadd.s32 %v4414_v25, %v4404_v7  ;;  %vm4436_vm2 = vc.u32 %v4428_v14, %v4432_v42 }
 0x412   : > { %v3988_v19 = vadd.f32 %v3968_v51, %v3875_v3  ;;  %v11407_v46 = vpop.f32.mrf.mxu1  ;;  %v4438_v51 = vadd.s32 %v4432_v42, %v4428_v14  ;;  %v4455_v25 = vshrl.u32 %v11412_v13, 16  ;;  %v5929_v14 = vld [vmem:[#allocation8 + $0x2b0] sm:$0xff] }
 0x413   : > { %5256 = vmatmul.f32.gmra.mxu0 %v5000_v35  ;;  %v4416_v3 = vadd.s32 %v4415_v53, %v4406_v33  ;;  %v4454_v33 = vand.u32 65535, %v11412_v13  ;;  %v11421_v35 = vadd.f32 %v11302_v26, %v11319_v11 }
 0x414   : > { %v11409_v59 = vadd.f32 %v4081_v40, %v3988_v19  ;;  %4309 = vmatmul.f32.gmra.mxu2 %v4231_v15  ;;  %5418 = vmatmul.f32.gmra.mxu1 %v5323_v30  ;;  %v4437_v40 = vsel %vm4436_vm2, 1, %v13368_v9  ;;  %vm4440_vm3 = vc.u32 %v4438_v51, %v4434_v56  ;;  %v4435_v30 = vshrl.u32 %v4430_v10, 16 }
 0x415   : > { %5143 = vmatmul.f32.gmra.mxu3 %v5048_v32  ;;  %v4417_v6 = vshrl.u32 %v4416_v3, 4  ;;  %v4439_v7 = vadd.s32 %v4437_v40, %v4431_v55  ;;  %v4441_v19 = vsel %vm4440_vm3, 1, %v13368_v9  ;;  %5948 = vmatpush.msrb.mxu0 %v5929_v14  ;;  %v5001_v55 = vld [vmem:[#allocation2 + $0x87] sm:$0xff]  ;;  %v4457_v42 = vmul.u32 43691, %v4454_v33 }
 0x416   : > { %v4458_v56 = vmul.u32 43690, %v4454_v33  ;;  %v11425_v3 = vmul.u32 43691, %v4455_v25  ;;  %v4460_v10 = vmul.u32 43690, %v4455_v25 }
 0x417   : > { %v3858_v27 = vpop.f32.mrf.mxu2  ;;  %v4443_v53 = vadd.s32 %v4441_v19, %v4439_v7  ;;  %v13577_v19 = vld [vmem:[#allocation25_spill] sm:$0xff] }
 0x418   : > { %v3876_v15 = vadd.f32 %v3858_v27, %v11312_v38  ;;  %v3971_v18 = vpop.f32.mrf.mxu3  ;;  %v4418_v38 = vmul.u32 24, %v4417_v6  ;;  %v5324_v27 = vld [vmem:[#allocation2 + $0x89] sm:$0xff]  ;;  %v4461_v40 = vshll.u32 %v4458_v56, 16  ;;  %v4462_v14 = vshrl.u32 %v4458_v56, 16 }
 0x419   : > { %v5212_v1 = vpop.f32.mrf.mxu0  ;;  %v4444_v11 = vadd.s32 %v4443_v53, %v4433_v28 }
 0x41a   : > { %v3989_v48 = vadd.f32 %v3971_v18, %v3876_v15  ;;  %v11423_v32 = vpop.f32.mrf.mxu1  ;;  %v4419_v26 = vsub.s32 %v11380_v8, %v4418_v38  ;;  %v4463_v15 = vshll.u32 %v11425_v3, 16  ;;  %vm4465_vm7 = vc.u32 %v4457_v42, %v4461_v40 }
 0x41b   : > { %5259 = vmatmul.f32.gmra.mxu0 %v5001_v55  ;;  %v4445_v6 = vadd.s32 %v4444_v11, %v4435_v30  ;;  %v11437_v8 = vadd.s32 256, %v13577_v19 }
 0x41c   : > { %v11427_v51 = vadd.f32 %v4084_v2, %v3989_v48  ;;  %5567 = vmatmul.f32.vlgmr.msra.gmra.mxu2 %v11250_v12  ;;  %5421 = vmatmul.f32.gmra.mxu1 %v5324_v27  ;;  %vm4857_vm4 = vcmp.ne.s32.totalorder %v4419_v26, 0  ;;  %vm4873_vm5 = vcmp.lt.s32.totalorder %v4419_v26, 0  ;;  %v4905_v18 = vadd.s32 24, %v4419_v26  ;;  %v5734_v27 = vld [vmem:[#allocation8 + $0x228] sm:$0xff] }
 0x41d   : > { %5146 = vmatmul.f32.gmra.mxu3 %v5049_v23  ;;  %vm11432_vm6 = vmand %vm4873_vm5, %vm4857_vm4  ;;  %v4467_v12 = vadd.s32 %v4461_v40, %v4457_v42  ;;  %v4446_v25 = vshrl.u32 %v4445_v6, 4  ;;  %v4466_v48 = vsel %vm4465_vm7, 1, %v13368_v9  ;;  %v6123_v23 = vld [vmem:[#allocation8 + $0x330] sm:$0xff]  ;;  %v6324_v42 = vld [vmem:[#allocation8 + $0x3e8] sm:$0xff]  ;;  %v4483_v6 = vand.u32 65535, %v11437_v8 }
 0x41e   : > { %v4921_v38 = vsel %vm11432_vm6, %v4905_v18, %v4419_v26  ;;  %v4468_v55 = vadd.s32 %v4466_v48, %v4460_v10  ;;  %6142 = vmatpush.msra.mxu1 %v6123_v23  ;;  %6329 = vmatpush.msrb.mxu2 %v6324_v42  ;;  %v5002_v26 = vld [vmem:[#allocation2 + $0x8f] sm:$0xff]  ;;  %v4484_v10 = vshrl.u32 %v11437_v8, 16  ;;  %v5326_v48 = vld [vmem:[#allocation2 + $0x99] sm:$0xff] }
 0x41f   : > { %v4265_v2 = vpop.f32.mrf.mxu2  ;;  %vm4469_vm8 = vc.u32 %v4467_v12, %v4463_v15  ;;  %5755 = vmatpush.msra.mxu3 %v5734_v27  ;;  %v11455_v12 = vmul.u32 43690, %v4483_v6  ;;  %vm4937_vm9 = vcmp.lt.s32.totalorder %v4921_v38, 16 }
 0x420   : > { %v4313_v28 = vadd.f32 %v4265_v2, %v11326_v24  ;;  %v5099_v33 = vpop.f32.mrf.mxu3  ;;  %v4447_v24 = vmul.u32 24, %v4446_v25  ;;  %v4470_v56 = vsel %vm4469_vm8, 1, %v13368_v9  ;;  %v5050_v2 = vld [vmem:[#allocation2 + $0x90] sm:$0xff] }
 0x421   : > { %v11443_v30 = vadd.f32 %v5212_v1, %v5099_v33  ;;  %v5215_v53 = vpop.f32.mrf.mxu0  ;;  %v4464_v1 = vshrl.u32 %v11425_v3, 16  ;;  %v4472_v18 = vadd.s32 %v4470_v56, %v4468_v55  ;;  %v4486_v3 = vmul.u32 43691, %v4483_v6  ;;  %v5928_v6 = vld [vmem:[#allocation8 + $0x2a8] sm:$0xff] }
 0x422   : > { %v4329_v11 = vmul.f32 %v11177_v29, %v4313_v28  ;;  %v11446_v40 = vpop.f32.mrf.mxu1  ;;  %v5325_v29 = vld [vmem:[#allocation2 + $0x91] sm:$0xff]  ;;  %v4448_v7 = vsub.s32 %v11395_v0, %v4447_v24  ;;  %v11457_v28 = vmul.u32 43691, %v4484_v10  ;;  %v4489_v0 = vmul.u32 43690, %v4484_v10  ;;  %5949 = vmatpush.msrb.mxu0 %v5928_v6 }
 0x423   : > { %5262 = vmatmul.f32.gmra.mxu0 %v5002_v26  ;;  %v4473_v19 = vadd.s32 %v4472_v18, %v4462_v14  ;;  %v4490_v55 = vshll.u32 %v11455_v12, 16  ;;  %v11473_v26 = vld [vmem:[%s13219_s2] ss:$0 sm:$0xff] }
 0x424   : > { %v4345_v15 = vadd.f32 %v11185_v54, %v4329_v11  ;;  %5570 = vmatmul.f32.gmra.mxu2 %v11264_v44  ;;  %5424 = vmatmul.f32.gmra.mxu1 %v5325_v29  ;;  %vm4858_vm10 = vcmp.ne.s32.totalorder %v4448_v7, 0  ;;  %vm4874_vm11 = vcmp.lt.s32.totalorder %v4448_v7, 0  ;;  %v4906_v54 = vadd.s32 24, %v4448_v7 }
 0x425   : > { %5149 = vmatmul.f32.gmra.mxu3 %v5050_v2  ;;  %vm11459_vm12 = vmand %vm4874_vm11, %vm4858_vm10  ;;  %v4474_v44 = vadd.s32 %v4473_v19, %v4464_v1  ;;  %v4492_v42 = vshll.u32 %v11457_v28, 16  ;;  %vm4494_vm13 = vc.u32 %v4486_v3, %v4490_v55  ;;  %v4496_v10 = vadd.s32 %v4490_v55, %v4486_v3 }
 0x426   : > { %v4361_v33 = vmax.f32 %v4345_v15, 0.0  ;;  %v4922_v27 = vsel %vm11459_vm12, %v4906_v54, %v4448_v7  ;;  %v4495_v18 = vsel %vm4494_vm13, 1, %v13368_v9  ;;  %v13580_v15 = vld [vmem:[#allocation32_spill] sm:$0xff]  ;;  %v4491_v7 = vshrl.u32 %v11455_v12, 16 }
 0x427   : > { %v4268_v25 = vpop.f32.mrf.mxu2  ;;  %v4475_v56 = vshrl.u32 %v4474_v44, 4  ;;  %v11480_v2 = vadd.s32 256, %v13580_v15  ;;  %v4497_v19 = vadd.s32 %v4495_v18, %v4489_v0  ;;  %vm4498_vm14 = vc.u32 %v4496_v10, %v4492_v42 }
 0x428   : > { %v4953_v38 = vsel %vm4937_vm9, %v4361_v33, 0.0  ;;  %v4314_v23 = vadd.f32 %v4268_v25, %v11339_v41  ;;  %v5102_v14 = vpop.f32.mrf.mxu3  ;;  %v11486_v33 = vld [vmem:[%s13220_s3] ss:$0 sm:$0xff]  ;;  %v5051_v25 = vld [vmem:[#allocation2 + $0x98] sm:$0xff]  ;;  %vm4938_vm15 = vcmp.lt.s32.totalorder %v4922_v27, 16  ;;  %v4493_v0 = vshrl.u32 %v11457_v28, 16 }
 0x429   : > { %4969 = vst [vmem:[#allocation2 + $0x120] sm:$0xff] %v4953_v38  ;;  %v11468_v11 = vadd.f32 %v5215_v53, %v5102_v14  ;;  %v5218_v24 = vpop.f32.mrf.mxu0  ;;  %v5003_v53 = vld [vmem:[#allocation2 + $0x97] sm:$0xff]  ;;  %v4476_v29 = vmul.u32 24, %v4475_v56  ;;  %v4512_v3 = vand.u32 65535, %v11480_v2  ;;  %v4513_v44 = vshrl.u32 %v11480_v2, 16 }
 0x42a   : > { %v4330_v41 = vmul.f32 %v11473_v26, %v4314_v23  ;;  %v11476_v1 = vpop.f32.mrf.mxu1  ;;  %v4499_v55 = vsel %vm4498_vm14, 1, %v13368_v9  ;;  %v11506_v10 = vadd.f32 %v11315_v31, %v11332_v49 }
 0x42b   : > { %5265 = vmatmul.f32.gmra.mxu0 %v5003_v53  ;;  %v4477_v12 = vsub.s32 %v11412_v13, %v4476_v29  ;;  %v4501_v23 = vadd.s32 %v4499_v55, %v4497_v19  ;;  %v4515_v14 = vmul.u32 43691, %v4512_v3  ;;  %v11495_v56 = vmul.u32 43690, %v4512_v3 }
 0x42c   : > { %v4346_v54 = vadd.f32 %v11486_v33, %v4330_v41  ;;  %5573 = vmatmul.f32.gmra.mxu2 %v11278_v60  ;;  %5427 = vmatmul.f32.gmra.mxu1 %v5326_v48  ;;  %v11497_v6 = vmul.u32 43691, %v4513_v44  ;;  %v4518_v19 = vmul.u32 43690, %v4513_v44  ;;  %v5733_v48 = vld [vmem:[#allocation8 + $0x220] sm:$0xff]  ;;  %v5004_v44 = vld [vmem:[#allocation2 + $0x9f] sm:$0xff] }
 0x42d   : > { %5152 = vmatmul.f32.gmra.mxu3 %v5051_v25  ;;  %vm4859_vm0 = vcmp.ne.s32.totalorder %v4477_v12, 0  ;;  %vm4875_vm1 = vcmp.lt.s32.totalorder %v4477_v12, 0  ;;  %v4907_v42 = vadd.s32 24, %v4477_v12  ;;  %v4502_v18 = vadd.s32 %v4501_v23, %v4491_v7  ;;  %v6323_v25 = vld [vmem:[#allocation8 + $0x3e0] sm:$0xff] }
 0x42e   : > { %v4362_v38 = vmax.f32 %v4346_v54, 0.0  ;;  %vm11500_vm2 = vmand %vm4875_vm1, %vm4859_vm0  ;;  %v6122_v54 = vld [vmem:[#allocation8 + $0x328] sm:$0xff]  ;;  %v4520_v31 = vshrl.u32 %v11495_v56, 16  ;;  %v4521_v49 = vshll.u32 %v11497_v6, 16  ;;  %6330 = vmatpush.msrb.mxu2 %v6323_v25  ;;  %5756 = vmatpush.msra.mxu3 %v5733_v48 }
 0x42f   : > { %v4271_v60 = vpop.f32.mrf.mxu2  ;;  %v4923_v15 = vsel %vm11500_vm2, %v4907_v42, %v4477_v12  ;;  %v4503_v55 = vadd.s32 %v4502_v18, %v4493_v0  ;;  %6143 = vmatpush.msra.mxu1 %v6122_v54  ;;  %v5052_v0 = vld [vmem:[#allocation2 + $0xa0] sm:$0xff]  ;;  %v13586_v54 = vld [vmem:[#allocation14_spill] sm:$0xff] }
 0x430   : > { %v4954_v27 = vsel %vm4938_vm15, %v4362_v38, 0.0  ;;  %v4315_v41 = vadd.f32 %v4271_v60, %v11352_v47  ;;  %v5105_v28 = vpop.f32.mrf.mxu3  ;;  %v4519_v47 = vshll.u32 %v11495_v56, 16  ;;  %vm11518_vm3 = vcmp.lt.s32.totalorder %v4923_v15, 16  ;;  %v13585_v38 = vld [vmem:[#allocation33_spill] sm:$0xff] }
 0x431   : > { %4970 = vst [vmem:[#allocation2 + $0x128] sm:$0xff] %v4954_v27  ;;  %v11510_v53 = vadd.f32 %v5218_v24, %v5105_v28  ;;  %v5221_v29 = vpop.f32.mrf.mxu0  ;;  %v11523_v23 = vadd.s32 256, %v13585_v38  ;;  %v5327_v56 = vld [vmem:[#allocation2 + $0xa1] sm:$0xff]  ;;  %v4504_v42 = vshrl.u32 %v4503_v55, 4  ;;  %v4522_v27 = vshrl.u32 %v11497_v6, 16 }
 0x432   : > { %v4331_v3 = vmul.f32 %v11473_v26, %v4315_v41  ;;  %v11514_v7 = vpop.f32.mrf.mxu1  ;;  %vm4523_vm4 = vc.u32 %v4515_v14, %v4519_v47  ;;  %v4525_v12 = vadd.s32 %v4519_v47, %v4515_v14  ;;  %v11533_v25 = vadd.s32 256, %v13586_v54  ;;  %v5328_v54 = vld [vmem:[#allocation2 + $0xa9] sm:$0xff] }
 0x433   : > { %5268 = vmatmul.f32.gmra.mxu0 %v5004_v44  ;;  %v4524_v41 = vsel %vm4523_vm4, 1, %v13368_v9  ;;  %v4541_v14 = vand.u32 65535, %v11523_v23  ;;  %v4542_v28 = vshrl.u32 %v11523_v23, 16  ;;  %v4505_v15 = vmul.u32 24, %v4504_v42 }
 0x434   : > { %v4347_v60 = vadd.f32 %v11486_v33, %v4331_v3  ;;  %5576 = vmatmul.f32.gmra.mxu2 %v11291_v22  ;;  %5430 = vmatmul.f32.gmra.mxu1 %v5327_v56  ;;  %v4526_v13 = vadd.s32 %v4524_v41, %v4518_v19  ;;  %vm4527_vm5 = vc.u32 %v4525_v12, %v4521_v49 }
 0x435   : > { %5155 = vmatmul.f32.gmra.mxu3 %v5052_v0  ;;  %v4528_v47 = vsel %vm4527_vm5, 1, %v13368_v9  ;;  %v4544_v6 = vmul.u32 43691, %v4541_v14  ;;  %v11535_v3 = vmul.u32 43690, %v4541_v14  ;;  %v11537_v55 = vmul.u32 43691, %v4542_v28 }
 0x436   : > { %v4363_v18 = vmax.f32 %v4347_v60, 0.0  ;;  %v4530_v48 = vadd.s32 %v4528_v47, %v4526_v13  ;;  %v4506_v44 = vsub.s32 %v11437_v8, %v4505_v15  ;;  %v4547_v38 = vmul.u32 43690, %v4542_v28  ;;  %v5005_v8 = vld [vmem:[#allocation2 + $0xa7] sm:$0xff] }
 0x437   : > { %v4274_v22 = vpop.f32.mrf.mxu2  ;;  %v4548_v42 = vshll.u32 %v11535_v3, 16  ;;  %v4549_v41 = vshrl.u32 %v11535_v3, 16  ;;  %v5053_v47 = vld [vmem:[#allocation2 + $0xa8] sm:$0xff] }
 0x438   : > { %v4955_v19 = vsel %vm11518_vm3, %v4363_v18, 0.0  ;;  %v4316_v49 = vadd.f32 %v4274_v22, %v11362_v20  ;;  %v5108_v12 = vpop.f32.mrf.mxu3  ;;  %v4531_v56 = vadd.s32 %v4530_v48, %v4520_v31  ;;  %vm4860_vm6 = vcmp.ne.s32.totalorder %v4506_v44, 0  ;;  %v5927_v20 = vld [vmem:[#allocation8 + $0x2a0] sm:$0xff] }
 0x439   : > { %4971 = vst [vmem:[#allocation2 + $0x130] sm:$0xff] %v4955_v19  ;;  %v11543_v60 = vadd.f32 %v5221_v29, %v5108_v12  ;;  %v5224_v0 = vpop.f32.mrf.mxu0  ;;  %vm4876_vm7 = vcmp.lt.s32.totalorder %v4506_v44, 0  ;;  %v4908_v24 = vadd.s32 24, %v4506_v44  ;;  %v4550_v29 = vshll.u32 %v11537_v55, 16  ;;  %5950 = vmatpush.msrb.mxu0 %v5927_v20 }
 0x43a   : > { %v4332_v13 = vmul.f32 %v11473_v26, %v4316_v49  ;;  %v11548_v14 = vpop.f32.mrf.mxu1  ;;  %vm4892_vm8 = vmand %vm4876_vm7, %vm4860_vm6  ;;  %v4532_v28 = vadd.s32 %v4531_v56, %v4522_v27  ;;  %v4551_v18 = vshrl.u32 %v11537_v55, 16  ;;  %vm4552_vm9 = vc.u32 %v4544_v6, %v4548_v42 }
 0x43b   : > { %v4924_v15 = vsel %vm4892_vm8, %v4908_v24, %v4506_v44  ;;  %5271 = vmatmul.f32.gmra.mxu0 %v5005_v8  ;;  %v4553_v22 = vsel %vm4552_vm9, 1, %v13368_v9  ;;  %v4554_v48 = vadd.s32 %v4548_v42, %v4544_v6  ;;  %v4570_v55 = vand.u32 65535, %v11533_v25  ;;  %v13587_v44 = vld [vmem:[#allocation27_spill] sm:$0xff] }
 0x43c   : > { %v4348_v31 = vadd.f32 %v11486_v33, %v4332_v13  ;;  %5579 = vmatmul.f32.gmra.mxu2 %v11304_v61  ;;  %vm4940_vm10 = vcmp.lt.s32.totalorder %v4924_v15, 16  ;;  %5433 = vmatmul.f32.gmra.mxu1 %v5328_v54  ;;  %v4533_v27 = vshrl.u32 %v4532_v28, 4  ;;  %v4555_v3 = vadd.s32 %v4553_v22, %v4547_v38  ;;  %v6121_v22 = vld [vmem:[#allocation8 + $0x320] sm:$0xff] }
 0x43d   : > { %5158 = vmatmul.f32.gmra.mxu3 %v5053_v47  ;;  %vm4556_vm11 = vc.u32 %v4554_v48, %v4550_v29  ;;  %v4571_v49 = vshrl.u32 %v11533_v25, 16  ;;  %v11558_v12 = vadd.s32 256, %v13587_v44  ;;  %v4573_v24 = vmul.u32 43691, %v4570_v55  ;;  %v6322_v48 = vld [vmem:[#allocation8 + $0x3d8] sm:$0xff]  ;;  %6144 = vmatpush.msra.mxu1 %v6121_v22 }
 0x43e   : > { %v4364_v19 = vmax.f32 %v4348_v31, 0.0  ;;  %v4534_v13 = vmul.u32 24, %v4533_v27  ;;  %v4557_v61 = vsel %vm4556_vm11, 1, %v13368_v9  ;;  %v11561_v6 = vmul.u32 43690, %v4570_v55  ;;  %v5732_v27 = vld [vmem:[#allocation8 + $0x218] sm:$0xff]  ;;  %6331 = vmatpush.msrb.mxu2 %v6322_v48 }
 0x43f   : > { %v4277_v56 = vpop.f32.mrf.mxu2  ;;  %v4559_v8 = vadd.s32 %v4557_v61, %v4555_v3  ;;  %v11564_v28 = vmul.u32 43691, %v4571_v49  ;;  %v4576_v47 = vmul.u32 43690, %v4571_v49  ;;  %5757 = vmatpush.msra.mxu3 %v5732_v27  ;;  %v5329_v61 = vld [vmem:[#allocation2 + $0xb1] sm:$0xff] }
 0x440   : > { %v4956_v42 = vsel %vm4940_vm10, %v4364_v19, 0.0  ;;  %v4317_v20 = vadd.f32 %v4277_v56, %v11373_v43  ;;  %v5111_v38 = vpop.f32.mrf.mxu3  ;;  %v4535_v29 = vsub.s32 %v11480_v2, %v4534_v13  ;;  %v4577_v54 = vshll.u32 %v11561_v6, 16  ;;  %v5054_v13 = vld [vmem:[#allocation2 + $0xb0] sm:$0xff] }
 0x441   : > { %4972 = vst [vmem:[#allocation2 + $0x138] sm:$0xff] %v4956_v42  ;;  %v11567_v31 = vadd.f32 %v5224_v0, %v5111_v38  ;;  %v5227_v15 = vpop.f32.mrf.mxu0  ;;  %v4560_v43 = vadd.s32 %v4559_v8, %v4549_v41  ;;  %v4578_v3 = vshrl.u32 %v11561_v6, 16  ;;  %v4579_v44 = vshll.u32 %v11564_v28, 16  ;;  %v5006_v0 = vld [vmem:[#allocation2 + $0xaf] sm:$0xff] }
 0x442   : > { %v4333_v55 = vmul.f32 %v11473_v26, %v4317_v20  ;;  %v11571_v19 = vpop.f32.mrf.mxu1  ;;  %vm4861_vm12 = vcmp.ne.s32.totalorder %v4535_v29, 0  ;;  %vm4877_vm13 = vcmp.lt.s32.totalorder %v4535_v29, 0  ;;  %v4909_v2 = vadd.s32 24, %v4535_v29 }
 0x443   : > { %v4580_v49 = vshrl.u32 %v11564_v28, 16  ;;  %vm4893_vm14 = vmand %vm4877_vm13, %vm4861_vm12  ;;  %5274 = vmatmul.f32.gmra.mxu0 %v5006_v0  ;;  %v4561_v41 = vadd.s32 %v4560_v43, %v4551_v18  ;;  %vm4581_vm15 = vc.u32 %v4573_v24, %v4577_v54  ;;  %v4599_v6 = vand.u32 65535, %v11558_v12 }
 0x444   : > { %v4349_v56 = vadd.f32 %v11486_v33, %v4333_v55  ;;  %5582 = vmatmul.f32.gmra.mxu2 %v11317_v16  ;;  %v4925_v42 = vsel %vm4893_vm14, %v4909_v2, %v4535_v29  ;;  %5436 = vmatmul.f32.gmra.mxu1 %v5329_v61  ;;  %v4582_v20 = vsel %vm4581_vm15, 1, %v13368_v9  ;;  %v4583_v38 = vadd.s32 %v4577_v54, %v4573_v24 }
 0x445   : > { %5161 = vmatmul.f32.gmra.mxu3 %v5054_v13  ;;  %v4600_v8 = vshrl.u32 %v11558_v12, 16  ;;  %vm4941_vm0 = vcmp.lt.s32.totalorder %v4925_v42, 16  ;;  %v4562_v22 = vshrl.u32 %v4561_v41, 4  ;;  %v4584_v48 = vadd.s32 %v4582_v20, %v4576_v47  ;;  %v5007_v20 = vld [vmem:[#allocation2 + $0xb7] sm:$0xff] }
 0x446   : > { %v4365_v28 = vmax.f32 %v4349_v56, 0.0  ;;  %vm4585_vm1 = vc.u32 %v4583_v38, %v4579_v44  ;;  %v4602_v55 = vmul.u32 43691, %v4599_v6  ;;  %v11581_v16 = vmul.u32 43690, %v4599_v6 }
 0x447   : > { %v4280_v27 = vpop.f32.mrf.mxu2  ;;  %v11583_v18 = vmul.u32 43691, %v4600_v8  ;;  %v4563_v2 = vmul.u32 24, %v4562_v22  ;;  %v4586_v24 = vsel %vm4585_vm1, 1, %v13368_v9  ;;  %v4605_v47 = vmul.u32 43690, %v4600_v8 }
 0x448   : > { %v4957_v43 = vsel %vm4941_vm0, %v4365_v28, 0.0  ;;  %v4318_v29 = vadd.f32 %v4280_v27, %v11388_v45  ;;  %v5114_v0 = vpop.f32.mrf.mxu3  ;;  %v4588_v13 = vadd.s32 %v4586_v24, %v4584_v48  ;;  %v4606_v44 = vshll.u32 %v11581_v16, 16  ;;  %v5055_v48 = vld [vmem:[#allocation2 + $0xb8] sm:$0xff]  ;;  %v5926_v27 = vld [vmem:[#allocation8 + $0x298] sm:$0xff] }
 0x449   : > { %4973 = vst [vmem:[#allocation2 + $0x140] sm:$0xff] %v4957_v43  ;;  %v11587_v54 = vadd.f32 %v5227_v15, %v5114_v0  ;;  %v5230_v56 = vpop.f32.mrf.mxu0  ;;  %v4564_v41 = vsub.s32 %v11523_v23, %v4563_v2  ;;  %v4607_v45 = vshrl.u32 %v11581_v16, 16  ;;  %v4608_v42 = vshll.u32 %v11583_v18, 16  ;;  %v5330_v23 = vld [vmem:[#allocation2 + $0xb9] sm:$0xff]  ;;  %5951 = vmatpush.msrb.mxu0 %v5926_v27 }
 0x44a   : > { %v4334_v61 = vmul.f32 %v11473_v26, %v4318_v29  ;;  %v11592_v6 = vpop.f32.mrf.mxu1  ;;  %v4589_v38 = vadd.s32 %v4588_v13, %v4578_v3  ;;  %v4609_v15 = vshrl.u32 %v11583_v18, 16  ;;  %vm4610_vm2 = vc.u32 %v4602_v55, %v4606_v44  ;;  %v13588_v18 = vld [vmem:[#allocation18_spill] sm:$0xff] }
 0x44b   : > { %v4612_v28 = vadd.s32 %v4606_v44, %v4602_v55  ;;  %vm4862_vm3 = vcmp.ne.s32.totalorder %v4564_v41, 0  ;;  %vm4878_vm4 = vcmp.lt.s32.totalorder %v4564_v41, 0  ;;  %v4910_v22 = vadd.s32 24, %v4564_v41  ;;  %5277 = vmatmul.f32.gmra.mxu0 %v5007_v20 }
 0x44c   : > { %v4350_v8 = vadd.f32 %v11486_v33, %v4334_v61  ;;  %5585 = vmatmul.f32.gmra.mxu2 %v11330_v4  ;;  %vm4894_vm5 = vmand %vm4878_vm4, %vm4862_vm3  ;;  %5439 = vmatmul.f32.gmra.mxu1 %v5330_v23  ;;  %v4590_v16 = vadd.s32 %v4589_v38, %v4580_v49  ;;  %v4611_v3 = vsel %vm4610_vm2, 1, %v13368_v9  ;;  %v11601_v55 = vadd.s32 256, %v13588_v18  ;;  %v13589_v38 = vld [vmem:[#allocation20_spill] sm:$0xff] }
 0x44d   : > { %5164 = vmatmul.f32.gmra.mxu3 %v5055_v48  ;;  %vm4614_vm6 = vc.u32 %v4612_v28, %v4608_v42  ;;  %v4926_v29 = vsel %vm4894_vm5, %v4910_v22, %v4564_v41  ;;  %v4613_v2 = vadd.s32 %v4611_v3, %v4605_v47  ;;  %v11608_v28 = vadd.s32 256, %v13589_v38 }
 0x44e   : > { %v4366_v43 = vmax.f32 %v4350_v8, 0.0  ;;  %v4615_v0 = vsel %vm4614_vm6, 1, %v13368_v9  ;;  %vm4942_vm7 = vcmp.lt.s32.totalorder %v4926_v29, 16  ;;  %v4591_v4 = vshrl.u32 %v4590_v16, 4 }
 0x44f   : > { %v4283_v24 = vpop.f32.mrf.mxu2  ;;  %v4628_v13 = vand.u32 65535, %v11601_v55  ;;  %v4629_v44 = vshrl.u32 %v11601_v55, 16  ;;  %v4617_v20 = vadd.s32 %v4615_v0, %v4613_v2  ;;  %v4657_v2 = vand.u32 65535, %v11608_v28  ;;  %v6120_v0 = vld [vmem:[#allocation8 + $0x318] sm:$0xff] }
 0x450   : > { %v4958_v49 = vsel %vm4942_vm7, %v4366_v43, 0.0  ;;  %v4319_v61 = vadd.f32 %v4283_v24, %v11405_v39  ;;  %v5117_v42 = vpop.f32.mrf.mxu3  ;;  %v4592_v47 = vmul.u32 24, %v4591_v4  ;;  %v5008_v43 = vld [vmem:[#allocation2 + $0xbf] sm:$0xff]  ;;  %6145 = vmatpush.msra.mxu1 %v6120_v0 }
 0x451   : > { %4974 = vst [vmem:[#allocation2 + $0x148] sm:$0xff] %v4958_v49  ;;  %v11610_v41 = vadd.f32 %v5230_v56, %v5117_v42  ;;  %v5233_v8 = vpop.f32.mrf.mxu0  ;;  %v4631_v22 = vmul.u32 43691, %v4628_v13  ;;  %v11612_v48 = vmul.u32 43690, %v4628_v13  ;;  %v4618_v16 = vadd.s32 %v4617_v20, %v4607_v45  ;;  %v6321_v24 = vld [vmem:[#allocation8 + $0x3d0] sm:$0xff] }
 0x452   : > { %v4335_v23 = vmul.f32 %v11473_v26, %v4319_v61  ;;  %v11615_v27 = vpop.f32.mrf.mxu1  ;;  %v11617_v3 = vmul.u32 43691, %v4629_v44  ;;  %v4634_v39 = vmul.u32 43690, %v4629_v44  ;;  %v4593_v18 = vsub.s32 %v11533_v25, %v4592_v47  ;;  %v5056_v13 = vld [vmem:[#allocation2 + $0xc0] sm:$0xff]  ;;  %6332 = vmatpush.msrb.mxu2 %v6321_v24 }
 0x453   : > { %13590 = vst [vmem:[#allocation46_spill] sm:$0xff] %v11615_v27  ;;  %v4635_v29 = vshll.u32 %v11612_v48, 16  ;;  %5280 = vmatmul.f32.gmra.mxu0 %v5008_v43  ;;  %v5331_v49 = vld [vmem:[#allocation2 + $0xc1] sm:$0xff]  ;;  %v4619_v45 = vadd.s32 %v4618_v16, %v4609_v15  ;;  %v4658_v43 = vshrl.u32 %v11608_v28, 16  ;;  %v4660_v25 = vmul.u32 43691, %v4657_v2 }
 0x454   : > { %v4351_v4 = vadd.f32 %v11486_v33, %v4335_v23  ;;  %5588 = vmatmul.f32.gmra.mxu2 %v11343_v63  ;;  %v4637_v44 = vshll.u32 %v11617_v3, 16  ;;  %v5731_v61 = vld [vmem:[#allocation8 + $0x210] sm:$0xff]  ;;  %vm4863_vm8 = vcmp.ne.s32.totalorder %v4593_v18, 0  ;;  %vm4879_vm9 = vcmp.lt.s32.totalorder %v4593_v18, 0  ;;  %5442 = vmatmul.f32.gmra.mxu1 %v5331_v49 }
 0x455   : > { %v4911_v42 = vadd.s32 24, %v4593_v18  ;;  %5167 = vmatmul.f32.gmra.mxu3 %v5056_v13  ;;  %vm4639_vm10 = vc.u32 %v4631_v22, %v4635_v29  ;;  %vm4895_vm11 = vmand %vm4879_vm9, %vm4863_vm8  ;;  %v4620_v38 = vshrl.u32 %v4619_v45, 4  ;;  %v4641_v23 = vadd.s32 %v4635_v29, %v4631_v22 }
 0x456   : > { %v4367_v20 = vmax.f32 %v4351_v4, 0.0  ;;  %v4640_v47 = vsel %vm4639_vm10, 1, %v13368_v9  ;;  %5758 = vmatpush.msra.mxu3 %v5731_v61  ;;  %v11633_v29 = vmul.u32 43690, %v4657_v2  ;;  %v5009_v61 = vld [vmem:[#allocation2 + $0xc7] sm:$0xff] }
 0x457   : > { %v4927_v63 = vsel %vm4895_vm11, %v4911_v42, %v4593_v18  ;;  %v4286_v15 = vpop.f32.mrf.mxu2  ;;  %v4642_v16 = vadd.s32 %v4640_v47, %v4634_v39  ;;  %v4621_v49 = vmul.u32 24, %v4620_v38  ;;  %vm4643_vm13 = vc.u32 %v4641_v23, %v4637_v44  ;;  %v5510_v44 = vld [vmem:[#allocation2 + $0x5f] sm:$0xff]  ;;  %v5057_v47 = vld [vmem:[#allocation2 + $0xc8] sm:$0xff] }
 0x458   : > { %vm4943_vm12 = vcmp.lt.s32.totalorder %v4927_v63, 16  ;;  %v4320_v13 = vadd.f32 %v4286_v15, %v11421_v35  ;;  %v5120_v56 = vpop.f32.mrf.mxu3  ;;  %v4644_v22 = vsel %vm4643_vm13, 1, %v13368_v9  ;;  %v11639_v35 = vmul.u32 43691, %v4658_v43  ;;  %v5332_v23 = vld [vmem:[#allocation2 + $0xc9] sm:$0xff]  ;;  %v5925_v63 = vld [vmem:[#allocation8 + $0x290] sm:$0xff] }
 0x459   : > { %v4959_v4 = vsel %vm4943_vm12, %v4367_v20, 0.0  ;;  %v11630_v45 = vadd.f32 %v5233_v8, %v5120_v56  ;;  %v5236_v27 = vpop.f32.mrf.mxu0  ;;  %v4622_v18 = vsub.s32 %v11558_v12, %v4621_v49  ;;  %v4646_v24 = vadd.s32 %v4644_v22, %v4642_v16  ;;  %v13591_v20 = vld [vmem:[#allocation22_spill] sm:$0xff]  ;;  %5952 = vmatpush.msrb.mxu0 %v5925_v63 }
 0x45a   : > { %4975 = vst [vmem:[#allocation2 + $0x150] sm:$0xff] %v4959_v4  ;;  %v4336_v39 = vmul.f32 %v11473_v26, %v4320_v13  ;;  %v11637_v0 = vpop.f32.mrf.mxu1  ;;  %v4663_v42 = vmul.u32 43690, %v4658_v43  ;;  %v4664_v8 = vshll.u32 %v11633_v29, 16  ;;  %v4665_v56 = vshrl.u32 %v11633_v29, 16 }
 0x45b   : > { %v11644_v2 = vadd.s32 256, %v13591_v20  ;;  %vm4864_vm14 = vcmp.ne.s32.totalorder %v4622_v18, 0  ;;  %vm4880_vm15 = vcmp.lt.s32.totalorder %v4622_v18, 0  ;;  %v4912_v12 = vadd.s32 24, %v4622_v18  ;;  %5283 = vmatmul.f32.gmra.mxu0 %v5009_v61 }
 0x45c   : > { %v4352_v38 = vadd.f32 %v11486_v33, %v4336_v39  ;;  %5591 = vmatmul.f32.gmra.mxu2 %v5510_v44  ;;  %vm4896_vm0 = vmand %vm4880_vm15, %vm4864_vm14  ;;  %5445 = vmatmul.f32.gmra.mxu1 %v5332_v23  ;;  %v13592_v15 = vshrl.u32 %v11612_v48, 16  ;;  %v4666_v43 = vshll.u32 %v11639_v35, 16  ;;  %v4667_v13 = vshrl.u32 %v11639_v35, 16 }
 0x45d   : > { %5170 = vmatmul.f32.gmra.mxu3 %v5057_v47  ;;  %vm4668_vm1 = vc.u32 %v4660_v25, %v4664_v8  ;;  %v4928_v4 = vsel %vm4896_vm0, %v4912_v12, %v4622_v18  ;;  %v4670_v29 = vadd.s32 %v4664_v8, %v4660_v25  ;;  %v13593_v61 = vshrl.u32 %v11617_v3, 16 }
 0x45e   : > { %v4647_v16 = vadd.s32 %v4646_v24, %v13592_v15  ;;  %v4368_v49 = vmax.f32 %v4352_v38, 0.0  ;;  %v4669_v22 = vsel %vm4668_vm1, 1, %v13368_v9  ;;  %vm4944_vm2 = vcmp.lt.s32.totalorder %v4928_v4, 16 }
 0x45f   : > { %v4289_v39 = vpop.f32.mrf.mxu2  ;;  %v4671_v20 = vadd.s32 %v4669_v22, %v4663_v42  ;;  %v4686_v48 = vand.u32 65535, %v11644_v2  ;;  %vm4672_vm3 = vc.u32 %v4670_v29, %v4666_v43  ;;  %v4687_v35 = vshrl.u32 %v11644_v2, 16  ;;  %v11667_v43 = vld [vmem:[#allocation2 + $0xcf] sm:$0xff]  ;;  %v13595_v22 = vld [vmem:[#allocation24_spill] sm:$0xff] }
 0x460   : > { %v4648_v44 = vadd.s32 %v4647_v16, %v13593_v61  ;;  %v4960_v24 = vsel %vm4944_vm2, %v4368_v49, 0.0  ;;  %v4321_v47 = vadd.f32 %v4289_v39, %v11506_v10  ;;  %v5123_v23 = vpop.f32.mrf.mxu3  ;;  %v4673_v8 = vsel %vm4672_vm3, 1, %v13368_v9  ;;  %v11669_v49 = vld [vmem:[#allocation2 + $0x67] sm:$0xff]  ;;  %v5058_v61 = vld [vmem:[#allocation2 + $0xd0] sm:$0xff] }
 0x461   : > { %4976 = vst [vmem:[#allocation2 + $0x158] sm:$0xff] %v4960_v24  ;;  %v11657_v38 = vadd.f32 %v5236_v27, %v5123_v23  ;;  %v5239_v25 = vpop.f32.mrf.mxu0  ;;  %v4689_v12 = vmul.u32 43691, %v4686_v48  ;;  %v4675_v63 = vadd.s32 %v4673_v8, %v4671_v20  ;;  %v11663_v15 = vmul.u32 43690, %v4686_v48  ;;  %v5730_v8 = vld [vmem:[#allocation8 + $0x208] sm:$0xff] }
 0x462   : > { %v4649_v18 = vshrl.u32 %v4648_v44, 4  ;;  %v4337_v3 = vmul.f32 %v11473_v26, %v4321_v47  ;;  %v11661_v42 = vpop.f32.mrf.mxu1  ;;  %v11665_v10 = vmul.u32 43691, %v4687_v35  ;;  %v4209_v27 = vadd.f32 %v11328_v57, %v11345_v21  ;;  %v5333_v44 = vld [vmem:[#allocation2 + $0xd1] sm:$0xff]  ;;  %5759 = vmatpush.msra.mxu3 %v5730_v8 }
 0x463   : > { %13594 = vst [vmem:[#allocation47_spill] sm:$0xff] %v11661_v42  ;;  %v4692_v4 = vmul.u32 43690, %v4687_v35  ;;  %v11674_v29 = vadd.s32 256, %v13595_v22  ;;  %5286 = vmatmul.f32.gmra.mxu0 %v11667_v43  ;;  %v4676_v20 = vadd.s32 %v4675_v63, %v4665_v56  ;;  %v4693_v48 = vshll.u32 %v11663_v15, 16  ;;  %v6119_v35 = vld [vmem:[#allocation8 + $0x310] sm:$0xff] }
 0x464   : > { %v4650_v16 = vmul.u32 24, %v4649_v18  ;;  %v4353_v39 = vadd.f32 %v11486_v33, %v4337_v3  ;;  %5594 = vmatmul.f32.gmra.mxu2 %v11669_v49  ;;  %v4694_v24 = vshrl.u32 %v11663_v15, 16  ;;  %5448 = vmatmul.f32.gmra.mxu1 %v5333_v44  ;;  %v4695_v57 = vshll.u32 %v11665_v10, 16  ;;  %v6320_v18 = vld [vmem:[#allocation8 + $0x3c8] sm:$0xff] }
 0x465   : > { %5173 = vmatmul.f32.gmra.mxu3 %v5058_v61  ;;  %v4696_v21 = vshrl.u32 %v11665_v10, 16  ;;  %v4715_v23 = vand.u32 65535, %v11674_v29  ;;  %v4677_v22 = vadd.s32 %v4676_v20, %v4667_v13  ;;  %vm4697_vm4 = vc.u32 %v4689_v12, %v4693_v48  ;;  %6146 = vmatpush.msra.mxu1 %v6119_v35 }
 0x466   : > { %v4651_v47 = vsub.s32 %v11601_v55, %v4650_v16  ;;  %v4369_v3 = vmax.f32 %v4353_v39, 0.0  ;;  %v4699_v56 = vadd.s32 %v4693_v48, %v4689_v12  ;;  %6333 = vmatpush.msrb.mxu2 %v6320_v18  ;;  %v4698_v15 = vsel %vm4697_vm4, 1, %v13368_v9 }
 0x467   : > { %v4292_v63 = vpop.f32.mrf.mxu2  ;;  %v4678_v16 = vshrl.u32 %v4677_v22, 4  ;;  %v4700_v44 = vadd.s32 %v4698_v15, %v4692_v4  ;;  %v4716_v20 = vshrl.u32 %v11674_v29, 16  ;;  %v11693_v22 = vld [vmem:[#allocation2 + $0xd7] sm:$0xff]  ;;  %v11695_v4 = vld [vmem:[#allocation2 + $0x6f] sm:$0xff] }
 0x468   : > { %vm4865_vm5 = vcmp.ne.s32.totalorder %v4651_v47, 0  ;;  %vm4881_vm6 = vcmp.lt.s32.totalorder %v4651_v47, 0  ;;  %v4913_v55 = vadd.s32 24, %v4651_v47  ;;  %v4322_v10 = vadd.f32 %v4292_v63, %v4209_v27  ;;  %v5126_v61 = vpop.f32.mrf.mxu3  ;;  %v5334_v63 = vld [vmem:[#allocation2 + $0xd9] sm:$0xff] }
 0x469   : > { %vm4897_vm7 = vmand %vm4881_vm6, %vm4865_vm5  ;;  %vm4701_vm8 = vc.u32 %v4699_v56, %v4695_v57  ;;  %v11686_v39 = vadd.f32 %v5239_v25, %v5126_v61  ;;  %v5242_v13 = vpop.f32.mrf.mxu0  ;;  %v4679_v35 = vmul.u32 24, %v4678_v16  ;;  %v11697_v25 = vmul.u32 43690, %v4715_v23 }
 0x46a   : > { %v4929_v42 = vsel %vm4897_vm7, %v4913_v55, %v4651_v47  ;;  %v4702_v12 = vsel %vm4701_vm8, 1, %v13368_v9  ;;  %v4338_v48 = vmul.f32 %v11473_v26, %v4322_v10  ;;  %v11691_v18 = vpop.f32.mrf.mxu1  ;;  %v4718_v47 = vmul.u32 43691, %v4715_v23  ;;  %v5059_v55 = vld [vmem:[#allocation2 + $0xd8] sm:$0xff] }
 0x46b   : > { %vm4945_vm9 = vcmp.lt.s32.totalorder %v4929_v42, 16  ;;  %13596 = vst [vmem:[#allocation50_spill] sm:$0xff] %v11691_v18  ;;  %v4704_v8 = vadd.s32 %v4702_v12, %v4700_v44  ;;  %v11699_v57 = vmul.u32 43691, %v4716_v20  ;;  %v4680_v42 = vsub.s32 %v11608_v28, %v4679_v35  ;;  %5289 = vmatmul.f32.gmra.mxu0 %v11693_v22 }
 0x46c   : > { %v4961_v27 = vsel %vm4945_vm9, %v4369_v3, 0.0  ;;  %v4354_v56 = vadd.f32 %v11486_v33, %v4338_v48  ;;  %5597 = vmatmul.f32.gmra.mxu2 %v11695_v4  ;;  %5451 = vmatmul.f32.gmra.mxu1 %v5334_v63  ;;  %v4210_v23 = vadd.f32 %v11341_v17, %v11356_v36  ;;  %v4721_v15 = vmul.u32 43690, %v4716_v20 }
 0x46d   : > { %4977 = vst [vmem:[#allocation2 + $0x160] sm:$0xff] %v4961_v27  ;;  %v4705_v3 = vadd.s32 %v4704_v8, %v4694_v24  ;;  %5176 = vmatmul.f32.gmra.mxu3 %v5059_v55  ;;  %v4722_v10 = vshll.u32 %v11697_v25, 16  ;;  %v4724_v16 = vshll.u32 %v11699_v57, 16  ;;  %vm4866_vm10 = vcmp.ne.s32.totalorder %v4680_v42, 0  ;;  %v5924_v27 = vld [vmem:[#allocation8 + $0x288] sm:$0xff] }
 0x46e   : > { %v4370_v61 = vmax.f32 %v4354_v56, 0.0  ;;  %vm4882_vm11 = vcmp.lt.s32.totalorder %v4680_v42, 0  ;;  %v4914_v28 = vadd.s32 24, %v4680_v42  ;;  %v4211_v24 = vadd.f32 %v11354_v58, %v11366_v62  ;;  %5953 = vmatpush.msrb.mxu0 %v5924_v27 }
 0x46f   : > { %vm4898_vm12 = vmand %vm4882_vm11, %vm4866_vm10  ;;  %v4295_v44 = vpop.f32.mrf.mxu2  ;;  %v4706_v12 = vadd.s32 %v4705_v3, %v4696_v21  ;;  %vm4726_vm13 = vc.u32 %v4718_v47, %v4722_v10  ;;  %v4728_v48 = vadd.s32 %v4722_v10, %v4718_v47  ;;  %v4723_v36 = vshrl.u32 %v11697_v25, 16  ;;  %v11718_v47 = vld [vmem:[#allocation2 + $0x77] sm:$0xff]  ;;  %v13600_v10 = vld [vmem:[#allocation17_spill] sm:$0xff] }
 0x470   : > { %v4930_v35 = vsel %vm4898_vm12, %v4914_v28, %v4680_v42  ;;  %v4323_v8 = vadd.f32 %v4295_v44, %v4210_v23  ;;  %v5129_v17 = vpop.f32.mrf.mxu3  ;;  %v4727_v20 = vsel %vm4726_vm13, 1, %v13368_v9  ;;  %v13599_v42 = vld [vmem:[#allocation15_spill] sm:$0xff]  ;;  %v5060_v44 = vld [vmem:[#allocation2 + $0xe0] sm:$0xff] }
 0x471   : > { %vm4946_vm14 = vcmp.lt.s32.totalorder %v4930_v35, 16  ;;  %v4707_v56 = vshrl.u32 %v4706_v12, 4  ;;  %v11713_v55 = vadd.f32 %v5242_v13, %v5129_v17  ;;  %v5245_v63 = vpop.f32.mrf.mxu0  ;;  %v4729_v18 = vadd.s32 %v4727_v20, %v4721_v15  ;;  %v11723_v23 = vld [vmem:[#allocation2 + $0xdf] sm:$0xff] }
 0x472   : > { %v4962_v21 = vsel %vm4946_vm14, %v4370_v61, 0.0  ;;  %v4339_v58 = vmul.f32 %v11473_v26, %v4323_v8  ;;  %v11716_v62 = vpop.f32.mrf.mxu1  ;;  %vm4730_vm15 = vc.u32 %v4728_v48, %v4724_v16  ;;  %v11721_v25 = vadd.s32 256, %v13599_v42  ;;  %v5335_v16 = vld [vmem:[#allocation2 + $0xe1] sm:$0xff]  ;;  %v6319_v42 = vld [vmem:[#allocation8 + $0x3c0] sm:$0xff] }
 0x473   : > { %13597 = vst [vmem:[#allocation30_spill] sm:$0xff] %v11713_v55  ;;  %v4708_v3 = vmul.u32 24, %v4707_v56  ;;  %v4725_v13 = vshrl.u32 %v11699_v57, 16  ;;  %v4731_v15 = vsel %vm4730_vm15, 1, %v13368_v9  ;;  %v11728_v61 = vadd.s32 256, %v13600_v10  ;;  %5292 = vmatmul.f32.gmra.mxu0 %v11723_v23  ;;  %6334 = vmatpush.msrb.mxu2 %v6319_v42 }
 0x474   : > { %13598 = vst [vmem:[#allocation53_spill] sm:$0xff] %v11716_v62  ;;  %v4355_v28 = vadd.f32 %v11486_v33, %v4339_v58  ;;  %5600 = vmatmul.f32.gmra.mxu2 %v11718_v47  ;;  %v4733_v12 = vadd.s32 %v4731_v15, %v4729_v18  ;;  %v4744_v48 = vand.u32 65535, %v11721_v25  ;;  %v4745_v35 = vshrl.u32 %v11721_v25, 16  ;;  %5454 = vmatmul.f32.gmra.mxu1 %v5335_v16  ;;  %v6118_v58 = vld [vmem:[#allocation8 + $0x308] sm:$0xff] }
 0x475   : > { %4978 = vst [vmem:[#allocation2 + $0x168] sm:$0xff] %v4962_v21  ;;  %v4709_v57 = vsub.s32 %v11644_v2, %v4708_v3  ;;  %5179 = vmatmul.f32.gmra.mxu3 %v5060_v44  ;;  %v11738_v8 = vadd.f32 %v11364_v52, %v11377_v34  ;;  %v11742_v17 = vadd.f32 %v11375_v50, %v11392_v37  ;;  %v4773_v20 = vand.u32 65535, %v11728_v61  ;;  %v5729_v2 = vld [vmem:[#allocation8 + $0x200] sm:$0xff] }
 0x476   : > { %v4371_v27 = vmax.f32 %v4355_v28, 0.0  ;;  %v4734_v18 = vadd.s32 %v4733_v12, %v4723_v36  ;;  %v4747_v56 = vmul.u32 43691, %v4744_v48  ;;  %v11745_v21 = vmul.u32 43690, %v4744_v48  ;;  %6147 = vmatpush.msra.mxu1 %v6118_v58  ;;  %5760 = vmatpush.msra.mxu3 %v5729_v2 }
 0x477   : > { %vm4867_vm0 = vcmp.ne.s32.totalorder %v4709_v57, 0  ;;  %vm4883_vm1 = vcmp.lt.s32.totalorder %v4709_v57, 0  ;;  %v4915_v3 = vadd.s32 24, %v4709_v57  ;;  %v4298_v15 = vpop.f32.mrf.mxu2  ;;  %v11747_v52 = vmul.u32 43691, %v4745_v35 }
 0x478   : > { %vm4899_vm2 = vmand %vm4883_vm1, %vm4867_vm0  ;;  %v4324_v50 = vadd.f32 %v4298_v15, %v4211_v24  ;;  %v4735_v34 = vadd.s32 %v4734_v18, %v4725_v13  ;;  %v5132_v37 = vpop.f32.mrf.mxu3  ;;  %v4751_v36 = vshll.u32 %v11745_v21, 16  ;;  %v4774_v10 = vshrl.u32 %v11728_v61, 16  ;;  %v11758_v18 = vld [vmem:[#allocation2 + $0xe7] sm:$0xff]  ;;  %v11760_v15 = vld [vmem:[#allocation2 + $0x7f] sm:$0xff] }
 0x479   : > { %v4931_v28 = vsel %vm4899_vm2, %v4915_v3, %v4709_v57  ;;  %v11751_v44 = vadd.f32 %v5245_v63, %v5132_v37  ;;  %v5248_v16 = vpop.f32.mrf.mxu0  ;;  %v4750_v12 = vmul.u32 43690, %v4745_v35  ;;  %v4753_v48 = vshll.u32 %v11747_v52, 16  ;;  %v5061_v3 = vld [vmem:[#allocation2 + $0xe8] sm:$0xff] }
 0x47a   : > { %vm4947_vm3 = vcmp.lt.s32.totalorder %v4931_v28, 16  ;;  %v4340_v58 = vmul.f32 %v11473_v26, %v4324_v50  ;;  %v4736_v42 = vshrl.u32 %v4735_v34, 4  ;;  %v11755_v62 = vpop.f32.mrf.mxu1  ;;  %v4752_v24 = vshrl.u32 %v11745_v21, 16  ;;  %v5336_v26 = vld [vmem:[#allocation2 + $0xe9] sm:$0xff] }
 0x47b   : > { %13601 = vst [vmem:[#allocation34_spill] sm:$0xff] %v11751_v44  ;;  %v4963_v13 = vsel %vm4947_vm3, %v4371_v27, 0.0  ;;  %v4754_v63 = vshrl.u32 %v11747_v52, 16  ;;  %vm4755_vm4 = vc.u32 %v4747_v56, %v4751_v36  ;;  %v4757_v57 = vadd.s32 %v4751_v36, %v4747_v56  ;;  %5295 = vmatmul.f32.gmra.mxu0 %v11758_v18 }
 0x47c   : > { %13602 = vst [vmem:[#allocation36_spill] sm:$0xff] %v11755_v62  ;;  %v4356_v35 = vadd.f32 %v11486_v33, %v4340_v58  ;;  %v4737_v2 = vmul.u32 24, %v4736_v42  ;;  %5603 = vmatmul.f32.gmra.mxu2 %v11760_v15  ;;  %v4756_v27 = vsel %vm4755_vm4, 1, %v13368_v9  ;;  %v11767_v21 = vmul.u32 43690, %v4773_v20  ;;  %5457 = vmatmul.f32.gmra.mxu1 %v5336_v26  ;;  %v6318_v62 = vld [vmem:[#allocation8 + $0x3b8] sm:$0xff] }
 0x47d   : > { %4979 = vst [vmem:[#allocation2 + $0x170] sm:$0xff] %v4963_v13  ;;  %5182 = vmatmul.f32.gmra.mxu3 %v5061_v3  ;;  %v4758_v50 = vadd.s32 %v4756_v27, %v4750_v12  ;;  %vm4759_vm5 = vc.u32 %v4757_v57, %v4753_v48  ;;  %v4776_v52 = vmul.u32 43691, %v4773_v20  ;;  %v11769_v56 = vmul.u32 43691, %v4774_v10  ;;  %v5923_v57 = vld [vmem:[#allocation8 + $0x280] sm:$0xff]  ;;  %v11782_v27 = vld [vmem:[%s13219_s2] ss:$0 sm:$0xff]  ;;  %6335 = vmatpush.msrb.mxu2 %v6318_v62 }
 0x47e   : > { %v4738_v33 = vsub.s32 %v11674_v29, %v4737_v2  ;;  %v4760_v34 = vsel %vm4759_vm5, 1, %v13368_v9  ;;  %v4779_v37 = vmul.u32 43690, %v4774_v10  ;;  %v4780_v36 = vshll.u32 %v11767_v21, 16  ;;  %5954 = vmatpush.msrb.mxu0 %v5923_v57  ;;  %v11836_v62 = vld [vmem:[#allocation2 + $0xf7] sm:$0xff] }
 0x47f   : > { %v4372_v28 = vmax.f32 %v4356_v35, 0.0  ;;  %v4301_v58 = vpop.f32.mrf.mxu2  ;;  %v4762_v42 = vadd.s32 %v4760_v34, %v4758_v50  ;;  %v4781_v13 = vshrl.u32 %v11767_v21, 16  ;;  %v4782_v3 = vshll.u32 %v11769_v56, 16  ;;  %v13605_v34 = vld [vmem:[#allocation23_spill] sm:$0xff] }
 0x480   : > { %vm4868_vm6 = vcmp.ne.s32.totalorder %v4738_v33, 0  ;;  %vm4884_vm7 = vcmp.lt.s32.totalorder %v4738_v33, 0  ;;  %v4916_v12 = vadd.s32 24, %v4738_v33  ;;  %v4325_v20 = vadd.f32 %v4301_v58, %v11738_v8  ;;  %v5135_v48 = vpop.f32.mrf.mxu3  ;;  %v11791_v58 = vld [vmem:[#allocation2 + $0xef] sm:$0xff] }
 0x481   : > { %vm4900_vm8 = vmand %vm4884_vm7, %vm4868_vm6  ;;  %v4763_v29 = vadd.s32 %v4762_v42, %v4752_v24  ;;  %v11777_v2 = vadd.f32 %v5248_v16, %v5135_v48  ;;  %v5251_v10 = vpop.f32.mrf.mxu0  ;;  %vm4784_vm9 = vc.u32 %v4776_v52, %v4780_v36  ;;  %v4786_v35 = vadd.s32 %v4780_v36, %v4776_v52  ;;  %v11793_v52 = vld [vmem:[#allocation2 + $0x87] sm:$0xff]  ;;  %v11798_v42 = vld [vmem:[%s13220_s3] ss:$0 sm:$0xff] }
 0x482   : > { %v4932_v26 = vsel %vm4900_vm8, %v4916_v12, %v4738_v33  ;;  %v4341_v21 = vmul.f32 %v11782_v27, %v4325_v20  ;;  %v11785_v50 = vpop.f32.mrf.mxu1  ;;  %v4785_v8 = vsel %vm4784_vm9, 1, %v13368_v9  ;;  %v11789_v24 = vadd.s32 256, %v13605_v34  ;;  %v5062_v20 = vld [vmem:[#allocation2 + $0xf0] sm:$0xff] }
 0x483   : > { %13603 = vst [vmem:[#allocation31_spill] sm:$0xff] %v11777_v2  ;;  %vm4948_vm10 = vcmp.lt.s32.totalorder %v4932_v26, 16  ;;  %v4764_v16 = vadd.s32 %v4763_v29, %v4754_v63  ;;  %v4787_v33 = vadd.s32 %v4785_v8, %v4779_v37  ;;  %vm4788_vm11 = vc.u32 %v4786_v35, %v4782_v3  ;;  %5298 = vmatmul.f32.gmra.mxu0 %v11791_v58  ;;  %v5337_v48 = vld [vmem:[#allocation2 + $0xf1] sm:$0xff]  ;;  %v6520_v2 = vld [vmem:[#allocation8 + $0x478] sm:$0xff] }
 0x484   : > { %13604 = vst [vmem:[#allocation16_spill] sm:$0xff] %v11785_v50  ;;  %v4964_v36 = vsel %vm4948_vm10, %v4372_v28, 0.0  ;;  %v11801_v12 = vadd.f32 %v11798_v42, %v4341_v21  ;;  %5606 = vmatmul.f32.gmra.mxu2 %v11793_v52  ;;  %v4789_v63 = vsel %vm4788_vm11, 1, %v13368_v9  ;;  %v4802_v37 = vand.u32 65535, %v11789_v24  ;;  %5460 = vmatmul.f32.gmra.mxu1 %v5337_v48  ;;  %v13606_v8 = vld [vmem:[#allocation39_spill] sm:$0xff] }
 0x485   : > { %4980 = vst [vmem:[#allocation2 + $0x178] sm:$0xff] %v4964_v36  ;;  %v4765_v28 = vshrl.u32 %v4764_v16, 4  ;;  %5185 = vmatmul.f32.gmra.mxu3 %v5062_v20  ;;  %v4783_v3 = vshrl.u32 %v11769_v56, 16  ;;  %v4791_v57 = vadd.s32 %v4789_v63, %v4787_v33  ;;  %v4803_v29 = vshrl.u32 %v11789_v24, 16 }
 0x486   : > { %v11811_v35 = vadd.f32 %v11390_v5, %v11409_v59  ;;  %v4805_v26 = vmul.u32 43691, %v4802_v37  ;;  %v11813_v21 = vmul.u32 43690, %v4802_v37  ;;  %v11816_v34 = vadd.s32 256, %v13606_v8  ;;  %v6117_v37 = vld [vmem:[#allocation8 + $0x300] sm:$0xff]  ;;  %6521 = vmatpush.msrb.mxu3 %v6520_v2  ;;  %v5338_v2 = vld [vmem:[#allocation2 + $0xf9] sm:$0xff] }
 0x487   : > { %v4373_v36 = vmax.f32 %v11801_v12, 0.0  ;;  %v4766_v16 = vmul.u32 24, %v4765_v28  ;;  %v4304_v20 = vpop.f32.mrf.mxu2  ;;  %v4792_v48 = vadd.s32 %v4791_v57, %v4781_v13  ;;  %v11819_v50 = vmul.u32 43691, %v4803_v29  ;;  %6148 = vmatpush.msra.mxu1 %v6117_v37  ;;  %v6895_v57 = vld [vmem:[#allocation8 + $0x78] sm:$0xff] }
 0x488   : > { %v4326_v56 = vadd.f32 %v4304_v20, %v11742_v17  ;;  %v5138_v33 = vpop.f32.mrf.mxu3  ;;  %v4808_v63 = vmul.u32 43690, %v4803_v29  ;;  %v4809_v5 = vshll.u32 %v11813_v21, 16  ;;  %v6927_v17 = vld [vmem:[#allocation8 + $0xf8] sm:$0xff] }
 0x489   : > { %v4767_v8 = vsub.s32 %v11721_v25, %v4766_v16  ;;  %v4793_v44 = vadd.s32 %v4792_v48, %v4783_v3  ;;  %v11825_v12 = vadd.f32 %v5251_v10, %v5138_v33  ;;  %v5254_v28 = vpop.f32.mrf.mxu0  ;;  %v4811_v13 = vshll.u32 %v11819_v50, 16  ;;  %6928 = vmatpush.msra.mxu0 %v6927_v17  ;;  %v11838_v16 = vld [vmem:[#allocation2 + $0x8f] sm:$0xff]  ;;  %6993 = vmatpush.msrb.mxu1 %v6895_v57 }
 0x48a   : > { %v4342_v29 = vmul.f32 %v11782_v27, %v4326_v56  ;;  %v11829_v20 = vpop.f32.mrf.mxu1  ;;  %vm11831_vm12 = vc.u32 %v4805_v26, %v4809_v5  ;;  %v4815_v55 = vadd.s32 %v4809_v5, %v4805_v26  ;;  %v4831_v25 = vand.u32 65535, %v11816_v34  ;;  %13611 = vst [vmem:[#allocation19_spill] sm:$0xff] %v11838_v16  ;;  %v5063_v26 = vld [vmem:[#allocation2 + $0xf8] sm:$0xff] }
 0x48b   : > { %13607 = vst [vmem:[#allocation38_spill] sm:$0xff] %v11825_v12  ;;  %vm4869_vm13 = vcmp.ne.s32.totalorder %v4767_v8, 0  ;;  %vm4885_vm14 = vcmp.lt.s32.totalorder %v4767_v8, 0  ;;  %v4917_v10 = vadd.s32 24, %v4767_v8  ;;  %v4794_v3 = vshrl.u32 %v4793_v44, 4  ;;  %5301 = vmatmul.f32.gmra.mxu0 %v11836_v62 }
 0x48c   : > { %13608 = vst [vmem:[#allocation26_spill] sm:$0xff] %v11829_v20  ;;  %vm11840_vm15 = vmand %vm4885_vm14, %vm4869_vm13  ;;  %v4358_v56 = vadd.f32 %v11798_v42, %v4342_v29  ;;  %5609 = vmatmul.f32.gmra.mxu2 %v11838_v16  ;;  %v4814_v44 = vsel %vm11831_vm12, 1, %v13368_v9  ;;  %vm4817_vm0 = vc.u32 %v4815_v55, %v4811_v13  ;;  %v4832_v33 = vshrl.u32 %v11816_v34, 16  ;;  %5463 = vmatmul.f32.gmra.mxu1 %v5338_v2  ;;  %v6317_v29 = vld [vmem:[#allocation8 + $0x3b0] sm:$0xff] }
 0x48d   : > { %v4933_v5 = vsel %vm11840_vm15, %v4917_v10, %v4767_v8  ;;  %v4795_v37 = vmul.u32 24, %v4794_v3  ;;  %5188 = vmatmul.f32.gmra.mxu3 %v5063_v26  ;;  %v4816_v17 = vadd.s32 %v4814_v44, %v4808_v63  ;;  %v4818_v57 = vsel %vm4817_vm0, 1, %v13368_v9  ;;  %v6519_v20 = vld [vmem:[#allocation8 + $0x470] sm:$0xff]  ;;  %6336 = vmatpush.msrb.mxu2 %v6317_v29 }
 0x48e   : > { %vm4949_vm1 = vcmp.lt.s32.totalorder %v4933_v5, 16  ;;  %v4812_v12 = vshrl.u32 %v11819_v50, 16  ;;  %v4834_v16 = vmul.u32 43691, %v4831_v25  ;;  %v4835_v59 = vmul.u32 43690, %v4831_v25  ;;  %6522 = vmatpush.msrb.mxu3 %v6519_v20 }
 0x48f   : > { %v4965_v55 = vsel %vm4949_vm1, %v4373_v36, 0.0  ;;  %v4796_v13 = vsub.s32 %v11728_v61, %v4795_v37  ;;  %v4307_v48 = vpop.f32.mrf.mxu2  ;;  %v4820_v8 = vadd.s32 %v4818_v57, %v4816_v17  ;;  %v4836_v10 = vmul.u32 43691, %v4832_v33  ;;  %v11864_v57 = vld [vmem:[#allocation2 + $0xff] sm:$0xff] }
 0x490   : > { %4981 = vst [vmem:[#allocation2 + $0x180] sm:$0xff] %v4965_v55  ;;  %v4374_v3 = vmax.f32 %v4358_v56, 0.0  ;;  %v4327_v63 = vadd.f32 %v4307_v48, %v11811_v35  ;;  %v5141_v26 = vpop.f32.mrf.mxu3  ;;  %v4837_v2 = vmul.u32 43690, %v4832_v33  ;;  %v4838_v44 = vshll.u32 %v4835_v59, 16  ;;  %v11866_v33 = vld [vmem:[#allocation2 + $0x97] sm:$0xff]  ;;  %v5339_v55 = vld [vmem:[#allocation2 + $0x101] sm:$0xff] }
 0x491   : > { %vm4870_vm2 = vcmp.ne.s32.totalorder %v4796_v13, 0  ;;  %vm4886_vm3 = vcmp.lt.s32.totalorder %v4796_v13, 0  ;;  %v4918_v50 = vadd.s32 24, %v4796_v13  ;;  %v13614_v25 = vshrl.u32 %v11813_v21, 16  ;;  %v5257_v20 = vpop.f32.mrf.mxu0  ;;  %v5064_v21 = vld [vmem:[#allocation2 + $0x100] sm:$0xff] }
 0x492   : > { %vm4902_vm4 = vmand %vm4886_vm3, %vm4870_vm2  ;;  %v4343_v61 = vmul.f32 %v11782_v27, %v4327_v63  ;;  %v11860_v36 = vadd.f32 %v5254_v28, %v5141_v26  ;;  %v11862_v37 = vpop.f32.mrf.mxu1  ;;  %v4840_v56 = vshll.u32 %v4836_v10, 16  ;;  %vm4842_vm5 = vc.u32 %v4834_v16, %v4838_v44 }
 0x493   : > { %v4821_v5 = vadd.s32 %v4820_v8, %v13614_v25  ;;  %v4934_v17 = vsel %vm4902_vm4, %v4918_v50, %v4796_v13  ;;  %v4844_v29 = vadd.s32 %v4838_v44, %v4834_v16  ;;  %5304 = vmatmul.f32.gmra.mxu0 %v11864_v57  ;;  %v4839_v28 = vshrl.u32 %v4835_v59, 16  ;;  %v6926_v13 = vld [vmem:[#allocation8 + $0xf0] sm:$0xff] }
 0x494   : > { %vm4950_vm6 = vcmp.lt.s32.totalorder %v4934_v17, 16  ;;  %5612 = vmatmul.f32.gmra.mxu2 %v11866_v33  ;;  %v4843_v48 = vsel %vm4842_vm5, 1, %v13368_v9  ;;  %5466 = vmatmul.f32.gmra.mxu1 %v5339_v55  ;;  %v4359_v16 = vadd.f32 %v11798_v42, %v4343_v61  ;;  %v4215_v26 = vadd.f32 %v11407_v46, %v11427_v51 }
 0x495   : > { %v4822_v35 = vadd.s32 %v4821_v5, %v4812_v12  ;;  %v4966_v8 = vsel %vm4950_vm6, %v4374_v3, 0.0  ;;  %5191 = vmatmul.f32.gmra.mxu3 %v5064_v21  ;;  %v4845_v12 = vadd.s32 %v4843_v48, %v4837_v2  ;;  %vm4846_vm7 = vc.u32 %v4844_v29, %v4840_v56  ;;  %6929 = vmatpush.msra.mxu0 %v6926_v13  ;;  %v6894_v21 = vld [vmem:[#allocation8 + $0x70] sm:$0xff] }
 0x496   : > { %4982 = vst [vmem:[#allocation2 + $0x188] sm:$0xff] %v4966_v8  ;;  %v4847_v44 = vsel %vm4846_vm7, 1, %v13368_v9  ;;  %v4841_v25 = vshrl.u32 %v4836_v10, 16  ;;  %v4375_v61 = vmax.f32 %v4359_v16, 0.0  ;;  %6994 = vmatpush.msrb.mxu1 %v6894_v21  ;;  %v11881_v10 = vld [vmem:[#allocation2 + $0x9f] sm:$0xff] }
 0x497   : > { %v4823_v63 = vshrl.u32 %v4822_v35, 4  ;;  %v4310_v59 = vpop.f32.mrf.mxu2  ;;  %v4849_v5 = vadd.s32 %v4847_v44, %v4845_v12  ;;  %v5890_v48 = vld [vmem:[#allocation2 + $0x21] sm:$0xff]  ;;  %v5470_v12 = vadd.f32 %v11423_v32, %v11443_v30 }
 0x498   : > { %v4328_v3 = vadd.f32 %v4310_v59, %v4215_v26  ;;  %v5144_v17 = vpop.f32.mrf.mxu3  ;;  %v11894_v30 = vld [vmem:[#allocation2 + $0xa7] sm:$0xff]  ;;  %v6085_v21 = vld [vmem:[#allocation2 + $0x3f] sm:$0xff] }
 0x499   : > { %v4824_v50 = vmul.u32 24, %v4823_v63  ;;  %v4850_v2 = vadd.s32 %v4849_v5, %v4839_v28  ;;  %v11876_v56 = vadd.f32 %v5257_v20, %v5144_v17  ;;  %v5260_v29 = vpop.f32.mrf.mxu0  ;;  %v6084_v20 = vld [vmem:[#allocation2 + $0x37] sm:$0xff] }
 0x49a   : > { %v4344_v55 = vmul.f32 %v11782_v27, %v4328_v3  ;;  %v11879_v46 = vpop.f32.mrf.mxu1  ;;  %v6316_v27 = vld [vmem:[#allocation8 + $0x3a8] sm:$0xff] }
 0x49b   : > { %v4825_v35 = vsub.s32 %v11789_v24, %v4824_v50  ;;  %v4851_v51 = vadd.s32 %v4850_v2, %v4841_v25  ;;  %v5696_v24 = vld [vmem:[#allocation2 + $0x20] sm:$0xff]  ;;  %5955 = vmatmul.f32.vlgmr.msrb.gmra.mxu0 %v5890_v48  ;;  %v6518_v63 = vld [vmem:[#allocation8 + $0x468] sm:$0xff]  ;;  %6337 = vmatpush.msrb.mxu2 %v6316_v27  ;;  %v5697_v2 = vld [vmem:[#allocation2 + $0x28] sm:$0xff] }
 0x49c   : > { %5615 = vmatmul.f32.gmra.mxu2 %v11881_v10  ;;  %6149 = vmatmul.f32.vlgmr.msra.gmra.mxu1 %v6084_v20  ;;  %v4360_v16 = vadd.f32 %v11798_v42, %v4344_v55  ;;  %v5891_v42 = vld [vmem:[#allocation2 + $0x29] sm:$0xff] }
 0x49d   : > { %vm4871_vm8 = vcmp.ne.s32.totalorder %v4825_v35, 0  ;;  %vm4887_vm9 = vcmp.lt.s32.totalorder %v4825_v35, 0  ;;  %v4919_v9 = vadd.s32 24, %v4825_v35  ;;  %v4852_v8 = vshrl.u32 %v4851_v51, 4  ;;  %5761 = vmatmul.f32.vlgmr.msra.gmra.mxu3 %v5696_v24  ;;  %v11905_v27 = vld [vmem:[#allocation2 + $0xaf] sm:$0xff] }
 0x49e   : > { %vm4903_vm10 = vmand %vm4887_vm9, %vm4871_vm8  ;;  %6523 = vmatpush.msrb.mxu3 %v6518_v63  ;;  %v5892_v63 = vld [vmem:[#allocation2 + $0x31] sm:$0xff] }
 0x49f   : > { %v4935_v28 = vsel %vm4903_vm10, %v4919_v9, %v4825_v35  ;;  %v4853_v26 = vmul.u32 24, %v4852_v8  ;;  %v5568_v44 = vpop.f32.mrf.mxu2  ;;  %v4376_v35 = vmax.f32 %v4360_v16, 0.0  ;;  %v5472_v16 = vadd.f32 %v11476_v1, %v11510_v53  ;;  %v6087_v1 = vld [vmem:[#allocation2 + $0x4f] sm:$0xff] }
 0x4a0   : > { %vm4951_vm11 = vcmp.lt.s32.totalorder %v4935_v28, 16  ;;  %v5147_v50 = vpop.f32.mrf.mxu3  ;;  %v11887_v59 = vadd.f32 %v5568_v44, %v5470_v12  ;;  %v6893_v28 = vld [vmem:[#allocation8 + $0x68] sm:$0xff]  ;;  %v6315_v12 = vld [vmem:[#allocation8 + $0x3a0] sm:$0xff] }
 0x4a1   : > { %v4967_v13 = vsel %vm4951_vm11, %v4375_v61, 0.0  ;;  %v4854_v25 = vsub.s32 %v11816_v34, %v4853_v26  ;;  %v11890_v5 = vadd.f32 %v5260_v29, %v5147_v50  ;;  %v5263_v3 = vpop.f32.mrf.mxu0  ;;  %v6925_v34 = vld [vmem:[#allocation8 + $0xe8] sm:$0xff]  ;;  %v5471_v29 = vadd.f32 %v11446_v40, %v11468_v11  ;;  %6995 = vmatpush.msrb.mxu1 %v6893_v28  ;;  %v5698_v40 = vld [vmem:[#allocation2 + $0x30] sm:$0xff]  ;;  %v6086_v11 = vld [vmem:[#allocation2 + $0x47] sm:$0xff]  ;;  %6338 = vmatpush.msrb.mxu2 %v6315_v12 }
 0x4a2   : > { %4983 = vst [vmem:[#allocation2 + $0x190] sm:$0xff] %v4967_v13  ;;  %v11892_v17 = vpop.f32.mrf.mxu1  ;;  %6930 = vmatpush.msra.mxu0 %v6925_v34  ;;  %v6517_v13 = vld [vmem:[#allocation8 + $0x460] sm:$0xff]  ;;  %v11930_v28 = vld [vmem:[#allocation2 + $0xbf] sm:$0xff]  ;;  %v5474_v12 = vadd.f32 %v11548_v14, %v11567_v31  ;;  %v6923_v31 = vld [vmem:[#allocation8 + $0xd8] sm:$0xff] }
 0x4a3   : > { %vm4872_vm12 = vcmp.ne.s32.totalorder %v4854_v25, 0  ;;  %vm4888_vm13 = vcmp.lt.s32.totalorder %v4854_v25, 0  ;;  %v4920_v32 = vadd.s32 24, %v4854_v25  ;;  %5958 = vmatmul.f32.gmra.mxu0 %v5891_v42  ;;  %6524 = vmatpush.msrb.mxu3 %v6517_v13  ;;  %v5893_v42 = vld [vmem:[#allocation2 + $0x39] sm:$0xff]  ;;  %v6924_v53 = vld [vmem:[#allocation8 + $0xe0] sm:$0xff] }
 0x4a4   : > { %vm4904_vm14 = vmand %vm4888_vm13, %vm4872_vm12  ;;  %5618 = vmatmul.f32.gmra.mxu2 %v11894_v30  ;;  %6152 = vmatmul.f32.gmra.mxu1 %v6085_v21  ;;  %v5473_v21 = vadd.f32 %v11514_v7, %v11543_v60  ;;  %v6088_v7 = vld [vmem:[#allocation2 + $0x57] sm:$0xff]  ;;  %v6314_v60 = vld [vmem:[#allocation8 + $0x398] sm:$0xff] }
 0x4a5   : > { %v4936_v61 = vsel %vm4904_vm14, %v4920_v32, %v4854_v25  ;;  %5764 = vmatmul.f32.gmra.mxu3 %v5697_v2  ;;  %v11916_v32 = vld [vmem:[#allocation2 + $0xb7] sm:$0xff]  ;;  %6931 = vmatpush.msra.mxu0 %v6924_v53  ;;  %v5895_v53 = vld [vmem:[#allocation2 + $0x49] sm:$0xff]  ;;  %v6089_v14 = vld [vmem:[#allocation2 + $0x5f] sm:$0xff] }
 0x4a6   : > { %vm4952_vm15 = vcmp.lt.s32.totalorder %v4936_v61, 16  ;;  %v11919_v2 = vld [vmem:[#allocation2 + $0x38] sm:$0xff]  ;;  %6339 = vmatpush.msrb.mxu2 %v6314_v60  ;;  %v6891_v60 = vld [vmem:[#allocation8 + $0x58] sm:$0xff] }
 0x4a7   : > { %v4968_v55 = vsel %vm4952_vm15, %v4376_v35, 0.0  ;;  %v5571_v9 = vpop.f32.mrf.mxu2  ;;  %6932 = vmatpush.msra.mxu0 %v6923_v31 }
 0x4a8   : > { %4984 = vst [vmem:[#allocation2 + $0x198] sm:$0xff] %v4968_v55  ;;  %v5150_v51 = vpop.f32.mrf.mxu3  ;;  %v11899_v48 = vadd.f32 %v5571_v9, %v5471_v29 }
 0x4a9   : > { %v11901_v24 = vadd.f32 %v5263_v3, %v5150_v51  ;;  %v5266_v20 = vpop.f32.mrf.mxu0  ;;  %v6892_v51 = vld [vmem:[#allocation8 + $0x60] sm:$0xff] }
 0x4aa   : > { %v11903_v8 = vpop.f32.mrf.mxu1  ;;  %6996 = vmatpush.msrb.mxu1 %v6892_v51 }
 0x4ab   : > { %5961 = vmatmul.f32.gmra.mxu0 %v5892_v63  ;;  %v5894_v63 = vld [vmem:[#allocation2 + $0x41] sm:$0xff] }
 0x4ac   : > { %5621 = vmatmul.f32.gmra.mxu2 %v11905_v27  ;;  %6155 = vmatmul.f32.gmra.mxu1 %v6086_v11  ;;  %v6516_v11 = vld [vmem:[#allocation8 + $0x458] sm:$0xff] }
 0x4ad   : > { %5767 = vmatmul.f32.gmra.mxu3 %v5698_v40  ;;  %v11933_v40 = vld [vmem:[#allocation2 + $0x40] sm:$0xff]  ;;  %6997 = vmatpush.msrb.mxu1 %v6891_v60 }
 0x4ae   : > { %6525 = vmatpush.msrb.mxu3 %v6516_v11 }
 0x4af   : > { %v5574_v26 = vpop.f32.mrf.mxu2 }
 0x4b0   : > { %v5153_v44 = vpop.f32.mrf.mxu3  ;;  %v11910_v50 = vadd.f32 %v5574_v26, %v5472_v16 }
 0x4b1   : > { %v11912_v25 = vadd.f32 %v5266_v20, %v5153_v44  ;;  %v5269_v3 = vpop.f32.mrf.mxu0 }
 0x4b2   : > { %v11914_v35 = vpop.f32.mrf.mxu1 }
 0x4b3   : > { %5964 = vmatmul.f32.gmra.mxu0 %v5893_v42 }
 0x4b4   : > { %5624 = vmatmul.f32.gmra.mxu2 %v11916_v32  ;;  %6158 = vmatmul.f32.gmra.mxu1 %v6087_v1  ;;  %v11944_v1 = vld [vmem:[#allocation2 + $0xc7] sm:$0xff] }
 0x4b5   : > { %5770 = vmatmul.f32.gmra.mxu3 %v11919_v2 }
 0x4b7   : > { %v5577_v61 = vpop.f32.mrf.mxu2 }
 0x4b8   : > { %v5156_v34 = vpop.f32.mrf.mxu3  ;;  %v11924_v29 = vadd.f32 %v5577_v61, %v5473_v21  ;;  %v11947_v21 = vld [vmem:[#allocation2 + $0x48] sm:$0xff]  ;;  %v5475_v61 = vadd.f32 %v11571_v19, %v11587_v54  ;;  %v6313_v19 = vld [vmem:[#allocation8 + $0x390] sm:$0xff] }
 0x4b9   : > { %v11926_v55 = vadd.f32 %v5269_v3, %v5156_v34  ;;  %v5272_v9 = vpop.f32.mrf.mxu0  ;;  %v6515_v54 = vld [vmem:[#allocation8 + $0x450] sm:$0xff]  ;;  %6340 = vmatpush.msrb.mxu2 %v6313_v19 }
 0x4ba   : > { %v11928_v20 = vpop.f32.mrf.mxu1  ;;  %6526 = vmatpush.msrb.mxu3 %v6515_v54 }
 0x4bb   : > { %5967 = vmatmul.f32.gmra.mxu0 %v5894_v63 }
 0x4bc   : > { %5627 = vmatmul.f32.gmra.mxu2 %v11930_v28  ;;  %6161 = vmatmul.f32.gmra.mxu1 %v6088_v7 }
 0x4bd   : > { %5773 = vmatmul.f32.gmra.mxu3 %v11933_v40 }
 0x4bf   : > { %v5580_v13 = vpop.f32.mrf.mxu2 }
 0x4c0   : > { %v5159_v16 = vpop.f32.mrf.mxu3  ;;  %v11938_v26 = vadd.f32 %v5580_v13, %v5474_v12  ;;  %v5896_v12 = vld [vmem:[#allocation2 + $0x51] sm:$0xff] }
 0x4c1   : > { %v11940_v44 = vadd.f32 %v5272_v9, %v5159_v16  ;;  %v5275_v3 = vpop.f32.mrf.mxu0  ;;  %v11959_v13 = vld [vmem:[#allocation2 + $0x50] sm:$0xff]  ;;  %v5476_v16 = vadd.f32 %v11592_v6, %v11610_v41  ;;  %v6922_v6 = vld [vmem:[#allocation8 + $0xd0] sm:$0xff] }
 0x4c2   : > { %v11942_v42 = vpop.f32.mrf.mxu1  ;;  %v13615_v41 = vld [vmem:[#allocation46_spill] sm:$0xff]  ;;  %6933 = vmatpush.msra.mxu0 %v6922_v6 }
 0x4c3   : > { %5970 = vmatmul.f32.gmra.mxu0 %v5895_v53 }
 0x4c4   : > { %5630 = vmatmul.f32.gmra.mxu2 %v11944_v1  ;;  %6164 = vmatmul.f32.gmra.mxu1 %v6089_v14 }
 0x4c5   : > { %5776 = vmatmul.f32.gmra.mxu3 %v11947_v21 }
 0x4c7   : > { %v5583_v34 = vpop.f32.mrf.mxu2 }
 0x4c8   : > { %v5162_v9 = vpop.f32.mrf.mxu3  ;;  %v11952_v51 = vadd.f32 %v5583_v34, %v5475_v61  ;;  %v5897_v34 = vld [vmem:[#allocation2 + $0x59] sm:$0xff] }
 0x4c9   : > { %v11954_v63 = vadd.f32 %v5275_v3, %v5162_v9  ;;  %v5278_v7 = vpop.f32.mrf.mxu0  ;;  %v5477_v9 = vadd.f32 %v13615_v41, %v11630_v45  ;;  %v6312_v45 = vld [vmem:[#allocation8 + $0x388] sm:$0xff] }
 0x4ca   : > { %v11956_v11 = vpop.f32.mrf.mxu1  ;;  %6341 = vmatpush.msrb.mxu2 %v6312_v45 }
 0x4cb   : > { %5973 = vmatmul.f32.gmra.mxu0 %v5896_v12 }
 0x4cc   : > { %5633 = vmatmul.f32.gmra.mxu2 %v11667_v43  ;;  %6167 = vmatmul.f32.gmra.mxu1 %v11669_v49  ;;  %v11972_v49 = vld [vmem:[#allocation2 + $0x58] sm:$0xff] }
 0x4cd   : > { %5779 = vmatmul.f32.gmra.mxu3 %v11959_v13 }
 0x4cf   : > { %v5586_v3 = vpop.f32.mrf.mxu2 }
 0x4d0   : > { %v5165_v53 = vpop.f32.mrf.mxu3  ;;  %v11965_v14 = vadd.f32 %v5586_v3, %v5476_v16  ;;  %v5898_v3 = vld [vmem:[#allocation2 + $0x61] sm:$0xff] }
 0x4d1   : > { %v11967_v31 = vadd.f32 %v5278_v7, %v5165_v53  ;;  %v5281_v43 = vpop.f32.mrf.mxu0  ;;  %v6514_v53 = vld [vmem:[#allocation8 + $0x448] sm:$0xff] }
 0x4d2   : > { %v11969_v61 = vpop.f32.mrf.mxu1  ;;  %6527 = vmatpush.msrb.mxu3 %v6514_v53 }
 0x4d3   : > { %5976 = vmatmul.f32.gmra.mxu0 %v5897_v34 }
 0x4d4   : > { %5636 = vmatmul.f32.gmra.mxu2 %v11693_v22  ;;  %6170 = vmatmul.f32.gmra.mxu1 %v11695_v4  ;;  %v6890_v22 = vld [vmem:[#allocation8 + $0x50] sm:$0xff] }
 0x4d5   : > { %5782 = vmatmul.f32.gmra.mxu3 %v11972_v49  ;;  %6998 = vmatpush.msrb.mxu1 %v6890_v22  ;;  %v11985_v4 = vld [vmem:[#allocation2 + $0x60] sm:$0xff] }
 0x4d7   : > { %v5589_v7 = vpop.f32.mrf.mxu2 }
 0x4d8   : > { %v5168_v60 = vpop.f32.mrf.mxu3  ;;  %v11978_v12 = vadd.f32 %v5589_v7, %v5477_v9 }
 0x4d9   : > { %v11980_v19 = vadd.f32 %v5281_v43, %v5168_v60  ;;  %v5284_v54 = vpop.f32.mrf.mxu0  ;;  %v5478_v43 = vadd.f32 %v11637_v0, %v11657_v38  ;;  %v5899_v60 = vld [vmem:[#allocation2 + $0x69] sm:$0xff]  ;;  %v6921_v0 = vld [vmem:[#allocation8 + $0xc8] sm:$0xff] }
 0x4da   : > { %v11982_v16 = vpop.f32.mrf.mxu1  ;;  %v13616_v38 = vld [vmem:[#allocation47_spill] sm:$0xff]  ;;  %6934 = vmatpush.msra.mxu0 %v6921_v0  ;;  %v13618_v0 = vld [vmem:[#allocation30_spill] sm:$0xff] }
 0x4db   : > { %5979 = vmatmul.f32.gmra.mxu0 %v5898_v3  ;;  %v5479_v22 = vadd.f32 %v13616_v38, %v11686_v39  ;;  %v6311_v39 = vld [vmem:[#allocation8 + $0x380] sm:$0xff] }
 0x4dc   : > { %5639 = vmatmul.f32.gmra.mxu2 %v11723_v23  ;;  %6173 = vmatmul.f32.gmra.mxu1 %v11718_v47  ;;  %v11998_v47 = vld [vmem:[#allocation2 + $0x68] sm:$0xff] }
 0x4dd   : > { %5785 = vmatmul.f32.gmra.mxu3 %v11985_v4  ;;  %6342 = vmatpush.msrb.mxu2 %v6311_v39  ;;  %v6920_v39 = vld [vmem:[#allocation8 + $0xc0] sm:$0xff] }
 0x4de   : > { %6935 = vmatpush.msra.mxu0 %v6920_v39  ;;  %v7089_v39 = vld [vmem:[#allocation8 + $0x178] sm:$0xff] }
 0x4df   : > { %v5592_v34 = vpop.f32.mrf.mxu2  ;;  %7090 = vmatpush.msra.mxu2 %v7089_v39  ;;  %v6919_v39 = vld [vmem:[#allocation8 + $0xb8] sm:$0xff] }
 0x4e0   : > { %v5171_v6 = vpop.f32.mrf.mxu3  ;;  %v11991_v41 = vadd.f32 %v5592_v34, %v5478_v43  ;;  %6936 = vmatpush.msra.mxu0 %v6919_v39  ;;  %v7088_v39 = vld [vmem:[#allocation8 + $0x170] sm:$0xff] }
 0x4e1   : > { %v11993_v9 = vadd.f32 %v5284_v54, %v5171_v6  ;;  %v5287_v23 = vpop.f32.mrf.mxu0  ;;  %v5900_v6 = vld [vmem:[#allocation2 + $0x71] sm:$0xff]  ;;  %7091 = vmatpush.msra.mxu2 %v7088_v39 }
 0x4e2   : > { %v11995_v7 = vpop.f32.mrf.mxu1 }
 0x4e3   : > { %5982 = vmatmul.f32.gmra.mxu0 %v5899_v60  ;;  %v6513_v60 = vld [vmem:[#allocation8 + $0x440] sm:$0xff] }
 0x4e4   : > { %5642 = vmatmul.f32.gmra.mxu2 %v11758_v18  ;;  %6176 = vmatmul.f32.gmra.mxu1 %v11760_v15  ;;  %v6889_v18 = vld [vmem:[#allocation8 + $0x48] sm:$0xff]  ;;  %v12011_v15 = vld [vmem:[#allocation2 + $0x70] sm:$0xff] }
 0x4e5   : > { %5788 = vmatmul.f32.gmra.mxu3 %v11998_v47  ;;  %6999 = vmatpush.msrb.mxu1 %v6889_v18 }
 0x4e6   : > { %6528 = vmatpush.msrb.mxu3 %v6513_v60  ;;  %v13624_v60 = vld [vmem:[#allocation34_spill] sm:$0xff] }
 0x4e7   : > { %v5595_v54 = vpop.f32.mrf.mxu2 }
 0x4e8   : > { %v5174_v3 = vpop.f32.mrf.mxu3  ;;  %v12004_v45 = vadd.f32 %v5595_v54, %v5479_v22 }
 0x4e9   : > { %v12006_v53 = vadd.f32 %v5287_v23, %v5174_v3  ;;  %v5290_v43 = vpop.f32.mrf.mxu0  ;;  %v13619_v23 = vld [vmem:[#allocation50_spill] sm:$0xff] }
 0x4ea   : > { %v12008_v34 = vpop.f32.mrf.mxu1  ;;  %v5480_v38 = vadd.f32 %v13619_v23, %v13618_v0  ;;  %v13623_v0 = vld [vmem:[#allocation19_spill] sm:$0xff]  ;;  %v13625_v23 = vld [vmem:[#allocation53_spill] sm:$0xff] }
 0x4eb   : > { %13617 = vst [vmem:[#allocation28_spill] sm:$0xff] %v12008_v34  ;;  %5985 = vmatmul.f32.gmra.mxu0 %v5900_v6  ;;  %v5901_v6 = vld [vmem:[#allocation2 + $0x79] sm:$0xff] }
 0x4ec   : > { %5645 = vmatmul.f32.gmra.mxu2 %v11791_v58  ;;  %6179 = vmatmul.f32.gmra.mxu1 %v11793_v52  ;;  %v12024_v52 = vld [vmem:[#allocation2 + $0x78] sm:$0xff] }
 0x4ed   : > { %5791 = vmatmul.f32.gmra.mxu3 %v12011_v15 }
 0x4ef   : > { %v5598_v22 = vpop.f32.mrf.mxu2 }
 0x4f0   : > { %v5177_v54 = vpop.f32.mrf.mxu3  ;;  %v12017_v3 = vadd.f32 %v5598_v22, %v5480_v38  ;;  %v5481_v38 = vadd.f32 %v13625_v23, %v13624_v60  ;;  %v6512_v60 = vld [vmem:[#allocation8 + $0x438] sm:$0xff]  ;;  %v13629_v23 = vld [vmem:[#allocation31_spill] sm:$0xff] }
 0x4f1   : > { %v12019_v18 = vadd.f32 %v5290_v43, %v5177_v54  ;;  %v5293_v58 = vpop.f32.mrf.mxu0  ;;  %6529 = vmatpush.msrb.mxu3 %v6512_v60  ;;  %v13635_v60 = vld [vmem:[#allocation38_spill] sm:$0xff] }
 0x4f2   : > { %13620 = vst [vmem:[#allocation21_spill] sm:$0xff] %v12017_v3  ;;  %v12021_v34 = vpop.f32.mrf.mxu1 }
 0x4f3   : > { %13621 = vst [vmem:[#allocation49_spill] sm:$0xff] %v12019_v18  ;;  %5988 = vmatmul.f32.gmra.mxu0 %v5901_v6  ;;  %v5902_v6 = vld [vmem:[#allocation2 + $0x81] sm:$0xff] }
 0x4f4   : > { %13622 = vst [vmem:[#allocation35_spill] sm:$0xff] %v12021_v34  ;;  %5648 = vmatmul.f32.gmra.mxu2 %v11836_v62  ;;  %6182 = vmatmul.f32.gmra.mxu1 %v13623_v0  ;;  %v6888_v62 = vld [vmem:[#allocation8 + $0x40] sm:$0xff]  ;;  %v12037_v0 = vld [vmem:[#allocation2 + $0x80] sm:$0xff] }
 0x4f5   : > { %5794 = vmatmul.f32.gmra.mxu3 %v12024_v52  ;;  %7000 = vmatpush.msrb.mxu1 %v6888_v62 }
 0x4f7   : > { %v5601_v43 = vpop.f32.mrf.mxu2 }
 0x4f8   : > { %v5180_v22 = vpop.f32.mrf.mxu3  ;;  %v12030_v54 = vadd.f32 %v5601_v43, %v5481_v38 }
 0x4f9   : > { %v12032_v34 = vadd.f32 %v5293_v58, %v5180_v22  ;;  %v5296_v3 = vpop.f32.mrf.mxu0  ;;  %v13630_v58 = vld [vmem:[#allocation36_spill] sm:$0xff] }
 0x4fa   : > { %13626 = vst [vmem:[#allocation40_spill] sm:$0xff] %v12030_v54  ;;  %v12034_v18 = vpop.f32.mrf.mxu1  ;;  %v5482_v38 = vadd.f32 %v13630_v58, %v13629_v23  ;;  %v13636_v23 = vld [vmem:[#allocation16_spill] sm:$0xff] }
 0x4fb   : > { %13627 = vst [vmem:[#allocation44_spill] sm:$0xff] %v12032_v34  ;;  %5991 = vmatmul.f32.gmra.mxu0 %v5902_v6  ;;  %v12049_v6 = vld [vmem:[#allocation2 + $0x107] sm:$0xff] }
 0x4fc   : > { %13628 = vst [vmem:[#allocation37_spill] sm:$0xff] %v12034_v18  ;;  %5651 = vmatmul.f32.gmra.mxu2 %v11864_v57  ;;  %6185 = vmatmul.f32.gmra.mxu1 %v11866_v33  ;;  %v5903_v34 = vld [vmem:[#allocation2 + $0x89] sm:$0xff] }
 0x4fd   : > { %5797 = vmatmul.f32.gmra.mxu3 %v12037_v0  ;;  %13634 = vst [vmem:[#allocation43_spill] sm:$0xff] %v12049_v6  ;;  %v12052_v33 = vld [vmem:[#allocation2 + $0x88] sm:$0xff] }
 0x4ff   : > { %v5604_v43 = vpop.f32.mrf.mxu2 }
 0x500   : > { %v5183_v22 = vpop.f32.mrf.mxu3  ;;  %v12043_v62 = vadd.f32 %v5604_v43, %v5482_v38 }
 0x501   : > { %v12045_v18 = vadd.f32 %v5296_v3, %v5183_v22  ;;  %v5299_v57 = vpop.f32.mrf.mxu0  ;;  %v5483_v3 = vadd.f32 %v13636_v23, %v13635_v60  ;;  %v6511_v60 = vld [vmem:[#allocation8 + $0x430] sm:$0xff] }
 0x502   : > { %13631 = vst [vmem:[#allocation52_spill] sm:$0xff] %v12043_v62  ;;  %v12047_v54 = vpop.f32.mrf.mxu1  ;;  %6530 = vmatpush.msrb.mxu3 %v6511_v60 }
 0x503   : > { %13632 = vst [vmem:[#allocation41_spill] sm:$0xff] %v12045_v18  ;;  %5994 = vmatmul.f32.gmra.mxu0 %v5903_v34  ;;  %v12064_v18 = vld [vmem:[#allocation2 + $0x10f] sm:$0xff] }
 0x504   : > { %13633 = vst [vmem:[#allocation42_spill] sm:$0xff] %v12047_v54  ;;  %5654 = vmatmul.f32.gmra.mxu2 %v12049_v6  ;;  %6188 = vmatmul.f32.gmra.mxu1 %v11881_v10  ;;  %v5904_v34 = vld [vmem:[#allocation2 + $0x91] sm:$0xff]  ;;  %v6887_v6 = vld [vmem:[#allocation8 + $0x38] sm:$0xff] }
 0x505   : > { %5800 = vmatmul.f32.gmra.mxu3 %v12052_v33  ;;  %13640 = vst [vmem:[#allocation29_spill] sm:$0xff] %v12064_v18  ;;  %v12067_v10 = vld [vmem:[#allocation2 + $0x90] sm:$0xff]  ;;  %7001 = vmatpush.msrb.mxu1 %v6887_v6 }
 0x507   : > { %v5607_v58 = vpop.f32.mrf.mxu2 }
 0x508   : > { %v5186_v38 = vpop.f32.mrf.mxu3  ;;  %v12058_v43 = vadd.f32 %v5607_v58, %v5483_v3 }
 0x509   : > { %v12060_v22 = vadd.f32 %v5299_v57, %v5186_v38  ;;  %v5302_v54 = vpop.f32.mrf.mxu0  ;;  %v13641_v57 = vld [vmem:[#allocation26_spill] sm:$0xff] }
 0x50a   : > { %13637 = vst [vmem:[#allocation45_spill] sm:$0xff] %v12058_v43  ;;  %v12062_v62 = vpop.f32.mrf.mxu1  ;;  %v5484_v23 = vadd.f32 %v13641_v57, %v11860_v36  ;;  %v6918_v36 = vld [vmem:[#allocation8 + $0xb0] sm:$0xff] }
 0x50b   : > { %13638 = vst [vmem:[#allocation48_spill] sm:$0xff] %v12060_v22  ;;  %5997 = vmatmul.f32.gmra.mxu0 %v5904_v34  ;;  %v12079_v22 = vld [vmem:[#allocation2 + $0x117] sm:$0xff] }
 0x50c   : > { %13639 = vst [vmem:[#allocation51_spill] sm:$0xff] %v12062_v62  ;;  %5657 = vmatmul.f32.gmra.mxu2 %v12064_v18  ;;  %6191 = vmatmul.f32.gmra.mxu1 %v11894_v30  ;;  %v5905_v30 = vld [vmem:[#allocation2 + $0x99] sm:$0xff] }
 0x50d   : > { %5803 = vmatmul.f32.gmra.mxu3 %v12067_v10  ;;  %v12082_v18 = vld [vmem:[#allocation2 + $0x98] sm:$0xff]  ;;  %6937 = vmatpush.msra.mxu0 %v6918_v36 }
 0x50f   : > { %v5610_v3 = vpop.f32.mrf.mxu2 }
 0x510   : > { %v5189_v58 = vpop.f32.mrf.mxu3  ;;  %v12073_v38 = vadd.f32 %v5610_v3, %v5484_v23 }
 0x511   : > { %v12075_v62 = vadd.f32 %v5302_v54, %v5189_v58  ;;  %v5305_v43 = vpop.f32.mrf.mxu0  ;;  %v5485_v54 = vadd.f32 %v11862_v37, %v11876_v56  ;;  %v5906_v58 = vld [vmem:[#allocation2 + $0xa1] sm:$0xff]  ;;  %v7087_v37 = vld [vmem:[#allocation8 + $0x168] sm:$0xff] }
 0x512   : > { %v12077_v34 = vpop.f32.mrf.mxu1  ;;  %v6510_v56 = vld [vmem:[#allocation8 + $0x428] sm:$0xff]  ;;  %7092 = vmatpush.msra.mxu2 %v7087_v37 }
 0x513   : > { %13642 = vst [vmem:[#allocation25_spill] sm:$0xff] %v12077_v34  ;;  %6000 = vmatmul.f32.gmra.mxu0 %v5905_v30  ;;  %v6886_v30 = vld [vmem:[#allocation8 + $0x30] sm:$0xff]  ;;  %6531 = vmatpush.msrb.mxu3 %v6510_v56 }
 0x514   : > { %5660 = vmatmul.f32.gmra.mxu2 %v12079_v22  ;;  %6194 = vmatmul.f32.gmra.mxu1 %v11905_v27  ;;  %v12094_v34 = vld [vmem:[#allocation2 + $0xa0] sm:$0xff]  ;;  %v5486_v27 = vadd.f32 %v11879_v46, %v11890_v5  ;;  %v6917_v46 = vld [vmem:[#allocation8 + $0xa8] sm:$0xff]  ;;  %v5487_v5 = vadd.f32 %v11892_v17, %v11901_v24  ;;  %v7086_v17 = vld [vmem:[#allocation8 + $0x160] sm:$0xff] }
 0x515   : > { %5806 = vmatmul.f32.gmra.mxu3 %v12082_v18  ;;  %7002 = vmatpush.msrb.mxu1 %v6886_v30  ;;  %v6509_v24 = vld [vmem:[#allocation8 + $0x420] sm:$0xff] }
 0x516   : > { %6938 = vmatpush.msra.mxu0 %v6917_v46  ;;  %7093 = vmatpush.msra.mxu2 %v7086_v17 }
 0x517   : > { %v5613_v6 = vpop.f32.mrf.mxu2  ;;  %6532 = vmatpush.msrb.mxu3 %v6509_v24 }
 0x518   : > { %v5192_v39 = vpop.f32.mrf.mxu3  ;;  %v12088_v60 = vadd.f32 %v5613_v6, %v5485_v54 }
 0x519   : > { %v12090_v57 = vadd.f32 %v5305_v43, %v5192_v39  ;;  %v5956_v23 = vpop.f32.mrf.mxu0 }
 0x51a   : > { %v12092_v3 = vpop.f32.mrf.mxu1 }
 0x51b   : > { %13643 = vst [vmem:[#allocation32_spill] sm:$0xff] %v12092_v3  ;;  %6003 = vmatmul.f32.gmra.mxu0 %v5906_v58  ;;  %v12108_v3 = vld [vmem:[#allocation2 + $0xa8] sm:$0xff] }
 0x51c   : > { %6343 = vmatmul.f32.vlgmr.msrb.gmra.mxu2 %v11919_v2  ;;  %6197 = vmatmul.f32.gmra.mxu1 %v11916_v32  ;;  %v5907_v32 = vld [vmem:[#allocation2 + $0xa9] sm:$0xff] }
 0x51d   : > { %5809 = vmatmul.f32.gmra.mxu3 %v12094_v34 }
 0x51f   : > { %v5616_v43 = vpop.f32.mrf.mxu2 }
 0x520   : > { %v12101_v36 = vadd.f32 %v5616_v43, %v5486_v27  ;;  %v5762_v54 = vpop.f32.mrf.mxu3 }
 0x521   : > { %v5858_v6 = vadd.f32 %v5762_v54, %v11887_v59  ;;  %v5959_v39 = vpop.f32.mrf.mxu0  ;;  %v6885_v54 = vld [vmem:[#allocation8 + $0x28] sm:$0xff] }
 0x522   : > { %v12104_v2 = vpop.f32.mrf.mxu1  ;;  %7003 = vmatpush.msrb.mxu1 %v6885_v54 }
 0x523   : > { %v12106_v58 = vadd.f32 %v5956_v23, %v5858_v6  ;;  %6006 = vmatmul.f32.gmra.mxu0 %v5907_v32  ;;  %v12122_v6 = vld [vmem:[#allocation2 + $0xb0] sm:$0xff] }
 0x524   : > { %6346 = vmatmul.f32.gmra.mxu2 %v11933_v40  ;;  %6200 = vmatmul.f32.gmra.mxu1 %v11930_v28  ;;  %v5908_v40 = vld [vmem:[#allocation2 + $0xb1] sm:$0xff] }
 0x525   : > { %5812 = vmatmul.f32.gmra.mxu3 %v12108_v3 }
 0x527   : > { %v5619_v59 = vpop.f32.mrf.mxu2 }
 0x528   : > { %v12115_v30 = vadd.f32 %v5619_v59, %v5487_v5  ;;  %v5765_v23 = vpop.f32.mrf.mxu3 }
 0x529   : > { %v5859_v37 = vadd.f32 %v5765_v23, %v11899_v48  ;;  %v5962_v56 = vpop.f32.mrf.mxu0  ;;  %v5488_v48 = vadd.f32 %v11903_v8, %v11912_v25  ;;  %v12136_v23 = vld [vmem:[#allocation2 + $0xb8] sm:$0xff]  ;;  %v6916_v8 = vld [vmem:[#allocation8 + $0xa0] sm:$0xff]  ;;  %v5489_v25 = vadd.f32 %v11914_v35, %v11926_v55  ;;  %v7085_v35 = vld [vmem:[#allocation8 + $0x158] sm:$0xff] }
 0x52a   : > { %v12118_v27 = vpop.f32.mrf.mxu1  ;;  %6939 = vmatpush.msra.mxu0 %v6916_v8  ;;  %v6508_v55 = vld [vmem:[#allocation8 + $0x418] sm:$0xff]  ;;  %7094 = vmatpush.msra.mxu2 %v7085_v35 }
 0x52b   : > { %v12120_v43 = vadd.f32 %v5959_v39, %v5859_v37  ;;  %6009 = vmatmul.f32.gmra.mxu0 %v5908_v40  ;;  %v6103_v37 = vld [vmem:[#allocation2 + $0xcf] sm:$0xff]  ;;  %6533 = vmatpush.msrb.mxu3 %v6508_v55 }
 0x52c   : > { %6349 = vmatmul.f32.gmra.mxu2 %v11947_v21  ;;  %6203 = vmatmul.f32.gmra.mxu1 %v11944_v1  ;;  %v5909_v1 = vld [vmem:[#allocation2 + $0xb9] sm:$0xff] }
 0x52d   : > { %5815 = vmatmul.f32.gmra.mxu3 %v12122_v6 }
 0x52f   : > { %v5622_v28 = vpop.f32.mrf.mxu2 }
 0x530   : > { %v12129_v39 = vadd.f32 %v5622_v28, %v5488_v48  ;;  %v5768_v32 = vpop.f32.mrf.mxu3  ;;  %v6884_v28 = vld [vmem:[#allocation8 + $0x20] sm:$0xff] }
 0x531   : > { %v5860_v46 = vadd.f32 %v5768_v32, %v11910_v50  ;;  %v5965_v5 = vpop.f32.mrf.mxu0  ;;  %v12149_v32 = vld [vmem:[#allocation2 + $0xc0] sm:$0xff]  ;;  %7004 = vmatpush.msrb.mxu1 %v6884_v28 }
 0x532   : > { %v12132_v21 = vpop.f32.mrf.mxu1 }
 0x533   : > { %v12134_v59 = vadd.f32 %v5962_v56, %v5860_v46  ;;  %6012 = vmatmul.f32.gmra.mxu0 %v5909_v1  ;;  %v6104_v46 = vld [vmem:[#allocation2 + $0xd7] sm:$0xff] }
 0x534   : > { %6352 = vmatmul.f32.gmra.mxu2 %v11959_v13  ;;  %6206 = vmatmul.f32.gmra.mxu1 %v6103_v37  ;;  %v5910_v13 = vld [vmem:[#allocation2 + $0xc1] sm:$0xff] }
 0x535   : > { %5818 = vmatmul.f32.gmra.mxu3 %v12136_v23 }
 0x537   : > { %v5625_v50 = vpop.f32.mrf.mxu2 }
 0x538   : > { %v12142_v40 = vadd.f32 %v5625_v50, %v5489_v25  ;;  %v5771_v56 = vpop.f32.mrf.mxu3 }
 0x539   : > { %v5861_v54 = vadd.f32 %v5771_v56, %v11924_v29  ;;  %v5968_v17 = vpop.f32.mrf.mxu0  ;;  %v5490_v29 = vadd.f32 %v11928_v20, %v11940_v44  ;;  %v5911_v56 = vld [vmem:[#allocation2 + $0xc9] sm:$0xff]  ;;  %v5491_v44 = vadd.f32 %v11942_v42, %v11954_v63  ;;  %v7084_v42 = vld [vmem:[#allocation8 + $0x150] sm:$0xff] }
 0x53a   : > { %v12145_v24 = vpop.f32.mrf.mxu1  ;;  %v6915_v20 = vld [vmem:[#allocation8 + $0x98] sm:$0xff]  ;;  %v6507_v63 = vld [vmem:[#allocation8 + $0x410] sm:$0xff]  ;;  %7095 = vmatpush.msra.mxu2 %v7084_v42 }
 0x53b   : > { %v12147_v48 = vadd.f32 %v5965_v5, %v5861_v54  ;;  %6015 = vmatmul.f32.gmra.mxu0 %v5910_v13  ;;  %v12162_v54 = vld [vmem:[#allocation2 + $0xc8] sm:$0xff]  ;;  %v6105_v13 = vld [vmem:[#allocation2 + $0xdf] sm:$0xff]  ;;  %6534 = vmatpush.msrb.mxu3 %v6507_v63 }
 0x53c   : > { %6355 = vmatmul.f32.gmra.mxu2 %v11972_v49  ;;  %6209 = vmatmul.f32.gmra.mxu1 %v6104_v46 }
 0x53d   : > { %5821 = vmatmul.f32.gmra.mxu3 %v12149_v32  ;;  %6940 = vmatpush.msra.mxu0 %v6915_v20 }
 0x53f   : > { %v5628_v5 = vpop.f32.mrf.mxu2 }
 0x540   : > { %v12155_v1 = vadd.f32 %v5628_v5, %v5490_v29  ;;  %v5774_v37 = vpop.f32.mrf.mxu3  ;;  %v6883_v5 = vld [vmem:[#allocation8 + $0x18] sm:$0xff] }
 0x541   : > { %v5862_v8 = vadd.f32 %v5774_v37, %v11938_v26  ;;  %v5971_v25 = vpop.f32.mrf.mxu0  ;;  %v12175_v37 = vld [vmem:[#allocation2 + $0xd0] sm:$0xff]  ;;  %7005 = vmatpush.msrb.mxu1 %v6883_v5 }
 0x542   : > { %v12158_v50 = vpop.f32.mrf.mxu1 }
 0x543   : > { %v12160_v49 = vadd.f32 %v5968_v17, %v5862_v8  ;;  %6018 = vmatmul.f32.gmra.mxu0 %v5911_v56  ;;  %v6106_v8 = vld [vmem:[#allocation2 + $0xe7] sm:$0xff] }
 0x544   : > { %6358 = vmatmul.f32.gmra.mxu2 %v11985_v4  ;;  %6212 = vmatmul.f32.gmra.mxu1 %v6105_v13  ;;  %v5912_v4 = vld [vmem:[#allocation2 + $0xd1] sm:$0xff] }
 0x545   : > { %5824 = vmatmul.f32.gmra.mxu3 %v12162_v54 }
 0x547   : > { %v5631_v26 = vpop.f32.mrf.mxu2 }
 0x548   : > { %v12168_v28 = vadd.f32 %v5631_v26, %v5491_v44  ;;  %v5777_v17 = vpop.f32.mrf.mxu3 }
 0x549   : > { %v5863_v46 = vadd.f32 %v5777_v17, %v11952_v51  ;;  %v5974_v35 = vpop.f32.mrf.mxu0  ;;  %v5492_v51 = vadd.f32 %v11956_v11, %v11967_v31  ;;  %v5913_v17 = vld [vmem:[#allocation2 + $0xd9] sm:$0xff]  ;;  %v5493_v31 = vadd.f32 %v11969_v61, %v11980_v19 }
 0x54a   : > { %v12171_v55 = vpop.f32.mrf.mxu1  ;;  %v6914_v11 = vld [vmem:[#allocation8 + $0x90] sm:$0xff]  ;;  %v7083_v61 = vld [vmem:[#allocation8 + $0x148] sm:$0xff] }
 0x54b   : > { %v12173_v29 = vadd.f32 %v5971_v25, %v5863_v46  ;;  %6021 = vmatmul.f32.gmra.mxu0 %v5912_v4  ;;  %v12188_v46 = vld [vmem:[#allocation2 + $0xd8] sm:$0xff]  ;;  %v6107_v4 = vld [vmem:[#allocation2 + $0xef] sm:$0xff]  ;;  %7096 = vmatpush.msra.mxu2 %v7083_v61 }
 0x54c   : > { %6361 = vmatmul.f32.gmra.mxu2 %v11998_v47  ;;  %6215 = vmatmul.f32.gmra.mxu1 %v6106_v8  ;;  %v6506_v19 = vld [vmem:[#allocation8 + $0x408] sm:$0xff] }
 0x54d   : > { %5827 = vmatmul.f32.gmra.mxu3 %v12175_v37  ;;  %6941 = vmatpush.msra.mxu0 %v6914_v11 }
 0x54e   : > { %6535 = vmatpush.msrb.mxu3 %v6506_v19 }
 0x54f   : > { %v5634_v25 = vpop.f32.mrf.mxu2 }
 0x550   : > { %v12181_v56 = vadd.f32 %v5634_v25, %v5492_v51  ;;  %v5780_v13 = vpop.f32.mrf.mxu3  ;;  %v6882_v25 = vld [vmem:[#allocation8 + $0x10] sm:$0xff] }
 0x551   : > { %v5864_v20 = vadd.f32 %v5780_v13, %v11965_v14  ;;  %v5977_v44 = vpop.f32.mrf.mxu0  ;;  %v12201_v13 = vld [vmem:[#allocation2 + $0xe0] sm:$0xff]  ;;  %7006 = vmatpush.msrb.mxu1 %v6882_v25 }
 0x552   : > { %v12184_v26 = vpop.f32.mrf.mxu1 }
 0x553   : > { %v12186_v47 = vadd.f32 %v5974_v35, %v5864_v20  ;;  %6024 = vmatmul.f32.gmra.mxu0 %v5913_v17  ;;  %v6108_v20 = vld [vmem:[#allocation2 + $0xf7] sm:$0xff] }
 0x554   : > { %6364 = vmatmul.f32.gmra.mxu2 %v12011_v15  ;;  %6218 = vmatmul.f32.gmra.mxu1 %v6107_v4  ;;  %v5914_v15 = vld [vmem:[#allocation2 + $0xe1] sm:$0xff] }
 0x555   : > { %5830 = vmatmul.f32.gmra.mxu3 %v12188_v46 }
 0x557   : > { %v5637_v14 = vpop.f32.mrf.mxu2 }
 0x558   : > { %v12194_v5 = vadd.f32 %v5637_v14, %v5493_v31  ;;  %v5783_v35 = vpop.f32.mrf.mxu3 }
 0x559   : > { %v5865_v8 = vadd.f32 %v5783_v35, %v11978_v12  ;;  %v5980_v42 = vpop.f32.mrf.mxu0  ;;  %v5494_v12 = vadd.f32 %v11982_v16, %v11993_v9  ;;  %v5915_v35 = vld [vmem:[#allocation2 + $0xe9] sm:$0xff]  ;;  %v6913_v16 = vld [vmem:[#allocation8 + $0x88] sm:$0xff]  ;;  %v5495_v9 = vadd.f32 %v11995_v7, %v12006_v53 }
 0x55a   : > { %v12197_v63 = vpop.f32.mrf.mxu1  ;;  %6942 = vmatpush.msra.mxu0 %v6913_v16  ;;  %v13648_v7 = vld [vmem:[#allocation43_spill] sm:$0xff]  ;;  %v7082_v53 = vld [vmem:[#allocation8 + $0x140] sm:$0xff] }
 0x55b   : > { %v12199_v51 = vadd.f32 %v5977_v44, %v5865_v8  ;;  %6027 = vmatmul.f32.gmra.mxu0 %v5914_v15  ;;  %v12214_v8 = vld [vmem:[#allocation2 + $0xe8] sm:$0xff]  ;;  %v6109_v15 = vld [vmem:[#allocation2 + $0xff] sm:$0xff]  ;;  %7097 = vmatpush.msra.mxu2 %v7082_v53  ;;  %v6912_v53 = vld [vmem:[#allocation8 + $0x80] sm:$0xff] }
 0x55c   : > { %6367 = vmatmul.f32.gmra.mxu2 %v12024_v52  ;;  %6221 = vmatmul.f32.gmra.mxu1 %v6108_v20 }
 0x55d   : > { %5833 = vmatmul.f32.gmra.mxu3 %v12201_v13  ;;  %6943 = vmatpush.msra.mxu0 %v6912_v53  ;;  %v7081_v53 = vld [vmem:[#allocation8 + $0x138] sm:$0xff] }
 0x55e   : > { %7098 = vmatpush.msra.mxu2 %v7081_v53  ;;  %v7202_v53 = vld [vmem:[#allocation8 + $0x1f8] sm:$0xff] }
 0x55f   : > { %v5640_v44 = vpop.f32.mrf.mxu2  ;;  %7203 = vmatpush.msrb.mxu0 %v7202_v53  ;;  %v7080_v53 = vld [vmem:[#allocation8 + $0x130] sm:$0xff] }
 0x560   : > { %v12207_v17 = vadd.f32 %v5640_v44, %v5494_v12  ;;  %v5786_v4 = vpop.f32.mrf.mxu3  ;;  %v6881_v44 = vld [vmem:[#allocation8 + $0x8] sm:$0xff]  ;;  %7099 = vmatpush.msra.mxu2 %v7080_v53 }
 0x561   : > { %v5866_v11 = vadd.f32 %v5786_v4, %v11991_v41  ;;  %v5983_v31 = vpop.f32.mrf.mxu0  ;;  %v12227_v4 = vld [vmem:[#allocation2 + $0xf0] sm:$0xff]  ;;  %7007 = vmatpush.msrb.mxu1 %v6881_v44  ;;  %v13655_v44 = vld [vmem:[#allocation29_spill] sm:$0xff] }
 0x562   : > { %v12210_v14 = vpop.f32.mrf.mxu1 }
 0x563   : > { %13644 = vst [vmem:[#allocation33_spill] sm:$0xff] %v12210_v14  ;;  %v12212_v52 = vadd.f32 %v5980_v42, %v5866_v11  ;;  %6030 = vmatmul.f32.gmra.mxu0 %v5915_v35  ;;  %v6505_v11 = vld [vmem:[#allocation8 + $0x400] sm:$0xff]  ;;  %v13649_v35 = vld [vmem:[#allocation49_spill] sm:$0xff] }
 0x564   : > { %6370 = vmatmul.f32.gmra.mxu2 %v12037_v0  ;;  %6224 = vmatmul.f32.gmra.mxu1 %v6109_v15  ;;  %v5916_v0 = vld [vmem:[#allocation2 + $0xf1] sm:$0xff]  ;;  %v12271_v14 = vld [vmem:[#allocation2 + $0x108] sm:$0xff] }
 0x565   : > { %5836 = vmatmul.f32.gmra.mxu3 %v12214_v8 }
 0x566   : > { %6536 = vmatpush.msrb.mxu3 %v6505_v11  ;;  %v13656_v11 = vld [vmem:[#allocation44_spill] sm:$0xff] }
 0x567   : > { %v5643_v41 = vpop.f32.mrf.mxu2 }
 0x568   : > { %v12220_v25 = vadd.f32 %v5643_v41, %v5495_v9  ;;  %v5789_v42 = vpop.f32.mrf.mxu3  ;;  %v13652_v41 = vld [vmem:[#allocation21_spill] sm:$0xff] }
 0x569   : > { %v5867_v20 = vadd.f32 %v5789_v42, %v12004_v45  ;;  %v5986_v61 = vpop.f32.mrf.mxu0  ;;  %v13650_v45 = vld [vmem:[#allocation28_spill] sm:$0xff] }
 0x56a   : > { %13645 = vst [vmem:[#allocation14_spill] sm:$0xff] %v12220_v25  ;;  %v12223_v19 = vpop.f32.mrf.mxu1  ;;  %v5496_v15 = vadd.f32 %v13650_v45, %v13649_v35  ;;  %v12241_v25 = vld [vmem:[#allocation2 + $0xf8] sm:$0xff] }
 0x56b   : > { %13646 = vst [vmem:[#allocation27_spill] sm:$0xff] %v12223_v19  ;;  %v12225_v12 = vadd.f32 %v5983_v31, %v5867_v20  ;;  %6033 = vmatmul.f32.gmra.mxu0 %v5916_v0  ;;  %v5917_v19 = vld [vmem:[#allocation2 + $0xf9] sm:$0xff] }
 0x56c   : > { %6373 = vmatmul.f32.gmra.mxu2 %v12052_v33  ;;  %6227 = vmatmul.f32.gmra.mxu1 %v13648_v7  ;;  %v13657_v35 = vld [vmem:[#allocation35_spill] sm:$0xff] }
 0x56d   : > { %13647 = vst [vmem:[#allocation18_spill] sm:$0xff] %v12225_v12  ;;  %5839 = vmatmul.f32.gmra.mxu3 %v12227_v4  ;;  %v5497_v45 = vadd.f32 %v13657_v35, %v13656_v11  ;;  %v7541_v11 = vld [vmem:[#allocation8 + $0x378] sm:$0xff]  ;;  %v7314_v12 = vld [vmem:[#allocation8 + $0x270] sm:$0xff] }
 0x56e   : > { %v13663_v35 = vld [vmem:[#allocation41_spill] sm:$0xff]  ;;  %7542 = vmatpush.msra.mxu3 %v7541_v11  ;;  %v13670_v11 = vld [vmem:[#allocation48_spill] sm:$0xff] }
 0x56f   : > { %v5646_v31 = vpop.f32.mrf.mxu2 }
 0x570   : > { %v12234_v16 = vadd.f32 %v5646_v31, %v5496_v15  ;;  %v5792_v9 = vpop.f32.mrf.mxu3 }
 0x571   : > { %v5868_v42 = vadd.f32 %v5792_v9, %v13652_v41  ;;  %v5989_v20 = vpop.f32.mrf.mxu0  ;;  %v13659_v9 = vld [vmem:[#allocation40_spill] sm:$0xff] }
 0x572   : > { %13651 = vst [vmem:[#allocation20_spill] sm:$0xff] %v12234_v16  ;;  %v12237_v33 = vpop.f32.mrf.mxu1  ;;  %v6880_v16 = vld [vmem:[#allocation8] sm:$0xff] }
 0x573   : > { %13653 = vst [vmem:[#allocation22_spill] sm:$0xff] %v12237_v33  ;;  %v12239_v0 = vadd.f32 %v5986_v61, %v5868_v42  ;;  %6036 = vmatmul.f32.gmra.mxu0 %v5917_v19  ;;  %7008 = vmatpush.msrb.mxu1 %v6880_v16  ;;  %v12274_v16 = vld [vmem:[#allocation2 + $0x11f] sm:$0xff] }
 0x574   : > { %6376 = vmatmul.f32.gmra.mxu2 %v12067_v10  ;;  %6230 = vmatmul.f32.gmra.mxu1 %v13655_v44  ;;  %v5918_v10 = vld [vmem:[#allocation2 + $0x101] sm:$0xff] }
 0x575   : > { %13654 = vst [vmem:[#allocation24_spill] sm:$0xff] %v12239_v0  ;;  %5842 = vmatmul.f32.gmra.mxu3 %v12241_v25  ;;  %v12255_v0 = vld [vmem:[#allocation2 + $0x100] sm:$0xff] }
 0x576   : > { %13662 = vst [vmem:[#allocation39_spill] sm:$0xff] %v12255_v0 }
 0x577   : > { %v5649_v15 = vpop.f32.mrf.mxu2 }
 0x578   : > { %v12248_v31 = vadd.f32 %v5649_v15, %v5497_v45  ;;  %v5795_v61 = vpop.f32.mrf.mxu3  ;;  %v13664_v45 = vld [vmem:[#allocation37_spill] sm:$0xff] }
 0x579   : > { %v5869_v41 = vadd.f32 %v5795_v61, %v13659_v9  ;;  %v5992_v42 = vpop.f32.mrf.mxu0  ;;  %v5498_v15 = vadd.f32 %v13664_v45, %v13663_v35  ;;  %v13671_v35 = vld [vmem:[#allocation42_spill] sm:$0xff] }
 0x57a   : > { %13658 = vst [vmem:[#allocation15_spill] sm:$0xff] %v12248_v31  ;;  %v12251_v33 = vpop.f32.mrf.mxu1  ;;  %v5499_v45 = vadd.f32 %v13671_v35, %v13670_v11  ;;  %v12293_v11 = vld [vmem:[#allocation2 + $0x127] sm:$0xff] }
 0x57b   : > { %13660 = vst [vmem:[#allocation17_spill] sm:$0xff] %v12251_v33  ;;  %v12253_v19 = vadd.f32 %v5989_v20, %v5869_v41  ;;  %6039 = vmatmul.f32.gmra.mxu0 %v5918_v10  ;;  %v13666_v41 = vld [vmem:[#allocation52_spill] sm:$0xff] }
 0x57c   : > { %6379 = vmatmul.f32.gmra.mxu2 %v12082_v18  ;;  %6233 = vmatmul.f32.gmra.mxu1 %v12079_v22  ;;  %v7201_v35 = vld [vmem:[#allocation8 + $0x1f0] sm:$0xff] }
 0x57d   : > { %13661 = vst [vmem:[#allocation23_spill] sm:$0xff] %v12253_v19  ;;  %5845 = vmatmul.f32.gmra.mxu3 %v12255_v0  ;;  %v12269_v19 = vld [vmem:[#allocation2 + $0x109] sm:$0xff]  ;;  %7204 = vmatpush.msrb.mxu0 %v7201_v35  ;;  %v12309_v0 = vld [vmem:[#allocation2 + $0x118] sm:$0xff] }
 0x57e   : > { %13669 = vst [vmem:[#allocation50_spill] sm:$0xff] %v12269_v19 }
 0x57f   : > { %v5652_v20 = vpop.f32.mrf.mxu2 }
 0x580   : > { %v12262_v61 = vadd.f32 %v5652_v20, %v5498_v15  ;;  %v5798_v9 = vpop.f32.mrf.mxu3 }
 0x581   : > { %v5870_v10 = vadd.f32 %v5798_v9, %v13666_v41  ;;  %v5995_v33 = vpop.f32.mrf.mxu0  ;;  %v13673_v9 = vld [vmem:[#allocation45_spill] sm:$0xff] }
 0x582   : > { %13665 = vst [vmem:[#allocation46_spill] sm:$0xff] %v12262_v61  ;;  %v12265_v18 = vpop.f32.mrf.mxu1  ;;  %v7315_v61 = vld [vmem:[#allocation8 + $0x278] sm:$0xff] }
 0x583   : > { %13667 = vst [vmem:[#allocation47_spill] sm:$0xff] %v12265_v18  ;;  %v12267_v31 = vadd.f32 %v5992_v42, %v5870_v10  ;;  %6042 = vmatmul.f32.gmra.mxu0 %v12269_v19  ;;  %7316 = vmatpush.msra.mxu1 %v7315_v61  ;;  %v13679_v61 = vld [vmem:[#allocation25_spill] sm:$0xff] }
 0x584   : > { %6382 = vmatmul.f32.gmra.mxu2 %v12094_v34  ;;  %6236 = vmatmul.f32.gmra.mxu1 %v12274_v16  ;;  %v12288_v34 = vld [vmem:[#allocation2 + $0x111] sm:$0xff] }
 0x585   : > { %13668 = vst [vmem:[#allocation30_spill] sm:$0xff] %v12267_v31  ;;  %5848 = vmatmul.f32.gmra.mxu3 %v12271_v14  ;;  %v12290_v31 = vld [vmem:[#allocation2 + $0x110] sm:$0xff]  ;;  %7317 = vmatpush.msra.mxu1 %v7314_v12 }
 0x586   : > { %13676 = vst [vmem:[#allocation31_spill] sm:$0xff] %v12288_v34  ;;  %v7199_v12 = vld [vmem:[#allocation8 + $0x1e0] sm:$0xff] }
 0x587   : > { %v5655_v42 = vpop.f32.mrf.mxu2 }
 0x588   : > { %v12281_v15 = vadd.f32 %v5655_v42, %v5499_v45  ;;  %v5801_v20 = vpop.f32.mrf.mxu3  ;;  %v7540_v45 = vld [vmem:[#allocation8 + $0x370] sm:$0xff] }
 0x589   : > { %v5871_v41 = vadd.f32 %v5801_v20, %v13673_v9  ;;  %v5998_v10 = vpop.f32.mrf.mxu0  ;;  %7543 = vmatpush.msra.mxu3 %v7540_v45 }
 0x58a   : > { %13672 = vst [vmem:[#allocation19_spill] sm:$0xff] %v12281_v15  ;;  %v12284_v19 = vpop.f32.mrf.mxu1 }
 0x58b   : > { %13674 = vst [vmem:[#allocation34_spill] sm:$0xff] %v12284_v19  ;;  %v12286_v18 = vadd.f32 %v5995_v33, %v5871_v41  ;;  %6045 = vmatmul.f32.gmra.mxu0 %v12288_v34  ;;  %v13677_v33 = vld [vmem:[#allocation51_spill] sm:$0xff] }
 0x58c   : > { %6385 = vmatmul.f32.gmra.mxu2 %v12108_v3  ;;  %6239 = vmatmul.f32.gmra.mxu1 %v12293_v11  ;;  %v5500_v42 = vadd.f32 %v13677_v33, %v12075_v62  ;;  %v12312_v62 = vld [vmem:[#allocation2 + $0x12f] sm:$0xff] }
 0x58d   : > { %13675 = vst [vmem:[#allocation53_spill] sm:$0xff] %v12286_v18  ;;  %5851 = vmatmul.f32.gmra.mxu3 %v12290_v31  ;;  %v12307_v18 = vld [vmem:[#allocation2 + $0x119] sm:$0xff] }
 0x58e   : > { %13678 = vst [vmem:[#allocation36_spill] sm:$0xff] %v12307_v18 }
 0x58f   : > { %v5658_v20 = vpop.f32.mrf.mxu2 }
 0x590   : > { %v12300_v9 = vadd.f32 %v5658_v20, %v5500_v42  ;;  %v5804_v41 = vpop.f32.mrf.mxu3 }
 0x591   : > { %v5872_v3 = vadd.f32 %v5804_v41, %v12073_v38  ;;  %v6001_v34 = vpop.f32.mrf.mxu0  ;;  %v7200_v38 = vld [vmem:[#allocation8 + $0x1e8] sm:$0xff] }
 0x592   : > { %v12303_v19 = vpop.f32.mrf.mxu1  ;;  %7205 = vmatpush.msrb.mxu0 %v7200_v38  ;;  %v7313_v41 = vld [vmem:[#allocation8 + $0x268] sm:$0xff] }
 0x593   : > { %v12305_v15 = vadd.f32 %v5998_v10, %v5872_v3  ;;  %6048 = vmatmul.f32.gmra.mxu0 %v12307_v18  ;;  %v5501_v10 = vadd.f32 %v13679_v61, %v12090_v57  ;;  %v6472_v3 = vld [vmem:[#allocation2 + $0x39] sm:$0xff]  ;;  %7318 = vmatpush.msra.mxu1 %v7313_v41  ;;  %v6473_v18 = vld [vmem:[#allocation2 + $0x41] sm:$0xff]  ;;  %v6247_v41 = vadd.f32 %v12104_v2, %v12120_v43  ;;  %v7078_v2 = vld [vmem:[#allocation8 + $0x120] sm:$0xff] }
 0x594   : > { %6388 = vmatmul.f32.gmra.mxu2 %v12122_v6  ;;  %6242 = vmatmul.f32.gmra.mxu1 %v12312_v62  ;;  %v7079_v57 = vld [vmem:[#allocation8 + $0x128] sm:$0xff]  ;;  %v13680_v61 = vld [vmem:[#allocation32_spill] sm:$0xff] }
 0x595   : > { %5854 = vmatmul.f32.gmra.mxu3 %v12309_v0  ;;  %v7539_v38 = vld [vmem:[#allocation8 + $0x368] sm:$0xff]  ;;  %7100 = vmatpush.msra.mxu2 %v7079_v57  ;;  %v7197_v43 = vld [vmem:[#allocation8 + $0x1d0] sm:$0xff] }
 0x596   : > { %7206 = vmatpush.msrb.mxu0 %v7199_v12  ;;  %7544 = vmatpush.msra.mxu3 %v7539_v38 }
 0x597   : > { %v5661_v53 = vpop.f32.mrf.mxu2  ;;  %7101 = vmatpush.msra.mxu2 %v7078_v2  ;;  %v12376_v2 = vld [vmem:[#allocation2 + $0x128] sm:$0xff] }
 0x598   : > { %v12319_v35 = vadd.f32 %v5661_v53, %v5501_v10  ;;  %v5807_v45 = vpop.f32.mrf.mxu3 }
 0x599   : > { %v5873_v33 = vadd.f32 %v5807_v45, %v12088_v60  ;;  %v6004_v42 = vpop.f32.mrf.mxu0  ;;  %v6246_v60 = vadd.f32 %v13680_v61, %v12106_v58  ;;  %v7198_v58 = vld [vmem:[#allocation8 + $0x1d8] sm:$0xff] }
 0x59a   : > { %v12322_v20 = vpop.f32.mrf.mxu1  ;;  %7207 = vmatpush.msrb.mxu0 %v7198_v58  ;;  %v12362_v58 = vld [vmem:[#allocation2 + $0x120] sm:$0xff] }
 0x59b   : > { %v12324_v6 = vadd.f32 %v6001_v34, %v5873_v33  ;;  %6944 = vmatmul.f32.vlgmr.msra.gmra.mxu0 %v12271_v14 }
 0x59c   : > { %6391 = vmatmul.f32.gmra.mxu2 %v12136_v23  ;;  %7009 = vmatmul.f32.vlgmr.msrb.gmra.mxu1 %v13648_v7 }
 0x59d   : > { %6537 = vmatmul.f32.vlgmr.msrb.gmra.mxu3 %v6472_v3  ;;  %v7312_v3 = vld [vmem:[#allocation8 + $0x260] sm:$0xff]  ;;  %7208 = vmatpush.msrb.mxu0 %v7197_v43  ;;  %v7309_v43 = vld [vmem:[#allocation8 + $0x248] sm:$0xff] }
 0x59e   : > { %7319 = vmatpush.msra.mxu1 %v7312_v3 }
 0x59f   : > { %v6344_v10 = vpop.f32.mrf.mxu2 }
 0x5a0   : > { %v5810_v34 = vpop.f32.mrf.mxu3  ;;  %v12331_v53 = vadd.f32 %v6344_v10, %v6246_v60  ;;  %v7538_v60 = vld [vmem:[#allocation8 + $0x360] sm:$0xff] }
 0x5a1   : > { %v5874_v23 = vadd.f32 %v5810_v34, %v12101_v36  ;;  %v6007_v45 = vpop.f32.mrf.mxu0  ;;  %7545 = vmatpush.msra.mxu3 %v7538_v60  ;;  %v6476_v60 = vld [vmem:[#allocation2 + $0x59] sm:$0xff] }
 0x5a2   : > { %v12334_v33 = vpop.f32.mrf.mxu1 }
 0x5a3   : > { %v12336_v7 = vadd.f32 %v6004_v42, %v5874_v23  ;;  %6947 = vmatmul.f32.gmra.mxu0 %v12290_v31 }
 0x5a4   : > { %6394 = vmatmul.f32.gmra.mxu2 %v12149_v32  ;;  %7012 = vmatmul.f32.gmra.mxu1 %v13655_v44  ;;  %v6474_v44 = vld [vmem:[#allocation2 + $0x49] sm:$0xff] }
 0x5a5   : > { %6540 = vmatmul.f32.gmra.mxu3 %v6473_v18  ;;  %v7311_v18 = vld [vmem:[#allocation8 + $0x258] sm:$0xff] }
 0x5a6   : > { %7320 = vmatpush.msra.mxu1 %v7311_v18 }
 0x5a7   : > { %v6347_v36 = vpop.f32.mrf.mxu2 }
 0x5a8   : > { %v5813_v57 = vpop.f32.mrf.mxu3  ;;  %v12343_v12 = vadd.f32 %v6347_v36, %v6247_v41  ;;  %v7310_v41 = vld [vmem:[#allocation8 + $0x250] sm:$0xff] }
 0x5a9   : > { %v5875_v42 = vadd.f32 %v5813_v57, %v12115_v30  ;;  %v6010_v38 = vpop.f32.mrf.mxu0  ;;  %v6248_v30 = vadd.f32 %v12118_v27, %v12134_v59  ;;  %v6475_v27 = vld [vmem:[#allocation2 + $0x51] sm:$0xff]  ;;  %7321 = vmatpush.msra.mxu1 %v7310_v41 }
 0x5aa   : > { %v12346_v32 = vpop.f32.mrf.mxu1  ;;  %v7196_v59 = vld [vmem:[#allocation8 + $0x1c8] sm:$0xff] }
 0x5ab   : > { %v12348_v61 = vadd.f32 %v6007_v45, %v5875_v42  ;;  %6950 = vmatmul.f32.gmra.mxu0 %v12309_v0  ;;  %7322 = vmatpush.msra.mxu1 %v7309_v43 }
 0x5ac   : > { %6397 = vmatmul.f32.gmra.mxu2 %v12162_v54  ;;  %7015 = vmatmul.f32.gmra.mxu1 %v12079_v22 }
 0x5ad   : > { %6543 = vmatmul.f32.gmra.mxu3 %v6474_v44  ;;  %7209 = vmatpush.msrb.mxu0 %v7196_v59  ;;  %v12390_v59 = vld [vmem:[#allocation2 + $0x130] sm:$0xff] }
 0x5af   : > { %v6350_v10 = vpop.f32.mrf.mxu2 }
 0x5b0   : > { %v5816_v34 = vpop.f32.mrf.mxu3  ;;  %v12355_v23 = vadd.f32 %v6350_v10, %v6248_v30  ;;  %v7537_v30 = vld [vmem:[#allocation8 + $0x358] sm:$0xff] }
 0x5b1   : > { %v5876_v54 = vadd.f32 %v5816_v34, %v12129_v39  ;;  %v6013_v45 = vpop.f32.mrf.mxu0  ;;  %v6249_v39 = vadd.f32 %v12132_v21, %v12147_v48  ;;  %v7077_v21 = vld [vmem:[#allocation8 + $0x118] sm:$0xff]  ;;  %v7195_v48 = vld [vmem:[#allocation8 + $0x1c0] sm:$0xff]  ;;  %7546 = vmatpush.msra.mxu3 %v7537_v30 }
 0x5b2   : > { %v12358_v3 = vpop.f32.mrf.mxu1  ;;  %7102 = vmatpush.msra.mxu2 %v7077_v21  ;;  %7210 = vmatpush.msrb.mxu0 %v7195_v48  ;;  %v12404_v21 = vld [vmem:[#allocation2 + $0x138] sm:$0xff]  ;;  %v7307_v48 = vld [vmem:[#allocation8 + $0x238] sm:$0xff] }
 0x5b3   : > { %v12360_v22 = vadd.f32 %v6010_v38, %v5876_v54  ;;  %6953 = vmatmul.f32.gmra.mxu0 %v12362_v58  ;;  %v6478_v30 = vld [vmem:[#allocation2 + $0x69] sm:$0xff] }
 0x5b4   : > { %6400 = vmatmul.f32.gmra.mxu2 %v12175_v37  ;;  %7018 = vmatmul.f32.gmra.mxu1 %v12274_v16 }
 0x5b5   : > { %6546 = vmatmul.f32.gmra.mxu3 %v6475_v27 }
 0x5b7   : > { %v6353_v36 = vpop.f32.mrf.mxu2 }
 0x5b8   : > { %v5819_v57 = vpop.f32.mrf.mxu3  ;;  %v12369_v42 = vadd.f32 %v6353_v36, %v6249_v39  ;;  %v7308_v39 = vld [vmem:[#allocation8 + $0x240] sm:$0xff] }
 0x5b9   : > { %v5877_v38 = vadd.f32 %v5819_v57, %v12142_v40  ;;  %v6016_v18 = vpop.f32.mrf.mxu0  ;;  %v6250_v40 = vadd.f32 %v12145_v24, %v12160_v49  ;;  %v6477_v24 = vld [vmem:[#allocation2 + $0x61] sm:$0xff]  ;;  %7323 = vmatpush.msra.mxu1 %v7308_v39 }
 0x5ba   : > { %v12372_v37 = vpop.f32.mrf.mxu1  ;;  %v7194_v49 = vld [vmem:[#allocation8 + $0x1b8] sm:$0xff] }
 0x5bb   : > { %v12374_v44 = vadd.f32 %v6013_v45, %v5877_v38  ;;  %6956 = vmatmul.f32.gmra.mxu0 %v12376_v2  ;;  %7324 = vmatpush.msra.mxu1 %v7307_v48 }
 0x5bc   : > { %6403 = vmatmul.f32.gmra.mxu2 %v12188_v46  ;;  %7021 = vmatmul.f32.gmra.mxu1 %v12293_v11 }
 0x5bd   : > { %6549 = vmatmul.f32.gmra.mxu3 %v6476_v60  ;;  %7211 = vmatpush.msrb.mxu0 %v7194_v49 }
 0x5bf   : > { %v6356_v10 = vpop.f32.mrf.mxu2 }
 0x5c0   : > { %v5822_v34 = vpop.f32.mrf.mxu3  ;;  %v12383_v54 = vadd.f32 %v6356_v10, %v6250_v40  ;;  %v7536_v40 = vld [vmem:[#allocation8 + $0x350] sm:$0xff]  ;;  %v6252_v10 = vadd.f32 %v12171_v55, %v12186_v47  ;;  %v6479_v55 = vld [vmem:[#allocation2 + $0x71] sm:$0xff] }
 0x5c1   : > { %v5878_v46 = vadd.f32 %v5822_v34, %v12155_v1  ;;  %v6019_v45 = vpop.f32.mrf.mxu0  ;;  %v6251_v1 = vadd.f32 %v12158_v50, %v12173_v29  ;;  %v12408_v50 = vld [vmem:[#allocation2 + $0x137] sm:$0xff]  ;;  %v7076_v29 = vld [vmem:[#allocation8 + $0x110] sm:$0xff]  ;;  %7547 = vmatpush.msra.mxu3 %v7536_v40  ;;  %v12436_v40 = vld [vmem:[#allocation2 + $0x148] sm:$0xff] }
 0x5c2   : > { %v12386_v41 = vpop.f32.mrf.mxu1  ;;  %7103 = vmatpush.msra.mxu2 %v7076_v29  ;;  %v12424_v47 = vld [vmem:[#allocation2 + $0x13f] sm:$0xff] }
 0x5c3   : > { %v12388_v27 = vadd.f32 %v6016_v18, %v5878_v46  ;;  %6959 = vmatmul.f32.gmra.mxu0 %v12390_v59 }
 0x5c4   : > { %6406 = vmatmul.f32.gmra.mxu2 %v12201_v13  ;;  %7024 = vmatmul.f32.gmra.mxu1 %v12312_v62 }
 0x5c5   : > { %6552 = vmatmul.f32.gmra.mxu3 %v6477_v24 }
 0x5c7   : > { %v6359_v36 = vpop.f32.mrf.mxu2 }
 0x5c8   : > { %v5825_v57 = vpop.f32.mrf.mxu3  ;;  %v12397_v38 = vadd.f32 %v6359_v36, %v6251_v1  ;;  %v12420_v1 = vld [vmem:[#allocation2 + $0x140] sm:$0xff] }
 0x5c9   : > { %v5879_v18 = vadd.f32 %v5825_v57, %v12168_v28  ;;  %v6022_v43 = vpop.f32.mrf.mxu0  ;;  %v7193_v28 = vld [vmem:[#allocation8 + $0x1b0] sm:$0xff]  ;;  %v7192_v57 = vld [vmem:[#allocation8 + $0x1a8] sm:$0xff] }
 0x5ca   : > { %v12400_v13 = vpop.f32.mrf.mxu1  ;;  %7212 = vmatpush.msrb.mxu0 %v7193_v28  ;;  %v7306_v36 = vld [vmem:[#allocation8 + $0x230] sm:$0xff] }
 0x5cb   : > { %v12402_v60 = vadd.f32 %v6019_v45, %v5879_v18  ;;  %6962 = vmatmul.f32.gmra.mxu0 %v12404_v21  ;;  %7325 = vmatpush.msra.mxu1 %v7306_v36 }
 0x5cc   : > { %6409 = vmatmul.f32.gmra.mxu2 %v12214_v8  ;;  %7027 = vmatmul.f32.gmra.mxu1 %v12408_v50 }
 0x5cd   : > { %6555 = vmatmul.f32.gmra.mxu3 %v6478_v30  ;;  %7213 = vmatpush.msrb.mxu0 %v7192_v57 }
 0x5cf   : > { %v6362_v34 = vpop.f32.mrf.mxu2 }
 0x5d0   : > { %v5828_v8 = vpop.f32.mrf.mxu3  ;;  %v12413_v46 = vadd.f32 %v6362_v34, %v6252_v10  ;;  %v7305_v10 = vld [vmem:[#allocation8 + $0x228] sm:$0xff] }
 0x5d1   : > { %v5880_v45 = vadd.f32 %v5828_v8, %v12181_v56  ;;  %v6025_v39 = vpop.f32.mrf.mxu0  ;;  %v6253_v56 = vadd.f32 %v12184_v26, %v12199_v51  ;;  %v6480_v34 = vld [vmem:[#allocation2 + $0x79] sm:$0xff]  ;;  %v12440_v26 = vld [vmem:[#allocation2 + $0x147] sm:$0xff]  ;;  %7326 = vmatpush.msra.mxu1 %v7305_v10 }
 0x5d2   : > { %v12416_v24 = vpop.f32.mrf.mxu1  ;;  %v7075_v51 = vld [vmem:[#allocation8 + $0x108] sm:$0xff]  ;;  %v7190_v10 = vld [vmem:[#allocation8 + $0x198] sm:$0xff] }
 0x5d3   : > { %v12418_v49 = vadd.f32 %v6022_v43, %v5880_v45  ;;  %6965 = vmatmul.f32.gmra.mxu0 %v12420_v1  ;;  %v7535_v8 = vld [vmem:[#allocation8 + $0x348] sm:$0xff]  ;;  %v6254_v45 = vadd.f32 %v12197_v63, %v12212_v52  ;;  %7104 = vmatpush.msra.mxu2 %v7075_v51  ;;  %v6481_v63 = vld [vmem:[#allocation2 + $0x81] sm:$0xff]  ;;  %v12456_v52 = vld [vmem:[#allocation2 + $0x14f] sm:$0xff] }
 0x5d4   : > { %6412 = vmatmul.f32.gmra.mxu2 %v12227_v4  ;;  %7030 = vmatmul.f32.gmra.mxu1 %v12424_v47  ;;  %v13688_v51 = vld [vmem:[#allocation33_spill] sm:$0xff] }
 0x5d5   : > { %6558 = vmatmul.f32.gmra.mxu3 %v6479_v55 }
 0x5d6   : > { %7548 = vmatpush.msra.mxu3 %v7535_v8 }
 0x5d7   : > { %v6365_v18 = vpop.f32.mrf.mxu2 }
 0x5d8   : > { %v5831_v43 = vpop.f32.mrf.mxu3  ;;  %v12429_v48 = vadd.f32 %v6365_v18, %v6253_v56 }
 0x5d9   : > { %v5881_v4 = vadd.f32 %v5831_v43, %v12194_v5  ;;  %v6028_v30 = vpop.f32.mrf.mxu0  ;;  %v7191_v5 = vld [vmem:[#allocation8 + $0x1a0] sm:$0xff] }
 0x5da   : > { %13681 = vst [vmem:[#allocation38_spill] sm:$0xff] %v12429_v48  ;;  %v12432_v29 = vpop.f32.mrf.mxu1  ;;  %7214 = vmatpush.msrb.mxu0 %v7191_v5  ;;  %v12452_v43 = vld [vmem:[#allocation2 + $0x150] sm:$0xff]  ;;  %v7302_v48 = vld [vmem:[#allocation8 + $0x210] sm:$0xff] }
 0x5db   : > { %13682 = vst [vmem:[#allocation16_spill] sm:$0xff] %v12432_v29  ;;  %v12434_v28 = vadd.f32 %v6025_v39, %v5881_v4  ;;  %6968 = vmatmul.f32.gmra.mxu0 %v12436_v40  ;;  %v7304_v4 = vld [vmem:[#allocation8 + $0x220] sm:$0xff] }
 0x5dc   : > { %6415 = vmatmul.f32.gmra.mxu2 %v12241_v25  ;;  %7033 = vmatmul.f32.gmra.mxu1 %v12440_v26  ;;  %v6482_v29 = vld [vmem:[#allocation2 + $0x89] sm:$0xff] }
 0x5dd   : > { %6561 = vmatmul.f32.gmra.mxu3 %v6480_v34  ;;  %v13686_v34 = vld [vmem:[#allocation39_spill] sm:$0xff]  ;;  %7327 = vmatpush.msra.mxu1 %v7304_v4 }
 0x5de   : > { %7215 = vmatpush.msrb.mxu0 %v7190_v10  ;;  %v12472_v4 = vld [vmem:[#allocation2 + $0x157] sm:$0xff] }
 0x5df   : > { %v6368_v39 = vpop.f32.mrf.mxu2  ;;  %v7074_v10 = vld [vmem:[#allocation8 + $0x100] sm:$0xff] }
 0x5e0   : > { %v5834_v25 = vpop.f32.mrf.mxu3  ;;  %v12445_v36 = vadd.f32 %v6368_v39, %v6254_v45  ;;  %v13690_v39 = vld [vmem:[#allocation14_spill] sm:$0xff]  ;;  %7105 = vmatpush.msra.mxu2 %v7074_v10  ;;  %v12488_v10 = vld [vmem:[#allocation2 + $0x15f] sm:$0xff] }
 0x5e1   : > { %v5882_v55 = vadd.f32 %v5834_v25, %v12207_v17  ;;  %v6031_v57 = vpop.f32.mrf.mxu0  ;;  %v13687_v17 = vld [vmem:[#allocation18_spill] sm:$0xff] }
 0x5e2   : > { %13683 = vst [vmem:[#allocation26_spill] sm:$0xff] %v12445_v36  ;;  %v12448_v56 = vpop.f32.mrf.mxu1  ;;  %v6255_v5 = vadd.f32 %v13688_v51, %v13687_v17  ;;  %v7303_v36 = vld [vmem:[#allocation8 + $0x218] sm:$0xff]  ;;  %v7189_v17 = vld [vmem:[#allocation8 + $0x190] sm:$0xff]  ;;  %v7534_v51 = vld [vmem:[#allocation8 + $0x340] sm:$0xff] }
 0x5e3   : > { %13684 = vst [vmem:[#allocation43_spill] sm:$0xff] %v12448_v56  ;;  %v12450_v18 = vadd.f32 %v6028_v30, %v5882_v55  ;;  %6971 = vmatmul.f32.gmra.mxu0 %v12452_v43  ;;  %7328 = vmatpush.msra.mxu1 %v7303_v36  ;;  %v6483_v36 = vld [vmem:[#allocation2 + $0x91] sm:$0xff] }
 0x5e4   : > { %6418 = vmatmul.f32.gmra.mxu2 %v13686_v34  ;;  %7036 = vmatmul.f32.gmra.mxu1 %v12456_v52 }
 0x5e5   : > { %13685 = vst [vmem:[#allocation49_spill] sm:$0xff] %v12450_v18  ;;  %6564 = vmatmul.f32.gmra.mxu3 %v6481_v63  ;;  %v12468_v63 = vld [vmem:[#allocation2 + $0x158] sm:$0xff]  ;;  %7216 = vmatpush.msrb.mxu0 %v7189_v17  ;;  %v12484_v18 = vld [vmem:[#allocation2 + $0x160] sm:$0xff] }
 0x5e6   : > { %7549 = vmatpush.msra.mxu3 %v7534_v51  ;;  %v7188_v17 = vld [vmem:[#allocation8 + $0x188] sm:$0xff]  ;;  %7329 = vmatpush.msra.mxu1 %v7302_v48  ;;  %v12504_v48 = vld [vmem:[#allocation2 + $0x167] sm:$0xff] }
 0x5e7   : > { %v6371_v30 = vpop.f32.mrf.mxu2  ;;  %v13699_v51 = vld [vmem:[#allocation23_spill] sm:$0xff]  ;;  %7217 = vmatpush.msrb.mxu0 %v7188_v17  ;;  %13706 = vst [vmem:[#allocation42_spill] sm:$0xff] %v12504_v48  ;;  %v7300_v17 = vld [vmem:[#allocation8 + $0x200] sm:$0xff] }
 0x5e8   : > { %v5837_v8 = vpop.f32.mrf.mxu3  ;;  %v12461_v45 = vadd.f32 %v6371_v30, %v6255_v5  ;;  %v13693_v5 = vld [vmem:[#allocation24_spill] sm:$0xff]  ;;  %v13694_v30 = vld [vmem:[#allocation27_spill] sm:$0xff] }
 0x5e9   : > { %v5883_v25 = vadd.f32 %v5837_v8, %v13690_v39  ;;  %v6034_v55 = vpop.f32.mrf.mxu0 }
 0x5ea   : > { %13689 = vst [vmem:[#allocation28_spill] sm:$0xff] %v12461_v45  ;;  %v12464_v34 = vpop.f32.mrf.mxu1 }
 0x5eb   : > { %13691 = vst [vmem:[#allocation21_spill] sm:$0xff] %v12464_v34  ;;  %v12466_v56 = vadd.f32 %v6031_v57, %v5883_v25  ;;  %6974 = vmatmul.f32.gmra.mxu0 %v12468_v63  ;;  %v6256_v57 = vadd.f32 %v13694_v30, %v13693_v5  ;;  %v13696_v25 = vld [vmem:[#allocation20_spill] sm:$0xff]  ;;  %v13700_v5 = vld [vmem:[#allocation22_spill] sm:$0xff] }
 0x5ec   : > { %6421 = vmatmul.f32.gmra.mxu2 %v12271_v14  ;;  %7039 = vmatmul.f32.gmra.mxu1 %v12472_v4  ;;  %v6257_v30 = vadd.f32 %v13700_v5, %v13699_v51  ;;  %v6484_v51 = vld [vmem:[#allocation2 + $0x99] sm:$0xff]  ;;  %v7428_v5 = vld [vmem:[#allocation8 + $0x2f8] sm:$0xff] }
 0x5ed   : > { %13692 = vst [vmem:[#allocation29_spill] sm:$0xff] %v12466_v56  ;;  %6567 = vmatmul.f32.gmra.mxu3 %v6482_v29  ;;  %7429 = vmatpush.msrb.mxu2 %v7428_v5  ;;  %v13714_v5 = vld [vmem:[#allocation47_spill] sm:$0xff] }
 0x5ef   : > { %v6374_v8 = vpop.f32.mrf.mxu2 }
 0x5f0   : > { %v5840_v14 = vpop.f32.mrf.mxu3  ;;  %v12477_v39 = vadd.f32 %v6374_v8, %v6256_v57  ;;  %v13702_v8 = vld [vmem:[#allocation15_spill] sm:$0xff] }
 0x5f1   : > { %v5884_v34 = vadd.f32 %v5840_v14, %v13696_v25  ;;  %v6037_v45 = vpop.f32.mrf.mxu0 }
 0x5f2   : > { %13695 = vst [vmem:[#allocation44_spill] sm:$0xff] %v12477_v39  ;;  %v12480_v29 = vpop.f32.mrf.mxu1  ;;  %v7301_v39 = vld [vmem:[#allocation8 + $0x208] sm:$0xff] }
 0x5f3   : > { %13697 = vst [vmem:[#allocation35_spill] sm:$0xff] %v12480_v29  ;;  %v12482_v56 = vadd.f32 %v6034_v55, %v5884_v34  ;;  %6977 = vmatmul.f32.gmra.mxu0 %v12484_v18  ;;  %7330 = vmatpush.msra.mxu1 %v7301_v39  ;;  %v6485_v39 = vld [vmem:[#allocation2 + $0xa1] sm:$0xff] }
 0x5f4   : > { %6424 = vmatmul.f32.gmra.mxu2 %v12290_v31  ;;  %7042 = vmatmul.f32.gmra.mxu1 %v12488_v10 }
 0x5f5   : > { %13698 = vst [vmem:[#allocation40_spill] sm:$0xff] %v12482_v56  ;;  %6570 = vmatmul.f32.gmra.mxu3 %v6483_v36  ;;  %v12500_v36 = vld [vmem:[#allocation2 + $0x168] sm:$0xff]  ;;  %v7187_v56 = vld [vmem:[#allocation8 + $0x180] sm:$0xff]  ;;  %7331 = vmatpush.msra.mxu1 %v7300_v17 }
 0x5f6   : > { %13705 = vst [vmem:[#allocation48_spill] sm:$0xff] %v12500_v36  ;;  %7218 = vmatpush.msrb.mxu0 %v7187_v56  ;;  %v12520_v56 = vld [vmem:[#allocation2 + $0x16f] sm:$0xff] }
 0x5f7   : > { %v6377_v55 = vpop.f32.mrf.mxu2  ;;  %v13713_v17 = vld [vmem:[#allocation53_spill] sm:$0xff] }
 0x5f8   : > { %v5843_v34 = vpop.f32.mrf.mxu3  ;;  %v12493_v57 = vadd.f32 %v6377_v55, %v6257_v30  ;;  %v7533_v30 = vld [vmem:[#allocation8 + $0x338] sm:$0xff]  ;;  %v13707_v55 = vld [vmem:[#allocation30_spill] sm:$0xff] }
 0x5f9   : > { %v5885_v31 = vadd.f32 %v5843_v34, %v13702_v8  ;;  %v6040_v14 = vpop.f32.mrf.mxu0  ;;  %7550 = vmatpush.msra.mxu3 %v7533_v30 }
 0x5fa   : > { %13701 = vst [vmem:[#allocation41_spill] sm:$0xff] %v12493_v57  ;;  %v12496_v25 = vpop.f32.mrf.mxu1 }
 0x5fb   : > { %13703 = vst [vmem:[#allocation37_spill] sm:$0xff] %v12496_v25  ;;  %v12498_v29 = vadd.f32 %v6037_v45, %v5885_v31  ;;  %6980 = vmatmul.f32.gmra.mxu0 %v12500_v36  ;;  %v13708_v45 = vld [vmem:[#allocation17_spill] sm:$0xff]  ;;  %v13710_v25 = vld [vmem:[#allocation46_spill] sm:$0xff] }
 0x5fc   : > { %6427 = vmatmul.f32.gmra.mxu2 %v12309_v0  ;;  %7045 = vmatmul.f32.gmra.mxu1 %v12504_v48  ;;  %v6258_v34 = vadd.f32 %v13708_v45, %v13707_v55  ;;  %v12516_v48 = vld [vmem:[#allocation2 + $0x170] sm:$0xff] }
 0x5fd   : > { %13704 = vst [vmem:[#allocation52_spill] sm:$0xff] %v12498_v29  ;;  %6573 = vmatmul.f32.gmra.mxu3 %v6484_v51 }
 0x5ff   : > { %v6380_v8 = vpop.f32.mrf.mxu2 }
 0x600   : > { %v5846_v0 = vpop.f32.mrf.mxu3  ;;  %v12509_v31 = vadd.f32 %v6380_v8, %v6258_v34 }
 0x601   : > { %v5886_v57 = vadd.f32 %v5846_v0, %v13710_v25  ;;  %v6043_v51 = vpop.f32.mrf.mxu0  ;;  %v6259_v25 = vadd.f32 %v13714_v5, %v13713_v17  ;;  %v12536_v17 = vld [vmem:[#allocation2 + $0x177] sm:$0xff] }
 0x602   : > { %13709 = vst [vmem:[#allocation45_spill] sm:$0xff] %v12509_v31  ;;  %v12512_v29 = vpop.f32.mrf.mxu1  ;;  %v7427_v31 = vld [vmem:[#allocation8 + $0x2f0] sm:$0xff]  ;;  %v13721_v5 = vld [vmem:[#allocation34_spill] sm:$0xff] }
 0x603   : > { %13711 = vst [vmem:[#allocation51_spill] sm:$0xff] %v12512_v29  ;;  %v12514_v36 = vadd.f32 %v6040_v14, %v5886_v57  ;;  %6983 = vmatmul.f32.gmra.mxu0 %v12516_v48  ;;  %v13716_v57 = vld [vmem:[#allocation19_spill] sm:$0xff]  ;;  %7430 = vmatpush.msrb.mxu2 %v7427_v31  ;;  %v7532_v31 = vld [vmem:[#allocation8 + $0x330] sm:$0xff] }
 0x604   : > { %6430 = vmatmul.f32.gmra.mxu2 %v12362_v58  ;;  %7048 = vmatmul.f32.gmra.mxu1 %v12520_v56  ;;  %v12532_v29 = vld [vmem:[#allocation2 + $0x178] sm:$0xff]  ;;  %13720 = vst [vmem:[#allocation14_spill] sm:$0xff] %v12536_v17 }
 0x605   : > { %13712 = vst [vmem:[#allocation25_spill] sm:$0xff] %v12514_v36  ;;  %6576 = vmatmul.f32.gmra.mxu3 %v6485_v39  ;;  %v7654_v39 = vld [vmem:[#allocation8 + $0x3f8] sm:$0xff] }
 0x606   : > { %13719 = vst [vmem:[#allocation33_spill] sm:$0xff] %v12532_v29  ;;  %v6486_v36 = vld [vmem:[#allocation2 + $0xa9] sm:$0xff]  ;;  %7655 = vmatpush.msra.mxu0 %v7654_v39  ;;  %v7653_v39 = vld [vmem:[#allocation8 + $0x3f0] sm:$0xff]  ;;  %7551 = vmatpush.msra.mxu3 %v7532_v31  ;;  %v7765_v31 = vld [vmem:[#allocation8 + $0x468] sm:$0xff] }
 0x607   : > { %v6383_v30 = vpop.f32.mrf.mxu2 }
 0x608   : > { %v5849_v55 = vpop.f32.mrf.mxu3  ;;  %v12525_v45 = vadd.f32 %v6383_v30, %v6259_v25  ;;  %v6260_v25 = vadd.f32 %v13721_v5, %v12305_v15  ;;  %v12552_v15 = vld [vmem:[#allocation2 + $0x17f] sm:$0xff]  ;;  %7656 = vmatpush.msra.mxu0 %v7653_v39  ;;  %v7424_v39 = vld [vmem:[#allocation8 + $0x2d8] sm:$0xff] }
 0x609   : > { %v5887_v14 = vadd.f32 %v5849_v55, %v13716_v57  ;;  %v6046_v34 = vpop.f32.mrf.mxu0 }
 0x60a   : > { %13715 = vst [vmem:[#allocation32_spill] sm:$0xff] %v12525_v45  ;;  %v12528_v8 = vpop.f32.mrf.mxu1  ;;  %v6487_v45 = vld [vmem:[#allocation2 + $0xb1] sm:$0xff] }
 0x60b   : > { %13717 = vst [vmem:[#allocation39_spill] sm:$0xff] %v12528_v8  ;;  %v12530_v0 = vadd.f32 %v6043_v51, %v5887_v14  ;;  %6986 = vmatmul.f32.gmra.mxu0 %v12532_v29  ;;  %v7767_v29 = vld [vmem:[#allocation8 + $0x478] sm:$0xff] }
 0x60c   : > { %6433 = vmatmul.f32.gmra.mxu2 %v12376_v2  ;;  %7051 = vmatmul.f32.gmra.mxu1 %v12536_v17  ;;  %v7426_v17 = vld [vmem:[#allocation8 + $0x2e8] sm:$0xff] }
 0x60d   : > { %13718 = vst [vmem:[#allocation18_spill] sm:$0xff] %v12530_v0  ;;  %6579 = vmatmul.f32.gmra.mxu3 %v6486_v36  ;;  %v12548_v36 = vld [vmem:[#allocation2 + $0x180] sm:$0xff]  ;;  %7768 = vmatpush.msrb.mxu1 %v7767_v29 }
 0x60e   : > { %7431 = vmatpush.msrb.mxu2 %v7426_v17  ;;  %v12574_v17 = vld [vmem:[%s13222_s5] ss:$0 sm:$0xff] }
 0x60f   : > { %v6386_v51 = vpop.f32.mrf.mxu2 }
 0x610   : > { %v5852_v30 = vpop.f32.mrf.mxu3  ;;  %v12541_v55 = vadd.f32 %v6386_v51, %v6260_v25 }
 0x611   : > { %v5888_v57 = vadd.f32 %v5852_v30, %v12300_v9  ;;  %v6049_v14 = vpop.f32.mrf.mxu0  ;;  %v6261_v9 = vadd.f32 %v12303_v19, %v12324_v6  ;;  %v13725_v19 = vld [vmem:[#allocation50_spill] sm:$0xff]  ;;  %v7652_v6 = vld [vmem:[#allocation8 + $0x3e8] sm:$0xff] }
 0x612   : > { %13722 = vst [vmem:[#allocation24_spill] sm:$0xff] %v12541_v55  ;;  %v12544_v8 = vpop.f32.mrf.mxu1  ;;  %v7425_v55 = vld [vmem:[#allocation8 + $0x2e0] sm:$0xff]  ;;  %7657 = vmatpush.msra.mxu0 %v7652_v6 }
 0x613   : > { %13723 = vst [vmem:[#allocation27_spill] sm:$0xff] %v12544_v8  ;;  %v12546_v0 = vadd.f32 %v6046_v34, %v5888_v57  ;;  %6989 = vmatmul.f32.gmra.mxu0 %v12548_v36  ;;  %v7766_v8 = vld [vmem:[#allocation8 + $0x470] sm:$0xff]  ;;  %7432 = vmatpush.msrb.mxu2 %v7425_v55 }
 0x614   : > { %6436 = vmatmul.f32.gmra.mxu2 %v12390_v59  ;;  %7054 = vmatmul.f32.gmra.mxu1 %v12552_v15  ;;  %v6489_v55 = vld [vmem:[#allocation2 + $0xc1] sm:$0xff] }
 0x615   : > { %13724 = vst [vmem:[#allocation20_spill] sm:$0xff] %v12546_v0  ;;  %6582 = vmatmul.f32.gmra.mxu3 %v6487_v45  ;;  %v6488_v0 = vld [vmem:[#allocation2 + $0xb9] sm:$0xff]  ;;  %7769 = vmatpush.msrb.mxu1 %v7766_v8 }
 0x616   : > { %7433 = vmatpush.msrb.mxu2 %v7424_v39  ;;  %v6490_v39 = vld [vmem:[#allocation2 + $0xc9] sm:$0xff] }
 0x617   : > { %v6389_v34 = vpop.f32.mrf.mxu2  ;;  %7770 = vmatpush.msrb.mxu1 %v7765_v31  ;;  %v6737_v31 = vld [vmem:[%s8515_s10 + $0x21] sm:$0xff] }
 0x618   : > { %v5855_v5 = vpop.f32.mrf.mxu3  ;;  %v12557_v25 = vadd.f32 %v6389_v34, %v6261_v9  ;;  %v6736_v9 = vld [vmem:[%s8515_s10 + $0x19] sm:$0xff] }
 0x619   : > { %v5889_v51 = vadd.f32 %v5855_v5, %v12319_v35  ;;  %v12560_v30 = vpop.f32.mrf.mxu0  ;;  %v6262_v35 = vadd.f32 %v12322_v20, %v12336_v7  ;;  %v12582_v20 = vld [vmem:[%s13223_s6] ss:$0 sm:$0xff]  ;;  %v13726_v34 = vld [vmem:[#allocation31_spill] sm:$0xff]  ;;  %v7651_v5 = vld [vmem:[#allocation8 + $0x3e0] sm:$0xff] }
 0x61a   : > { %v12562_v57 = vpop.f32.mrf.mxu1  ;;  %7658 = vmatpush.msra.mxu0 %v7651_v5 }
 0x61b   : > { %v12564_v45 = vadd.f32 %v6049_v14, %v5889_v51  ;;  %7219 = vmatmul.f32.vlgmr.msrb.gmra.mxu0 %v12274_v16 }
 0x61c   : > { %7106 = vmatmul.f32.vlgmr.msra.gmra.mxu2 %v13725_v19  ;;  %7332 = vmatmul.f32.vlgmr.msra.gmra.mxu1 %v12362_v58  ;;  %v6263_v19 = vadd.f32 %v12334_v33, %v12348_v61  ;;  %v7764_v61 = vld [vmem:[#allocation8 + $0x460] sm:$0xff] }
 0x61d   : > { %6585 = vmatmul.f32.gmra.mxu3 %v6488_v0  ;;  %7771 = vmatpush.msrb.mxu1 %v7764_v61  ;;  %v6738_v61 = vld [vmem:[%s8515_s10 + $0x29] sm:$0xff] }
 0x61f   : > { %v6392_v29 = vpop.f32.mrf.mxu2 }
 0x620   : > { %v12576_v14 = vadd.f32 %v6392_v29, %v6262_v35  ;;  %v6538_v16 = vpop.f32.mrf.mxu3 }
 0x621   : > { %v6634_v0 = vadd.f32 %v6538_v16, %v12331_v53  ;;  %v12584_v7 = vpop.f32.mrf.mxu0  ;;  %v7531_v53 = vld [vmem:[#allocation8 + $0x328] sm:$0xff] }
 0x622   : > { %v12586_v58 = vpop.f32.mrf.mxu1  ;;  %7552 = vmatpush.msra.mxu3 %v7531_v53  ;;  %v6264_v53 = vadd.f32 %v12346_v32, %v12360_v22  ;;  %v12624_v22 = vld [vmem:[#allocation2 + $0x121] sm:$0xff] }
 0x623   : > { %v6669_v8 = vmul.f32 %v12574_v17, %v6634_v0  ;;  %7222 = vmatmul.f32.gmra.mxu0 %v12293_v11 }
 0x624   : > { %7109 = vmatmul.f32.gmra.mxu2 %v13726_v34  ;;  %7335 = vmatmul.f32.gmra.mxu1 %v12376_v2  ;;  %v7423_v2 = vld [vmem:[#allocation8 + $0x2d0] sm:$0xff]  ;;  %v7650_v34 = vld [vmem:[#allocation8 + $0x3d8] sm:$0xff] }
 0x625   : > { %v6704_v51 = vadd.f32 %v12582_v20, %v6669_v8  ;;  %6588 = vmatmul.f32.gmra.mxu3 %v6489_v55  ;;  %7434 = vmatpush.msrb.mxu2 %v7423_v2  ;;  %v7530_v2 = vld [vmem:[#allocation8 + $0x320] sm:$0xff] }
 0x626   : > { %7659 = vmatpush.msra.mxu0 %v7650_v34  ;;  %7553 = vmatpush.msra.mxu3 %v7530_v2 }
 0x627   : > { %v6768_v6 = vadd.f32 %v6736_v9, %v6704_v51  ;;  %v6395_v35 = vpop.f32.mrf.mxu2  ;;  %v13727_v9 = vld [vmem:[#allocation36_spill] sm:$0xff] }
 0x628   : > { %v12597_v29 = vadd.f32 %v6395_v35, %v6263_v19  ;;  %v6541_v11 = vpop.f32.mrf.mxu3 }
 0x629   : > { %v6800_v16 = vmax.f32 %v6768_v6, 0.0  ;;  %v6635_v0 = vadd.f32 %v6541_v11, %v12343_v12  ;;  %v12600_v8 = vpop.f32.mrf.mxu0 }
 0x62a   : > { %v12602_v55 = vpop.f32.mrf.mxu1 }
 0x62b   : > { %6832 = vst [vmem:[%s12604_s1] sm:$0xff] %v6800_v16  ;;  %v6670_v33 = vmul.f32 %v12574_v17, %v6635_v0  ;;  %7225 = vmatmul.f32.gmra.mxu0 %v12312_v62  ;;  %v7763_v0 = vld [vmem:[#allocation8 + $0x458] sm:$0xff] }
 0x62c   : > { %7112 = vmatmul.f32.gmra.mxu2 %v13727_v9  ;;  %7338 = vmatmul.f32.gmra.mxu1 %v12390_v59  ;;  %v6491_v59 = vld [vmem:[#allocation2 + $0xd1] sm:$0xff] }
 0x62d   : > { %v6705_v12 = vadd.f32 %v12582_v20, %v6670_v33  ;;  %6591 = vmatmul.f32.gmra.mxu3 %v6490_v39  ;;  %v7422_v33 = vld [vmem:[#allocation8 + $0x2c8] sm:$0xff]  ;;  %v6265_v39 = vadd.f32 %v12358_v3, %v12374_v44  ;;  %7772 = vmatpush.msrb.mxu1 %v7763_v0  ;;  %v12642_v44 = vld [vmem:[#allocation2 + $0x129] sm:$0xff]  ;;  %v6266_v0 = vadd.f32 %v12372_v37, %v12388_v27 }
 0x62e   : > { %7435 = vmatpush.msrb.mxu2 %v7422_v33  ;;  %v12660_v27 = vld [vmem:[#allocation2 + $0x131] sm:$0xff] }
 0x62f   : > { %v6769_v5 = vadd.f32 %v6737_v31, %v6705_v12  ;;  %v6398_v51 = vpop.f32.mrf.mxu2  ;;  %v7649_v31 = vld [vmem:[#allocation8 + $0x3d0] sm:$0xff] }
 0x630   : > { %v12615_v19 = vadd.f32 %v6398_v51, %v6264_v53  ;;  %v6544_v6 = vpop.f32.mrf.mxu3  ;;  %7660 = vmatpush.msra.mxu0 %v7649_v31 }
 0x631   : > { %v6801_v62 = vmax.f32 %v6769_v5, 0.0  ;;  %v6636_v35 = vadd.f32 %v6544_v6, %v12355_v23  ;;  %v12618_v11 = vpop.f32.mrf.mxu0 }
 0x632   : > { %v12620_v16 = vpop.f32.mrf.mxu1 }
 0x633   : > { %6833 = vst [vmem:[%s12604_s1 + $0x8] sm:$0xff] %v6801_v62  ;;  %v6671_v32 = vmul.f32 %v12574_v17, %v6636_v35  ;;  %7228 = vmatmul.f32.gmra.mxu0 %v12408_v50  ;;  %v7421_v62 = vld [vmem:[#allocation8 + $0x2c0] sm:$0xff] }
 0x634   : > { %7115 = vmatmul.f32.gmra.mxu2 %v12624_v22  ;;  %7341 = vmatmul.f32.gmra.mxu1 %v12404_v21  ;;  %v7762_v21 = vld [vmem:[#allocation8 + $0x450] sm:$0xff] }
 0x635   : > { %v6706_v23 = vadd.f32 %v12582_v20, %v6671_v32  ;;  %6594 = vmatmul.f32.gmra.mxu3 %v6491_v59  ;;  %v6739_v35 = vld [vmem:[%s8515_s10 + $0x31] sm:$0xff]  ;;  %7773 = vmatpush.msrb.mxu1 %v7762_v21  ;;  %v6267_v21 = vadd.f32 %v12386_v41, %v12402_v60 }
 0x636   : > { %v6492_v59 = vld [vmem:[#allocation2 + $0xd9] sm:$0xff]  ;;  %7436 = vmatpush.msrb.mxu2 %v7421_v62 }
 0x637   : > { %v6770_v9 = vadd.f32 %v6738_v61, %v6706_v23  ;;  %v6401_v34 = vpop.f32.mrf.mxu2  ;;  %v7648_v32 = vld [vmem:[#allocation8 + $0x3c8] sm:$0xff] }
 0x638   : > { %v12633_v12 = vadd.f32 %v6401_v34, %v6265_v39  ;;  %v6547_v50 = vpop.f32.mrf.mxu3  ;;  %7661 = vmatpush.msra.mxu0 %v7648_v32  ;;  %v7761_v34 = vld [vmem:[#allocation8 + $0x448] sm:$0xff] }
 0x639   : > { %v6802_v53 = vmax.f32 %v6770_v9, 0.0  ;;  %v6637_v5 = vadd.f32 %v6547_v50, %v12369_v42  ;;  %v12636_v51 = vpop.f32.mrf.mxu0  ;;  %v7420_v50 = vld [vmem:[#allocation8 + $0x2b8] sm:$0xff]  ;;  %7774 = vmatpush.msrb.mxu1 %v7761_v34  ;;  %v12678_v60 = vld [vmem:[#allocation2 + $0x139] sm:$0xff] }
 0x63a   : > { %v12638_v6 = vpop.f32.mrf.mxu1  ;;  %7437 = vmatpush.msrb.mxu2 %v7420_v50 }
 0x63b   : > { %6834 = vst [vmem:[%s12604_s1 + $0x10] sm:$0xff] %v6802_v53  ;;  %v6672_v3 = vmul.f32 %v12574_v17, %v6637_v5  ;;  %7231 = vmatmul.f32.gmra.mxu0 %v12424_v47  ;;  %v6740_v53 = vld [vmem:[%s8515_s10 + $0x39] sm:$0xff] }
 0x63c   : > { %7118 = vmatmul.f32.gmra.mxu2 %v12642_v44  ;;  %7344 = vmatmul.f32.gmra.mxu1 %v12420_v1  ;;  %v6493_v1 = vld [vmem:[#allocation2 + $0xe1] sm:$0xff] }
 0x63d   : > { %v6707_v42 = vadd.f32 %v12582_v20, %v6672_v3  ;;  %6597 = vmatmul.f32.gmra.mxu3 %v6492_v59  ;;  %v7529_v5 = vld [vmem:[#allocation8 + $0x318] sm:$0xff]  ;;  %v7647_v3 = vld [vmem:[#allocation8 + $0x3c0] sm:$0xff] }
 0x63e   : > { %7554 = vmatpush.msra.mxu3 %v7529_v5  ;;  %7662 = vmatpush.msra.mxu0 %v7647_v3 }
 0x63f   : > { %v6771_v33 = vadd.f32 %v6739_v35, %v6707_v42  ;;  %v6404_v61 = vpop.f32.mrf.mxu2 }
 0x640   : > { %v12651_v2 = vadd.f32 %v6404_v61, %v6266_v0  ;;  %v6550_v31 = vpop.f32.mrf.mxu3  ;;  %v7419_v61 = vld [vmem:[#allocation8 + $0x2b0] sm:$0xff] }
 0x641   : > { %v6803_v47 = vmax.f32 %v6771_v33, 0.0  ;;  %v6638_v23 = vadd.f32 %v6550_v31, %v12383_v54  ;;  %v12654_v39 = vpop.f32.mrf.mxu0  ;;  %v6741_v31 = vld [vmem:[%s8515_s10 + $0x41] sm:$0xff]  ;;  %7438 = vmatpush.msrb.mxu2 %v7419_v61 }
 0x642   : > { %v12656_v9 = vpop.f32.mrf.mxu1 }
 0x643   : > { %6835 = vst [vmem:[%s12604_s1 + $0x18] sm:$0xff] %v6803_v47  ;;  %v6673_v37 = vmul.f32 %v12574_v17, %v6638_v23  ;;  %7234 = vmatmul.f32.gmra.mxu0 %v12440_v26  ;;  %v6494_v47 = vld [vmem:[#allocation2 + $0xe9] sm:$0xff] }
 0x644   : > { %7121 = vmatmul.f32.gmra.mxu2 %v12660_v27  ;;  %7347 = vmatmul.f32.gmra.mxu1 %v12436_v40  ;;  %v7760_v40 = vld [vmem:[#allocation8 + $0x440] sm:$0xff]  ;;  %v7646_v23 = vld [vmem:[#allocation8 + $0x3b8] sm:$0xff] }
 0x645   : > { %v6708_v54 = vadd.f32 %v12582_v20, %v6673_v37  ;;  %6600 = vmatmul.f32.gmra.mxu3 %v6493_v1  ;;  %v6268_v1 = vadd.f32 %v12400_v13, %v12418_v49  ;;  %7775 = vmatpush.msrb.mxu1 %v7760_v40  ;;  %v12696_v49 = vld [vmem:[#allocation2 + $0x141] sm:$0xff] }
 0x646   : > { %7663 = vmatpush.msra.mxu0 %v7646_v23 }
 0x647   : > { %v6772_v62 = vadd.f32 %v6740_v53, %v6708_v54  ;;  %v6407_v35 = vpop.f32.mrf.mxu2 }
 0x648   : > { %v12669_v59 = vadd.f32 %v6407_v35, %v6267_v21  ;;  %v6553_v26 = vpop.f32.mrf.mxu3  ;;  %v7759_v21 = vld [vmem:[#allocation8 + $0x438] sm:$0xff] }
 0x649   : > { %v6804_v32 = vmax.f32 %v6772_v62, 0.0  ;;  %v6639_v42 = vadd.f32 %v6553_v26, %v12397_v38  ;;  %v12672_v0 = vpop.f32.mrf.mxu0  ;;  %v7418_v62 = vld [vmem:[#allocation8 + $0x2a8] sm:$0xff]  ;;  %v7528_v26 = vld [vmem:[#allocation8 + $0x310] sm:$0xff]  ;;  %7776 = vmatpush.msrb.mxu1 %v7759_v21 }
 0x64a   : > { %v12674_v33 = vpop.f32.mrf.mxu1  ;;  %v6742_v35 = vld [vmem:[%s8515_s10 + $0x49] sm:$0xff]  ;;  %7439 = vmatpush.msrb.mxu2 %v7418_v62  ;;  %7555 = vmatpush.msra.mxu3 %v7528_v26 }
 0x64b   : > { %6836 = vst [vmem:[%s12604_s1 + $0x20] sm:$0xff] %v6804_v32  ;;  %v6674_v41 = vmul.f32 %v12574_v17, %v6639_v42  ;;  %7237 = vmatmul.f32.gmra.mxu0 %v12456_v52  ;;  %v7645_v32 = vld [vmem:[#allocation8 + $0x3b0] sm:$0xff]  ;;  %v6269_v42 = vadd.f32 %v12416_v24, %v12434_v28  ;;  %v12714_v28 = vld [vmem:[#allocation2 + $0x149] sm:$0xff] }
 0x64c   : > { %7124 = vmatmul.f32.gmra.mxu2 %v12678_v60  ;;  %7350 = vmatmul.f32.gmra.mxu1 %v12452_v43  ;;  %v6495_v43 = vld [vmem:[#allocation2 + $0xf1] sm:$0xff] }
 0x64d   : > { %v6709_v38 = vadd.f32 %v12582_v20, %v6674_v41  ;;  %6603 = vmatmul.f32.gmra.mxu3 %v6494_v47  ;;  %7664 = vmatpush.msra.mxu0 %v7645_v32  ;;  %v13728_v47 = vld [vmem:[#allocation38_spill] sm:$0xff] }
 0x64f   : > { %v6773_v37 = vadd.f32 %v6741_v31, %v6709_v38  ;;  %v6410_v34 = vpop.f32.mrf.mxu2 }
 0x650   : > { %v12687_v50 = vadd.f32 %v6410_v34, %v6268_v1  ;;  %v6556_v53 = vpop.f32.mrf.mxu3  ;;  %v6743_v34 = vld [vmem:[%s8515_s10 + $0x51] sm:$0xff] }
 0x651   : > { %v6805_v52 = vmax.f32 %v6773_v37, 0.0  ;;  %v6640_v5 = vadd.f32 %v6556_v53, %v12413_v46  ;;  %v12690_v3 = vpop.f32.mrf.mxu0  ;;  %v7417_v37 = vld [vmem:[#allocation8 + $0x2a0] sm:$0xff]  ;;  %v6496_v53 = vld [vmem:[#allocation2 + $0xf9] sm:$0xff] }
 0x652   : > { %v12692_v54 = vpop.f32.mrf.mxu1  ;;  %7440 = vmatpush.msrb.mxu2 %v7417_v37  ;;  %v7527_v37 = vld [vmem:[#allocation8 + $0x308] sm:$0xff] }
 0x653   : > { %6837 = vst [vmem:[%s12604_s1 + $0x28] sm:$0xff] %v6805_v52  ;;  %v6675_v13 = vmul.f32 %v12574_v17, %v6640_v5  ;;  %7240 = vmatmul.f32.gmra.mxu0 %v12472_v4  ;;  %v7644_v52 = vld [vmem:[#allocation8 + $0x3a8] sm:$0xff]  ;;  %7556 = vmatpush.msra.mxu3 %v7527_v37  ;;  %v6498_v37 = vld [vmem:[#allocation2 + $0x109] sm:$0xff] }
 0x654   : > { %7127 = vmatmul.f32.gmra.mxu2 %v12696_v49  ;;  %7353 = vmatmul.f32.gmra.mxu1 %v12468_v63  ;;  %v7758_v63 = vld [vmem:[#allocation8 + $0x430] sm:$0xff] }
 0x655   : > { %v6710_v46 = vadd.f32 %v12582_v20, %v6675_v13  ;;  %6606 = vmatmul.f32.gmra.mxu3 %v6495_v43  ;;  %v13729_v43 = vld [vmem:[#allocation49_spill] sm:$0xff]  ;;  %v13730_v13 = vld [vmem:[#allocation16_spill] sm:$0xff]  ;;  %7777 = vmatpush.msrb.mxu1 %v7758_v63  ;;  %v13732_v63 = vld [vmem:[#allocation42_spill] sm:$0xff] }
 0x656   : > { %v6270_v21 = vadd.f32 %v13730_v13, %v13729_v43  ;;  %7665 = vmatpush.msra.mxu0 %v7644_v52  ;;  %v13733_v52 = vld [vmem:[#allocation48_spill] sm:$0xff]  ;;  %v13735_v43 = vld [vmem:[#allocation43_spill] sm:$0xff] }
 0x657   : > { %v6774_v41 = vadd.f32 %v6742_v35, %v6710_v46  ;;  %v6413_v40 = vpop.f32.mrf.mxu2  ;;  %v13731_v46 = vld [vmem:[#allocation26_spill] sm:$0xff] }
 0x658   : > { %v12705_v61 = vadd.f32 %v6413_v40, %v6269_v42  ;;  %v6559_v4 = vpop.f32.mrf.mxu3 }
 0x659   : > { %v6806_v31 = vmax.f32 %v6774_v41, 0.0  ;;  %v6641_v23 = vadd.f32 %v6559_v4, %v13728_v47  ;;  %v12708_v38 = vpop.f32.mrf.mxu0  ;;  %v7757_v47 = vld [vmem:[#allocation8 + $0x428] sm:$0xff] }
 0x65a   : > { %v12710_v1 = vpop.f32.mrf.mxu1  ;;  %7778 = vmatpush.msrb.mxu1 %v7757_v47  ;;  %v12750_v47 = vld [vmem:[#allocation2 + $0x159] sm:$0xff] }
 0x65b   : > { %6838 = vst [vmem:[%s12604_s1 + $0x30] sm:$0xff] %v6806_v31  ;;  %v6676_v24 = vmul.f32 %v12574_v17, %v6641_v23  ;;  %7243 = vmatmul.f32.gmra.mxu0 %v12488_v10  ;;  %v12732_v31 = vld [vmem:[#allocation2 + $0x151] sm:$0xff]  ;;  %v7416_v23 = vld [vmem:[#allocation8 + $0x298] sm:$0xff] }
 0x65c   : > { %7130 = vmatmul.f32.gmra.mxu2 %v12714_v28  ;;  %7356 = vmatmul.f32.gmra.mxu1 %v12484_v18  ;;  %v6497_v18 = vld [vmem:[#allocation2 + $0x101] sm:$0xff] }
 0x65d   : > { %v6711_v5 = vadd.f32 %v12582_v20, %v6676_v24  ;;  %6609 = vmatmul.f32.gmra.mxu3 %v6496_v53  ;;  %v6744_v24 = vld [vmem:[%s8515_s10 + $0x59] sm:$0xff]  ;;  %7441 = vmatpush.msrb.mxu2 %v7416_v23  ;;  %v7756_v23 = vld [vmem:[#allocation8 + $0x420] sm:$0xff] }
 0x65e   : > { %7779 = vmatpush.msrb.mxu1 %v7756_v23  ;;  %v12768_v23 = vld [vmem:[#allocation2 + $0x161] sm:$0xff] }
 0x65f   : > { %v6775_v62 = vadd.f32 %v6743_v34, %v6711_v5  ;;  %v6416_v35 = vpop.f32.mrf.mxu2  ;;  %v7643_v34 = vld [vmem:[#allocation8 + $0x3a0] sm:$0xff]  ;;  %v13734_v5 = vld [vmem:[#allocation29_spill] sm:$0xff] }
 0x660   : > { %v12723_v26 = vadd.f32 %v6416_v35, %v6270_v21  ;;  %v6562_v32 = vpop.f32.mrf.mxu3  ;;  %v6271_v13 = vadd.f32 %v13735_v43, %v13734_v5  ;;  %7666 = vmatpush.msra.mxu0 %v7643_v34  ;;  %v7642_v34 = vld [vmem:[#allocation8 + $0x398] sm:$0xff]  ;;  %v13739_v5 = vld [vmem:[#allocation40_spill] sm:$0xff] }
 0x661   : > { %v6807_v10 = vmax.f32 %v6775_v62, 0.0  ;;  %v6642_v42 = vadd.f32 %v6562_v32, %v13731_v46  ;;  %v12726_v41 = vpop.f32.mrf.mxu0  ;;  %v13736_v46 = vld [vmem:[#allocation28_spill] sm:$0xff]  ;;  %v13740_v43 = vld [vmem:[#allocation21_spill] sm:$0xff] }
 0x662   : > { %v12728_v40 = vpop.f32.mrf.mxu1  ;;  %7667 = vmatpush.msra.mxu0 %v7642_v34  ;;  %v13745_v34 = vld [vmem:[#allocation14_spill] sm:$0xff] }
 0x663   : > { %6839 = vst [vmem:[%s12604_s1 + $0x38] sm:$0xff] %v6807_v10  ;;  %v6677_v4 = vmul.f32 %v12574_v17, %v6642_v42  ;;  %7246 = vmatmul.f32.gmra.mxu0 %v13732_v63 }
 0x664   : > { %7133 = vmatmul.f32.gmra.mxu2 %v12732_v31  ;;  %7359 = vmatmul.f32.gmra.mxu1 %v13733_v52 }
 0x665   : > { %v6712_v53 = vadd.f32 %v12582_v20, %v6677_v4  ;;  %6612 = vmatmul.f32.gmra.mxu3 %v6497_v18 }
 0x667   : > { %v6776_v21 = vadd.f32 %v6744_v24, %v6712_v53  ;;  %v6419_v62 = vpop.f32.mrf.mxu2  ;;  %v7415_v24 = vld [vmem:[#allocation8 + $0x290] sm:$0xff] }
 0x668   : > { %v12741_v35 = vadd.f32 %v6419_v62, %v6271_v13  ;;  %v6565_v32 = vpop.f32.mrf.mxu3  ;;  %v6745_v53 = vld [vmem:[%s8515_s10 + $0x61] sm:$0xff]  ;;  %v6272_v13 = vadd.f32 %v13740_v43, %v13739_v5  ;;  %7442 = vmatpush.msrb.mxu2 %v7415_v24 }
 0x669   : > { %v6808_v10 = vmax.f32 %v6776_v21, 0.0  ;;  %v6643_v42 = vadd.f32 %v6565_v32, %v13736_v46  ;;  %v12744_v4 = vpop.f32.mrf.mxu0  ;;  %v13742_v46 = vld [vmem:[#allocation44_spill] sm:$0xff]  ;;  %v7755_v24 = vld [vmem:[#allocation8 + $0x418] sm:$0xff]  ;;  %v7526_v43 = vld [vmem:[#allocation8 + $0x300] sm:$0xff] }
 0x66a   : > { %13737 = vst [vmem:[#allocation23_spill] sm:$0xff] %v12744_v4  ;;  %v12746_v18 = vpop.f32.mrf.mxu1  ;;  %7780 = vmatpush.msrb.mxu1 %v7755_v24  ;;  %7557 = vmatpush.msra.mxu3 %v7526_v43  ;;  %v12786_v24 = vld [vmem:[#allocation2 + $0x169] sm:$0xff]  ;;  %v6500_v43 = vld [vmem:[#allocation2 + $0x119] sm:$0xff] }
 0x66b   : > { %13738 = vst [vmem:[#allocation22_spill] sm:$0xff] %v12746_v18  ;;  %v6678_v63 = vmul.f32 %v12574_v17, %v6643_v42  ;;  %7249 = vmatmul.f32.gmra.mxu0 %v12520_v56  ;;  %v13750_v18 = vld [vmem:[#allocation41_spill] sm:$0xff] }
 0x66c   : > { %6840 = vst [vmem:[%s12604_s1 + $0x40] sm:$0xff] %v6808_v10  ;;  %7136 = vmatmul.f32.gmra.mxu2 %v12750_v47  ;;  %7362 = vmatmul.f32.gmra.mxu1 %v12516_v48  ;;  %v6499_v48 = vld [vmem:[#allocation2 + $0x111] sm:$0xff] }
 0x66d   : > { %v6713_v52 = vadd.f32 %v12582_v20, %v6678_v63  ;;  %6615 = vmatmul.f32.gmra.mxu3 %v6498_v37 }
 0x66f   : > { %v6777_v21 = vadd.f32 %v6745_v53, %v6713_v52  ;;  %v6422_v62 = vpop.f32.mrf.mxu2  ;;  %v7414_v53 = vld [vmem:[#allocation8 + $0x288] sm:$0xff] }
 0x670   : > { %v12759_v32 = vadd.f32 %v6422_v62, %v6272_v13  ;;  %v6568_v10 = vpop.f32.mrf.mxu3  ;;  %v6746_v52 = vld [vmem:[%s8515_s10 + $0x69] sm:$0xff]  ;;  %v7641_v13 = vld [vmem:[#allocation8 + $0x390] sm:$0xff]  ;;  %7443 = vmatpush.msrb.mxu2 %v7414_v53 }
 0x671   : > { %v6809_v56 = vmax.f32 %v6777_v21, 0.0  ;;  %v6644_v42 = vadd.f32 %v6568_v10, %v13742_v46  ;;  %v12762_v63 = vpop.f32.mrf.mxu0  ;;  %v13746_v62 = vld [vmem:[#allocation33_spill] sm:$0xff]  ;;  %v13747_v10 = vld [vmem:[#allocation52_spill] sm:$0xff]  ;;  %7668 = vmatpush.msra.mxu0 %v7641_v13 }
 0x672   : > { %13741 = vst [vmem:[#allocation15_spill] sm:$0xff] %v12759_v32  ;;  %v12764_v37 = vpop.f32.mrf.mxu1  ;;  %v7754_v53 = vld [vmem:[#allocation8 + $0x410] sm:$0xff]  ;;  %v13754_v13 = vld [vmem:[#allocation37_spill] sm:$0xff] }
 0x673   : > { %13743 = vst [vmem:[#allocation30_spill] sm:$0xff] %v12762_v63  ;;  %v6679_v5 = vmul.f32 %v12574_v17, %v6644_v42  ;;  %7252 = vmatmul.f32.gmra.mxu0 %v13745_v34  ;;  %7781 = vmatpush.msrb.mxu1 %v7754_v53 }
 0x674   : > { %13744 = vst [vmem:[#allocation17_spill] sm:$0xff] %v12764_v37  ;;  %7139 = vmatmul.f32.gmra.mxu2 %v12768_v23  ;;  %7365 = vmatmul.f32.gmra.mxu1 %v13746_v62 }
 0x675   : > { %6841 = vst [vmem:[%s12604_s1 + $0x48] sm:$0xff] %v6809_v56  ;;  %v6714_v21 = vadd.f32 %v12582_v20, %v6679_v5  ;;  %6618 = vmatmul.f32.gmra.mxu3 %v6499_v48  ;;  %v13748_v56 = vld [vmem:[#allocation35_spill] sm:$0xff] }
 0x676   : > { %v6273_v46 = vadd.f32 %v13748_v56, %v13747_v10 }
 0x677   : > { %v6778_v42 = vadd.f32 %v6746_v52, %v6714_v21  ;;  %v6425_v37 = vpop.f32.mrf.mxu2  ;;  %v7413_v52 = vld [vmem:[#allocation8 + $0x280] sm:$0xff] }
 0x678   : > { %v12777_v63 = vadd.f32 %v6425_v37, %v6273_v46  ;;  %v6571_v34 = vpop.f32.mrf.mxu3  ;;  %v6747_v21 = vld [vmem:[%s8515_s10 + $0x71] sm:$0xff]  ;;  %7444 = vmatpush.msrb.mxu2 %v7413_v52  ;;  %v12806_v52 = vld [vmem:[#allocation2 + $0x187] sm:$0xff] }
 0x679   : > { %v6810_v32 = vmax.f32 %v6778_v42, 0.0  ;;  %v6645_v5 = vadd.f32 %v6571_v34, %v13750_v18  ;;  %v12780_v4 = vpop.f32.mrf.mxu0  ;;  %v7640_v37 = vld [vmem:[#allocation8 + $0x388] sm:$0xff]  ;;  %13759 = vst [vmem:[#allocation31_spill] sm:$0xff] %v12806_v52 }
 0x67a   : > { %13749 = vst [vmem:[#allocation46_spill] sm:$0xff] %v12777_v63  ;;  %v12782_v48 = vpop.f32.mrf.mxu1  ;;  %7669 = vmatpush.msra.mxu0 %v7640_v37  ;;  %v6748_v37 = vld [vmem:[%s8515_s10 + $0x79] sm:$0xff] }
 0x67b   : > { %13751 = vst [vmem:[#allocation53_spill] sm:$0xff] %v12780_v4  ;;  %v6680_v62 = vmul.f32 %v12574_v17, %v6645_v5  ;;  %7255 = vmatmul.f32.gmra.mxu0 %v12552_v15  ;;  %v13756_v5 = vld [vmem:[#allocation45_spill] sm:$0xff] }
 0x67c   : > { %13752 = vst [vmem:[#allocation47_spill] sm:$0xff] %v12782_v48  ;;  %7142 = vmatmul.f32.gmra.mxu2 %v12786_v24  ;;  %7368 = vmatmul.f32.gmra.mxu1 %v12548_v36  ;;  %v12802_v36 = vld [vmem:[#allocation2 + $0x171] sm:$0xff] }
 0x67d   : > { %6842 = vst [vmem:[%s12604_s1 + $0x50] sm:$0xff] %v6810_v32  ;;  %v6715_v18 = vadd.f32 %v12582_v20, %v6680_v62  ;;  %6621 = vmatmul.f32.gmra.mxu3 %v6500_v43  ;;  %v13753_v32 = vld [vmem:[#allocation25_spill] sm:$0xff] }
 0x67e   : > { %v6274_v10 = vadd.f32 %v13754_v13, %v13753_v32  ;;  %v12811_v32 = vld [vmem:[#allocation2 + $0x188] sm:$0xff] }
 0x67f   : > { %v6779_v56 = vadd.f32 %v6747_v21, %v6715_v18  ;;  %v6428_v46 = vpop.f32.mrf.mxu2  ;;  %v7753_v21 = vld [vmem:[#allocation8 + $0x408] sm:$0xff]  ;;  %v7639_v18 = vld [vmem:[#allocation8 + $0x380] sm:$0xff] }
 0x680   : > { %v12795_v42 = vadd.f32 %v6428_v46, %v6274_v10  ;;  %v6574_v34 = vpop.f32.mrf.mxu3  ;;  %v7752_v10 = vld [vmem:[#allocation8 + $0x400] sm:$0xff]  ;;  %7782 = vmatpush.msrb.mxu1 %v7753_v21  ;;  %7670 = vmatpush.msra.mxu0 %v7639_v18 }
 0x681   : > { %v6811_v15 = vmax.f32 %v6779_v56, 0.0  ;;  %v6646_v48 = vadd.f32 %v6574_v34, %v13756_v5  ;;  %v12798_v62 = vpop.f32.mrf.mxu0  ;;  %v13761_v56 = vld [vmem:[#allocation51_spill] sm:$0xff]  ;;  %v12829_v21 = vld [vmem:[#allocation2 + $0x18f] sm:$0xff] }
 0x682   : > { %13755 = vst [vmem:[#allocation19_spill] sm:$0xff] %v12795_v42  ;;  %v12800_v43 = vpop.f32.mrf.mxu1  ;;  %7783 = vmatpush.msrb.mxu1 %v7752_v10  ;;  %v6749_v18 = vld [vmem:[%s8515_s10 + $0x81] sm:$0xff] }
 0x683   : > { %13757 = vst [vmem:[#allocation34_spill] sm:$0xff] %v12798_v62  ;;  %v6681_v53 = vmul.f32 %v12574_v17, %v6646_v48  ;;  %7258 = vmatmul.f32.gmra.mxu0 %v12806_v52  ;;  %v13760_v48 = vld [vmem:[#allocation18_spill] sm:$0xff] }
 0x684   : > { %13758 = vst [vmem:[#allocation50_spill] sm:$0xff] %v12800_v43  ;;  %7145 = vmatmul.f32.gmra.mxu2 %v12802_v36  ;;  %7371 = vmatmul.f32.gmra.mxu1 %v12811_v32  ;;  %v6275_v46 = vadd.f32 %v13761_v56, %v13760_v48  ;;  %v12827_v48 = vld [vmem:[#allocation2 + $0x179] sm:$0xff] }
 0x685   : > { %6843 = vst [vmem:[%s12604_s1 + $0x58] sm:$0xff] %v6811_v15  ;;  %v6716_v13 = vadd.f32 %v12582_v20, %v6681_v53  ;;  %6624 = vmatmul.f32.gmra.mxu3 %v12624_v22  ;;  %v13763_v53 = vld [vmem:[#allocation32_spill] sm:$0xff] }
 0x686   : > { %13766 = vst [vmem:[#allocation16_spill] sm:$0xff] %v12829_v21 }
 0x687   : > { %v6780_v34 = vadd.f32 %v6748_v37, %v6716_v13  ;;  %v6431_v15 = vpop.f32.mrf.mxu2  ;;  %v12834_v37 = vld [vmem:[#allocation2 + $0x190] sm:$0xff] }
 0x688   : > { %v12818_v5 = vadd.f32 %v6431_v15, %v6275_v46  ;;  %v6577_v43 = vpop.f32.mrf.mxu3  ;;  %13767 = vst [vmem:[#allocation26_spill] sm:$0xff] %v12834_v37 }
 0x689   : > { %v6812_v62 = vmax.f32 %v6780_v34, 0.0  ;;  %v6647_v42 = vadd.f32 %v6577_v43, %v13763_v53  ;;  %v12821_v4 = vpop.f32.mrf.mxu0  ;;  %v13771_v53 = vld [vmem:[#allocation24_spill] sm:$0xff] }
 0x68a   : > { %13762 = vst [vmem:[#allocation36_spill] sm:$0xff] %v12818_v5  ;;  %v12823_v63 = vpop.f32.mrf.mxu1 }
 0x68b   : > { %13764 = vst [vmem:[#allocation38_spill] sm:$0xff] %v12821_v4  ;;  %v6682_v52 = vmul.f32 %v12574_v17, %v6647_v42  ;;  %7261 = vmatmul.f32.gmra.mxu0 %v12829_v21  ;;  %v13768_v42 = vld [vmem:[#allocation20_spill] sm:$0xff] }
 0x68c   : > { %13765 = vst [vmem:[#allocation49_spill] sm:$0xff] %v12823_v63  ;;  %7148 = vmatmul.f32.gmra.mxu2 %v12827_v48  ;;  %7374 = vmatmul.f32.gmra.mxu1 %v12834_v37  ;;  %v12850_v21 = vld [vmem:[#allocation2 + $0x181] sm:$0xff]  ;;  %v12852_v37 = vld [vmem:[#allocation2 + $0x197] sm:$0xff] }
 0x68d   : > { %6844 = vst [vmem:[%s12604_s1 + $0x60] sm:$0xff] %v6812_v62  ;;  %v6717_v43 = vadd.f32 %v12582_v20, %v6682_v52  ;;  %6627 = vmatmul.f32.gmra.mxu3 %v12642_v44  ;;  %v13769_v62 = vld [vmem:[#allocation39_spill] sm:$0xff] }
 0x68e   : > { %v6276_v13 = vadd.f32 %v13769_v62, %v13768_v42  ;;  %13774 = vst [vmem:[#allocation43_spill] sm:$0xff] %v12852_v37  ;;  %v6750_v42 = vld [vmem:[%s8515_s10 + $0x89] sm:$0xff] }
 0x68f   : > { %v6781_v10 = vadd.f32 %v6749_v18, %v6717_v43  ;;  %v6434_v56 = vpop.f32.mrf.mxu2  ;;  %v12857_v18 = vld [vmem:[#allocation2 + $0x198] sm:$0xff] }
 0x690   : > { %v12841_v46 = vadd.f32 %v6434_v56, %v6276_v13  ;;  %v6580_v34 = vpop.f32.mrf.mxu3 }
 0x691   : > { %v6813_v15 = vmax.f32 %v6781_v10, 0.0  ;;  %v6648_v63 = vadd.f32 %v6580_v34, %v13771_v53  ;;  %v12844_v4 = vpop.f32.mrf.mxu0 }
 0x692   : > { %13770 = vst [vmem:[#allocation42_spill] sm:$0xff] %v12841_v46  ;;  %v12846_v5 = vpop.f32.mrf.mxu1  ;;  %v7623_v46 = vld [vmem:[#allocation2 + $0x138] sm:$0xff] }
 0x693   : > { %13772 = vst [vmem:[#allocation48_spill] sm:$0xff] %v12844_v4  ;;  %v6683_v52 = vmul.f32 %v12574_v17, %v6648_v63  ;;  %7264 = vmatmul.f32.gmra.mxu0 %v12852_v37  ;;  %v13775_v63 = vld [vmem:[#allocation27_spill] sm:$0xff] }
 0x694   : > { %13773 = vst [vmem:[#allocation29_spill] sm:$0xff] %v12846_v5  ;;  %7151 = vmatmul.f32.gmra.mxu2 %v12850_v21  ;;  %7377 = vmatmul.f32.gmra.mxu1 %v12857_v18  ;;  %v6277_v62 = vadd.f32 %v13775_v63, %v12564_v45  ;;  %v6751_v37 = vld [vmem:[%s8515_s10 + $0x91] sm:$0xff] }
 0x695   : > { %6845 = vst [vmem:[%s12604_s1 + $0x68] sm:$0xff] %v6813_v15  ;;  %v6718_v43 = vadd.f32 %v12582_v20, %v6683_v52  ;;  %6630 = vmatmul.f32.gmra.mxu3 %v12660_v27  ;;  %v7510_v45 = vld [vmem:[#allocation2 + $0x137] sm:$0xff] }
 0x697   : > { %v6782_v13 = vadd.f32 %v6750_v42, %v6718_v43  ;;  %v6437_v10 = vpop.f32.mrf.mxu2 }
 0x698   : > { %v12864_v56 = vadd.f32 %v6437_v10, %v6277_v62  ;;  %v6583_v34 = vpop.f32.mrf.mxu3 }
 0x699   : > { %v6814_v15 = vmax.f32 %v6782_v13, 0.0  ;;  %v6649_v53 = vadd.f32 %v6583_v34, %v12557_v25  ;;  %v7220_v5 = vpop.f32.mrf.mxu0  ;;  %v7011_v25 = vadd.f32 %v12562_v57, %v12560_v30  ;;  %v7511_v30 = vld [vmem:[#allocation2 + $0x13f] sm:$0xff] }
 0x69a   : > { %v12867_v4 = vpop.f32.mrf.mxu1 }
 0x69b   : > { %6846 = vst [vmem:[%s12604_s1 + $0x70] sm:$0xff] %v6814_v15  ;;  %v6684_v52 = vmul.f32 %v12574_v17, %v6649_v53  ;;  %7671 = vmatmul.f32.vlgmr.msra.gmra.mxu0 %v7623_v46 }
 0x69c   : > { %7445 = vmatmul.f32.vlgmr.msrb.gmra.mxu2 %v12624_v22  ;;  %7784 = vmatmul.f32.vlgmr.msrb.gmra.mxu1 %v12678_v60 }
 0x69d   : > { %v6719_v42 = vadd.f32 %v12582_v20, %v6684_v52  ;;  %7558 = vmatmul.f32.vlgmr.msra.gmra.mxu3 %v7510_v45  ;;  %v7624_v52 = vld [vmem:[#allocation2 + $0x140] sm:$0xff] }
 0x69e   : > { %v6752_v45 = vld [vmem:[%s8515_s10 + $0x99] sm:$0xff] }
 0x69f   : > { %v6783_v43 = vadd.f32 %v6751_v37, %v6719_v42  ;;  %v7107_v63 = vpop.f32.mrf.mxu2 }
 0x6a0   : > { %v6586_v62 = vpop.f32.mrf.mxu3  ;;  %v7155_v13 = vadd.f32 %v7107_v63, %v7011_v25 }
 0x6a1   : > { %v6815_v10 = vmax.f32 %v6783_v43, 0.0  ;;  %v6650_v34 = vadd.f32 %v6586_v62, %v12576_v14  ;;  %v7223_v22 = vpop.f32.mrf.mxu0  ;;  %v7014_v14 = vadd.f32 %v12586_v58, %v12584_v7  ;;  %v7512_v7 = vld [vmem:[#allocation2 + $0x147] sm:$0xff] }
 0x6a2   : > { %v12878_v15 = vadd.f32 %v7220_v5, %v7155_v13  ;;  %v12880_v46 = vpop.f32.mrf.mxu1 }
 0x6a3   : > { %6847 = vst [vmem:[%s12604_s1 + $0x78] sm:$0xff] %v6815_v10  ;;  %v6685_v53 = vmul.f32 %v12574_v17, %v6650_v34  ;;  %7674 = vmatmul.f32.gmra.mxu0 %v7624_v52  ;;  %v7625_v34 = vld [vmem:[#allocation2 + $0x148] sm:$0xff] }
 0x6a4   : > { %7448 = vmatmul.f32.gmra.mxu2 %v12642_v44  ;;  %7787 = vmatmul.f32.gmra.mxu1 %v12696_v49 }
 0x6a5   : > { %v6720_v57 = vadd.f32 %v12582_v20, %v6685_v53  ;;  %7561 = vmatmul.f32.gmra.mxu3 %v7511_v30  ;;  %v6753_v53 = vld [vmem:[%s8515_s10 + $0xa1] sm:$0xff] }
 0x6a7   : > { %v6784_v5 = vadd.f32 %v6752_v45, %v6720_v57  ;;  %v7110_v37 = vpop.f32.mrf.mxu2 }
 0x6a8   : > { %v6589_v42 = vpop.f32.mrf.mxu3  ;;  %v7156_v25 = vadd.f32 %v7110_v37, %v7014_v14 }
 0x6a9   : > { %v6816_v43 = vmax.f32 %v6784_v5, 0.0  ;;  %v6651_v63 = vadd.f32 %v6589_v42, %v12597_v29  ;;  %v7226_v44 = vpop.f32.mrf.mxu0  ;;  %v7017_v29 = vadd.f32 %v12602_v55, %v12600_v8  ;;  %v7513_v8 = vld [vmem:[#allocation2 + $0x14f] sm:$0xff] }
 0x6aa   : > { %v12891_v62 = vadd.f32 %v7223_v22, %v7156_v25  ;;  %v12893_v13 = vpop.f32.mrf.mxu1  ;;  %v7626_v25 = vld [vmem:[#allocation2 + $0x150] sm:$0xff] }
 0x6ab   : > { %6848 = vst [vmem:[%s12604_s1 + $0x80] sm:$0xff] %v6816_v43  ;;  %v6686_v10 = vmul.f32 %v12574_v17, %v6651_v63  ;;  %7677 = vmatmul.f32.gmra.mxu0 %v7625_v34  ;;  %v6754_v43 = vld [vmem:[%s8515_s10 + $0xa9] sm:$0xff] }
 0x6ac   : > { %7451 = vmatmul.f32.gmra.mxu2 %v12660_v27  ;;  %7790 = vmatmul.f32.gmra.mxu1 %v12714_v28 }
 0x6ad   : > { %v6721_v58 = vadd.f32 %v12582_v20, %v6686_v10  ;;  %7564 = vmatmul.f32.gmra.mxu3 %v7512_v7 }
 0x6af   : > { %v6785_v22 = vadd.f32 %v6753_v53, %v6721_v58  ;;  %v7113_v52 = vpop.f32.mrf.mxu2 }
 0x6b0   : > { %v6592_v45 = vpop.f32.mrf.mxu3  ;;  %v7157_v30 = vadd.f32 %v7113_v52, %v7017_v29  ;;  %v7627_v52 = vld [vmem:[#allocation2 + $0x158] sm:$0xff] }
 0x6b1   : > { %v6817_v57 = vmax.f32 %v6785_v22, 0.0  ;;  %v6652_v14 = vadd.f32 %v6592_v45, %v12615_v19  ;;  %v7229_v27 = vpop.f32.mrf.mxu0  ;;  %v7020_v19 = vadd.f32 %v12620_v16, %v12618_v11  ;;  %v6755_v45 = vld [vmem:[%s8515_s10 + $0xb1] sm:$0xff] }
 0x6b2   : > { %v12904_v5 = vadd.f32 %v7226_v44, %v7157_v30  ;;  %v12906_v37 = vpop.f32.mrf.mxu1  ;;  %v7514_v11 = vld [vmem:[#allocation2 + $0x157] sm:$0xff] }
 0x6b3   : > { %6849 = vst [vmem:[%s12604_s1 + $0x88] sm:$0xff] %v6817_v57  ;;  %v6687_v42 = vmul.f32 %v12574_v17, %v6652_v14  ;;  %7680 = vmatmul.f32.gmra.mxu0 %v7626_v25 }
 0x6b4   : > { %7454 = vmatmul.f32.gmra.mxu2 %v12678_v60  ;;  %7793 = vmatmul.f32.gmra.mxu1 %v12732_v31 }
 0x6b5   : > { %v6722_v55 = vadd.f32 %v12582_v20, %v6687_v42  ;;  %7567 = vmatmul.f32.gmra.mxu3 %v7513_v8 }
 0x6b7   : > { %v6786_v63 = vadd.f32 %v6754_v43, %v6722_v55  ;;  %v7116_v44 = vpop.f32.mrf.mxu2 }
 0x6b8   : > { %v6595_v10 = vpop.f32.mrf.mxu3  ;;  %v7158_v34 = vadd.f32 %v7116_v44, %v7020_v19  ;;  %v7628_v19 = vld [vmem:[#allocation2 + $0x160] sm:$0xff] }
 0x6b9   : > { %v6818_v53 = vmax.f32 %v6786_v63, 0.0  ;;  %v6653_v7 = vadd.f32 %v6595_v10, %v12633_v12  ;;  %v7232_v60 = vpop.f32.mrf.mxu0  ;;  %v7023_v12 = vadd.f32 %v12638_v6, %v12636_v51  ;;  %v6756_v63 = vld [vmem:[%s8515_s10 + $0xb9] sm:$0xff] }
 0x6ba   : > { %v12917_v58 = vadd.f32 %v7229_v27, %v7158_v34  ;;  %v12919_v29 = vpop.f32.mrf.mxu1  ;;  %v7515_v51 = vld [vmem:[#allocation2 + $0x15f] sm:$0xff] }
 0x6bb   : > { %6850 = vst [vmem:[%s12604_s1 + $0x90] sm:$0xff] %v6818_v53  ;;  %v6688_v22 = vmul.f32 %v12574_v17, %v6653_v7  ;;  %7683 = vmatmul.f32.gmra.mxu0 %v7627_v52 }
 0x6bc   : > { %7457 = vmatmul.f32.gmra.mxu2 %v12696_v49  ;;  %7796 = vmatmul.f32.gmra.mxu1 %v12750_v47 }
 0x6bd   : > { %v6723_v16 = vadd.f32 %v12582_v20, %v6688_v22  ;;  %7570 = vmatmul.f32.gmra.mxu3 %v7514_v11  ;;  %v7629_v11 = vld [vmem:[#allocation2 + $0x168] sm:$0xff] }
 0x6bf   : > { %v6787_v30 = vadd.f32 %v6755_v45, %v6723_v16  ;;  %v7119_v57 = vpop.f32.mrf.mxu2  ;;  %v6757_v16 = vld [vmem:[%s8515_s10 + $0xc1] sm:$0xff] }
 0x6c0   : > { %v6598_v14 = vpop.f32.mrf.mxu3  ;;  %v7159_v27 = vadd.f32 %v7119_v57, %v7023_v12 }
 0x6c1   : > { %v6819_v42 = vmax.f32 %v6787_v30, 0.0  ;;  %v6654_v25 = vadd.f32 %v6598_v14, %v12651_v2  ;;  %v7235_v49 = vpop.f32.mrf.mxu0  ;;  %v7026_v2 = vadd.f32 %v12656_v9, %v12654_v39  ;;  %v7516_v39 = vld [vmem:[#allocation2 + $0x167] sm:$0xff] }
 0x6c2   : > { %v12930_v43 = vadd.f32 %v7232_v60, %v7159_v27  ;;  %v12932_v8 = vpop.f32.mrf.mxu1 }
 0x6c3   : > { %6851 = vst [vmem:[%s12604_s1 + $0x98] sm:$0xff] %v6819_v42  ;;  %v6689_v55 = vmul.f32 %v12574_v17, %v6654_v25  ;;  %7686 = vmatmul.f32.gmra.mxu0 %v7628_v19 }
 0x6c4   : > { %7460 = vmatmul.f32.gmra.mxu2 %v12714_v28  ;;  %7799 = vmatmul.f32.gmra.mxu1 %v12768_v23 }
 0x6c5   : > { %v6724_v6 = vadd.f32 %v12582_v20, %v6689_v55  ;;  %7573 = vmatmul.f32.gmra.mxu3 %v7515_v51  ;;  %v7517_v55 = vld [vmem:[#allocation2 + $0x16f] sm:$0xff] }
 0x6c7   : > { %v6788_v44 = vadd.f32 %v6756_v63, %v6724_v6  ;;  %v7122_v10 = vpop.f32.mrf.mxu2  ;;  %v7032_v63 = vadd.f32 %v12692_v54, %v12690_v3  ;;  %v7518_v3 = vld [vmem:[#allocation2 + $0x177] sm:$0xff] }
 0x6c8   : > { %v6601_v34 = vpop.f32.mrf.mxu3  ;;  %v7160_v53 = vadd.f32 %v7122_v10, %v7026_v2 }
 0x6c9   : > { %v6820_v7 = vmax.f32 %v6788_v44, 0.0  ;;  %v6655_v60 = vadd.f32 %v6601_v34, %v12669_v59  ;;  %v7238_v28 = vpop.f32.mrf.mxu0  ;;  %v7029_v59 = vadd.f32 %v12674_v33, %v12672_v0  ;;  %v7630_v33 = vld [vmem:[#allocation2 + $0x170] sm:$0xff] }
 0x6ca   : > { %v12943_v22 = vadd.f32 %v7235_v49, %v7160_v53  ;;  %v12945_v52 = vpop.f32.mrf.mxu1  ;;  %v6758_v49 = vld [vmem:[%s8515_s10 + $0xc9] sm:$0xff] }
 0x6cb   : > { %6852 = vst [vmem:[%s12604_s1 + $0xa0] sm:$0xff] %v6820_v7  ;;  %v6690_v45 = vmul.f32 %v12574_v17, %v6655_v60  ;;  %7689 = vmatmul.f32.gmra.mxu0 %v7629_v11 }
 0x6cc   : > { %7463 = vmatmul.f32.gmra.mxu2 %v12732_v31  ;;  %7802 = vmatmul.f32.gmra.mxu1 %v12786_v24 }
 0x6cd   : > { %v6725_v9 = vadd.f32 %v12582_v20, %v6690_v45  ;;  %7576 = vmatmul.f32.gmra.mxu3 %v7516_v39  ;;  %v12964_v20 = vld [vmem:[%s13222_s5] ss:$0 sm:$0xff] }
 0x6ce   : > { %v6759_v45 = vld [vmem:[%s8515_s10 + $0xd1] sm:$0xff] }
 0x6cf   : > { %v6789_v12 = vadd.f32 %v6757_v16, %v6725_v9  ;;  %v7125_v30 = vpop.f32.mrf.mxu2 }
 0x6d0   : > { %v6604_v57 = vpop.f32.mrf.mxu3  ;;  %v7161_v17 = vadd.f32 %v7125_v30, %v7029_v59 }
 0x6d1   : > { %v6821_v14 = vmax.f32 %v6789_v12, 0.0  ;;  %v6656_v27 = vadd.f32 %v6604_v57, %v12687_v50  ;;  %v7241_v31 = vpop.f32.mrf.mxu0  ;;  %v12972_v50 = vld [vmem:[%s13223_s6] ss:$0 sm:$0xff] }
 0x6d2   : > { %v12956_v42 = vadd.f32 %v7238_v28, %v7161_v17  ;;  %v12958_v25 = vpop.f32.mrf.mxu1  ;;  %v7631_v28 = vld [vmem:[#allocation2 + $0x178] sm:$0xff] }
 0x6d3   : > { %6853 = vst [vmem:[%s12604_s1 + $0xa8] sm:$0xff] %v6821_v14  ;;  %v6691_v0 = vmul.f32 %v12964_v20, %v6656_v27  ;;  %7692 = vmatmul.f32.gmra.mxu0 %v7630_v33  ;;  %v7632_v14 = vld [vmem:[#allocation2 + $0x180] sm:$0xff] }
 0x6d4   : > { %7466 = vmatmul.f32.gmra.mxu2 %v12750_v47  ;;  %7805 = vmatmul.f32.gmra.mxu1 %v12802_v36  ;;  %v6760_v27 = vld [vmem:[%s8515_s10 + $0xd9] sm:$0xff] }
 0x6d5   : > { %v6726_v19 = vadd.f32 %v12972_v50, %v6691_v0  ;;  %7579 = vmatmul.f32.gmra.mxu3 %v7517_v55 }
 0x6d7   : > { %v6790_v51 = vadd.f32 %v6758_v49, %v6726_v19  ;;  %v7128_v6 = vpop.f32.mrf.mxu2 }
 0x6d8   : > { %v6607_v47 = vpop.f32.mrf.mxu3  ;;  %v7162_v2 = vadd.f32 %v7128_v6, %v7032_v63 }
 0x6d9   : > { %v6822_v44 = vmax.f32 %v6790_v51, 0.0  ;;  %v6657_v10 = vadd.f32 %v6607_v47, %v12705_v61  ;;  %v7244_v34 = vpop.f32.mrf.mxu0  ;;  %v7035_v61 = vadd.f32 %v12710_v1, %v12708_v38  ;;  %v7519_v38 = vld [vmem:[#allocation2 + $0x17f] sm:$0xff] }
 0x6da   : > { %v12979_v53 = vadd.f32 %v7241_v31, %v7162_v2  ;;  %v12981_v7 = vpop.f32.mrf.mxu1  ;;  %v6761_v47 = vld [vmem:[%s8515_s10 + $0xe1] sm:$0xff]  ;;  %v13776_v2 = vld [vmem:[#allocation31_spill] sm:$0xff] }
 0x6db   : > { %6854 = vst [vmem:[%s12604_s1 + $0xb0] sm:$0xff] %v6822_v44  ;;  %v6692_v60 = vmul.f32 %v12964_v20, %v6657_v10  ;;  %7695 = vmatmul.f32.gmra.mxu0 %v7631_v28  ;;  %v13778_v44 = vld [vmem:[#allocation22_spill] sm:$0xff] }
 0x6dc   : > { %7469 = vmatmul.f32.gmra.mxu2 %v12768_v23  ;;  %7808 = vmatmul.f32.gmra.mxu1 %v12827_v48 }
 0x6dd   : > { %v6727_v54 = vadd.f32 %v12972_v50, %v6692_v60  ;;  %7582 = vmatmul.f32.gmra.mxu3 %v7518_v3 }
 0x6df   : > { %v6791_v11 = vadd.f32 %v6759_v45, %v6727_v54  ;;  %v7131_v16 = vpop.f32.mrf.mxu2  ;;  %v13779_v54 = vld [vmem:[#allocation15_spill] sm:$0xff] }
 0x6e0   : > { %v6610_v39 = vpop.f32.mrf.mxu3  ;;  %v7163_v9 = vadd.f32 %v7131_v16, %v7035_v61 }
 0x6e1   : > { %v6823_v59 = vmax.f32 %v6791_v11, 0.0  ;;  %v6658_v12 = vadd.f32 %v6610_v39, %v12723_v26  ;;  %v7247_v23 = vpop.f32.mrf.mxu0  ;;  %v7038_v26 = vadd.f32 %v12728_v40, %v12726_v41  ;;  %v7746_v41 = vld [vmem:[#allocation2 + $0x189] sm:$0xff] }
 0x6e2   : > { %v12992_v30 = vadd.f32 %v7244_v34, %v7163_v9  ;;  %v12994_v57 = vpop.f32.mrf.mxu1  ;;  %v6762_v39 = vld [vmem:[%s8515_s10 + $0xe9] sm:$0xff] }
 0x6e3   : > { %6855 = vst [vmem:[%s12604_s1 + $0xb8] sm:$0xff] %v6823_v59  ;;  %v6693_v17 = vmul.f32 %v12964_v20, %v6658_v12  ;;  %7698 = vmatmul.f32.gmra.mxu0 %v7632_v14  ;;  %v13780_v9 = vld [vmem:[#allocation26_spill] sm:$0xff]  ;;  %v13783_v14 = vld [vmem:[#allocation17_spill] sm:$0xff] }
 0x6e4   : > { %7472 = vmatmul.f32.gmra.mxu2 %v12786_v24  ;;  %7811 = vmatmul.f32.gmra.mxu1 %v12850_v21  ;;  %v7747_v59 = vld [vmem:[#allocation2 + $0x191] sm:$0xff] }
 0x6e5   : > { %v6728_v1 = vadd.f32 %v12972_v50, %v6693_v17  ;;  %7585 = vmatmul.f32.gmra.mxu3 %v7519_v38  ;;  %v13782_v17 = vld [vmem:[#allocation30_spill] sm:$0xff] }
 0x6e7   : > { %v6792_v31 = vadd.f32 %v6760_v27, %v6728_v1  ;;  %v7134_v0 = vpop.f32.mrf.mxu2  ;;  %v7044_v27 = vadd.f32 %v13783_v14, %v13782_v17  ;;  %v13789_v14 = vld [vmem:[#allocation34_spill] sm:$0xff] }
 0x6e8   : > { %v6613_v33 = vpop.f32.mrf.mxu3  ;;  %v7164_v49 = vadd.f32 %v7134_v0, %v7038_v26 }
 0x6e9   : > { %v6824_v55 = vmax.f32 %v6792_v31, 0.0  ;;  %v6659_v19 = vadd.f32 %v6613_v33, %v12741_v35  ;;  %v7250_v24 = vpop.f32.mrf.mxu0  ;;  %v13777_v35 = vld [vmem:[#allocation23_spill] sm:$0xff]  ;;  %v13784_v33 = vld [vmem:[#allocation46_spill] sm:$0xff] }
 0x6ea   : > { %v13005_v63 = vadd.f32 %v7247_v23, %v7164_v49  ;;  %v13007_v51 = vpop.f32.mrf.mxu1  ;;  %v7041_v10 = vadd.f32 %v13778_v44, %v13777_v35  ;;  %v13781_v23 = vld [vmem:[#allocation16_spill] sm:$0xff]  ;;  %v13786_v35 = vld [vmem:[#allocation53_spill] sm:$0xff]  ;;  %v13787_v44 = vld [vmem:[#allocation47_spill] sm:$0xff] }
 0x6eb   : > { %6856 = vst [vmem:[%s12604_s1 + $0xc0] sm:$0xff] %v6824_v55  ;;  %v6694_v6 = vmul.f32 %v12964_v20, %v6659_v19  ;;  %7701 = vmatmul.f32.gmra.mxu0 %v12811_v32 }
 0x6ec   : > { %7475 = vmatmul.f32.gmra.mxu2 %v12802_v36  ;;  %7814 = vmatmul.f32.gmra.mxu1 %v7746_v41 }
 0x6ed   : > { %v6729_v40 = vadd.f32 %v12972_v50, %v6694_v6  ;;  %7588 = vmatmul.f32.gmra.mxu3 %v13776_v2  ;;  %v6763_v6 = vld [vmem:[%s8515_s10 + $0xf1] sm:$0xff] }
 0x6ee   : > { %v13785_v2 = vld [vmem:[#allocation43_spill] sm:$0xff] }
 0x6ef   : > { %v6793_v34 = vadd.f32 %v6761_v47, %v6729_v40  ;;  %v7137_v60 = vpop.f32.mrf.mxu2  ;;  %v7748_v47 = vld [vmem:[#allocation2 + $0x199] sm:$0xff] }
 0x6f0   : > { %v6616_v28 = vpop.f32.mrf.mxu3  ;;  %v7165_v45 = vadd.f32 %v7137_v60, %v7041_v10  ;;  %v7047_v10 = vadd.f32 %v13787_v44, %v13786_v35  ;;  %v6765_v44 = vld [vmem:[%s8515_s10 + $0x101] sm:$0xff] }
 0x6f1   : > { %v6825_v3 = vmax.f32 %v6793_v34, 0.0  ;;  %v6660_v36 = vadd.f32 %v6616_v28, %v13779_v54  ;;  %v7253_v61 = vpop.f32.mrf.mxu0  ;;  %v13788_v54 = vld [vmem:[#allocation19_spill] sm:$0xff] }
 0x6f2   : > { %v13019_v11 = vadd.f32 %v7250_v24, %v7165_v45  ;;  %v13021_v32 = vpop.f32.mrf.mxu1 }
 0x6f3   : > { %6857 = vst [vmem:[%s12604_s1 + $0xc8] sm:$0xff] %v6825_v3  ;;  %v6695_v16 = vmul.f32 %v12964_v20, %v6660_v36  ;;  %7704 = vmatmul.f32.gmra.mxu0 %v13780_v9  ;;  %v6764_v9 = vld [vmem:[%s8515_s10 + $0xf9] sm:$0xff] }
 0x6f4   : > { %7478 = vmatmul.f32.gmra.mxu2 %v12827_v48  ;;  %7817 = vmatmul.f32.gmra.mxu1 %v7747_v59 }
 0x6f5   : > { %v6730_v12 = vadd.f32 %v12972_v50, %v6695_v16  ;;  %7591 = vmatmul.f32.gmra.mxu3 %v13781_v23  ;;  %v7749_v16 = vld [vmem:[#allocation2 + $0x1a1] sm:$0xff] }
 0x6f6   : > { %v8195_v23 = vld [vmem:[#allocation2 + $0x8] sm:$0xff] }
 0x6f7   : > { %v6794_v38 = vadd.f32 %v6762_v39, %v6730_v12  ;;  %v7140_v1 = vpop.f32.mrf.mxu2  ;;  %v7523_v12 = vld [vmem:[#allocation2 + $0x19f] sm:$0xff] }
 0x6f8   : > { %v6619_v26 = vpop.f32.mrf.mxu3  ;;  %v7166_v31 = vadd.f32 %v7140_v1, %v7044_v27  ;;  %v13790_v27 = vld [vmem:[#allocation50_spill] sm:$0xff] }
 0x6f9   : > { %v6826_v0 = vmax.f32 %v6794_v38, 0.0  ;;  %v6661_v48 = vadd.f32 %v6619_v26, %v13784_v33  ;;  %v7256_v49 = vpop.f32.mrf.mxu0  ;;  %v7050_v38 = vadd.f32 %v13790_v27, %v13789_v14  ;;  %v7751_v14 = vld [vmem:[#allocation2 + $0x1b1] sm:$0xff] }
 0x6fa   : > { %v13033_v55 = vadd.f32 %v7253_v61, %v7166_v31  ;;  %v13035_v19 = vpop.f32.mrf.mxu1 }
 0x6fb   : > { %6858 = vst [vmem:[%s12604_s1 + $0xd0] sm:$0xff] %v6826_v0  ;;  %v6696_v24 = vmul.f32 %v12964_v20, %v6661_v48  ;;  %7707 = vmatmul.f32.gmra.mxu0 %v12857_v18  ;;  %v13791_v48 = vld [vmem:[#allocation36_spill] sm:$0xff] }
 0x6fc   : > { %7481 = vmatmul.f32.gmra.mxu2 %v12850_v21  ;;  %7820 = vmatmul.f32.gmra.mxu1 %v7748_v47 }
 0x6fd   : > { %v6731_v40 = vadd.f32 %v12972_v50, %v6696_v24  ;;  %7594 = vmatmul.f32.gmra.mxu3 %v13785_v2  ;;  %v7750_v2 = vld [vmem:[#allocation2 + $0x1a9] sm:$0xff] }
 0x6ff   : > { %v6795_v34 = vadd.f32 %v6763_v6, %v6731_v40  ;;  %v7143_v60 = vpop.f32.mrf.mxu2  ;;  %v7524_v40 = vld [vmem:[#allocation2 + $0x1a7] sm:$0xff] }
 0x700   : > { %v6622_v28 = vpop.f32.mrf.mxu3  ;;  %v7167_v45 = vadd.f32 %v7143_v60, %v7047_v10  ;;  %v13793_v60 = vld [vmem:[#allocation49_spill] sm:$0xff] }
 0x701   : > { %v6827_v3 = vmax.f32 %v6795_v34, 0.0  ;;  %v6662_v21 = vadd.f32 %v6622_v28, %v13788_v54  ;;  %v7259_v36 = vpop.f32.mrf.mxu0  ;;  %v13792_v34 = vld [vmem:[#allocation38_spill] sm:$0xff] }
 0x702   : > { %v13047_v18 = vadd.f32 %v7256_v49, %v7167_v45  ;;  %v13049_v61 = vpop.f32.mrf.mxu1  ;;  %v7053_v28 = vadd.f32 %v13793_v60, %v13792_v34  ;;  %v7381_v60 = vadd.f32 %v12867_v4, %v12878_v15 }
 0x703   : > { %6859 = vst [vmem:[%s12604_s1 + $0xd8] sm:$0xff] %v6827_v3  ;;  %v6697_v39 = vmul.f32 %v12964_v20, %v6662_v21  ;;  %7710 = vmatmul.f32.gmra.mxu0 %v8195_v23 }
 0x704   : > { %7484 = vmatmul.f32.gmra.mxu2 %v7746_v41  ;;  %7823 = vmatmul.f32.gmra.mxu1 %v7749_v16  ;;  %v13794_v16 = vld [vmem:[#allocation42_spill] sm:$0xff] }
 0x705   : > { %v6732_v17 = vadd.f32 %v12972_v50, %v6697_v39  ;;  %7597 = vmatmul.f32.gmra.mxu3 %v7523_v12 }
 0x707   : > { %v6796_v1 = vadd.f32 %v6764_v9, %v6732_v17  ;;  %v7146_v26 = vpop.f32.mrf.mxu2  ;;  %v7525_v17 = vld [vmem:[#allocation2 + $0x1af] sm:$0xff] }
 0x708   : > { %v6625_v31 = vpop.f32.mrf.mxu3  ;;  %v7168_v0 = vadd.f32 %v7146_v26, %v7050_v38  ;;  %v6766_v38 = vld [vmem:[%s8515_s10 + $0x109] sm:$0xff]  ;;  %v13795_v26 = vld [vmem:[#allocation48_spill] sm:$0xff] }
 0x709   : > { %v6828_v33 = vmax.f32 %v6796_v1, 0.0  ;;  %v6663_v49 = vadd.f32 %v6625_v31, %v13791_v48  ;;  %v7262_v41 = vpop.f32.mrf.mxu0  ;;  %v13796_v31 = vld [vmem:[#allocation29_spill] sm:$0xff] }
 0x70a   : > { %v13058_v24 = vadd.f32 %v7259_v36, %v7168_v0  ;;  %v13060_v6 = vpop.f32.mrf.mxu1  ;;  %v7056_v0 = vadd.f32 %v13796_v31, %v13795_v26 }
 0x70b   : > { %6860 = vst [vmem:[%s12604_s1 + $0xe0] sm:$0xff] %v6828_v33  ;;  %v6698_v35 = vmul.f32 %v12964_v20, %v6663_v49  ;;  %7713 = vmatmul.f32.gmra.mxu0 %v8195_v23 }
 0x70c   : > { %7487 = vmatmul.f32.gmra.mxu2 %v7747_v59  ;;  %7826 = vmatmul.f32.gmra.mxu1 %v7750_v2 }
 0x70d   : > { %v6733_v10 = vadd.f32 %v12972_v50, %v6698_v35  ;;  %7600 = vmatmul.f32.gmra.mxu3 %v7524_v40 }
 0x70f   : > { %v6797_v45 = vadd.f32 %v6765_v44, %v6733_v10  ;;  %v7149_v3 = vpop.f32.mrf.mxu2  ;;  %v6767_v10 = vld [vmem:[%s8515_s10 + $0x111] sm:$0xff] }
 0x710   : > { %v6628_v54 = vpop.f32.mrf.mxu3  ;;  %v7169_v21 = vadd.f32 %v7149_v3, %v7053_v28 }
 0x711   : > { %v6829_v36 = vmax.f32 %v6797_v45, 0.0  ;;  %v6664_v39 = vadd.f32 %v6628_v54, %v13794_v16  ;;  %v7265_v9 = vpop.f32.mrf.mxu0 }
 0x712   : > { %v13069_v12 = vadd.f32 %v7262_v41, %v7169_v21  ;;  %v13071_v59 = vpop.f32.mrf.mxu1 }
 0x713   : > { %6861 = vst [vmem:[%s12604_s1 + $0xe8] sm:$0xff] %v6829_v36  ;;  %v6699_v27 = vmul.f32 %v12964_v20, %v6664_v39  ;;  %7716 = vmatmul.f32.gmra.mxu0 %v8195_v23 }
 0x714   : > { %7490 = vmatmul.f32.gmra.mxu2 %v7748_v47  ;;  %7829 = vmatmul.f32.gmra.mxu1 %v7751_v14 }
 0x715   : > { %v6734_v1 = vadd.f32 %v12972_v50, %v6699_v27  ;;  %7603 = vmatmul.f32.gmra.mxu3 %v7525_v17  ;;  %v7382_v17 = vadd.f32 %v12880_v46, %v12891_v62  ;;  %v7383_v46 = vadd.f32 %v12893_v13, %v12904_v5  ;;  %v7384_v13 = vadd.f32 %v12906_v37, %v12917_v58 }
 0x716   : > { %v7385_v37 = vadd.f32 %v12919_v29, %v12930_v43  ;;  %v7386_v29 = vadd.f32 %v12932_v8, %v12943_v22  ;;  %v7387_v8 = vadd.f32 %v12945_v52, %v12956_v42  ;;  %v7388_v52 = vadd.f32 %v12958_v25, %v12979_v53 }
 0x717   : > { %v6798_v33 = vadd.f32 %v6766_v38, %v6734_v1  ;;  %v7152_v48 = vpop.f32.mrf.mxu2  ;;  %v7881_v38 = vld [vmem:[%s8515_s10 + $0x119] sm:$0xff]  ;;  %v7389_v25 = vadd.f32 %v12981_v7, %v12992_v30  ;;  %v7390_v7 = vadd.f32 %v12994_v57, %v13005_v63  ;;  %v7391_v57 = vadd.f32 %v13007_v51, %v13019_v11 }
 0x718   : > { %v6631_v49 = vpop.f32.mrf.mxu3  ;;  %v7170_v41 = vadd.f32 %v7152_v48, %v7056_v0  ;;  %v7392_v51 = vadd.f32 %v13021_v32, %v13033_v55  ;;  %v7393_v32 = vadd.f32 %v13035_v19, %v13047_v18  ;;  %v7394_v19 = vadd.f32 %v13049_v61, %v13058_v24 }
 0x719   : > { %v6830_v40 = vmax.f32 %v6798_v33, 0.0  ;;  %v6665_v2 = vadd.f32 %v6631_v49, %v12864_v56  ;;  %v7672_v35 = vpop.f32.mrf.mxu0  ;;  %v7395_v61 = vadd.f32 %v13060_v6, %v13069_v12 }
 0x71a   : > { %v13080_v44 = vadd.f32 %v7265_v9, %v7170_v41  ;;  %v7785_v47 = vpop.f32.mrf.mxu1 }
 0x71b   : > { %6862 = vst [vmem:[%s12604_s1 + $0xf0] sm:$0xff] %v6830_v40  ;;  %v6700_v23 = vmul.f32 %v12964_v20, %v6665_v2 }
 0x71c   : > { %v7396_v6 = vadd.f32 %v13071_v59, %v13080_v44 }
 0x71d   : > { %v6735_v34 = vadd.f32 %v12972_v50, %v6700_v23 }
 0x71f   : > { %v6799_v28 = vadd.f32 %v6767_v10, %v6735_v34  ;;  %v7446_v45 = vpop.f32.mrf.mxu2 }
 0x720   : > { %v7494_v3 = vadd.f32 %v7446_v45, %v7381_v60  ;;  %v7559_v54 = vpop.f32.mrf.mxu3 }
 0x721   : > { %v6831_v56 = vmax.f32 %v6799_v28, 0.0  ;;  %v7675_v21 = vpop.f32.mrf.mxu0 }
 0x722   : > { %v7607_v36 = vadd.f32 %v7559_v54, %v7494_v3  ;;  %v7788_v16 = vpop.f32.mrf.mxu1 }
 0x723   : > { %6863 = vst [vmem:[%s12604_s1 + $0xf8] sm:$0xff] %v6831_v56 }
 0x724   : > { %v7720_v39 = vadd.f32 %v7672_v35, %v7607_v36 }
 0x726   : > { %v7833_v9 = vadd.f32 %v7785_v47, %v7720_v39  ;;  %v7882_v47 = vld [vmem:[%s8515_s10 + $0x121] sm:$0xff] }
 0x727   : > { %v7449_v14 = vpop.f32.mrf.mxu2 }
 0x728   : > { %v7849_v27 = vmul.f32 %v12964_v20, %v7833_v9  ;;  %v7495_v4 = vadd.f32 %v7449_v14, %v7382_v17  ;;  %v7562_v15 = vpop.f32.mrf.mxu3 }
 0x729   : > { %v7678_v1 = vpop.f32.mrf.mxu0 }
 0x72a   : > { %v7865_v26 = vadd.f32 %v12972_v50, %v7849_v27  ;;  %v7608_v31 = vadd.f32 %v7562_v15, %v7495_v4  ;;  %v7791_v0 = vpop.f32.mrf.mxu1 }
 0x72c   : > { %v7897_v33 = vadd.f32 %v7881_v38, %v7865_v26  ;;  %v7721_v48 = vadd.f32 %v7675_v21, %v7608_v31 }
 0x72e   : > { %v7913_v49 = vmax.f32 %v7897_v33, 0.0  ;;  %v7834_v41 = vadd.f32 %v7788_v16, %v7721_v48  ;;  %v7883_v16 = vld [vmem:[%s8515_s10 + $0x129] sm:$0xff] }
 0x72f   : > { %v7452_v62 = vpop.f32.mrf.mxu2 }
 0x730   : > { %7929 = vst [vmem:[%s12604_s1 + $0x100] sm:$0xff] %v7913_v49  ;;  %v7850_v40 = vmul.f32 %v12964_v20, %v7834_v41  ;;  %v7496_v2 = vadd.f32 %v7452_v62, %v7383_v46  ;;  %v7565_v35 = vpop.f32.mrf.mxu3 }
 0x731   : > { %v7681_v23 = vpop.f32.mrf.mxu0 }
 0x732   : > { %v7866_v10 = vadd.f32 %v12972_v50, %v7850_v40  ;;  %v7609_v34 = vadd.f32 %v7565_v35, %v7496_v2  ;;  %v7794_v60 = vpop.f32.mrf.mxu1 }
 0x734   : > { %v7898_v28 = vadd.f32 %v7882_v47, %v7866_v10  ;;  %v7722_v45 = vadd.f32 %v7678_v1, %v7609_v34  ;;  %v7885_v10 = vld [vmem:[%s8515_s10 + $0x139] sm:$0xff] }
 0x736   : > { %v7914_v3 = vmax.f32 %v7898_v28, 0.0  ;;  %v7835_v54 = vadd.f32 %v7791_v0, %v7722_v45  ;;  %v7884_v0 = vld [vmem:[%s8515_s10 + $0x131] sm:$0xff] }
 0x737   : > { %v7455_v5 = vpop.f32.mrf.mxu2 }
 0x738   : > { %7930 = vst [vmem:[%s12604_s1 + $0x108] sm:$0xff] %v7914_v3  ;;  %v7851_v56 = vmul.f32 %v12964_v20, %v7835_v54  ;;  %v7497_v21 = vadd.f32 %v7455_v5, %v7384_v13  ;;  %v7568_v36 = vpop.f32.mrf.mxu3 }
 0x739   : > { %v7684_v39 = vpop.f32.mrf.mxu0 }
 0x73a   : > { %v7867_v9 = vadd.f32 %v12972_v50, %v7851_v56  ;;  %v7610_v17 = vadd.f32 %v7568_v36, %v7497_v21  ;;  %v7797_v14 = vpop.f32.mrf.mxu1 }
 0x73c   : > { %v7899_v27 = vadd.f32 %v7883_v16, %v7867_v9  ;;  %v7723_v4 = vadd.f32 %v7681_v23, %v7610_v17  ;;  %v7886_v16 = vld [vmem:[%s8515_s10 + $0x141] sm:$0xff] }
 0x73e   : > { %v7915_v15 = vmax.f32 %v7899_v27, 0.0  ;;  %v7836_v38 = vadd.f32 %v7794_v60, %v7723_v4 }
 0x73f   : > { %v7458_v58 = vpop.f32.mrf.mxu2 }
 0x740   : > { %7931 = vst [vmem:[%s12604_s1 + $0x110] sm:$0xff] %v7915_v15  ;;  %v7852_v1 = vmul.f32 %v12964_v20, %v7836_v38  ;;  %v7498_v26 = vadd.f32 %v7458_v58, %v7385_v37  ;;  %v7571_v31 = vpop.f32.mrf.mxu3 }
 0x741   : > { %v7687_v33 = vpop.f32.mrf.mxu0 }
 0x742   : > { %v7868_v48 = vadd.f32 %v12972_v50, %v7852_v1  ;;  %v7611_v49 = vadd.f32 %v7571_v31, %v7498_v26  ;;  %v7800_v41 = vpop.f32.mrf.mxu1  ;;  %v7887_v26 = vld [vmem:[%s8515_s10 + $0x149] sm:$0xff] }
 0x744   : > { %v7900_v46 = vadd.f32 %v7884_v0, %v7868_v48  ;;  %v7724_v62 = vadd.f32 %v7684_v39, %v7611_v49 }
 0x746   : > { %v7916_v40 = vmax.f32 %v7900_v46, 0.0  ;;  %v7837_v2 = vadd.f32 %v7797_v14, %v7724_v62 }
 0x747   : > { %v7461_v43 = vpop.f32.mrf.mxu2 }
 0x748   : > { %7932 = vst [vmem:[%s12604_s1 + $0x118] sm:$0xff] %v7916_v40  ;;  %v7853_v35 = vmul.f32 %v12964_v20, %v7837_v2  ;;  %v7499_v47 = vadd.f32 %v7461_v43, %v7386_v29  ;;  %v7574_v23 = vpop.f32.mrf.mxu3  ;;  %v7888_v43 = vld [vmem:[%s8515_s10 + $0x151] sm:$0xff] }
 0x749   : > { %v7690_v34 = vpop.f32.mrf.mxu0 }
 0x74a   : > { %v7869_v60 = vadd.f32 %v12972_v50, %v7853_v35  ;;  %v7612_v28 = vadd.f32 %v7574_v23, %v7499_v47  ;;  %v7803_v45 = vpop.f32.mrf.mxu1 }
 0x74c   : > { %v7901_v3 = vadd.f32 %v7885_v10, %v7869_v60  ;;  %v7725_v54 = vadd.f32 %v7687_v33, %v7612_v28 }
 0x74e   : > { %v7917_v13 = vmax.f32 %v7901_v3, 0.0  ;;  %v7838_v5 = vadd.f32 %v7800_v41, %v7725_v54 }
 0x74f   : > { %v7464_v22 = vpop.f32.mrf.mxu2 }
 0x750   : > { %7933 = vst [vmem:[%s12604_s1 + $0x120] sm:$0xff] %v7917_v13  ;;  %v7854_v56 = vmul.f32 %v12964_v20, %v7838_v5  ;;  %v7500_v21 = vadd.f32 %v7464_v22, %v7387_v8  ;;  %v7577_v36 = vpop.f32.mrf.mxu3  ;;  %v7889_v5 = vld [vmem:[%s8515_s10 + $0x159] sm:$0xff] }
 0x751   : > { %v7693_v39 = vpop.f32.mrf.mxu0 }
 0x752   : > { %v7870_v9 = vadd.f32 %v12972_v50, %v7854_v56  ;;  %v7613_v17 = vadd.f32 %v7577_v36, %v7500_v21  ;;  %v7806_v14 = vpop.f32.mrf.mxu1 }
 0x754   : > { %v7902_v27 = vadd.f32 %v7886_v16, %v7870_v9  ;;  %v7726_v4 = vadd.f32 %v7690_v34, %v7613_v17 }
 0x756   : > { %v7918_v15 = vmax.f32 %v7902_v27, 0.0  ;;  %v7839_v38 = vadd.f32 %v7803_v45, %v7726_v4  ;;  %v7890_v4 = vld [vmem:[%s8515_s10 + $0x161] sm:$0xff] }
 0x757   : > { %v7467_v42 = vpop.f32.mrf.mxu2 }
 0x758   : > { %7934 = vst [vmem:[%s12604_s1 + $0x128] sm:$0xff] %v7918_v15  ;;  %v7855_v37 = vmul.f32 %v12964_v20, %v7839_v38  ;;  %v7501_v58 = vadd.f32 %v7467_v42, %v7388_v52  ;;  %v7580_v1 = vpop.f32.mrf.mxu3 }
 0x759   : > { %v7696_v31 = vpop.f32.mrf.mxu0 }
 0x75a   : > { %v7871_v0 = vadd.f32 %v12972_v50, %v7855_v37  ;;  %v7614_v33 = vadd.f32 %v7580_v1, %v7501_v58  ;;  %v7809_v48 = vpop.f32.mrf.mxu1 }
 0x75c   : > { %v7903_v49 = vadd.f32 %v7887_v26, %v7871_v0  ;;  %v7727_v41 = vadd.f32 %v7693_v39, %v7614_v33 }
 0x75e   : > { %v7919_v46 = vmax.f32 %v7903_v49, 0.0  ;;  %v7840_v62 = vadd.f32 %v7806_v14, %v7727_v41 }
 0x75f   : > { %v7470_v53 = vpop.f32.mrf.mxu2 }
 0x760   : > { %7935 = vst [vmem:[%s12604_s1 + $0x130] sm:$0xff] %v7919_v46  ;;  %v7856_v40 = vmul.f32 %v12964_v20, %v7840_v62  ;;  %v7502_v2 = vadd.f32 %v7470_v53, %v7389_v25  ;;  %v7583_v29 = vpop.f32.mrf.mxu3 }
 0x761   : > { %v7699_v35 = vpop.f32.mrf.mxu0 }
 0x762   : > { %v7872_v47 = vadd.f32 %v12972_v50, %v7856_v40  ;;  %v7615_v23 = vadd.f32 %v7583_v29, %v7502_v2  ;;  %v7812_v10 = vpop.f32.mrf.mxu1 }
 0x764   : > { %v7904_v34 = vadd.f32 %v7888_v43, %v7872_v47  ;;  %v7728_v60 = vadd.f32 %v7696_v31, %v7615_v23  ;;  %v7892_v47 = vld [vmem:[%s8515_s10 + $0x171] sm:$0xff] }
 0x766   : > { %v7920_v28 = vmax.f32 %v7904_v34, 0.0  ;;  %v7841_v45 = vadd.f32 %v7809_v48, %v7728_v60  ;;  %v7891_v48 = vld [vmem:[%s8515_s10 + $0x169] sm:$0xff] }
 0x767   : > { %v7473_v30 = vpop.f32.mrf.mxu2 }
 0x768   : > { %7936 = vst [vmem:[%s12604_s1 + $0x138] sm:$0xff] %v7920_v28  ;;  %v7857_v3 = vmul.f32 %v12964_v20, %v7841_v45  ;;  %v7503_v54 = vadd.f32 %v7473_v30, %v7390_v7  ;;  %v7586_v13 = vpop.f32.mrf.mxu3 }
 0x769   : > { %v7702_v8 = vpop.f32.mrf.mxu0 }
 0x76a   : > { %v7873_v22 = vadd.f32 %v12972_v50, %v7857_v3  ;;  %v7616_v56 = vadd.f32 %v7586_v13, %v7503_v54  ;;  %v7815_v21 = vpop.f32.mrf.mxu1 }
 0x76c   : > { %v7905_v36 = vadd.f32 %v7889_v5, %v7873_v22  ;;  %v7729_v16 = vadd.f32 %v7699_v35, %v7616_v56  ;;  %v7893_v5 = vld [vmem:[%s8515_s10 + $0x179] sm:$0xff] }
 0x76e   : > { %v7921_v39 = vmax.f32 %v7905_v36, 0.0  ;;  %v7842_v9 = vadd.f32 %v7812_v10, %v7729_v16 }
 0x76f   : > { %v7476_v63 = vpop.f32.mrf.mxu2 }
 0x770   : > { %7937 = vst [vmem:[%s12604_s1 + $0x140] sm:$0xff] %v7921_v39  ;;  %v7858_v17 = vmul.f32 %v12964_v20, %v7842_v9  ;;  %v7504_v14 = vadd.f32 %v7476_v63, %v7391_v57  ;;  %v7589_v27 = vpop.f32.mrf.mxu3 }
 0x771   : > { %v7705_v52 = vpop.f32.mrf.mxu0 }
 0x772   : > { %v7874_v15 = vadd.f32 %v12972_v50, %v7858_v17  ;;  %v7617_v38 = vadd.f32 %v7589_v27, %v7504_v14  ;;  %v7818_v58 = vpop.f32.mrf.mxu1  ;;  %v7894_v17 = vld [vmem:[%s8515_s10 + $0x181] sm:$0xff] }
 0x774   : > { %v7906_v42 = vadd.f32 %v7890_v4, %v7874_v15  ;;  %v7730_v37 = vadd.f32 %v7702_v8, %v7617_v38 }
 0x776   : > { %v7922_v1 = vmax.f32 %v7906_v42, 0.0  ;;  %v7843_v26 = vadd.f32 %v7815_v21, %v7730_v37 }
 0x777   : > { %v7479_v11 = vpop.f32.mrf.mxu2 }
 0x778   : > { %7938 = vst [vmem:[%s12604_s1 + $0x148] sm:$0xff] %v7922_v1  ;;  %v7859_v31 = vmul.f32 %v12964_v20, %v7843_v26  ;;  %v7505_v0 = vadd.f32 %v7479_v11, %v7392_v51  ;;  %v7592_v33 = vpop.f32.mrf.mxu3  ;;  %v7895_v26 = vld [vmem:[%s8515_s10 + $0x189] sm:$0xff] }
 0x779   : > { %v7708_v25 = vpop.f32.mrf.mxu0 }
 0x77a   : > { %v7875_v49 = vadd.f32 %v12972_v50, %v7859_v31  ;;  %v7618_v41 = vadd.f32 %v7592_v33, %v7505_v0  ;;  %v7821_v55 = vpop.f32.mrf.mxu1 }
 0x77c   : > { %v7907_v46 = vadd.f32 %v7891_v48, %v7875_v49  ;;  %v7731_v62 = vadd.f32 %v7705_v52, %v7618_v41  ;;  %v7896_v41 = vld [vmem:[%s8515_s10 + $0x191] sm:$0xff]  ;;  %s8306_s10 = scalar_lea.hbm %s13224_s7, 768 }
 0x77d   : > { %p8308_p9 = scmp.lt.s32.totalorder %s8306_s10, %s8302_s11 }
 0x77e   : > { %v7923_v53 = vmax.f32 %v7907_v46, 0.0  ;;  %v7844_v40 = vadd.f32 %v7818_v58, %v7731_v62 }
 0x77f   : > { %v7482_v2 = vpop.f32.mrf.mxu2  ;;  %p8309_p2 = por %p8308_p9, %p8307_p11 }
 0x780   : > { %7939 = vst [vmem:[%s12604_s1 + $0x150] sm:$0xff] %v7923_v53  ;;  %v7860_v29 = vmul.f32 %v12964_v20, %v7844_v40  ;;  %v7506_v43 = vadd.f32 %v7482_v2, %v7393_v32  ;;  %v7595_v35 = vpop.f32.mrf.mxu3 }
 0x781   : > { %v7711_v28 = vpop.f32.mrf.mxu0  ;;  %p8310_p10 = pnand %p8309_p2, %p8305_p8 }
 0x782   : > { %v7876_v23 = vadd.f32 %v12972_v50, %v7860_v29  ;;  %v7619_v10 = vadd.f32 %v7595_v35, %v7506_v43  ;;  %v7824_v30 = vpop.f32.mrf.mxu1 }
 0x784   : > { %v7908_v34 = vadd.f32 %v7892_v47, %v7876_v23  ;;  %v7732_v60 = vadd.f32 %v7708_v25, %v7619_v10 }
 0x786   : > { %v7924_v45 = vmax.f32 %v7908_v34, 0.0  ;;  %v7845_v7 = vadd.f32 %v7821_v55, %v7732_v60 }
 0x787   : > { %v7485_v18 = vpop.f32.mrf.mxu2 }
 0x788   : > { %7940 = vst [vmem:[%s12604_s1 + $0x158] sm:$0xff] %v7924_v45  ;;  %v7861_v3 = vmul.f32 %v12964_v20, %v7845_v7  ;;  %v7507_v54 = vadd.f32 %v7485_v18, %v7394_v19  ;;  %v7598_v13 = vpop.f32.mrf.mxu3 }
 0x789   : > { %v7714_v39 = vpop.f32.mrf.mxu0 }
 0x78a   : > { %v7877_v8 = vadd.f32 %v12972_v50, %v7861_v3  ;;  %v7620_v22 = vadd.f32 %v7598_v13, %v7507_v54  ;;  %v7827_v14 = vpop.f32.mrf.mxu1 }
 0x78c   : > { %v7909_v56 = vadd.f32 %v7893_v5, %v7877_v8  ;;  %v7733_v21 = vadd.f32 %v7711_v28, %v7620_v22 }
 0x78e   : > { %v7925_v36 = vmax.f32 %v7909_v56, 0.0  ;;  %v7846_v16 = vadd.f32 %v7824_v30, %v7733_v21 }
 0x78f   : > { %v7488_v24 = vpop.f32.mrf.mxu2 }
 0x790   : > { %7941 = vst [vmem:[%s12604_s1 + $0x160] sm:$0xff] %v7925_v36  ;;  %v7862_v9 = vmul.f32 %v12964_v20, %v7846_v16  ;;  %v7508_v57 = vadd.f32 %v7488_v24, %v7395_v61  ;;  %v7601_v63 = vpop.f32.mrf.mxu3 }
 0x791   : > { %v7717_v51 = vpop.f32.mrf.mxu0 }
 0x792   : > { %v7878_v27 = vadd.f32 %v12972_v50, %v7862_v9  ;;  %v7621_v4 = vadd.f32 %v7601_v63, %v7508_v57  ;;  %v7830_v0 = vpop.f32.mrf.mxu1 }
 0x794   : > { %v7910_v15 = vadd.f32 %v7894_v17, %v7878_v27  ;;  %v7734_v38 = vadd.f32 %v7714_v39, %v7621_v4 }
 0x796   : > { %v7926_v52 = vmax.f32 %v7910_v15, 0.0  ;;  %v7847_v42 = vadd.f32 %v7827_v14, %v7734_v38 }
 0x797   : > { %v7491_v12 = vpop.f32.mrf.mxu2 }
 0x798   : > { %7942 = vst [vmem:[%s12604_s1 + $0x168] sm:$0xff] %v7926_v52  ;;  %v7863_v37 = vmul.f32 %v12964_v20, %v7847_v42  ;;  %v7509_v58 = vadd.f32 %v7491_v12, %v7396_v6  ;;  %v7604_v1 = vpop.f32.mrf.mxu3 }
 0x79a   : > { %v7879_v11 = vadd.f32 %v12972_v50, %v7863_v37  ;;  %v7622_v31 = vadd.f32 %v7604_v1, %v7509_v58 }
 0x79c   : > { %v7911_v33 = vadd.f32 %v7895_v26, %v7879_v11  ;;  %v7735_v48 = vadd.f32 %v7717_v51, %v7622_v31 }
 0x79e   : > { %v7927_v59 = vmax.f32 %v7911_v33, 0.0  ;;  %v7848_v44 = vadd.f32 %v7830_v0, %v7735_v48 }
 0x7a0   : > { %7943 = vst [vmem:[%s12604_s1 + $0x170] sm:$0xff] %v7927_v59  ;;  %v7864_v49 = vmul.f32 %v12964_v20, %v7848_v44 }
 0x7a2   : > { %v7880_v46 = vadd.f32 %v12972_v50, %v7864_v49 }
 0x7a4   : > { %v7912_v62 = vadd.f32 %v7896_v41, %v7880_v46 }
 0x7a6   : > { %v7928_v25 = vmax.f32 %v7912_v62, 0.0 }
 0x7a8   : > { %7944 = vst [vmem:[%s12604_s1 + $0x178] sm:$0xff] %v7928_v25 }
 0x7a9   : > { %8313 = shalt.err (!%p8310_p10)
}
 0x7aa   : > { %s8364_s4 = smov 128   ;;  %s8365_s1 = smov 8  }
 0x7ab   : > { %8112 = dma.vmem_to_hbm [thread:$0]  (%p8478_p3), %s7959_s16, 6144, %s7961_s17, %s7946_s28, %s8364_s4, %s8364_s4, %s8365_s1  }
 0x7ac PF: > { %s7975_s18 = sand.u32 1, %s8344_s24   ;;  %p13797_p12 = scmp.ge.s32.totalorder %s8356_s27, 2 }
 0x7ad   : > { %s7976_s15 = scalar_lea.sflag [#allocation5], %s7975_s18 }
 0x7ae   : > { %p8126_p13 = pnand %p13797_p12, %p8441_p6 }
 0x7b0   : > { %p8127_p0 = pneg %p8126_p13 }
 0x7b2   : > { %8339 = dma.done.wait (%p8127_p0), %s7976_s15, 6144  }
 0x7b3   : > { %8341 = vsyncadd (%p8127_p0), %s7976_s15, 4294961152  ;;  %s13798_s20 = sld [smem:[#allocation13_spill]]  ;;  %p21_p5 = scmp.ge.s32.totalorder %s8468_s22, 4  }
 0x7b4   : > { %s13799_s24 = smov %s8348_s25  ;;  %s13800_s25 = smov %s8352_s26 }
 0x7b5   : > { %s13802_s27 = smov %s8468_s22  ;;  %23 = sbr.rel (!%p21_p5) target bundleno = 9 (0x9), region = 117 }
 0x7b9   : > { %s13801_s26 = smov %s13798_s20 }
 0x7ba   :  { %7982 = vsyncpa [#allocation4], 1 }
 0x7bb   :  { %7984 = vsyncpa [#allocation4 + $0x1], 1 }
 0x7bc   :  { %7985 = vsyncpa [#allocation7], 1 }
 0x7bd   :  { %7986 = vsyncpa [#allocation5], 1 }
 0x7be   :  { %7988 = vsyncpa [#allocation5 + $0x1], 1 }

</bundles_post_ra>
